<compile_context>
chip_gen: v7x
topology: tpu7x:2x2x1
jax: 0.10.0
libtpu: 0.0.40
codegen_flags: <defaults>
</compile_context>

<pallas_src>
import functools

import jax
import jax.numpy as jnp
from jax.experimental import pallas as pl
from jax.experimental.pallas import tpu as pltpu

EPS = 1e-5  # nn.GroupNorm default


# ----------------------------------------------------------------------------
# Fused kernel: conv (tap accumulation) + bias + ReLU + GroupNorm [+ mean pool]
# ----------------------------------------------------------------------------
def _conv_relu_gn_kernel(x_ref, w_ref, b_ref, g_ref, be_ref, gm_ref, o_ref,
                         *, ksize, hout, wout, pool):
    bt = x_ref.shape[0]
    cin = x_ref.shape[3]
    cout = w_ref.shape[-1]
    hw = hout * wout

    # ---- convolution: accumulate ksize*ksize taps on the MXU (bf16 in, f32 acc) ----
    xv = x_ref[...].astype(jnp.float32)                      # one load of the block
    acc = None
    for ky in range(ksize):
        for kx in range(ksize):
            tap = xv[:, ky:ky + hout, kx:kx + wout, :]       # (bt, hout, wout, cin)
            tap2 = tap.reshape(bt * hw, cin).astype(jnp.bfloat16)
            contrib = jnp.dot(tap2, w_ref[ky * ksize + kx],
                              preferred_element_type=jnp.float32)
            acc = contrib if acc is None else acc + contrib  # (bt*hw, cout) f32

    # ---- bias + ReLU -----------------------------------------------------------------
    y = jnp.maximum(acc + b_ref[...], 0.0).reshape(bt, hw, cout)

    # ---- GroupNorm (per sample, f32, two-pass centered statistics) ---------------------
    # gm_ref is the (cout, cout) group-averaging matrix: 1/(hw*cg) for channels in the
    # same group, 0 otherwise; `sums @ gm` broadcasts the group mean/var to every channel.
    mean = jnp.dot(jnp.sum(y, axis=1), gm_ref[...],
                   preferred_element_type=jnp.float32)       # (bt, cout)
    yc = y - mean[:, None, :]
    var = jnp.dot(jnp.sum(yc * yc, axis=1), gm_ref[...],
                  preferred_element_type=jnp.float32)        # (bt, cout)
    scale = jax.lax.rsqrt(var + EPS) * g_ref[...]            # (bt, cout)
    out = yc * scale[:, None, :] + be_ref[...]               # (bt, hw, cout) f32

    if pool:
        # fused AdaptiveAvgPool2d((1,1)) + view(N, -1) for the last layer
        o_ref[...] = jnp.mean(out, axis=1).astype(o_ref.dtype)             # (bt, cout)
    else:
        o_ref[...] = out.reshape(bt, hout, wout, cout).astype(o_ref.dtype)


def fused_conv_relu_gn(x_sp, w_taps, bias, gamma, beta, *, ksize, hout, wout,
                       groups=8, pool=False, batch_tile=8):
    """x_sp:    (N, hout+ksize-1.., wout+ksize-1.., Cin) bf16 spatially-padded input.
       w_taps:  (ksize*ksize, Cin, Cout) bf16 per-tap weights.
       Returns GroupNorm(ReLU(conv(x))) as (N, hout, wout, Cout) bf16, or its spatial
       mean (N, Cout) f32 when pool=True."""
    n, hp, wp, cin = x_sp.shape
    kt, wcin, cout = w_taps.shape
    assert kt == ksize * ksize and wcin == cin
    assert hp >= hout + ksize - 1 and wp >= wout + ksize - 1

    bt = max(1, min(batch_tile, n))
    while n % bt:
        bt -= 1

    cg = cout // groups
    gid = jnp.arange(cout) // cg
    gmat = (gid[:, None] == gid[None, :]).astype(jnp.float32) / float(hout * wout * cg)

    kernel = functools.partial(_conv_relu_gn_kernel, ksize=ksize,
                               hout=hout, wout=wout, pool=pool)
    if pool:
        out_shape = jax.ShapeDtypeStruct((n, cout), jnp.float32)
        out_spec = pl.BlockSpec((bt, cout), lambda i: (i, 0))
    else:
        out_shape = jax.ShapeDtypeStruct((n, hout, wout, cout), jnp.bfloat16)
        out_spec = pl.BlockSpec((bt, hout, wout, cout), lambda i: (i, 0, 0, 0))

    return pl.pallas_call(
        kernel,
        out_shape=out_shape,
        grid=(n // bt,),
        in_specs=[
            # batch-tiled activation block (pipelined / double-buffered over the grid)
            pl.BlockSpec((bt, hp, wp, cin), lambda i: (i, 0, 0, 0)),
            # weights / bias / gamma / beta / group matrix stay resident in VMEM
            pl.BlockSpec((kt, cin, cout), lambda i: (0, 0, 0)),
            pl.BlockSpec((1, cout), lambda i: (0, 0)),
            pl.BlockSpec((1, cout), lambda i: (0, 0)),
            pl.BlockSpec((1, cout), lambda i: (0, 0)),
            pl.BlockSpec((cout, cout), lambda i: (0, 0)),
        ],
        out_specs=out_spec,
        compiler_params=pltpu.CompilerParams(
            dimension_semantics=("parallel",)),
    )(x_sp, w_taps,
      bias.reshape(1, cout).astype(jnp.float32),
      gamma.reshape(1, cout).astype(jnp.float32),
      beta.reshape(1, cout).astype(jnp.float32),
      gmat)


# ----------------------------------------------------------------------------
# Plain-JAX glue: padding, stride-2 -> phase-packed stride-1, weight repacking
# ----------------------------------------------------------------------------
def _space_to_phase(x, hout, wout):
    """Rewrites a stride-2 3x3 conv input as a stride-1 2x2 conv input: pad by 1, then
    stack the four (row, col) parity phases along channels -> (N, hout+1, wout+1, 4*C)."""
    n, h, w, c = x.shape
    hp, wp = 2 * (hout + 1), 2 * (wout + 1)
    xp = jnp.pad(x, ((0, 0), (1, hp - h - 1), (1, wp - w - 1), (0, 0)))
    phases = [xp[:, p::2, q::2, :] for p in (0, 1) for q in (0, 1)]
    return jnp.concatenate(phases, axis=-1)


def _taps_3x3(w_oihw):
    """(Cout, Cin, 3, 3) -> (9, Cin, Cout) bf16, tap index = ky*3 + kx."""
    cout, cin = w_oihw.shape[0], w_oihw.shape[1]
    return jnp.transpose(w_oihw, (2, 3, 1, 0)).reshape(9, cin, cout).astype(jnp.bfloat16)


def _taps_3x3_stride2(w_oihw):
    """Stride-2 3x3 conv weights -> equivalent stride-1 2x2 conv weights over the
    phase-packed input: (4, 4*Cin, Cout) bf16, tap index = a*2 + b."""
    w = jnp.transpose(w_oihw, (2, 3, 1, 0))          # (3, 3, Cin, Cout)
    _, _, cin, cout = w.shape
    wr = jnp.zeros((2, 2, 4, cin, cout), w.dtype)
    for a in (0, 1):
        for b in (0, 1):
            for p in (0, 1):
                for q in (0, 1):
                    ky, kx = 2 * a + p, 2 * b + q
                    if ky < 3 and kx < 3:
                        wr = wr.at[a, b, 2 * p + q].set(w[ky, kx])
    return wr.reshape(4, 4 * cin, cout).astype(jnp.bfloat16)


def prepare_params(p):
    """Convert PyTorch-layout parameters into the kernel-side (per-tap, bf16) format."""
    kp = dict(p)
    kp["w1t"] = _taps_3x3(p["w1"])
    kp["w2t"] = _taps_3x3_stride2(p["w2"])
    kp["w3t"] = _taps_3x3(p["w3"])
    kp["w4t"] = _taps_3x3(p["w4"])
    return kp


# ----------------------------------------------------------------------------
# Full forward (equivalent to MNIST_CNN.forward), NCHW in -> (N, 128) out
# ----------------------------------------------------------------------------
def mnist_cnn_forward(x_nchw, p, *, batch_tile=8):
    x = jnp.transpose(x_nchw, (0, 2, 3, 1)).astype(jnp.bfloat16)   # NCHW -> NHWC, bf16
    n, h, w, _ = x.shape

    # conv1 (3x3, stride 1) + ReLU + GroupNorm(8, 64)
    xp = jnp.pad(x, ((0, 0), (1, 1), (1, 1), (0, 0)))
    x = fused_conv_relu_gn(xp, p["w1t"], p["b1"], p["g0"], p["be0"],
                           ksize=3, hout=h, wout=w, batch_tile=batch_tile)

    # conv2 (3x3, stride 2) + ReLU + GroupNorm(8, 128), as phase-packed 2x2 stride-1 conv
    h2, w2 = (h - 1) // 2 + 1, (w - 1) // 2 + 1
    xr = _space_to_phase(x, h2, w2)
    x = fused_conv_relu_gn(xr, p["w2t"], p["b2"], p["g1"], p["be1"],
                           ksize=2, hout=h2, wout=w2, batch_tile=batch_tile)

    # conv3 (3x3, stride 1) + ReLU + GroupNorm(8, 128)
    xp = jnp.pad(x, ((0, 0), (1, 1), (1, 1), (0, 0)))
    x = fused_conv_relu_gn(xp, p["w3t"], p["b3"], p["g2"], p["be2"],
                           ksize=3, hout=h2, wout=w2, batch_tile=batch_tile)

    # conv4 (3x3, stride 1) + ReLU + GroupNorm(8, 128) + fused global mean pool
    xp = jnp.pad(x, ((0, 0), (1, 1), (1, 1), (0, 0)))
    return fused_conv_relu_gn(xp, p["w4t"], p["b4"], p["g3"], p["be3"],
                              ksize=3, hout=h2, wout=w2, pool=True,
                              batch_tile=batch_tile)   # (N, 128); nn.Identity is a no-op


# ----------------------------------------------------------------------------
# Pure-JAX reference (for correctness check only)
# ----------------------------------------------------------------------------
def reference_forward(x_nchw, p):
    def conv(x, w, b, stride):
        y = jax.lax.conv_general_dilated(
            x, w, window_strides=(stride, stride), padding=((1, 1), (1, 1)),
            dimension_numbers=("NCHW", "OIHW", "NCHW"))
        return y + b[None, :, None, None]

    def gn(x, gamma, beta, groups=8):
        n, c, h, w = x.shape
        xg = x.reshape(n, groups, c // groups, h, w)
        mean = xg.mean(axis=(2, 3, 4), keepdims=True)
        var = xg.var(axis=(2, 3, 4), keepdims=True)
        xn = ((xg - mean) / jnp.sqrt(var + EPS)).reshape(n, c, h, w)
        return xn * gamma[None, :, None, None] + beta[None, :, None, None]

    x = gn(jax.nn.relu(conv(x_nchw, p["w1"], p["b1"], 1)), p["g0"], p["be0"])
    x = gn(jax.nn.relu(conv(x, p["w2"], p["b2"], 2)), p["g1"], p["be1"])
    x = gn(jax.nn.relu(conv(x, p["w3"], p["b3"], 1)), p["g2"], p["be2"])
    x = gn(jax.nn.relu(conv(x, p["w4"], p["b4"], 1)), p["g3"], p["be3"])
    return x.mean(axis=(2, 3))


def init_params(key, c_in):
    ks = jax.random.split(key, 12)

    def w(k, shape, scale=0.05):
        return scale * jax.random.normal(k, shape, jnp.float32)

    p = {
        "w1": w(ks[0], (64, c_in, 3, 3)),  "b1": w(ks[1], (64,)),
        "w2": w(ks[2], (128, 64, 3, 3)),   "b2": w(ks[3], (128,)),
        "w3": w(ks[4], (128, 128, 3, 3)),  "b3": w(ks[5], (128,)),
        "w4": w(ks[6], (128, 128, 3, 3)),  "b4": w(ks[7], (128,)),
        "g0": 1.0 + 0.1 * jax.random.normal(ks[8], (64,), jnp.float32),
        "be0": 0.1 * jax.random.normal(ks[9], (64,), jnp.float32),
        "g1": 1.0 + 0.1 * jax.random.normal(ks[10], (128,), jnp.float32),
        "be1": 0.1 * jax.random.normal(ks[11], (128,), jnp.float32),
        "g2": jnp.ones((128,), jnp.float32),
        "be2": jnp.zeros((128,), jnp.float32),
        "g3": jnp.ones((128,), jnp.float32),
        "be3": jnp.zeros((128,), jnp.float32),
    }
    return p


if __name__ == "__main__":
    key = jax.random.PRNGKey(0)
    kx, kp = jax.random.split(key)
    # small MNIST-like input (PyTorch NCHW): batch=2, channels=4, 16x16 spatial
    x = jax.random.normal(kx, (2, 4, 16, 16), jnp.float32)
    params = init_params(kp, c_in=4)
    kparams = prepare_params(params)

    fwd = jax.jit(mnist_cnn_forward)
    out = jax.block_until_ready(fwd(x, kparams))
    assert out.shape == (2, 128), out.shape

    ref = reference_forward(x, params)
    max_err = float(jnp.max(jnp.abs(out - ref)))
    # bf16 activations/weights into the MXU; accumulation + GroupNorm stats are f32.
    assert max_err < 5e-2, f"mismatch vs reference: {max_err}"

    print("KERNEL_OK")
</pallas_src>

<mosaic_0001>
module attributes {stable_mosaic.version = 11 : i64} {
  func.func @_conv_relu_gn_kernel(%arg0: i32, %arg1: memref<2x18x18x4xbf16, #tpu.memory_space<vmem>>, %arg2: memref<9x4x64xbf16, #tpu.memory_space<vmem>>, %arg3: memref<1x64xf32, #tpu.memory_space<vmem>>, %arg4: memref<1x64xf32, #tpu.memory_space<vmem>>, %arg5: memref<1x64xf32, #tpu.memory_space<vmem>>, %arg6: memref<64x64xf32, #tpu.memory_space<vmem>>, %arg7: memref<2x16x16x64xbf16, #tpu.memory_space<vmem>>) attributes {dimension_semantics = [#tpu.dimension_semantics<parallel>], iteration_bounds = array<i64: 1>, scalar_prefetch = 0 : i64, scratch_operands = 0 : i64, tpu.core_type = #tpu.core_type<tc>, window_params = [{transform_indices = @transform_0, window_bounds = array<i64: 2, 18, 18, 4>}, {pipeline_mode = #tpu.pipeline_mode<synchronous>, transform_indices = @transform_1, window_bounds = array<i64: 9, 4, 64>}, {pipeline_mode = #tpu.pipeline_mode<synchronous>, transform_indices = @transform_2, window_bounds = array<i64: 1, 64>}, {pipeline_mode = #tpu.pipeline_mode<synchronous>, transform_indices = @transform_3, window_bounds = array<i64: 1, 64>}, {pipeline_mode = #tpu.pipeline_mode<synchronous>, transform_indices = @transform_4, window_bounds = array<i64: 1, 64>}, {pipeline_mode = #tpu.pipeline_mode<synchronous>, transform_indices = @transform_5, window_bounds = array<i64: 64, 64>}, {transform_indices = @transform_6, window_bounds = array<i64: 2, 16, 16, 64>}]} {
    %c0 = arith.constant 0 : index
    %c0_0 = arith.constant 0 : index
    %c0_1 = arith.constant 0 : index
    %c0_2 = arith.constant 0 : index
    %0 = vector.load %arg1[%c0, %c0_0, %c0_1, %c0_2] : memref<2x18x18x4xbf16, #tpu.memory_space<vmem>>, vector<2x18x18x4xbf16>
    %1 = arith.extf %0 : vector<2x18x18x4xbf16> to vector<2x18x18x4xf32>
    %2 = vector.extract_strided_slice %1 {offsets = [0, 0, 0, 0], sizes = [2, 16, 16, 4], strides = [1, 1, 1, 1]} : vector<2x18x18x4xf32> to vector<2x16x16x4xf32>
    %3 = vector.shape_cast %2 : vector<2x16x16x4xf32> to vector<512x4xf32>
    %4 = arith.truncf %3 : vector<512x4xf32> to vector<512x4xbf16>
    %c0_3 = arith.constant 0 : index
    %c0_4 = arith.constant 0 : index
    %c0_5 = arith.constant 0 : index
    %5 = vector.load %arg2[%c0_3, %c0_4, %c0_5] : memref<9x4x64xbf16, #tpu.memory_space<vmem>>, vector<1x4x64xbf16>
    %6 = vector.shape_cast %5 : vector<1x4x64xbf16> to vector<4x64xbf16>
    %cst = arith.constant dense<0.000000e+00> : vector<512x64xf32>
    %7 = tpu.matmul %4, %6, %cst {dimension_numbers = #tpu.dot_dimension_numbers<[1], [0], [0], [1], [0, 0, 1, 1], [], []>} : vector<512x4xbf16>, vector<4x64xbf16>, vector<512x64xf32> -> vector<512x64xf32>
    %8 = vector.extract_strided_slice %1 {offsets = [0, 0, 1, 0], sizes = [2, 16, 16, 4], strides = [1, 1, 1, 1]} : vector<2x18x18x4xf32> to vector<2x16x16x4xf32>
    %9 = vector.shape_cast %8 : vector<2x16x16x4xf32> to vector<512x4xf32>
    %10 = arith.truncf %9 : vector<512x4xf32> to vector<512x4xbf16>
    %c1 = arith.constant 1 : index
    %c0_6 = arith.constant 0 : index
    %c0_7 = arith.constant 0 : index
    %11 = vector.load %arg2[%c1, %c0_6, %c0_7] : memref<9x4x64xbf16, #tpu.memory_space<vmem>>, vector<1x4x64xbf16>
    %12 = vector.shape_cast %11 : vector<1x4x64xbf16> to vector<4x64xbf16>
    %cst_8 = arith.constant dense<0.000000e+00> : vector<512x64xf32>
    %13 = tpu.matmul %10, %12, %cst_8 {dimension_numbers = #tpu.dot_dimension_numbers<[1], [0], [0], [1], [0, 0, 1, 1], [], []>} : vector<512x4xbf16>, vector<4x64xbf16>, vector<512x64xf32> -> vector<512x64xf32>
    %14 = arith.addf %7, %13 : vector<512x64xf32>
    %15 = vector.extract_strided_slice %1 {offsets = [0, 0, 2, 0], sizes = [2, 16, 16, 4], strides = [1, 1, 1, 1]} : vector<2x18x18x4xf32> to vector<2x16x16x4xf32>
    %16 = vector.shape_cast %15 : vector<2x16x16x4xf32> to vector<512x4xf32>
    %17 = arith.truncf %16 : vector<512x4xf32> to vector<512x4xbf16>
    %c2 = arith.constant 2 : index
    %c0_9 = arith.constant 0 : index
    %c0_10 = arith.constant 0 : index
    %18 = vector.load %arg2[%c2, %c0_9, %c0_10] : memref<9x4x64xbf16, #tpu.memory_space<vmem>>, vector<1x4x64xbf16>
    %19 = vector.shape_cast %18 : vector<1x4x64xbf16> to vector<4x64xbf16>
    %cst_11 = arith.constant dense<0.000000e+00> : vector<512x64xf32>
    %20 = tpu.matmul %17, %19, %cst_11 {dimension_numbers = #tpu.dot_dimension_numbers<[1], [0], [0], [1], [0, 0, 1, 1], [], []>} : vector<512x4xbf16>, vector<4x64xbf16>, vector<512x64xf32> -> vector<512x64xf32>
    %21 = arith.addf %14, %20 : vector<512x64xf32>
    %22 = vector.extract_strided_slice %1 {offsets = [0, 1, 0, 0], sizes = [2, 16, 16, 4], strides = [1, 1, 1, 1]} : vector<2x18x18x4xf32> to vector<2x16x16x4xf32>
    %23 = vector.shape_cast %22 : vector<2x16x16x4xf32> to vector<512x4xf32>
    %24 = arith.truncf %23 : vector<512x4xf32> to vector<512x4xbf16>
    %c3 = arith.constant 3 : index
    %c0_12 = arith.constant 0 : index
    %c0_13 = arith.constant 0 : index
    %25 = vector.load %arg2[%c3, %c0_12, %c0_13] : memref<9x4x64xbf16, #tpu.memory_space<vmem>>, vector<1x4x64xbf16>
    %26 = vector.shape_cast %25 : vector<1x4x64xbf16> to vector<4x64xbf16>
    %cst_14 = arith.constant dense<0.000000e+00> : vector<512x64xf32>
    %27 = tpu.matmul %24, %26, %cst_14 {dimension_numbers = #tpu.dot_dimension_numbers<[1], [0], [0], [1], [0, 0, 1, 1], [], []>} : vector<512x4xbf16>, vector<4x64xbf16>, vector<512x64xf32> -> vector<512x64xf32>
    %28 = arith.addf %21, %27 : vector<512x64xf32>
    %29 = vector.extract_strided_slice %1 {offsets = [0, 1, 1, 0], sizes = [2, 16, 16, 4], strides = [1, 1, 1, 1]} : vector<2x18x18x4xf32> to vector<2x16x16x4xf32>
    %30 = vector.shape_cast %29 : vector<2x16x16x4xf32> to vector<512x4xf32>
    %31 = arith.truncf %30 : vector<512x4xf32> to vector<512x4xbf16>
    %c4 = arith.constant 4 : index
    %c0_15 = arith.constant 0 : index
    %c0_16 = arith.constant 0 : index
    %32 = vector.load %arg2[%c4, %c0_15, %c0_16] : memref<9x4x64xbf16, #tpu.memory_space<vmem>>, vector<1x4x64xbf16>
    %33 = vector.shape_cast %32 : vector<1x4x64xbf16> to vector<4x64xbf16>
    %cst_17 = arith.constant dense<0.000000e+00> : vector<512x64xf32>
    %34 = tpu.matmul %31, %33, %cst_17 {dimension_numbers = #tpu.dot_dimension_numbers<[1], [0], [0], [1], [0, 0, 1, 1], [], []>} : vector<512x4xbf16>, vector<4x64xbf16>, vector<512x64xf32> -> vector<512x64xf32>
    %35 = arith.addf %28, %34 : vector<512x64xf32>
    %36 = vector.extract_strided_slice %1 {offsets = [0, 1, 2, 0], sizes = [2, 16, 16, 4], strides = [1, 1, 1, 1]} : vector<2x18x18x4xf32> to vector<2x16x16x4xf32>
    %37 = vector.shape_cast %36 : vector<2x16x16x4xf32> to vector<512x4xf32>
    %38 = arith.truncf %37 : vector<512x4xf32> to vector<512x4xbf16>
    %c5 = arith.constant 5 : index
    %c0_18 = arith.constant 0 : index
    %c0_19 = arith.constant 0 : index
    %39 = vector.load %arg2[%c5, %c0_18, %c0_19] : memref<9x4x64xbf16, #tpu.memory_space<vmem>>, vector<1x4x64xbf16>
    %40 = vector.shape_cast %39 : vector<1x4x64xbf16> to vector<4x64xbf16>
    %cst_20 = arith.constant dense<0.000000e+00> : vector<512x64xf32>
    %41 = tpu.matmul %38, %40, %cst_20 {dimension_numbers = #tpu.dot_dimension_numbers<[1], [0], [0], [1], [0, 0, 1, 1], [], []>} : vector<512x4xbf16>, vector<4x64xbf16>, vector<512x64xf32> -> vector<512x64xf32>
    %42 = arith.addf %35, %41 : vector<512x64xf32>
    %43 = vector.extract_strided_slice %1 {offsets = [0, 2, 0, 0], sizes = [2, 16, 16, 4], strides = [1, 1, 1, 1]} : vector<2x18x18x4xf32> to vector<2x16x16x4xf32>
    %44 = vector.shape_cast %43 : vector<2x16x16x4xf32> to vector<512x4xf32>
    %45 = arith.truncf %44 : vector<512x4xf32> to vector<512x4xbf16>
    %c6 = arith.constant 6 : index
    %c0_21 = arith.constant 0 : index
    %c0_22 = arith.constant 0 : index
    %46 = vector.load %arg2[%c6, %c0_21, %c0_22] : memref<9x4x64xbf16, #tpu.memory_space<vmem>>, vector<1x4x64xbf16>
    %47 = vector.shape_cast %46 : vector<1x4x64xbf16> to vector<4x64xbf16>
    %cst_23 = arith.constant dense<0.000000e+00> : vector<512x64xf32>
    %48 = tpu.matmul %45, %47, %cst_23 {dimension_numbers = #tpu.dot_dimension_numbers<[1], [0], [0], [1], [0, 0, 1, 1], [], []>} : vector<512x4xbf16>, vector<4x64xbf16>, vector<512x64xf32> -> vector<512x64xf32>
    %49 = arith.addf %42, %48 : vector<512x64xf32>
    %50 = vector.extract_strided_slice %1 {offsets = [0, 2, 1, 0], sizes = [2, 16, 16, 4], strides = [1, 1, 1, 1]} : vector<2x18x18x4xf32> to vector<2x16x16x4xf32>
    %51 = vector.shape_cast %50 : vector<2x16x16x4xf32> to vector<512x4xf32>
    %52 = arith.truncf %51 : vector<512x4xf32> to vector<512x4xbf16>
    %c7 = arith.constant 7 : index
    %c0_24 = arith.constant 0 : index
    %c0_25 = arith.constant 0 : index
    %53 = vector.load %arg2[%c7, %c0_24, %c0_25] : memref<9x4x64xbf16, #tpu.memory_space<vmem>>, vector<1x4x64xbf16>
    %54 = vector.shape_cast %53 : vector<1x4x64xbf16> to vector<4x64xbf16>
    %cst_26 = arith.constant dense<0.000000e+00> : vector<512x64xf32>
    %55 = tpu.matmul %52, %54, %cst_26 {dimension_numbers = #tpu.dot_dimension_numbers<[1], [0], [0], [1], [0, 0, 1, 1], [], []>} : vector<512x4xbf16>, vector<4x64xbf16>, vector<512x64xf32> -> vector<512x64xf32>
    %56 = arith.addf %49, %55 : vector<512x64xf32>
    %57 = vector.extract_strided_slice %1 {offsets = [0, 2, 2, 0], sizes = [2, 16, 16, 4], strides = [1, 1, 1, 1]} : vector<2x18x18x4xf32> to vector<2x16x16x4xf32>
    %58 = vector.shape_cast %57 : vector<2x16x16x4xf32> to vector<512x4xf32>
    %59 = arith.truncf %58 : vector<512x4xf32> to vector<512x4xbf16>
    %c8 = arith.constant 8 : index
    %c0_27 = arith.constant 0 : index
    %c0_28 = arith.constant 0 : index
    %60 = vector.load %arg2[%c8, %c0_27, %c0_28] : memref<9x4x64xbf16, #tpu.memory_space<vmem>>, vector<1x4x64xbf16>
    %61 = vector.shape_cast %60 : vector<1x4x64xbf16> to vector<4x64xbf16>
    %cst_29 = arith.constant dense<0.000000e+00> : vector<512x64xf32>
    %62 = tpu.matmul %59, %61, %cst_29 {dimension_numbers = #tpu.dot_dimension_numbers<[1], [0], [0], [1], [0, 0, 1, 1], [], []>} : vector<512x4xbf16>, vector<4x64xbf16>, vector<512x64xf32> -> vector<512x64xf32>
    %63 = arith.addf %56, %62 : vector<512x64xf32>
    %c0_30 = arith.constant 0 : index
    %c0_31 = arith.constant 0 : index
    %64 = vector.load %arg3[%c0_30, %c0_31] : memref<1x64xf32, #tpu.memory_space<vmem>>, vector<1x64xf32>
    %65 = vector.broadcast %64 : vector<1x64xf32> to vector<512x64xf32>
    %66 = arith.addf %63, %65 : vector<512x64xf32>
    %cst_32 = arith.constant 0.000000e+00 : f32
    %67 = vector.broadcast %cst_32 : f32 to vector<512x64xf32>
    %68 = arith.maximumf %66, %67 : vector<512x64xf32>
    %69 = vector.shape_cast %68 : vector<512x64xf32> to vector<2x256x64xf32>
    %cst_33 = arith.constant dense<0.000000e+00> : vector<2x64xf32>
    %70 = vector.multi_reduction <add>, %69, %cst_33 [1] : vector<2x256x64xf32> to vector<2x64xf32>
    %c0_34 = arith.constant 0 : index
    %c0_35 = arith.constant 0 : index
    %71 = vector.load %arg6[%c0_34, %c0_35] : memref<64x64xf32, #tpu.memory_space<vmem>>, vector<64x64xf32>
    %cst_36 = arith.constant dense<0.000000e+00> : vector<2x64xf32>
    %72 = tpu.matmul %70, %71, %cst_36 {dimension_numbers = #tpu.dot_dimension_numbers<[1], [0], [0], [1], [0, 0, 1, 1], [], []>} : vector<2x64xf32>, vector<64x64xf32>, vector<2x64xf32> -> vector<2x64xf32>
    %73 = vector.shape_cast %72 : vector<2x64xf32> to vector<2x1x64xf32>
    %74 = vector.broadcast %73 : vector<2x1x64xf32> to vector<2x256x64xf32>
    %75 = arith.subf %69, %74 : vector<2x256x64xf32>
    %76 = arith.mulf %75, %75 : vector<2x256x64xf32>
    %cst_37 = arith.constant dense<0.000000e+00> : vector<2x64xf32>
    %77 = vector.multi_reduction <add>, %76, %cst_37 [1] : vector<2x256x64xf32> to vector<2x64xf32>
    %c0_38 = arith.constant 0 : index
    %c0_39 = arith.constant 0 : index
    %78 = vector.load %arg6[%c0_38, %c0_39] : memref<64x64xf32, #tpu.memory_space<vmem>>, vector<64x64xf32>
    %cst_40 = arith.constant dense<0.000000e+00> : vector<2x64xf32>
    %79 = tpu.matmul %77, %78, %cst_40 {dimension_numbers = #tpu.dot_dimension_numbers<[1], [0], [0], [1], [0, 0, 1, 1], [], []>} : vector<2x64xf32>, vector<64x64xf32>, vector<2x64xf32> -> vector<2x64xf32>
    %cst_41 = arith.constant 9.99999974E-6 : f32
    %80 = vector.broadcast %cst_41 : f32 to vector<2x64xf32>
    %81 = arith.addf %79, %80 : vector<2x64xf32>
    %82 = math.rsqrt %81 : vector<2x64xf32>
    %c0_42 = arith.constant 0 : index
    %c0_43 = arith.constant 0 : index
    %83 = vector.load %arg4[%c0_42, %c0_43] : memref<1x64xf32, #tpu.memory_space<vmem>>, vector<1x64xf32>
    %84 = vector.broadcast %83 : vector<1x64xf32> to vector<2x64xf32>
    %85 = arith.mulf %82, %84 : vector<2x64xf32>
    %86 = vector.shape_cast %85 : vector<2x64xf32> to vector<2x1x64xf32>
    %87 = vector.broadcast %86 : vector<2x1x64xf32> to vector<2x256x64xf32>
    %88 = arith.mulf %75, %87 : vector<2x256x64xf32>
    %c0_44 = arith.constant 0 : index
    %c0_45 = arith.constant 0 : index
    %89 = vector.load %arg5[%c0_44, %c0_45] : memref<1x64xf32, #tpu.memory_space<vmem>>, vector<1x64xf32>
    %90 = vector.shape_cast %89 : vector<1x64xf32> to vector<1x1x64xf32>
    %91 = vector.broadcast %90 : vector<1x1x64xf32> to vector<2x256x64xf32>
    %92 = arith.addf %88, %91 : vector<2x256x64xf32>
    %93 = vector.shape_cast %92 : vector<2x256x64xf32> to vector<2x16x16x64xf32>
    %94 = arith.truncf %93 : vector<2x16x16x64xf32> to vector<2x16x16x64xbf16>
    %c0_46 = arith.constant 0 : index
    %c0_47 = arith.constant 0 : index
    %c0_48 = arith.constant 0 : index
    %c0_49 = arith.constant 0 : index
    %95 = vector.load %arg7[%c0_46, %c0_47, %c0_48, %c0_49] : memref<2x16x16x64xbf16, #tpu.memory_space<vmem>>, vector<2x16x16x64xbf16>
    tpu.vector_store %arg7[%c0_46, %c0_47, %c0_48, %c0_49], %94 {strides = array<i32>} : memref<2x16x16x64xbf16, #tpu.memory_space<vmem>>, vector<2x16x16x64xbf16>,
    return
  }
  func.func @transform_0(%arg0: i32) -> (i32, i32, i32, i32) {
    %c0_i32 = arith.constant 0 : i32
    %c0_i32_0 = arith.constant 0 : i32
    %c0_i32_1 = arith.constant 0 : i32
    %c0_i32_2 = arith.constant 0 : i32
    return %arg0, %c0_i32, %c0_i32_0, %c0_i32_1 : i32, i32, i32, i32
  }
  func.func @transform_1(%arg0: i32) -> (i32, i32, i32) {
    %c0_i32 = arith.constant 0 : i32
    %c0_i32_0 = arith.constant 0 : i32
    %c0_i32_1 = arith.constant 0 : i32
    %c0_i32_2 = arith.constant 0 : i32
    return %c0_i32, %c0_i32_0, %c0_i32_1 : i32, i32, i32
  }
  func.func @transform_2(%arg0: i32) -> (i32, i32) {
    %c0_i32 = arith.constant 0 : i32
    %c0_i32_0 = arith.constant 0 : i32
    %c0_i32_1 = arith.constant 0 : i32
    return %c0_i32, %c0_i32_0 : i32, i32
  }
  func.func @transform_3(%arg0: i32) -> (i32, i32) {
    %c0_i32 = arith.constant 0 : i32
    %c0_i32_0 = arith.constant 0 : i32
    %c0_i32_1 = arith.constant 0 : i32
    return %c0_i32, %c0_i32_0 : i32, i32
  }
  func.func @transform_4(%arg0: i32) -> (i32, i32) {
    %c0_i32 = arith.constant 0 : i32
    %c0_i32_0 = arith.constant 0 : i32
    %c0_i32_1 = arith.constant 0 : i32
    return %c0_i32, %c0_i32_0 : i32, i32
  }
  func.func @transform_5(%arg0: i32) -> (i32, i32) {
    %c0_i32 = arith.constant 0 : i32
    %c0_i32_0 = arith.constant 0 : i32
    %c0_i32_1 = arith.constant 0 : i32
    return %c0_i32, %c0_i32_0 : i32, i32
  }
  func.func @transform_6(%arg0: i32) -> (i32, i32, i32, i32) {
    %c0_i32 = arith.constant 0 : i32
    %c0_i32_0 = arith.constant 0 : i32
    %c0_i32_1 = arith.constant 0 : i32
    %c0_i32_2 = arith.constant 0 : i32
    return %arg0, %c0_i32, %c0_i32_0, %c0_i32_1 : i32, i32, i32, i32
  }
}

module attributes {stable_mosaic.version = 11 : i64} {
  func.func @_conv_relu_gn_kernel(%arg0: i32, %arg1: memref<2x9x9x256xbf16, #tpu.memory_space<vmem>>, %arg2: memref<4x256x128xbf16, #tpu.memory_space<vmem>>, %arg3: memref<1x128xf32, #tpu.memory_space<vmem>>, %arg4: memref<1x128xf32, #tpu.memory_space<vmem>>, %arg5: memref<1x128xf32, #tpu.memory_space<vmem>>, %arg6: memref<128x128xf32, #tpu.memory_space<vmem>>, %arg7: memref<2x8x8x128xbf16, #tpu.memory_space<vmem>>) attributes {dimension_semantics = [#tpu.dimension_semantics<parallel>], iteration_bounds = array<i64: 1>, scalar_prefetch = 0 : i64, scratch_operands = 0 : i64, tpu.core_type = #tpu.core_type<tc>, window_params = [{transform_indices = @transform_0, window_bounds = array<i64: 2, 9, 9, 256>}, {pipeline_mode = #tpu.pipeline_mode<synchronous>, transform_indices = @transform_1, window_bounds = array<i64: 4, 256, 128>}, {pipeline_mode = #tpu.pipeline_mode<synchronous>, transform_indices = @transform_2, window_bounds = array<i64: 1, 128>}, {pipeline_mode = #tpu.pipeline_mode<synchronous>, transform_indices = @transform_3, window_bounds = array<i64: 1, 128>}, {pipeline_mode = #tpu.pipeline_mode<synchronous>, transform_indices = @transform_4, window_bounds = array<i64: 1, 128>}, {pipeline_mode = #tpu.pipeline_mode<synchronous>, transform_indices = @transform_5, window_bounds = array<i64: 128, 128>}, {transform_indices = @transform_6, window_bounds = array<i64: 2, 8, 8, 128>}]} {
    %c0 = arith.constant 0 : index
    %c0_0 = arith.constant 0 : index
    %c0_1 = arith.constant 0 : index
    %c0_2 = arith.constant 0 : index
    %0 = vector.load %arg1[%c0, %c0_0, %c0_1, %c0_2] : memref<2x9x9x256xbf16, #tpu.memory_space<vmem>>, vector<2x9x9x256xbf16>
    %1 = arith.extf %0 : vector<2x9x9x256xbf16> to vector<2x9x9x256xf32>
    %2 = vector.extract_strided_slice %1 {offsets = [0, 0, 0, 0], sizes = [2, 8, 8, 256], strides = [1, 1, 1, 1]} : vector<2x9x9x256xf32> to vector<2x8x8x256xf32>
    %3 = vector.shape_cast %2 : vector<2x8x8x256xf32> to vector<128x256xf32>
    %4 = arith.truncf %3 : vector<128x256xf32> to vector<128x256xbf16>
    %c0_3 = arith.constant 0 : index
    %c0_4 = arith.constant 0 : index
    %c0_5 = arith.constant 0 : index
    %5 = vector.load %arg2[%c0_3, %c0_4, %c0_5] : memref<4x256x128xbf16, #tpu.memory_space<vmem>>, vector<1x256x128xbf16>
    %6 = vector.shape_cast %5 : vector<1x256x128xbf16> to vector<256x128xbf16>
    %cst = arith.constant dense<0.000000e+00> : vector<128x128xf32>
    %7 = tpu.matmul %4, %6, %cst {dimension_numbers = #tpu.dot_dimension_numbers<[1], [0], [0], [1], [0, 0, 1, 1], [], []>} : vector<128x256xbf16>, vector<256x128xbf16>, vector<128x128xf32> -> vector<128x128xf32>
    %8 = vector.extract_strided_slice %1 {offsets = [0, 0, 1, 0], sizes = [2, 8, 8, 256], strides = [1, 1, 1, 1]} : vector<2x9x9x256xf32> to vector<2x8x8x256xf32>
    %9 = vector.shape_cast %8 : vector<2x8x8x256xf32> to vector<128x256xf32>
    %10 = arith.truncf %9 : vector<128x256xf32> to vector<128x256xbf16>
    %c1 = arith.constant 1 : index
    %c0_6 = arith.constant 0 : index
    %c0_7 = arith.constant 0 : index
    %11 = vector.load %arg2[%c1, %c0_6, %c0_7] : memref<4x256x128xbf16, #tpu.memory_space<vmem>>, vector<1x256x128xbf16>
    %12 = vector.shape_cast %11 : vector<1x256x128xbf16> to vector<256x128xbf16>
    %cst_8 = arith.constant dense<0.000000e+00> : vector<128x128xf32>
    %13 = tpu.matmul %10, %12, %cst_8 {dimension_numbers = #tpu.dot_dimension_numbers<[1], [0], [0], [1], [0, 0, 1, 1], [], []>} : vector<128x256xbf16>, vector<256x128xbf16>, vector<128x128xf32> -> vector<128x128xf32>
    %14 = arith.addf %7, %13 : vector<128x128xf32>
    %15 = vector.extract_strided_slice %1 {offsets = [0, 1, 0, 0], sizes = [2, 8, 8, 256], strides = [1, 1, 1, 1]} : vector<2x9x9x256xf32> to vector<2x8x8x256xf32>
    %16 = vector.shape_cast %15 : vector<2x8x8x256xf32> to vector<128x256xf32>
    %17 = arith.truncf %16 : vector<128x256xf32> to vector<128x256xbf16>
    %c2 = arith.constant 2 : index
    %c0_9 = arith.constant 0 : index
    %c0_10 = arith.constant 0 : index
    %18 = vector.load %arg2[%c2, %c0_9, %c0_10] : memref<4x256x128xbf16, #tpu.memory_space<vmem>>, vector<1x256x128xbf16>
    %19 = vector.shape_cast %18 : vector<1x256x128xbf16> to vector<256x128xbf16>
    %cst_11 = arith.constant dense<0.000000e+00> : vector<128x128xf32>
    %20 = tpu.matmul %17, %19, %cst_11 {dimension_numbers = #tpu.dot_dimension_numbers<[1], [0], [0], [1], [0, 0, 1, 1], [], []>} : vector<128x256xbf16>, vector<256x128xbf16>, vector<128x128xf32> -> vector<128x128xf32>
    %21 = arith.addf %14, %20 : vector<128x128xf32>
    %22 = vector.extract_strided_slice %1 {offsets = [0, 1, 1, 0], sizes = [2, 8, 8, 256], strides = [1, 1, 1, 1]} : vector<2x9x9x256xf32> to vector<2x8x8x256xf32>
    %23 = vector.shape_cast %22 : vector<2x8x8x256xf32> to vector<128x256xf32>
    %24 = arith.truncf %23 : vector<128x256xf32> to vector<128x256xbf16>
    %c3 = arith.constant 3 : index
    %c0_12 = arith.constant 0 : index
    %c0_13 = arith.constant 0 : index
    %25 = vector.load %arg2[%c3, %c0_12, %c0_13] : memref<4x256x128xbf16, #tpu.memory_space<vmem>>, vector<1x256x128xbf16>
    %26 = vector.shape_cast %25 : vector<1x256x128xbf16> to vector<256x128xbf16>
    %cst_14 = arith.constant dense<0.000000e+00> : vector<128x128xf32>
    %27 = tpu.matmul %24, %26, %cst_14 {dimension_numbers = #tpu.dot_dimension_numbers<[1], [0], [0], [1], [0, 0, 1, 1], [], []>} : vector<128x256xbf16>, vector<256x128xbf16>, vector<128x128xf32> -> vector<128x128xf32>
    %28 = arith.addf %21, %27 : vector<128x128xf32>
    %c0_15 = arith.constant 0 : index
    %c0_16 = arith.constant 0 : index
    %29 = vector.load %arg3[%c0_15, %c0_16] : memref<1x128xf32, #tpu.memory_space<vmem>>, vector<1x128xf32>
    %30 = vector.broadcast %29 : vector<1x128xf32> to vector<128x128xf32>
    %31 = arith.addf %28, %30 : vector<128x128xf32>
    %cst_17 = arith.constant 0.000000e+00 : f32
    %32 = vector.broadcast %cst_17 : f32 to vector<128x128xf32>
    %33 = arith.maximumf %31, %32 : vector<128x128xf32>
    %34 = vector.shape_cast %33 : vector<128x128xf32> to vector<2x64x128xf32>
    %cst_18 = arith.constant dense<0.000000e+00> : vector<2x128xf32>
    %35 = vector.multi_reduction <add>, %34, %cst_18 [1] : vector<2x64x128xf32> to vector<2x128xf32>
    %c0_19 = arith.constant 0 : index
    %c0_20 = arith.constant 0 : index
    %36 = vector.load %arg6[%c0_19, %c0_20] : memref<128x128xf32, #tpu.memory_space<vmem>>, vector<128x128xf32>
    %cst_21 = arith.constant dense<0.000000e+00> : vector<2x128xf32>
    %37 = tpu.matmul %35, %36, %cst_21 {dimension_numbers = #tpu.dot_dimension_numbers<[1], [0], [0], [1], [0, 0, 1, 1], [], []>} : vector<2x128xf32>, vector<128x128xf32>, vector<2x128xf32> -> vector<2x128xf32>
    %38 = vector.shape_cast %37 : vector<2x128xf32> to vector<2x1x128xf32>
    %39 = vector.broadcast %38 : vector<2x1x128xf32> to vector<2x64x128xf32>
    %40 = arith.subf %34, %39 : vector<2x64x128xf32>
    %41 = arith.mulf %40, %40 : vector<2x64x128xf32>
    %cst_22 = arith.constant dense<0.000000e+00> : vector<2x128xf32>
    %42 = vector.multi_reduction <add>, %41, %cst_22 [1] : vector<2x64x128xf32> to vector<2x128xf32>
    %c0_23 = arith.constant 0 : index
    %c0_24 = arith.constant 0 : index
    %43 = vector.load %arg6[%c0_23, %c0_24] : memref<128x128xf32, #tpu.memory_space<vmem>>, vector<128x128xf32>
    %cst_25 = arith.constant dense<0.000000e+00> : vector<2x128xf32>
    %44 = tpu.matmul %42, %43, %cst_25 {dimension_numbers = #tpu.dot_dimension_numbers<[1], [0], [0], [1], [0, 0, 1, 1], [], []>} : vector<2x128xf32>, vector<128x128xf32>, vector<2x128xf32> -> vector<2x128xf32>
    %cst_26 = arith.constant 9.99999974E-6 : f32
    %45 = vector.broadcast %cst_26 : f32 to vector<2x128xf32>
    %46 = arith.addf %44, %45 : vector<2x128xf32>
    %47 = math.rsqrt %46 : vector<2x128xf32>
    %c0_27 = arith.constant 0 : index
    %c0_28 = arith.constant 0 : index
    %48 = vector.load %arg4[%c0_27, %c0_28] : memref<1x128xf32, #tpu.memory_space<vmem>>, vector<1x128xf32>
    %49 = vector.broadcast %48 : vector<1x128xf32> to vector<2x128xf32>
    %50 = arith.mulf %47, %49 : vector<2x128xf32>
    %51 = vector.shape_cast %50 : vector<2x128xf32> to vector<2x1x128xf32>
    %52 = vector.broadcast %51 : vector<2x1x128xf32> to vector<2x64x128xf32>
    %53 = arith.mulf %40, %52 : vector<2x64x128xf32>
    %c0_29 = arith.constant 0 : index
    %c0_30 = arith.constant 0 : index
    %54 = vector.load %arg5[%c0_29, %c0_30] : memref<1x128xf32, #tpu.memory_space<vmem>>, vector<1x128xf32>
    %55 = vector.shape_cast %54 : vector<1x128xf32> to vector<1x1x128xf32>
    %56 = vector.broadcast %55 : vector<1x1x128xf32> to vector<2x64x128xf32>
    %57 = arith.addf %53, %56 : vector<2x64x128xf32>
    %58 = vector.shape_cast %57 : vector<2x64x128xf32> to vector<2x8x8x128xf32>
    %59 = arith.truncf %58 : vector<2x8x8x128xf32> to vector<2x8x8x128xbf16>
    %c0_31 = arith.constant 0 : index
    %c0_32 = arith.constant 0 : index
    %c0_33 = arith.constant 0 : index
    %c0_34 = arith.constant 0 : index
    %60 = vector.load %arg7[%c0_31, %c0_32, %c0_33, %c0_34] : memref<2x8x8x128xbf16, #tpu.memory_space<vmem>>, vector<2x8x8x128xbf16>
    tpu.vector_store %arg7[%c0_31, %c0_32, %c0_33, %c0_34], %59 {strides = array<i32>} : memref<2x8x8x128xbf16, #tpu.memory_space<vmem>>, vector<2x8x8x128xbf16>,
    return
  }
  func.func @transform_0(%arg0: i32) -> (i32, i32, i32, i32) {
    %c0_i32 = arith.constant 0 : i32
    %c0_i32_0 = arith.constant 0 : i32
    %c0_i32_1 = arith.constant 0 : i32
    %c0_i32_2 = arith.constant 0 : i32
    return %arg0, %c0_i32, %c0_i32_0, %c0_i32_1 : i32, i32, i32, i32
  }
  func.func @transform_1(%arg0: i32) -> (i32, i32, i32) {
    %c0_i32 = arith.constant 0 : i32
    %c0_i32_0 = arith.constant 0 : i32
    %c0_i32_1 = arith.constant 0 : i32
    %c0_i32_2 = arith.constant 0 : i32
    return %c0_i32, %c0_i32_0, %c0_i32_1 : i32, i32, i32
  }
  func.func @transform_2(%arg0: i32) -> (i32, i32) {
    %c0_i32 = arith.constant 0 : i32
    %c0_i32_0 = arith.constant 0 : i32
    %c0_i32_1 = arith.constant 0 : i32
    return %c0_i32, %c0_i32_0 : i32, i32
  }
  func.func @transform_3(%arg0: i32) -> (i32, i32) {
    %c0_i32 = arith.constant 0 : i32
    %c0_i32_0 = arith.constant 0 : i32
    %c0_i32_1 = arith.constant 0 : i32
    return %c0_i32, %c0_i32_0 : i32, i32
  }
  func.func @transform_4(%arg0: i32) -> (i32, i32) {
    %c0_i32 = arith.constant 0 : i32
    %c0_i32_0 = arith.constant 0 : i32
    %c0_i32_1 = arith.constant 0 : i32
    return %c0_i32, %c0_i32_0 : i32, i32
  }
  func.func @transform_5(%arg0: i32) -> (i32, i32) {
    %c0_i32 = arith.constant 0 : i32
    %c0_i32_0 = arith.constant 0 : i32
    %c0_i32_1 = arith.constant 0 : i32
    return %c0_i32, %c0_i32_0 : i32, i32
  }
  func.func @transform_6(%arg0: i32) -> (i32, i32, i32, i32) {
    %c0_i32 = arith.constant 0 : i32
    %c0_i32_0 = arith.constant 0 : i32
    %c0_i32_1 = arith.constant 0 : i32
    %c0_i32_2 = arith.constant 0 : i32
    return %arg0, %c0_i32, %c0_i32_0, %c0_i32_1 : i32, i32, i32, i32
  }
}

module attributes {stable_mosaic.version = 11 : i64} {
  func.func @_conv_relu_gn_kernel(%arg0: i32, %arg1: memref<2x10x10x128xbf16, #tpu.memory_space<vmem>>, %arg2: memref<9x128x128xbf16, #tpu.memory_space<vmem>>, %arg3: memref<1x128xf32, #tpu.memory_space<vmem>>, %arg4: memref<1x128xf32, #tpu.memory_space<vmem>>, %arg5: memref<1x128xf32, #tpu.memory_space<vmem>>, %arg6: memref<128x128xf32, #tpu.memory_space<vmem>>, %arg7: memref<2x8x8x128xbf16, #tpu.memory_space<vmem>>) attributes {dimension_semantics = [#tpu.dimension_semantics<parallel>], iteration_bounds = array<i64: 1>, scalar_prefetch = 0 : i64, scratch_operands = 0 : i64, tpu.core_type = #tpu.core_type<tc>, window_params = [{transform_indices = @transform_0, window_bounds = array<i64: 2, 10, 10, 128>}, {pipeline_mode = #tpu.pipeline_mode<synchronous>, transform_indices = @transform_1, window_bounds = array<i64: 9, 128, 128>}, {pipeline_mode = #tpu.pipeline_mode<synchronous>, transform_indices = @transform_2, window_bounds = array<i64: 1, 128>}, {pipeline_mode = #tpu.pipeline_mode<synchronous>, transform_indices = @transform_3, window_bounds = array<i64: 1, 128>}, {pipeline_mode = #tpu.pipeline_mode<synchronous>, transform_indices = @transform_4, window_bounds = array<i64: 1, 128>}, {pipeline_mode = #tpu.pipeline_mode<synchronous>, transform_indices = @transform_5, window_bounds = array<i64: 128, 128>}, {transform_indices = @transform_6, window_bounds = array<i64: 2, 8, 8, 128>}]} {
    %c0 = arith.constant 0 : index
    %c0_0 = arith.constant 0 : index
    %c0_1 = arith.constant 0 : index
    %c0_2 = arith.constant 0 : index
    %0 = vector.load %arg1[%c0, %c0_0, %c0_1, %c0_2] : memref<2x10x10x128xbf16, #tpu.memory_space<vmem>>, vector<2x10x10x128xbf16>
    %1 = arith.extf %0 : vector<2x10x10x128xbf16> to vector<2x10x10x128xf32>
    %2 = vector.extract_strided_slice %1 {offsets = [0, 0, 0, 0], sizes = [2, 8, 8, 128], strides = [1, 1, 1, 1]} : vector<2x10x10x128xf32> to vector<2x8x8x128xf32>
    %3 = vector.shape_cast %2 : vector<2x8x8x128xf32> to vector<128x128xf32>
    %4 = arith.truncf %3 : vector<128x128xf32> to vector<128x128xbf16>
    %c0_3 = arith.constant 0 : index
    %c0_4 = arith.constant 0 : index
    %c0_5 = arith.constant 0 : index
    %5 = vector.load %arg2[%c0_3, %c0_4, %c0_5] : memref<9x128x128xbf16, #tpu.memory_space<vmem>>, vector<1x128x128xbf16>
    %6 = vector.shape_cast %5 : vector<1x128x128xbf16> to vector<128x128xbf16>
    %cst = arith.constant dense<0.000000e+00> : vector<128x128xf32>
    %7 = tpu.matmul %4, %6, %cst {dimension_numbers = #tpu.dot_dimension_numbers<[1], [0], [0], [1], [0, 0, 1, 1], [], []>} : vector<128x128xbf16>, vector<128x128xbf16>, vector<128x128xf32> -> vector<128x128xf32>
    %8 = vector.extract_strided_slice %1 {offsets = [0, 0, 1, 0], sizes = [2, 8, 8, 128], strides = [1, 1, 1, 1]} : vector<2x10x10x128xf32> to vector<2x8x8x128xf32>
    %9 = vector.shape_cast %8 : vector<2x8x8x128xf32> to vector<128x128xf32>
    %10 = arith.truncf %9 : vector<128x128xf32> to vector<128x128xbf16>
    %c1 = arith.constant 1 : index
    %c0_6 = arith.constant 0 : index
    %c0_7 = arith.constant 0 : index
    %11 = vector.load %arg2[%c1, %c0_6, %c0_7] : memref<9x128x128xbf16, #tpu.memory_space<vmem>>, vector<1x128x128xbf16>
    %12 = vector.shape_cast %11 : vector<1x128x128xbf16> to vector<128x128xbf16>
    %cst_8 = arith.constant dense<0.000000e+00> : vector<128x128xf32>
    %13 = tpu.matmul %10, %12, %cst_8 {dimension_numbers = #tpu.dot_dimension_numbers<[1], [0], [0], [1], [0, 0, 1, 1], [], []>} : vector<128x128xbf16>, vector<128x128xbf16>, vector<128x128xf32> -> vector<128x128xf32>
    %14 = arith.addf %7, %13 : vector<128x128xf32>
    %15 = vector.extract_strided_slice %1 {offsets = [0, 0, 2, 0], sizes = [2, 8, 8, 128], strides = [1, 1, 1, 1]} : vector<2x10x10x128xf32> to vector<2x8x8x128xf32>
    %16 = vector.shape_cast %15 : vector<2x8x8x128xf32> to vector<128x128xf32>
    %17 = arith.truncf %16 : vector<128x128xf32> to vector<128x128xbf16>
    %c2 = arith.constant 2 : index
    %c0_9 = arith.constant 0 : index
    %c0_10 = arith.constant 0 : index
    %18 = vector.load %arg2[%c2, %c0_9, %c0_10] : memref<9x128x128xbf16, #tpu.memory_space<vmem>>, vector<1x128x128xbf16>
    %19 = vector.shape_cast %18 : vector<1x128x128xbf16> to vector<128x128xbf16>
    %cst_11 = arith.constant dense<0.000000e+00> : vector<128x128xf32>
    %20 = tpu.matmul %17, %19, %cst_11 {dimension_numbers = #tpu.dot_dimension_numbers<[1], [0], [0], [1], [0, 0, 1, 1], [], []>} : vector<128x128xbf16>, vector<128x128xbf16>, vector<128x128xf32> -> vector<128x128xf32>
    %21 = arith.addf %14, %20 : vector<128x128xf32>
    %22 = vector.extract_strided_slice %1 {offsets = [0, 1, 0, 0], sizes = [2, 8, 8, 128], strides = [1, 1, 1, 1]} : vector<2x10x10x128xf32> to vector<2x8x8x128xf32>
    %23 = vector.shape_cast %22 : vector<2x8x8x128xf32> to vector<128x128xf32>
    %24 = arith.truncf %23 : vector<128x128xf32> to vector<128x128xbf16>
    %c3 = arith.constant 3 : index
    %c0_12 = arith.constant 0 : index
    %c0_13 = arith.constant 0 : index
    %25 = vector.load %arg2[%c3, %c0_12, %c0_13] : memref<9x128x128xbf16, #tpu.memory_space<vmem>>, vector<1x128x128xbf16>
    %26 = vector.shape_cast %25 : vector<1x128x128xbf16> to vector<128x128xbf16>
    %cst_14 = arith.constant dense<0.000000e+00> : vector<128x128xf32>
    %27 = tpu.matmul %24, %26, %cst_14 {dimension_numbers = #tpu.dot_dimension_numbers<[1], [0], [0], [1], [0, 0, 1, 1], [], []>} : vector<128x128xbf16>, vector<128x128xbf16>, vector<128x128xf32> -> vector<128x128xf32>
    %28 = arith.addf %21, %27 : vector<128x128xf32>
    %29 = vector.extract_strided_slice %1 {offsets = [0, 1, 1, 0], sizes = [2, 8, 8, 128], strides = [1, 1, 1, 1]} : vector<2x10x10x128xf32> to vector<2x8x8x128xf32>
    %30 = vector.shape_cast %29 : vector<2x8x8x128xf32> to vector<128x128xf32>
    %31 = arith.truncf %30 : vector<128x128xf32> to vector<128x128xbf16>
    %c4 = arith.constant 4 : index
    %c0_15 = arith.constant 0 : index
    %c0_16 = arith.constant 0 : index
    %32 = vector.load %arg2[%c4, %c0_15, %c0_16] : memref<9x128x128xbf16, #tpu.memory_space<vmem>>, vector<1x128x128xbf16>
    %33 = vector.shape_cast %32 : vector<1x128x128xbf16> to vector<128x128xbf16>
    %cst_17 = arith.constant dense<0.000000e+00> : vector<128x128xf32>
    %34 = tpu.matmul %31, %33, %cst_17 {dimension_numbers = #tpu.dot_dimension_numbers<[1], [0], [0], [1], [0, 0, 1, 1], [], []>} : vector<128x128xbf16>, vector<128x128xbf16>, vector<128x128xf32> -> vector<128x128xf32>
    %35 = arith.addf %28, %34 : vector<128x128xf32>
    %36 = vector.extract_strided_slice %1 {offsets = [0, 1, 2, 0], sizes = [2, 8, 8, 128], strides = [1, 1, 1, 1]} : vector<2x10x10x128xf32> to vector<2x8x8x128xf32>
    %37 = vector.shape_cast %36 : vector<2x8x8x128xf32> to vector<128x128xf32>
    %38 = arith.truncf %37 : vector<128x128xf32> to vector<128x128xbf16>
    %c5 = arith.constant 5 : index
    %c0_18 = arith.constant 0 : index
    %c0_19 = arith.constant 0 : index
    %39 = vector.load %arg2[%c5, %c0_18, %c0_19] : memref<9x128x128xbf16, #tpu.memory_space<vmem>>, vector<1x128x128xbf16>
    %40 = vector.shape_cast %39 : vector<1x128x128xbf16> to vector<128x128xbf16>
    %cst_20 = arith.constant dense<0.000000e+00> : vector<128x128xf32>
    %41 = tpu.matmul %38, %40, %cst_20 {dimension_numbers = #tpu.dot_dimension_numbers<[1], [0], [0], [1], [0, 0, 1, 1], [], []>} : vector<128x128xbf16>, vector<128x128xbf16>, vector<128x128xf32> -> vector<128x128xf32>
    %42 = arith.addf %35, %41 : vector<128x128xf32>
    %43 = vector.extract_strided_slice %1 {offsets = [0, 2, 0, 0], sizes = [2, 8, 8, 128], strides = [1, 1, 1, 1]} : vector<2x10x10x128xf32> to vector<2x8x8x128xf32>
    %44 = vector.shape_cast %43 : vector<2x8x8x128xf32> to vector<128x128xf32>
    %45 = arith.truncf %44 : vector<128x128xf32> to vector<128x128xbf16>
    %c6 = arith.constant 6 : index
    %c0_21 = arith.constant 0 : index
    %c0_22 = arith.constant 0 : index
    %46 = vector.load %arg2[%c6, %c0_21, %c0_22] : memref<9x128x128xbf16, #tpu.memory_space<vmem>>, vector<1x128x128xbf16>
    %47 = vector.shape_cast %46 : vector<1x128x128xbf16> to vector<128x128xbf16>
    %cst_23 = arith.constant dense<0.000000e+00> : vector<128x128xf32>
    %48 = tpu.matmul %45, %47, %cst_23 {dimension_numbers = #tpu.dot_dimension_numbers<[1], [0], [0], [1], [0, 0, 1, 1], [], []>} : vector<128x128xbf16>, vector<128x128xbf16>, vector<128x128xf32> -> vector<128x128xf32>
    %49 = arith.addf %42, %48 : vector<128x128xf32>
    %50 = vector.extract_strided_slice %1 {offsets = [0, 2, 1, 0], sizes = [2, 8, 8, 128], strides = [1, 1, 1, 1]} : vector<2x10x10x128xf32> to vector<2x8x8x128xf32>
    %51 = vector.shape_cast %50 : vector<2x8x8x128xf32> to vector<128x128xf32>
    %52 = arith.truncf %51 : vector<128x128xf32> to vector<128x128xbf16>
    %c7 = arith.constant 7 : index
    %c0_24 = arith.constant 0 : index
    %c0_25 = arith.constant 0 : index
    %53 = vector.load %arg2[%c7, %c0_24, %c0_25] : memref<9x128x128xbf16, #tpu.memory_space<vmem>>, vector<1x128x128xbf16>
    %54 = vector.shape_cast %53 : vector<1x128x128xbf16> to vector<128x128xbf16>
    %cst_26 = arith.constant dense<0.000000e+00> : vector<128x128xf32>
    %55 = tpu.matmul %52, %54, %cst_26 {dimension_numbers = #tpu.dot_dimension_numbers<[1], [0], [0], [1], [0, 0, 1, 1], [], []>} : vector<128x128xbf16>, vector<128x128xbf16>, vector<128x128xf32> -> vector<128x128xf32>
    %56 = arith.addf %49, %55 : vector<128x128xf32>
    %57 = vector.extract_strided_slice %1 {offsets = [0, 2, 2, 0], sizes = [2, 8, 8, 128], strides = [1, 1, 1, 1]} : vector<2x10x10x128xf32> to vector<2x8x8x128xf32>
    %58 = vector.shape_cast %57 : vector<2x8x8x128xf32> to vector<128x128xf32>
    %59 = arith.truncf %58 : vector<128x128xf32> to vector<128x128xbf16>
    %c8 = arith.constant 8 : index
    %c0_27 = arith.constant 0 : index
    %c0_28 = arith.constant 0 : index
    %60 = vector.load %arg2[%c8, %c0_27, %c0_28] : memref<9x128x128xbf16, #tpu.memory_space<vmem>>, vector<1x128x128xbf16>
    %61 = vector.shape_cast %60 : vector<1x128x128xbf16> to vector<128x128xbf16>
    %cst_29 = arith.constant dense<0.000000e+00> : vector<128x128xf32>
    %62 = tpu.matmul %59, %61, %cst_29 {dimension_numbers = #tpu.dot_dimension_numbers<[1], [0], [0], [1], [0, 0, 1, 1], [], []>} : vector<128x128xbf16>, vector<128x128xbf16>, vector<128x128xf32> -> vector<128x128xf32>
    %63 = arith.addf %56, %62 : vector<128x128xf32>
    %c0_30 = arith.constant 0 : index
    %c0_31 = arith.constant 0 : index
    %64 = vector.load %arg3[%c0_30, %c0_31] : memref<1x128xf32, #tpu.memory_space<vmem>>, vector<1x128xf32>
    %65 = vector.broadcast %64 : vector<1x128xf32> to vector<128x128xf32>
    %66 = arith.addf %63, %65 : vector<128x128xf32>
    %cst_32 = arith.constant 0.000000e+00 : f32
    %67 = vector.broadcast %cst_32 : f32 to vector<128x128xf32>
    %68 = arith.maximumf %66, %67 : vector<128x128xf32>
    %69 = vector.shape_cast %68 : vector<128x128xf32> to vector<2x64x128xf32>
    %cst_33 = arith.constant dense<0.000000e+00> : vector<2x128xf32>
    %70 = vector.multi_reduction <add>, %69, %cst_33 [1] : vector<2x64x128xf32> to vector<2x128xf32>
    %c0_34 = arith.constant 0 : index
    %c0_35 = arith.constant 0 : index
    %71 = vector.load %arg6[%c0_34, %c0_35] : memref<128x128xf32, #tpu.memory_space<vmem>>, vector<128x128xf32>
    %cst_36 = arith.constant dense<0.000000e+00> : vector<2x128xf32>
    %72 = tpu.matmul %70, %71, %cst_36 {dimension_numbers = #tpu.dot_dimension_numbers<[1], [0], [0], [1], [0, 0, 1, 1], [], []>} : vector<2x128xf32>, vector<128x128xf32>, vector<2x128xf32> -> vector<2x128xf32>
    %73 = vector.shape_cast %72 : vector<2x128xf32> to vector<2x1x128xf32>
    %74 = vector.broadcast %73 : vector<2x1x128xf32> to vector<2x64x128xf32>
    %75 = arith.subf %69, %74 : vector<2x64x128xf32>
    %76 = arith.mulf %75, %75 : vector<2x64x128xf32>
    %cst_37 = arith.constant dense<0.000000e+00> : vector<2x128xf32>
    %77 = vector.multi_reduction <add>, %76, %cst_37 [1] : vector<2x64x128xf32> to vector<2x128xf32>
    %c0_38 = arith.constant 0 : index
    %c0_39 = arith.constant 0 : index
    %78 = vector.load %arg6[%c0_38, %c0_39] : memref<128x128xf32, #tpu.memory_space<vmem>>, vector<128x128xf32>
    %cst_40 = arith.constant dense<0.000000e+00> : vector<2x128xf32>
    %79 = tpu.matmul %77, %78, %cst_40 {dimension_numbers = #tpu.dot_dimension_numbers<[1], [0], [0], [1], [0, 0, 1, 1], [], []>} : vector<2x128xf32>, vector<128x128xf32>, vector<2x128xf32> -> vector<2x128xf32>
    %cst_41 = arith.constant 9.99999974E-6 : f32
    %80 = vector.broadcast %cst_41 : f32 to vector<2x128xf32>
    %81 = arith.addf %79, %80 : vector<2x128xf32>
    %82 = math.rsqrt %81 : vector<2x128xf32>
    %c0_42 = arith.constant 0 : index
    %c0_43 = arith.constant 0 : index
    %83 = vector.load %arg4[%c0_42, %c0_43] : memref<1x128xf32, #tpu.memory_space<vmem>>, vector<1x128xf32>
    %84 = vector.broadcast %83 : vector<1x128xf32> to vector<2x128xf32>
    %85 = arith.mulf %82, %84 : vector<2x128xf32>
    %86 = vector.shape_cast %85 : vector<2x128xf32> to vector<2x1x128xf32>
    %87 = vector.broadcast %86 : vector<2x1x128xf32> to vector<2x64x128xf32>
    %88 = arith.mulf %75, %87 : vector<2x64x128xf32>
    %c0_44 = arith.constant 0 : index
    %c0_45 = arith.constant 0 : index
    %89 = vector.load %arg5[%c0_44, %c0_45] : memref<1x128xf32, #tpu.memory_space<vmem>>, vector<1x128xf32>
    %90 = vector.shape_cast %89 : vector<1x128xf32> to vector<1x1x128xf32>
    %91 = vector.broadcast %90 : vector<1x1x128xf32> to vector<2x64x128xf32>
    %92 = arith.addf %88, %91 : vector<2x64x128xf32>
    %93 = vector.shape_cast %92 : vector<2x64x128xf32> to vector<2x8x8x128xf32>
    %94 = arith.truncf %93 : vector<2x8x8x128xf32> to vector<2x8x8x128xbf16>
    %c0_46 = arith.constant 0 : index
    %c0_47 = arith.constant 0 : index
    %c0_48 = arith.constant 0 : index
    %c0_49 = arith.constant 0 : index
    %95 = vector.load %arg7[%c0_46, %c0_47, %c0_48, %c0_49] : memref<2x8x8x128xbf16, #tpu.memory_space<vmem>>, vector<2x8x8x128xbf16>
    tpu.vector_store %arg7[%c0_46, %c0_47, %c0_48, %c0_49], %94 {strides = array<i32>} : memref<2x8x8x128xbf16, #tpu.memory_space<vmem>>, vector<2x8x8x128xbf16>,
    return
  }
  func.func @transform_0(%arg0: i32) -> (i32, i32, i32, i32) {
    %c0_i32 = arith.constant 0 : i32
    %c0_i32_0 = arith.constant 0 : i32
    %c0_i32_1 = arith.constant 0 : i32
    %c0_i32_2 = arith.constant 0 : i32
    return %arg0, %c0_i32, %c0_i32_0, %c0_i32_1 : i32, i32, i32, i32
  }
  func.func @transform_1(%arg0: i32) -> (i32, i32, i32) {
    %c0_i32 = arith.constant 0 : i32
    %c0_i32_0 = arith.constant 0 : i32
    %c0_i32_1 = arith.constant 0 : i32
    %c0_i32_2 = arith.constant 0 : i32
    return %c0_i32, %c0_i32_0, %c0_i32_1 : i32, i32, i32
  }
  func.func @transform_2(%arg0: i32) -> (i32, i32) {
    %c0_i32 = arith.constant 0 : i32
    %c0_i32_0 = arith.constant 0 : i32
    %c0_i32_1 = arith.constant 0 : i32
    return %c0_i32, %c0_i32_0 : i32, i32
  }
  func.func @transform_3(%arg0: i32) -> (i32, i32) {
    %c0_i32 = arith.constant 0 : i32
    %c0_i32_0 = arith.constant 0 : i32
    %c0_i32_1 = arith.constant 0 : i32
    return %c0_i32, %c0_i32_0 : i32, i32
  }
  func.func @transform_4(%arg0: i32) -> (i32, i32) {
    %c0_i32 = arith.constant 0 : i32
    %c0_i32_0 = arith.constant 0 : i32
    %c0_i32_1 = arith.constant 0 : i32
    return %c0_i32, %c0_i32_0 : i32, i32
  }
  func.func @transform_5(%arg0: i32) -> (i32, i32) {
    %c0_i32 = arith.constant 0 : i32
    %c0_i32_0 = arith.constant 0 : i32
    %c0_i32_1 = arith.constant 0 : i32
    return %c0_i32, %c0_i32_0 : i32, i32
  }
  func.func @transform_6(%arg0: i32) -> (i32, i32, i32, i32) {
    %c0_i32 = arith.constant 0 : i32
    %c0_i32_0 = arith.constant 0 : i32
    %c0_i32_1 = arith.constant 0 : i32
    %c0_i32_2 = arith.constant 0 : i32
    return %arg0, %c0_i32, %c0_i32_0, %c0_i32_1 : i32, i32, i32, i32
  }
}

module attributes {stable_mosaic.version = 11 : i64} {
  func.func @_conv_relu_gn_kernel(%arg0: i32, %arg1: memref<2x10x10x128xbf16, #tpu.memory_space<vmem>>, %arg2: memref<9x128x128xbf16, #tpu.memory_space<vmem>>, %arg3: memref<1x128xf32, #tpu.memory_space<vmem>>, %arg4: memref<1x128xf32, #tpu.memory_space<vmem>>, %arg5: memref<1x128xf32, #tpu.memory_space<vmem>>, %arg6: memref<128x128xf32, #tpu.memory_space<vmem>>, %arg7: memref<2x128xf32, #tpu.memory_space<vmem>>) attributes {dimension_semantics = [#tpu.dimension_semantics<parallel>], iteration_bounds = array<i64: 1>, scalar_prefetch = 0 : i64, scratch_operands = 0 : i64, tpu.core_type = #tpu.core_type<tc>, window_params = [{transform_indices = @transform_0, window_bounds = array<i64: 2, 10, 10, 128>}, {pipeline_mode = #tpu.pipeline_mode<synchronous>, transform_indices = @transform_1, window_bounds = array<i64: 9, 128, 128>}, {pipeline_mode = #tpu.pipeline_mode<synchronous>, transform_indices = @transform_2, window_bounds = array<i64: 1, 128>}, {pipeline_mode = #tpu.pipeline_mode<synchronous>, transform_indices = @transform_3, window_bounds = array<i64: 1, 128>}, {pipeline_mode = #tpu.pipeline_mode<synchronous>, transform_indices = @transform_4, window_bounds = array<i64: 1, 128>}, {pipeline_mode = #tpu.pipeline_mode<synchronous>, transform_indices = @transform_5, window_bounds = array<i64: 128, 128>}, {transform_indices = @transform_6, window_bounds = array<i64: 2, 128>}]} {
    %c0 = arith.constant 0 : index
    %c0_0 = arith.constant 0 : index
    %c0_1 = arith.constant 0 : index
    %c0_2 = arith.constant 0 : index
    %0 = vector.load %arg1[%c0, %c0_0, %c0_1, %c0_2] : memref<2x10x10x128xbf16, #tpu.memory_space<vmem>>, vector<2x10x10x128xbf16>
    %1 = arith.extf %0 : vector<2x10x10x128xbf16> to vector<2x10x10x128xf32>
    %2 = vector.extract_strided_slice %1 {offsets = [0, 0, 0, 0], sizes = [2, 8, 8, 128], strides = [1, 1, 1, 1]} : vector<2x10x10x128xf32> to vector<2x8x8x128xf32>
    %3 = vector.shape_cast %2 : vector<2x8x8x128xf32> to vector<128x128xf32>
    %4 = arith.truncf %3 : vector<128x128xf32> to vector<128x128xbf16>
    %c0_3 = arith.constant 0 : index
    %c0_4 = arith.constant 0 : index
    %c0_5 = arith.constant 0 : index
    %5 = vector.load %arg2[%c0_3, %c0_4, %c0_5] : memref<9x128x128xbf16, #tpu.memory_space<vmem>>, vector<1x128x128xbf16>
    %6 = vector.shape_cast %5 : vector<1x128x128xbf16> to vector<128x128xbf16>
    %cst = arith.constant dense<0.000000e+00> : vector<128x128xf32>
    %7 = tpu.matmul %4, %6, %cst {dimension_numbers = #tpu.dot_dimension_numbers<[1], [0], [0], [1], [0, 0, 1, 1], [], []>} : vector<128x128xbf16>, vector<128x128xbf16>, vector<128x128xf32> -> vector<128x128xf32>
    %8 = vector.extract_strided_slice %1 {offsets = [0, 0, 1, 0], sizes = [2, 8, 8, 128], strides = [1, 1, 1, 1]} : vector<2x10x10x128xf32> to vector<2x8x8x128xf32>
    %9 = vector.shape_cast %8 : vector<2x8x8x128xf32> to vector<128x128xf32>
    %10 = arith.truncf %9 : vector<128x128xf32> to vector<128x128xbf16>
    %c1 = arith.constant 1 : index
    %c0_6 = arith.constant 0 : index
    %c0_7 = arith.constant 0 : index
    %11 = vector.load %arg2[%c1, %c0_6, %c0_7] : memref<9x128x128xbf16, #tpu.memory_space<vmem>>, vector<1x128x128xbf16>
    %12 = vector.shape_cast %11 : vector<1x128x128xbf16> to vector<128x128xbf16>
    %cst_8 = arith.constant dense<0.000000e+00> : vector<128x128xf32>
    %13 = tpu.matmul %10, %12, %cst_8 {dimension_numbers = #tpu.dot_dimension_numbers<[1], [0], [0], [1], [0, 0, 1, 1], [], []>} : vector<128x128xbf16>, vector<128x128xbf16>, vector<128x128xf32> -> vector<128x128xf32>
    %14 = arith.addf %7, %13 : vector<128x128xf32>
    %15 = vector.extract_strided_slice %1 {offsets = [0, 0, 2, 0], sizes = [2, 8, 8, 128], strides = [1, 1, 1, 1]} : vector<2x10x10x128xf32> to vector<2x8x8x128xf32>
    %16 = vector.shape_cast %15 : vector<2x8x8x128xf32> to vector<128x128xf32>
    %17 = arith.truncf %16 : vector<128x128xf32> to vector<128x128xbf16>
    %c2 = arith.constant 2 : index
    %c0_9 = arith.constant 0 : index
    %c0_10 = arith.constant 0 : index
    %18 = vector.load %arg2[%c2, %c0_9, %c0_10] : memref<9x128x128xbf16, #tpu.memory_space<vmem>>, vector<1x128x128xbf16>
    %19 = vector.shape_cast %18 : vector<1x128x128xbf16> to vector<128x128xbf16>
    %cst_11 = arith.constant dense<0.000000e+00> : vector<128x128xf32>
    %20 = tpu.matmul %17, %19, %cst_11 {dimension_numbers = #tpu.dot_dimension_numbers<[1], [0], [0], [1], [0, 0, 1, 1], [], []>} : vector<128x128xbf16>, vector<128x128xbf16>, vector<128x128xf32> -> vector<128x128xf32>
    %21 = arith.addf %14, %20 : vector<128x128xf32>
    %22 = vector.extract_strided_slice %1 {offsets = [0, 1, 0, 0], sizes = [2, 8, 8, 128], strides = [1, 1, 1, 1]} : vector<2x10x10x128xf32> to vector<2x8x8x128xf32>
    %23 = vector.shape_cast %22 : vector<2x8x8x128xf32> to vector<128x128xf32>
    %24 = arith.truncf %23 : vector<128x128xf32> to vector<128x128xbf16>
    %c3 = arith.constant 3 : index
    %c0_12 = arith.constant 0 : index
    %c0_13 = arith.constant 0 : index
    %25 = vector.load %arg2[%c3, %c0_12, %c0_13] : memref<9x128x128xbf16, #tpu.memory_space<vmem>>, vector<1x128x128xbf16>
    %26 = vector.shape_cast %25 : vector<1x128x128xbf16> to vector<128x128xbf16>
    %cst_14 = arith.constant dense<0.000000e+00> : vector<128x128xf32>
    %27 = tpu.matmul %24, %26, %cst_14 {dimension_numbers = #tpu.dot_dimension_numbers<[1], [0], [0], [1], [0, 0, 1, 1], [], []>} : vector<128x128xbf16>, vector<128x128xbf16>, vector<128x128xf32> -> vector<128x128xf32>
    %28 = arith.addf %21, %27 : vector<128x128xf32>
    %29 = vector.extract_strided_slice %1 {offsets = [0, 1, 1, 0], sizes = [2, 8, 8, 128], strides = [1, 1, 1, 1]} : vector<2x10x10x128xf32> to vector<2x8x8x128xf32>
    %30 = vector.shape_cast %29 : vector<2x8x8x128xf32> to vector<128x128xf32>
    %31 = arith.truncf %30 : vector<128x128xf32> to vector<128x128xbf16>
    %c4 = arith.constant 4 : index
    %c0_15 = arith.constant 0 : index
    %c0_16 = arith.constant 0 : index
    %32 = vector.load %arg2[%c4, %c0_15, %c0_16] : memref<9x128x128xbf16, #tpu.memory_space<vmem>>, vector<1x128x128xbf16>
    %33 = vector.shape_cast %32 : vector<1x128x128xbf16> to vector<128x128xbf16>
    %cst_17 = arith.constant dense<0.000000e+00> : vector<128x128xf32>
    %34 = tpu.matmul %31, %33, %cst_17 {dimension_numbers = #tpu.dot_dimension_numbers<[1], [0], [0], [1], [0, 0, 1, 1], [], []>} : vector<128x128xbf16>, vector<128x128xbf16>, vector<128x128xf32> -> vector<128x128xf32>
    %35 = arith.addf %28, %34 : vector<128x128xf32>
    %36 = vector.extract_strided_slice %1 {offsets = [0, 1, 2, 0], sizes = [2, 8, 8, 128], strides = [1, 1, 1, 1]} : vector<2x10x10x128xf32> to vector<2x8x8x128xf32>
    %37 = vector.shape_cast %36 : vector<2x8x8x128xf32> to vector<128x128xf32>
    %38 = arith.truncf %37 : vector<128x128xf32> to vector<128x128xbf16>
    %c5 = arith.constant 5 : index
    %c0_18 = arith.constant 0 : index
    %c0_19 = arith.constant 0 : index
    %39 = vector.load %arg2[%c5, %c0_18, %c0_19] : memref<9x128x128xbf16, #tpu.memory_space<vmem>>, vector<1x128x128xbf16>
    %40 = vector.shape_cast %39 : vector<1x128x128xbf16> to vector<128x128xbf16>
    %cst_20 = arith.constant dense<0.000000e+00> : vector<128x128xf32>
    %41 = tpu.matmul %38, %40, %cst_20 {dimension_numbers = #tpu.dot_dimension_numbers<[1], [0], [0], [1], [0, 0, 1, 1], [], []>} : vector<128x128xbf16>, vector<128x128xbf16>, vector<128x128xf32> -> vector<128x128xf32>
    %42 = arith.addf %35, %41 : vector<128x128xf32>
    %43 = vector.extract_strided_slice %1 {offsets = [0, 2, 0, 0], sizes = [2, 8, 8, 128], strides = [1, 1, 1, 1]} : vector<2x10x10x128xf32> to vector<2x8x8x128xf32>
    %44 = vector.shape_cast %43 : vector<2x8x8x128xf32> to vector<128x128xf32>
    %45 = arith.truncf %44 : vector<128x128xf32> to vector<128x128xbf16>
    %c6 = arith.constant 6 : index
    %c0_21 = arith.constant 0 : index
    %c0_22 = arith.constant 0 : index
    %46 = vector.load %arg2[%c6, %c0_21, %c0_22] : memref<9x128x128xbf16, #tpu.memory_space<vmem>>, vector<1x128x128xbf16>
    %47 = vector.shape_cast %46 : vector<1x128x128xbf16> to vector<128x128xbf16>
    %cst_23 = arith.constant dense<0.000000e+00> : vector<128x128xf32>
    %48 = tpu.matmul %45, %47, %cst_23 {dimension_numbers = #tpu.dot_dimension_numbers<[1], [0], [0], [1], [0, 0, 1, 1], [], []>} : vector<128x128xbf16>, vector<128x128xbf16>, vector<128x128xf32> -> vector<128x128xf32>
    %49 = arith.addf %42, %48 : vector<128x128xf32>
    %50 = vector.extract_strided_slice %1 {offsets = [0, 2, 1, 0], sizes = [2, 8, 8, 128], strides = [1, 1, 1, 1]} : vector<2x10x10x128xf32> to vector<2x8x8x128xf32>
    %51 = vector.shape_cast %50 : vector<2x8x8x128xf32> to vector<128x128xf32>
    %52 = arith.truncf %51 : vector<128x128xf32> to vector<128x128xbf16>
    %c7 = arith.constant 7 : index
    %c0_24 = arith.constant 0 : index
    %c0_25 = arith.constant 0 : index
    %53 = vector.load %arg2[%c7, %c0_24, %c0_25] : memref<9x128x128xbf16, #tpu.memory_space<vmem>>, vector<1x128x128xbf16>
    %54 = vector.shape_cast %53 : vector<1x128x128xbf16> to vector<128x128xbf16>
    %cst_26 = arith.constant dense<0.000000e+00> : vector<128x128xf32>
    %55 = tpu.matmul %52, %54, %cst_26 {dimension_numbers = #tpu.dot_dimension_numbers<[1], [0], [0], [1], [0, 0, 1, 1], [], []>} : vector<128x128xbf16>, vector<128x128xbf16>, vector<128x128xf32> -> vector<128x128xf32>
    %56 = arith.addf %49, %55 : vector<128x128xf32>
    %57 = vector.extract_strided_slice %1 {offsets = [0, 2, 2, 0], sizes = [2, 8, 8, 128], strides = [1, 1, 1, 1]} : vector<2x10x10x128xf32> to vector<2x8x8x128xf32>
    %58 = vector.shape_cast %57 : vector<2x8x8x128xf32> to vector<128x128xf32>
    %59 = arith.truncf %58 : vector<128x128xf32> to vector<128x128xbf16>
    %c8 = arith.constant 8 : index
    %c0_27 = arith.constant 0 : index
    %c0_28 = arith.constant 0 : index
    %60 = vector.load %arg2[%c8, %c0_27, %c0_28] : memref<9x128x128xbf16, #tpu.memory_space<vmem>>, vector<1x128x128xbf16>
    %61 = vector.shape_cast %60 : vector<1x128x128xbf16> to vector<128x128xbf16>
    %cst_29 = arith.constant dense<0.000000e+00> : vector<128x128xf32>
    %62 = tpu.matmul %59, %61, %cst_29 {dimension_numbers = #tpu.dot_dimension_numbers<[1], [0], [0], [1], [0, 0, 1, 1], [], []>} : vector<128x128xbf16>, vector<128x128xbf16>, vector<128x128xf32> -> vector<128x128xf32>
    %63 = arith.addf %56, %62 : vector<128x128xf32>
    %c0_30 = arith.constant 0 : index
    %c0_31 = arith.constant 0 : index
    %64 = vector.load %arg3[%c0_30, %c0_31] : memref<1x128xf32, #tpu.memory_space<vmem>>, vector<1x128xf32>
    %65 = vector.broadcast %64 : vector<1x128xf32> to vector<128x128xf32>
    %66 = arith.addf %63, %65 : vector<128x128xf32>
    %cst_32 = arith.constant 0.000000e+00 : f32
    %67 = vector.broadcast %cst_32 : f32 to vector<128x128xf32>
    %68 = arith.maximumf %66, %67 : vector<128x128xf32>
    %69 = vector.shape_cast %68 : vector<128x128xf32> to vector<2x64x128xf32>
    %cst_33 = arith.constant dense<0.000000e+00> : vector<2x128xf32>
    %70 = vector.multi_reduction <add>, %69, %cst_33 [1] : vector<2x64x128xf32> to vector<2x128xf32>
    %c0_34 = arith.constant 0 : index
    %c0_35 = arith.constant 0 : index
    %71 = vector.load %arg6[%c0_34, %c0_35] : memref<128x128xf32, #tpu.memory_space<vmem>>, vector<128x128xf32>
    %cst_36 = arith.constant dense<0.000000e+00> : vector<2x128xf32>
    %72 = tpu.matmul %70, %71, %cst_36 {dimension_numbers = #tpu.dot_dimension_numbers<[1], [0], [0], [1], [0, 0, 1, 1], [], []>} : vector<2x128xf32>, vector<128x128xf32>, vector<2x128xf32> -> vector<2x128xf32>
    %73 = vector.shape_cast %72 : vector<2x128xf32> to vector<2x1x128xf32>
    %74 = vector.broadcast %73 : vector<2x1x128xf32> to vector<2x64x128xf32>
    %75 = arith.subf %69, %74 : vector<2x64x128xf32>
    %76 = arith.mulf %75, %75 : vector<2x64x128xf32>
    %cst_37 = arith.constant dense<0.000000e+00> : vector<2x128xf32>
    %77 = vector.multi_reduction <add>, %76, %cst_37 [1] : vector<2x64x128xf32> to vector<2x128xf32>
    %c0_38 = arith.constant 0 : index
    %c0_39 = arith.constant 0 : index
    %78 = vector.load %arg6[%c0_38, %c0_39] : memref<128x128xf32, #tpu.memory_space<vmem>>, vector<128x128xf32>
    %cst_40 = arith.constant dense<0.000000e+00> : vector<2x128xf32>
    %79 = tpu.matmul %77, %78, %cst_40 {dimension_numbers = #tpu.dot_dimension_numbers<[1], [0], [0], [1], [0, 0, 1, 1], [], []>} : vector<2x128xf32>, vector<128x128xf32>, vector<2x128xf32> -> vector<2x128xf32>
    %cst_41 = arith.constant 9.99999974E-6 : f32
    %80 = vector.broadcast %cst_41 : f32 to vector<2x128xf32>
    %81 = arith.addf %79, %80 : vector<2x128xf32>
    %82 = math.rsqrt %81 : vector<2x128xf32>
    %c0_42 = arith.constant 0 : index
    %c0_43 = arith.constant 0 : index
    %83 = vector.load %arg4[%c0_42, %c0_43] : memref<1x128xf32, #tpu.memory_space<vmem>>, vector<1x128xf32>
    %84 = vector.broadcast %83 : vector<1x128xf32> to vector<2x128xf32>
    %85 = arith.mulf %82, %84 : vector<2x128xf32>
    %86 = vector.shape_cast %85 : vector<2x128xf32> to vector<2x1x128xf32>
    %87 = vector.broadcast %86 : vector<2x1x128xf32> to vector<2x64x128xf32>
    %88 = arith.mulf %75, %87 : vector<2x64x128xf32>
    %c0_44 = arith.constant 0 : index
    %c0_45 = arith.constant 0 : index
    %89 = vector.load %arg5[%c0_44, %c0_45] : memref<1x128xf32, #tpu.memory_space<vmem>>, vector<1x128xf32>
    %90 = vector.shape_cast %89 : vector<1x128xf32> to vector<1x1x128xf32>
    %91 = vector.broadcast %90 : vector<1x1x128xf32> to vector<2x64x128xf32>
    %92 = arith.addf %88, %91 : vector<2x64x128xf32>
    %cst_46 = arith.constant dense<0.000000e+00> : vector<2x128xf32>
    %93 = vector.multi_reduction <add>, %92, %cst_46 [1] : vector<2x64x128xf32> to vector<2x128xf32>
    %cst_47 = arith.constant 6.400000e+01 : f32
    %94 = vector.broadcast %cst_47 : f32 to vector<2x128xf32>
    %95 = arith.divf %93, %94 : vector<2x128xf32>
    %c0_48 = arith.constant 0 : index
    %c0_49 = arith.constant 0 : index
    %96 = vector.load %arg7[%c0_48, %c0_49] : memref<2x128xf32, #tpu.memory_space<vmem>>, vector<2x128xf32>
    tpu.vector_store %arg7[%c0_48, %c0_49], %95 {strides = array<i32>} : memref<2x128xf32, #tpu.memory_space<vmem>>, vector<2x128xf32>,
    return
  }
  func.func @transform_0(%arg0: i32) -> (i32, i32, i32, i32) {
    %c0_i32 = arith.constant 0 : i32
    %c0_i32_0 = arith.constant 0 : i32
    %c0_i32_1 = arith.constant 0 : i32
    %c0_i32_2 = arith.constant 0 : i32
    return %arg0, %c0_i32, %c0_i32_0, %c0_i32_1 : i32, i32, i32, i32
  }
  func.func @transform_1(%arg0: i32) -> (i32, i32, i32) {
    %c0_i32 = arith.constant 0 : i32
    %c0_i32_0 = arith.constant 0 : i32
    %c0_i32_1 = arith.constant 0 : i32
    %c0_i32_2 = arith.constant 0 : i32
    return %c0_i32, %c0_i32_0, %c0_i32_1 : i32, i32, i32
  }
  func.func @transform_2(%arg0: i32) -> (i32, i32) {
    %c0_i32 = arith.constant 0 : i32
    %c0_i32_0 = arith.constant 0 : i32
    %c0_i32_1 = arith.constant 0 : i32
    return %c0_i32, %c0_i32_0 : i32, i32
  }
  func.func @transform_3(%arg0: i32) -> (i32, i32) {
    %c0_i32 = arith.constant 0 : i32
    %c0_i32_0 = arith.constant 0 : i32
    %c0_i32_1 = arith.constant 0 : i32
    return %c0_i32, %c0_i32_0 : i32, i32
  }
  func.func @transform_4(%arg0: i32) -> (i32, i32) {
    %c0_i32 = arith.constant 0 : i32
    %c0_i32_0 = arith.constant 0 : i32
    %c0_i32_1 = arith.constant 0 : i32
    return %c0_i32, %c0_i32_0 : i32, i32
  }
  func.func @transform_5(%arg0: i32) -> (i32, i32) {
    %c0_i32 = arith.constant 0 : i32
    %c0_i32_0 = arith.constant 0 : i32
    %c0_i32_1 = arith.constant 0 : i32
    return %c0_i32, %c0_i32_0 : i32, i32
  }
  func.func @transform_6(%arg0: i32) -> (i32, i32) {
    %c0_i32 = arith.constant 0 : i32
    %c0_i32_0 = arith.constant 0 : i32
    return %arg0, %c0_i32 : i32, i32
  }
}

</mosaic_0001>

<bundles_post_ra>
// kernel: mnist_cnn_forward.5
= control target key start
LH: loop header
LB: loop body
LE: loop exit
PB: predicated region body
PF: predicated region fallthrough
CT: control target
= control target key end

     0   :  { %vm244_vm0 = vcmask 1046528   ;;  %vm2539_vm1 = vmmov 0   ;;  %vm1431_vm2 = vcmask 1041409   ;;  %s3524_s1 = inlined_call_operand.vmem [shape: bf16[4,256,128], index: 1, kind: input, shape index: {}]   ;;  %s3525_s0 = inlined_call_operand.vmem [shape: bf16[2,9,9,256], index: 0, kind: input, shape index: {}]   ;;  %s3526_s5 = inlined_call_operand.vmem [shape: f32[128,128], index: 5, kind: input, shape index: {}]   ;;  %s3527_s2 = inlined_call_operand.vmem [shape: f32[1,128], index: 2, kind: input, shape index: {}]   ;;  %s3528_s3 = inlined_call_operand.vmem [shape: f32[1,128], index: 3, kind: input, shape index: {}]   ;;  %s3529_s4 = inlined_call_operand.vmem [shape: f32[1,128], index: 4, kind: input, shape index: {}]   ;;  %s3530_s6 = inlined_call_operand.vmem [shape: bf16[2,8,8,128], index: 6, kind: output, shape index: {}]  }
   0x1   :  { %v2440_v0 = vld [vmem:[%s3524_s1 + $0xc0] sm:$0xff]   ;;  %v2444_v4 = vld [vmem:[%s3524_s1 + $0xc8] sm:$0xff]   ;;  %v2448_v8 = vld [vmem:[%s3524_s1 + $0xd0] sm:$0xff]  }
   0x2   :  { %v2441_v1 = vld [vmem:[%s3524_s1 + $0x40] sm:$0xff]   ;;  %2028 = vmatprep.subr.bf16.mxu0 %v2440_v0  ;;  %v2445_v5 = vld [vmem:[%s3524_s1 + $0x48] sm:$0xff]   ;;  %v2449_v9 = vld [vmem:[%s3524_s1 + $0x50] sm:$0xff]  }
   0x3   :  { %v2442_v2 = vld [vmem:[%s3524_s1 + $0x80] sm:$0xff]   ;;  %2092 = vmatprep.subr.bf16.mxu1 %v2441_v1  ;;  %v2446_v6 = vld [vmem:[%s3524_s1 + $0x88] sm:$0xff]   ;;  %v2450_v10 = vld [vmem:[%s3524_s1 + $0x90] sm:$0xff]  }
   0x4   :  { %v2443_v3 = vld [vmem:[%s3524_s1] sm:$0xff]   ;;  %2029 = vmatpush3.bf16.msra.mxu0 %v2442_v2  ;;  %v2447_v7 = vld [vmem:[%s3524_s1 + $0x8] sm:$0xff]   ;;  %v2451_v11 = vld [vmem:[%s3524_s1 + $0x10] sm:$0xff]  }
   0x5   :  { %2093 = vmatpush3.bf16.msra.mxu1 %v2443_v3  ;;  %2030 = vmatprep.subr.bf16.mxu0 %v2444_v4  ;;  %v2452_v12 = vld [vmem:[%s3524_s1 + $0xd8] sm:$0xff]   ;;  %v2456_v16 = vld [vmem:[%s3524_s1 + $0xe0] sm:$0xff]   ;;  %v2460_v20 = vld [vmem:[%s3524_s1 + $0xe8] sm:$0xff]  }
   0x6   :  { %2094 = vmatprep.subr.bf16.mxu1 %v2445_v5  ;;  %v2453_v13 = vld [vmem:[%s3524_s1 + $0x58] sm:$0xff]   ;;  %v2457_v17 = vld [vmem:[%s3524_s1 + $0x60] sm:$0xff]   ;;  %v2461_v21 = vld [vmem:[%s3524_s1 + $0x68] sm:$0xff]  }
   0x7   :  { %v2454_v14 = vld [vmem:[%s3524_s1 + $0x98] sm:$0xff]   ;;  %v2458_v18 = vld [vmem:[%s3524_s1 + $0xa0] sm:$0xff]   ;;  %v2462_v22 = vld [vmem:[%s3524_s1 + $0xa8] sm:$0xff]  }
   0x8   :  { %2031 = vmatpush3.bf16.msra.mxu0 %v2446_v6  ;;  %v2455_v15 = vld [vmem:[%s3524_s1 + $0x18] sm:$0xff]   ;;  %v2459_v19 = vld [vmem:[%s3524_s1 + $0x20] sm:$0xff]   ;;  %v2463_v23 = vld [vmem:[%s3524_s1 + $0x28] sm:$0xff]  }
   0x9   :  { %2095 = vmatpush3.bf16.msra.mxu1 %v2447_v7  ;;  %2032 = vmatprep.subr.bf16.mxu0 %v2448_v8  ;;  %v2464_v24 = vld [vmem:[%s3524_s1 + $0xf0] sm:$0xff]   ;;  %v2468_v28 = vld [vmem:[%s3524_s1 + $0xf8] sm:$0xff]   ;;  %v24_v32 = vld [vmem:[%s3525_s0] sm:$0xff] }
   0xa   :  { %2096 = vmatprep.subr.bf16.mxu1 %v2449_v9  ;;  %v2465_v25 = vld [vmem:[%s3524_s1 + $0x70] sm:$0xff]   ;;  %v2469_v29 = vld [vmem:[%s3524_s1 + $0x78] sm:$0xff]   ;;  %v25_v33 = vld [vmem:[%s3525_s0 + $0x8] sm:$0x11]  ;;  %v61_v38 = vunpack.c.h.bf16 %v24_v32  ;;  %v60_v57 = vunpack.c.l.bf16 %v24_v32 }
   0xb   :  { %v2466_v26 = vld [vmem:[%s3524_s1 + $0xb0] sm:$0xff]   ;;  %v2470_v30 = vld [vmem:[%s3524_s1 + $0xb8] sm:$0xff]   ;;  %v2690_v36 = vld [vmem:[%s3525_s0 + $0x20] sm:$0xff]  ;;  %v62_v39 = vunpack.c.l.bf16 %v25_v33  ;;  %v63_v40 = vunpack.c.h.bf16 %v25_v33 }
   0xc   :  { %2033 = vmatpush3.bf16.msra.mxu0 %v2450_v10  ;;  %v2467_v27 = vld [vmem:[%s3524_s1 + $0x30] sm:$0xff]   ;;  %v2471_v31 = vld [vmem:[%s3524_s1 + $0x38] sm:$0xff]   ;;  %v29_v37 = vld [vmem:[%s3525_s0 + $0x28] sm:$0x11]  ;;  %v69_v44 = vunpack.c.h.bf16 %v2690_v36  ;;  %v248_v48 = vrot.slane %v61_v38, 1  ;;  %v68_v62 = vunpack.c.l.bf16 %v2690_v36  ;;  %v245_v1 = vrot.slane %v60_v57, 1 }
   0xd   :  { %2097 = vmatpush3.bf16.msra.mxu1 %v2451_v11  ;;  %2034 = vmatprep.subr.bf16.mxu0 %v2452_v12  ;;  %v2682_v34 = vld [vmem:[%s3525_s0 + $0x10] sm:$0xff]  ;;  %v27_v35 = vld [vmem:[%s3525_s0 + $0x18] sm:$0x11]  ;;  %v71_v45 = vunpack.c.h.bf16 %v29_v37  ;;  %v2474_v46 = vld [vmem:[%s3524_s1 + $0x140] sm:$0xff]   ;;  %v246_v47 = vrot.slane %v62_v39, 1  ;;  %v249_v49 = vrot.slane %v63_v40, 1  ;;  %v70_v10 = vunpack.c.l.bf16 %v29_v37 }
   0xe   :  { %2098 = vmatprep.subr.bf16.mxu1 %v2453_v13  ;;  %v65_v41 = vunpack.c.h.bf16 %v2682_v34  ;;  %v66_v42 = vunpack.c.l.bf16 %v27_v35  ;;  %v67_v43 = vunpack.c.h.bf16 %v27_v35  ;;  %v260_v53 = vrot.slane %v69_v44, 1  ;;  %v2476_v61 = vld [vmem:[%s3524_s1 + $0x1c0] sm:$0xff]   ;;  %v2721_v4 = vld [vmem:[%s3525_s0 + $0x30] sm:$0xff]  ;;  %v31_v5 = vld [vmem:[%s3525_s0 + $0x38] sm:$0x11] }
   0xf   :  { %v261_v54 = vrot.slane %v71_v45, 1  ;;  %v250_v55 = vsel %vm244_vm0, %v248_v48, %v249_v49  ;;  %v1787_v56 = vcombine.high %v24_v32, %v2682_v34  ;;  %v64_v58 = vunpack.c.l.bf16 %v2682_v34  ;;  %v2477_v3 = vld [vmem:[%s3524_s1 + $0x180] sm:$0xff]   ;;  %v33_v33 = vld [vmem:[%s3525_s0 + $0x48] sm:$0x11]  ;;  %v2776_v35 = vld [vmem:[%s3525_s0 + $0x50] sm:$0xff] }
  0x10   :  { %2035 = vmatpush3.bf16.msra.mxu0 %v2454_v14  ;;  %v254_v50 = vrot.slane %v65_v41, 1  ;;  %v252_v51 = vrot.slane %v66_v42, 1  ;;  %v255_v52 = vrot.slane %v67_v43, 1  ;;  %v1786_v60 = vcombine.low %v24_v32, %v2682_v34  ;;  %v2475_v6 = vld [vmem:[%s3524_s1 + $0x100] sm:$0xff]   ;;  %v35_v37 = vld [vmem:[%s3525_s0 + $0x58] sm:$0x11] }
  0x11   :  { %2099 = vmatpush3.bf16.msra.mxu1 %v2455_v15  ;;  %2036 = vmatprep.subr.bf16.mxu0 %v2456_v16  ;;  %v2712_v63 = vsel %vm244_vm0, %v260_v53, %v261_v54  ;;  %v251_v2 = vrot.slane %v64_v58, 1  ;;  %v73_v7 = vunpack.c.h.bf16 %v2721_v4  ;;  %v75_v8 = vunpack.c.h.bf16 %v31_v5  ;;  %v2480_v15 = vld [vmem:[%s3524_s1 + $0x148] sm:$0xff]   ;;  %v2486_v42 = vld [vmem:[%s3524_s1 + $0x150] sm:$0xff]  }
  0x12   :  { %2100 = vmatprep.subr.bf16.mxu1 %v2457_v17  ;;  %v2704_v59 = vsel %vm244_vm0, %v254_v50, %v255_v52  ;;  %743 = vmatprep.mubr.bf16.mxu1 %v1787_v56  ;;  %v1789_v9 = vcombine.high %v2690_v36, %v2721_v4  ;;  %v247_v11 = vsel %vm244_vm0, %v245_v1, %v246_v47  ;;  %v72_v13 = vunpack.c.l.bf16 %v2721_v4  ;;  %v2487_v47 = vld [vmem:[%s3524_s1 + $0x110] sm:$0xff]  }
  0x13   :  { %v374_v0 = vpack.c.bf16 %v2704_v59, %v250_v55  ;;  %v2734_v12 = vsel %vm244_vm0, %v251_v2, %v252_v51  ;;  %v74_v14 = vunpack.c.l.bf16 %v31_v5  ;;  %v266_v17 = vrot.slane %v73_v7, 1  ;;  %v2488_v55 = vld [vmem:[%s3524_s1 + $0x1d0] sm:$0xff]   ;;  %v39_v5 = vld [vmem:[%s3525_s0 + $0x78] sm:$0x11] }
  0x14   :  { %2037 = vmatpush3.bf16.msra.mxu0 %v2458_v18  ;;  %v373_v16 = vpack.c.bf16 %v2734_v12, %v247_v11  ;;  %v267_v18 = vrot.slane %v75_v8, 1  ;;  %v79_v40 = vunpack.c.h.bf16 %v33_v33  ;;  %v81_v41 = vunpack.c.h.bf16 %v2776_v35  ;;  %v2489_v56 = vld [vmem:[%s3524_s1 + $0x190] sm:$0xff]   ;;  %v2492_v8 = vld [vmem:[%s3524_s1 + $0x158] sm:$0xff]  }
  0x15   :  { %2101 = vmatpush3.bf16.msra.mxu1 %v2459_v19  ;;  %2038 = vmatprep.subr.bf16.mxu0 %v2460_v20  ;;  %v257_v19 = vrot.slane %v68_v62, 1  ;;  %v2482_v20 = vld [vmem:[%s3524_s1 + $0x1c8] sm:$0xff]   ;;  %v83_v43 = vunpack.c.h.bf16 %v35_v37  ;;  %v78_v50 = vunpack.c.l.bf16 %v33_v33  ;;  %v80_v51 = vunpack.c.l.bf16 %v2776_v35  ;;  %v2809_v62 = vld [vmem:[%s3525_s0 + $0x60] sm:$0xff] }
  0x16   :  { %2102 = vmatprep.subr.bf16.mxu1 %v2461_v21  ;;  %550 = vmatprep.mubr.bf16.mxu0 %v374_v0  ;;  %v258_v21 = vrot.slane %v70_v10, 1  ;;  %v273_v48 = vrot.slane %v79_v40, 1  ;;  %v278_v49 = vrot.slane %v81_v41, 1  ;;  %v82_v53 = vunpack.c.l.bf16 %v35_v37  ;;  %v2814_v0 = vld [vmem:[%s3525_s0 + $0x70] sm:$0xff]  ;;  %v43_v40 = vld [vmem:[%s3525_s0 + $0x98] sm:$0x11] }
  0x17   :  { %v279_v52 = vrot.slane %v83_v43, 1  ;;  %v270_v58 = vrot.slane %v78_v50, 1  ;;  %v89_v7 = vunpack.c.h.bf16 %v2814_v0  ;;  %v2870_v41 = vld [vmem:[%s3525_s0 + $0xa0] sm:$0xff] }
  0x18   :  { %2039 = vmatpush3.bf16.msra.mxu0 %v2462_v22  ;;  %v263_v22 = vrot.slane %v72_v13, 1  ;;  %v276_v2 = vrot.slane %v82_v53, 1  ;;  %v91_v13 = vunpack.c.h.bf16 %v39_v5  ;;  %v101_v50 = vunpack.c.h.bf16 %v2870_v41 }
  0x19   :  { %2103 = vmatpush3.bf16.msra.mxu1 %v2463_v23  ;;  %2040 = vmatprep.subr.bf16.mxu0 %v2464_v24  ;;  %v264_v23 = vrot.slane %v74_v14, 1  ;;  %v2481_v24 = vld [vmem:[%s3524_s1 + $0x108] sm:$0xff]   ;;  %v2817_v1 = vsel %vm244_vm0, %v278_v49, %v279_v52  ;;  %v99_v49 = vunpack.c.h.bf16 %v43_v40 }
  0x1a   :  { %2104 = vmatprep.subr.bf16.mxu1 %v2465_v25  ;;  %v2483_v25 = vld [vmem:[%s3524_s1 + $0x188] sm:$0xff]  }
  0x1b   :  { %v2768_v32 = vsel %vm244_vm0, %v263_v22, %v264_v23  ;;  %v84_v22 = vunpack.c.l.bf16 %v2809_v62 }
  0x1c   :  { %2041 = vmatpush3.bf16.msra.mxu0 %v2466_v26  ;;  %v2751_v26 = vsel %vm244_vm0, %v266_v17, %v267_v18  ;;  %v1793_v17 = vcombine.high %v2809_v62, %v2814_v0  ;;  %v2493_v18 = vld [vmem:[%s3524_s1 + $0x118] sm:$0xff]  }
  0x1d   :  { %2105 = vmatpush3.bf16.msra.mxu1 %v2467_v27  ;;  %2042 = vmatprep.subr.bf16.mxu0 %v2468_v28  ;;  %v1788_v27 = vcombine.low %v2690_v36, %v2721_v4  ;;  %v2758_v28 = vld [vmem:[%s3525_s0 + $0x40] sm:$0xff] }
  0x1e   :  { %2106 = vmatprep.subr.bf16.mxu1 %v2469_v29  ;;  %v77_v38 = vunpack.c.h.bf16 %v2758_v28  ;;  %v1791_v45 = vcombine.high %v2758_v28, %v2776_v35 }
  0x20   :  { %2043 = vmatpush3.bf16.msra.mxu0 %v2470_v30  ;;  %v376_v30 = vpack.c.bf16 %v2751_v26, %v2712_v63  ;;  %v272_v44 = vrot.slane %v77_v38, 1  ;;  %v281_v38 = vrot.slane %v84_v22, 1  ;;  %v49_v22 = vld [vmem:[%s3525_s0 + $0xc8] sm:$0x11] }
  0x21   :  { %2107 = vmatpush3.bf16.msra.mxu1 %v2471_v31  ;;  %2156 = vmatprep.subr.bf16.mxu0 %v2474_v46  ;;  %v2765_v31 = vsel %vm244_vm0, %v257_v19, %v258_v21  ;;  %v76_v46 = vunpack.c.l.bf16 %v2758_v28  ;;  %v2494_v19 = vld [vmem:[%s3524_s1 + $0x1d8] sm:$0xff]   ;;  %v291_v21 = vrot.slane %v91_v13, 1  ;;  %v2907_v13 = vld [vmem:[%s3525_s0 + $0xb0] sm:$0xff] }
  0x22   :  { %2220 = vmatprep.subr.bf16.mxu1 %v2476_v61  ;;  %v375_v39 = vpack.c.bf16 %v2768_v32, %v2765_v31  ;;  %v2802_v57 = vsel %vm244_vm0, %v272_v44, %v273_v48  ;;  %v1790_v61 = vcombine.low %v2758_v28, %v2776_v35 }
  0x23   :  { %551 = vmatmul.mubr.bf16.vlgmr.msra.gmra.mrb[0].mxu0 %v373_v16  ;;  %v269_v54 = vrot.slane %v76_v46, 1  ;;  %v290_v16 = vrot.slane %v89_v7, 1  ;;  %v45_v46 = vld [vmem:[%s3525_s0 + $0xa8] sm:$0x11]  ;;  %v100_v7 = vunpack.c.l.bf16 %v2870_v41 }
  0x24   :  { %744 = vmatmul.mubr.bf16.vlgmr.msra.gmra.mrb[0].mxu1 %v1786_v60  ;;  %2157 = vmatpush3.bf16.msra.mxu0 %v2475_v6  ;;  %v275_v60 = vrot.slane %v80_v51, 1  ;;  %v85_v6 = vunpack.c.h.bf16 %v2809_v62  ;;  %v103_v51 = vunpack.c.h.bf16 %v45_v46 }
  0x25   :  { %2221 = vmatpush3.bf16.msra.mxu1 %v2477_v3  ;;  %751 = vmatprep.mubr.bf16.mxu1 %v1789_v9  ;;  %v37_v3 = vld [vmem:[%s3525_s0 + $0x68] sm:$0x11]  ;;  %v378_v9 = vpack.c.bf16 %v2817_v1, %v2802_v57  ;;  %v2833_v10 = vsel %vm244_vm0, %v269_v54, %v270_v58  ;;  %v2857_v37 = vsel %vm244_vm0, %v290_v16, %v291_v21  ;;  %v2915_v16 = vld [vmem:[%s3525_s0 + $0xc0] sm:$0xff]  ;;  %v299_v21 = vrot.slane %v100_v7, 1 }
  0x26   :  { %2222 = vmatprep.subr.bf16.mxu1 %v2482_v20  ;;  %2158 = vmatprep.subr.bf16.mxu0 %v2480_v15  ;;  %v87_v11 = vunpack.c.h.bf16 %v37_v3  ;;  %v2836_v14 = vsel %vm244_vm0, %v275_v60, %v276_v2  ;;  %v284_v15 = vrot.slane %v85_v6, 1  ;;  %v86_v23 = vunpack.c.l.bf16 %v37_v3  ;;  %v2500_v3 = vld [vmem:[%s3524_s1 + $0x1e0] sm:$0xff]   ;;  %v53_v7 = vld [vmem:[%s3525_s0 + $0xe8] sm:$0x11] }
  0x27   :  { %558 = vmatprep.mubr.bf16.mxu0 %v376_v30  ;;  %v377_v30 = vpack.c.bf16 %v2836_v14, %v2833_v10  ;;  %v1792_v54 = vcombine.low %v2809_v62, %v2814_v0  ;;  %v297_v60 = vrot.slane %v99_v49, 1  ;;  %v98_v6 = vunpack.c.l.bf16 %v43_v40 }
  0x28   :  { %2159 = vmatpush3.bf16.msra.mxu0 %v2481_v24  ;;  %v285_v20 = vrot.slane %v87_v11, 1  ;;  %v88_v24 = vunpack.c.l.bf16 %v2814_v0  ;;  %v282_v43 = vrot.slane %v86_v23, 1  ;;  %v2504_v23 = vld [vmem:[%s3524_s1 + $0x168] sm:$0xff]   ;;  %v104_v49 = vunpack.c.l.bf16 %v2907_v13 }
  0x29   :  { %2223 = vmatpush3.bf16.msra.mxu1 %v2483_v25  ;;  %2160 = vmatprep.subr.bf16.mxu0 %v2486_v42  ;;  %v90_v25 = vunpack.c.l.bf16 %v39_v5  ;;  %v303_v5 = vrot.slane %v103_v51, 1  ;;  %v2507_v51 = vld [vmem:[%s3524_s1 + $0x1a8] sm:$0xff]  }
  0x2a   :  { %2224 = vmatprep.subr.bf16.mxu1 %v2488_v55  ;;  %v2854_v33 = vsel %vm244_vm0, %v284_v15, %v285_v20  ;;  %v287_v44 = vrot.slane %v88_v24, 1  ;;  %v2883_v52 = vsel %vm244_vm0, %v281_v38, %v282_v43  ;;  %v47_v15 = vld [vmem:[%s3525_s0 + $0xb8] sm:$0x11]  ;;  %v294_v20 = vrot.slane %v98_v6, 1  ;;  %v2505_v43 = vld [vmem:[%s3524_s1 + $0x128] sm:$0xff]  }
  0x2b   :  { %559 = vmatmul.mubr.bf16.gmra.mrb[4].mxu0 %v375_v39  ;;  %v2862_v39 = vld [vmem:[%s3525_s0 + $0x90] sm:$0xff]  ;;  %v380_v42 = vpack.c.bf16 %v2857_v37, %v2854_v33  ;;  %v305_v6 = vrot.slane %v104_v49, 1 }
  0x2c   :  { %752 = vmatmul.mubr.bf16.gmra.mrb[4].mxu1 %v1788_v27  ;;  %2161 = vmatpush3.bf16.msra.mxu0 %v2487_v47  ;;  %v2495_v27 = vld [vmem:[%s3524_s1 + $0x198] sm:$0xff]   ;;  %v2498_v47 = vld [vmem:[%s3524_s1 + $0x160] sm:$0xff]   ;;  %v97_v48 = vunpack.c.h.bf16 %v2862_v39  ;;  %v96_v55 = vunpack.c.l.bf16 %v2862_v39  ;;  %v1795_v2 = vcombine.high %v2862_v39, %v2870_v41  ;;  %v2996_v49 = vld [vmem:[%s3525_s0 + $0xf0] sm:$0xff] }
  0x2d   :  { %759 = vmatprep.mubr.bf16.mxu1 %v1791_v45  ;;  %2225 = vmatpush3.bf16.msra.mxu1 %v2489_v56  ;;  %v288_v45 = vrot.slane %v90_v25, 1  ;;  %v2499_v56 = vld [vmem:[%s3524_s1 + $0x120] sm:$0xff]   ;;  %v105_v25 = vunpack.c.h.bf16 %v2907_v13 }
  0x2e   :  { %566 = vmatprep.mubr.bf16.mxu0 %v378_v9  ;;  %2162 = vmatprep.subr.bf16.mxu0 %v2492_v8  ;;  %v296_v58 = vrot.slane %v97_v48, 1  ;;  %v102_v8 = vunpack.c.l.bf16 %v45_v46  ;;  %v2501_v9 = vld [vmem:[%s3524_s1 + $0x1a0] sm:$0xff]  }
  0x2f   :  { %2226 = vmatprep.subr.bf16.mxu1 %v2494_v19  ;;  %v2886_v53 = vsel %vm244_vm0, %v287_v44, %v288_v45  ;;  %v293_v19 = vrot.slane %v96_v55, 1  ;;  %v308_v44 = vrot.slane %v105_v25, 1  ;;  %v1794_v55 = vcombine.low %v2862_v39, %v2870_v41 }
  0x30   :  { %2163 = vmatpush3.bf16.msra.mxu0 %v2493_v18  ;;  %v298_v11 = vsel %vm244_vm0, %v296_v58, %v297_v60  ;;  %v379_v24 = vpack.c.bf16 %v2886_v53, %v2883_v52  ;;  %v300_v40 = vrot.slane %v102_v8, 1  ;;  %v110_v58 = vunpack.c.l.bf16 %v49_v22  ;;  %v2950_v60 = vld [vmem:[%s3525_s0 + $0xd0] sm:$0xff] }
  0x31   :  { %2227 = vmatpush3.bf16.msra.mxu1 %v2495_v27  ;;  %2164 = vmatprep.subr.bf16.mxu0 %v2498_v47  ;;  %v107_v27 = vunpack.c.h.bf16 %v47_v15  ;;  %v2506_v47 = vld [vmem:[%s3524_s1 + $0x1e8] sm:$0xff]   ;;  %v2510_v8 = vld [vmem:[%s3524_s1 + $0x170] sm:$0xff]  }
  0x32   :  { %2228 = vmatprep.subr.bf16.mxu1 %v2500_v3  ;;  %v2961_v39 = vsel %vm244_vm0, %v299_v21, %v300_v40  ;;  %v312_v25 = vrot.slane %v110_v58, 1  ;;  %v2516_v58 = vld [vmem:[%s3524_s1 + $0x178] sm:$0xff]  }
  0x33   :  { %567 = vmatmul.mubr.bf16.gmra.mrb[8].mxu0 %v377_v30  ;;  %v109_v30 = vunpack.c.h.bf16 %v2915_v16  ;;  %v309_v45 = vrot.slane %v107_v27, 1  ;;  %v112_v27 = vunpack.c.l.bf16 %v2950_v60 }
  0x34   :  { %760 = vmatmul.mubr.bf16.gmra.mrb[8].mxu1 %v1790_v61  ;;  %v302_v61 = vrot.slane %v101_v50, 1  ;;  %574 = vmatprep.mubr.bf16.mxu0 %v380_v42  ;;  %v111_v42 = vunpack.c.h.bf16 %v49_v22  ;;  %v106_v50 = vunpack.c.l.bf16 %v47_v15  ;;  %v113_v15 = vunpack.c.h.bf16 %v2950_v60 }
  0x35   :  { %767 = vmatprep.mubr.bf16.mxu1 %v1793_v17  ;;  %2165 = vmatpush3.bf16.msra.mxu0 %v2499_v56  ;;  %v314_v46 = vrot.slane %v109_v30, 1  ;;  %v108_v56 = vunpack.c.l.bf16 %v2915_v16  ;;  %v2964_v3 = vsel %vm244_vm0, %v308_v44, %v309_v45  ;;  %v119_v22 = vunpack.c.h.bf16 %v53_v7  ;;  %v2512_v30 = vld [vmem:[%s3524_s1 + $0x1f0] sm:$0xff]  }
  0x36   :  { %v2920_v18 = vsel %vm244_vm0, %v302_v61, %v303_v5  ;;  %2229 = vmatpush3.bf16.msra.mxu1 %v2501_v9  ;;  %2166 = vmatprep.subr.bf16.mxu0 %v2504_v23  ;;  %v315_v48 = vrot.slane %v111_v42, 1  ;;  %v51_v61 = vld [vmem:[%s3525_s0 + $0xd8] sm:$0x11]  ;;  %v1797_v5 = vcombine.high %v2907_v13, %v2915_v16  ;;  %v320_v42 = vrot.slane %v113_v15, 1 }
  0x37   :  { %v382_v38 = vpack.c.bf16 %v2920_v18, %v298_v11  ;;  %2230 = vmatprep.subr.bf16.mxu1 %v2506_v47  ;;  %v306_v11 = vrot.slane %v106_v50, 1  ;;  %v114_v44 = vunpack.c.l.bf16 %v51_v61  ;;  %v3001_v50 = vld [vmem:[%s3525_s0 + $0xf8] sm:$0x11] }
  0x38   :  { %v2975_v9 = vsel %vm244_vm0, %v314_v46, %v315_v48  ;;  %v327_v46 = vrot.slane %v119_v22, 1  ;;  %v118_v48 = vunpack.c.l.bf16 %v53_v7  ;;  %v121_v7 = vunpack.c.h.bf16 %v2996_v49 }
  0x39   :  { %2167 = vmatpush3.bf16.msra.mxu0 %v2505_v43  ;;  %v384_v40 = vpack.c.bf16 %v2975_v9, %v2964_v3 }
  0x3a   :  { %2231 = vmatpush3.bf16.msra.mxu1 %v2507_v51  ;;  %2168 = vmatprep.subr.bf16.mxu0 %v2510_v8  ;;  %v3006_v51 = vld [vmem:[%s3525_s0 + $0x100] sm:$0xff]  ;;  %v324_v22 = vrot.slane %v118_v48, 1 }
  0x3b   :  { %575 = vmatmul.mubr.bf16.gmra.mrb[12].mxu0 %v379_v24  ;;  %v311_v24 = vrot.slane %v108_v56, 1  ;;  %2232 = vmatprep.subr.bf16.mxu1 %v2512_v30  ;;  %v3016_v56 = vld [vmem:[%s3525_s0 + $0x108] sm:$0x11] }
  0x3c   :  { %768 = vmatmul.mubr.bf16.gmra.mrb[12].mxu1 %v1792_v54  ;;  %v295_v54 = vsel %vm244_vm0, %v293_v19, %v294_v20  ;;  %582 = vmatprep.mubr.bf16.mxu0 %v382_v38  ;;  %v115_v19 = vunpack.c.h.bf16 %v51_v61  ;;  %v2511_v20 = vld [vmem:[%s3524_s1 + $0x130] sm:$0xff]   ;;  %v317_v61 = vrot.slane %v112_v27, 1  ;;  %v2519_v27 = vld [vmem:[%s3524_s1 + $0x1b8] sm:$0xff]  }
  0x3d   :  { %775 = vmatprep.mubr.bf16.mxu1 %v1795_v2  ;;  %v2958_v2 = vld [vmem:[%s3525_s0 + $0xe0] sm:$0xff]  ;;  %v381_v23 = vpack.c.bf16 %v2961_v39, %v295_v54  ;;  %2169 = vmatpush3.bf16.msra.mxu0 %v2511_v20  ;;  %v2513_v38 = vld [vmem:[%s3524_s1 + $0x1b0] sm:$0xff]   ;;  %v3009_v54 = vsel %vm244_vm0, %v305_v6, %v306_v11  ;;  %v123_v6 = vunpack.c.h.bf16 %v3001_v50  ;;  %v3024_v8 = vsel %vm244_vm0, %v311_v24, %v312_v25  ;;  %v2517_v20 = vld [vmem:[%s3524_s1 + $0x138] sm:$0xff]  }
  0x3e   :  { %v117_v21 = vunpack.c.h.bf16 %v2958_v2  ;;  %v321_v43 = vrot.slane %v115_v19, 1  ;;  %v116_v47 = vunpack.c.l.bf16 %v2958_v2  ;;  %2233 = vmatpush3.bf16.msra.mxu1 %v2513_v38  ;;  %v1799_v15 = vcombine.high %v2950_v60, %v2958_v2  ;;  %2170 = vmatprep.subr.bf16.mxu0 %v2516_v58  ;;  %v2518_v25 = vld [vmem:[%s3524_s1 + $0x1f8] sm:$0xff]  }
  0x3f   :  { %v127_v24 = vunpack.c.h.bf16 %v3016_v56  ;;  %v383_v30 = vpack.c.bf16 %v3024_v8, %v3009_v54  ;;  %v332_v38 = vrot.slane %v121_v7, 1  ;;  %2234 = vmatprep.subr.bf16.mxu1 %v2518_v25  ;;  %v1801_v58 = vcombine.high %v2996_v49, %v3006_v51 }
  0x40   :  { %v326_v45 = vrot.slane %v117_v21, 1  ;;  %v3027_v11 = vsel %vm244_vm0, %v320_v42, %v321_v43  ;;  %v323_v19 = vrot.slane %v116_v47, 1 }
  0x41   :  { %2171 = vmatpush3.bf16.msra.mxu0 %v2517_v20 }
  0x42   :  { %v3035_v21 = vsel %vm244_vm0, %v326_v45, %v327_v46  ;;  %2235 = vmatpush3.bf16.msra.mxu1 %v2519_v27  ;;  %v3057_v45 = vld [vmem:[%s3525_s0 + $0x80] sm:$0xff]  ;;  %v41_v46 = vld [vmem:[%s3525_s0 + $0x88] sm:$0x11]  ;;  %v3063_v47 = vsel %vm244_vm0, %v323_v19, %v324_v22 }
  0x43   :  { %583 = vmatmul.mubr.bf16.gmra.mrb[16].mxu0 %v381_v23  ;;  %v125_v23 = vunpack.c.h.bf16 %v3006_v51  ;;  %v386_v42 = vpack.c.bf16 %v3035_v21, %v3027_v11  ;;  %v93_v19 = vunpack.c.h.bf16 %v3057_v45  ;;  %v95_v20 = vunpack.c.h.bf16 %v41_v46 }
  0x44   :  { %776 = vmatmul.mubr.bf16.gmra.mrb[16].mxu1 %v1794_v55  ;;  %v1796_v55 = vcombine.low %v2907_v13, %v2915_v16  ;;  %590 = vmatprep.mubr.bf16.mxu0 %v384_v40  ;;  %v333_v40 = vrot.slane %v123_v6, 1  ;;  %v94_v25 = vunpack.c.l.bf16 %v41_v46 }
  0x45   :  { %783 = vmatprep.mubr.bf16.mxu1 %v1797_v5  ;;  %v318_v5 = vrot.slane %v114_v44, 1  ;;  %v1798_v44 = vcombine.low %v2950_v60, %v2958_v2  ;;  %v338_v48 = vrot.slane %v125_v23, 1  ;;  %v124_v23 = vunpack.c.l.bf16 %v3006_v51 }
  0x47   :  { %v3050_v43 = vsel %vm244_vm0, %v317_v61, %v318_v5  ;;  %v120_v61 = vunpack.c.l.bf16 %v2996_v49  ;;  %v122_v5 = vunpack.c.l.bf16 %v3001_v50  ;;  %v126_v50 = vunpack.c.l.bf16 %v3016_v56 }
  0x48   :  { %v385_v6 = vpack.c.bf16 %v3063_v47, %v3050_v43 }
  0x49   :  { %v329_v7 = vrot.slane %v120_v61, 1  ;;  %v330_v17 = vrot.slane %v122_v5, 1  ;;  %v336_v61 = vrot.slane %v126_v50, 1 }
  0x4b   :  { %591 = vmatmul.mubr.bf16.gmra.mrb[20].mxu0 %v383_v30  ;;  %v1077_v30 = vrot.slane %v93_v19, 1 }
  0x4c   :  { %784 = vmatmul.mubr.bf16.gmra.mrb[20].mxu1 %v1796_v55  ;;  %v339_v55 = vrot.slane %v127_v24, 1  ;;  %598 = vmatprep.mubr.bf16.mxu0 %v386_v42  ;;  %v92_v24 = vunpack.c.l.bf16 %v3057_v45  ;;  %v1075_v42 = vrot.slane %v94_v25, 1 }
  0x4d   :  { %791 = vmatprep.mubr.bf16.mxu1 %v1799_v15  ;;  %v3074_v15 = vsel %vm244_vm0, %v332_v38, %v333_v40  ;;  %v1078_v38 = vrot.slane %v95_v20, 1 }
  0x4e   :  { %v3083_v27 = vsel %vm244_vm0, %v338_v48, %v339_v55  ;;  %v1074_v22 = vrot.slane %v92_v24, 1  ;;  %v3095_v48 = vld [vmem:[%s3525_s0 + $0x110] sm:$0xff]  ;;  %v59_v55 = vld [vmem:[%s3525_s0 + $0x118] sm:$0x11] }
  0x4f   :  { %v1079_v56 = vsel %vm244_vm0, %v1077_v30, %v1078_v38  ;;  %3533 = vst [vmem:[#allocation2_spill] sm:$0xff] %v3095_v48  ;;  %v388_v19 = vpack.c.bf16 %v3083_v27, %v3074_v15  ;;  %v129_v25 = vunpack.c.h.bf16 %v3095_v48  ;;  %v131_v30 = vunpack.c.h.bf16 %v59_v55 }
  0x50   :  { %v1076_v5 = vsel %vm244_vm0, %v1074_v22, %v1075_v42  ;;  %v128_v46 = vunpack.c.l.bf16 %v3095_v48  ;;  %v331_v22 = vsel %vm244_vm0, %v329_v7, %v330_v17  ;;  %v130_v50 = vunpack.c.l.bf16 %v59_v55 }
  0x51   :  { %v1083_v24 = vrot.slane %v129_v25, 1  ;;  %v1084_v20 = vrot.slane %v131_v30, 1  ;;  %v1090_v17 = vpack.c.bf16 %v2765_v31, %v2734_v12  ;;  %v1093_v7 = vpack.c.bf16 %v2802_v57, %v2751_v26 }
  0x52   :  { %v1080_v40 = vrot.slane %v128_v46, 1  ;;  %v1081_v29 = vrot.slane %v130_v50, 1  ;;  %v1095_v12 = vpack.c.bf16 %v2854_v33, %v2817_v1  ;;  %v1871_v26 = vcombine.high %v2776_v35, %v2809_v62 }
  0x53   :  { %599 = vmatmul.mubr.bf16.gmra.mrb[24].mxu0 %v385_v6  ;;  %v1085_v38 = vsel %vm244_vm0, %v1083_v24, %v1084_v20  ;;  %v1869_v6 = vcombine.high %v2721_v4, %v2758_v28  ;;  %v3535_v31 = vcombine.low %v2721_v4, %v2758_v28  ;;  %v1096_v57 = vpack.c.bf16 %v1076_v5, %v2886_v53 }
  0x54   :  { %792 = vmatmul.mubr.bf16.gmra.mrb[24].mxu1 %v1798_v44  ;;  %v335_v44 = vrot.slane %v124_v23, 1  ;;  %v1800_v23 = vcombine.low %v2996_v49, %v3006_v51  ;;  %606 = vmatprep.mubr.bf16.mxu0 %v388_v19  ;;  %v3537_v1 = vcombine.high %v2814_v0, %v3057_v45  ;;  %v1099_v4 = vpack.c.bf16 %v2964_v3, %v2920_v18  ;;  %v1421_v19 = vld [vmem:[%s3526_s5 + $0x40] sm:$0xff] }
  0x55   :  { %799 = vmatprep.mubr.bf16.mxu1 %v1801_v58  ;;  %v1091_v58 = vpack.c.bf16 %v2712_v63, %v2704_v59  ;;  %v1082_v59 = vsel %vm244_vm0, %v1080_v40, %v1081_v29  ;;  %v1867_v63 = vcombine.high %v2682_v34, %v2690_v36  ;;  %v3534_v29 = vcombine.low %v2682_v34, %v2690_v36 }
  0x56   :  { %v337_v42 = vsel %vm244_vm0, %v335_v44, %v336_v61  ;;  %v1092_v40 = vpack.c.bf16 %v2833_v10, %v2768_v32  ;;  %v1094_v34 = vpack.c.bf16 %v2883_v52, %v2836_v14  ;;  %v1097_v36 = vpack.c.bf16 %v1079_v56, %v2857_v37  ;;  %v3542_v3 = vld [vmem:[#allocation2_spill] sm:$0xff]  ;;  %v1422_v44 = vld [vmem:[%s3526_s5 + $0x48] sm:$0xff] }
  0x57   :  { %v387_v48 = vpack.c.bf16 %v337_v42, %v331_v22  ;;  %v3536_v32 = vcombine.low %v2776_v35, %v2809_v62  ;;  %v1875_v28 = vcombine.high %v2870_v41, %v2907_v13  ;;  %v3538_v10 = vcombine.low %v2814_v0, %v3057_v45 }
  0x58   :  { %v1098_v35 = vpack.c.bf16 %v3009_v54, %v2961_v39  ;;  %v1101_v62 = vpack.c.bf16 %v3027_v11, %v2975_v9  ;;  %v1877_v14 = vcombine.high %v2915_v16, %v2950_v60  ;;  %v3539_v33 = vcombine.low %v2870_v41, %v2907_v13  ;;  %v1413_v54 = vld [vmem:[%s3526_s5] sm:$0xff] }
  0x59   :  { %v1100_v0 = vpack.c.bf16 %v3050_v43, %v3024_v8  ;;  %v1103_v37 = vpack.c.bf16 %v3074_v15, %v3035_v21  ;;  %v1879_v52 = vcombine.high %v2958_v2, %v2996_v49  ;;  %v3540_v53 = vcombine.low %v2915_v16, %v2950_v60  ;;  %v1416_v8 = vld [vmem:[%s3526_s5 + $0x18] sm:$0xff]  ;;  %v1417_v11 = vld [vmem:[%s3526_s5 + $0x20] sm:$0xff]  ;;  %v1418_v43 = vld [vmem:[%s3526_s5 + $0x28] sm:$0xff] }
  0x5a   :  { %v1102_v18 = vpack.c.bf16 %v331_v22, %v3063_v47  ;;  %v1105_v41 = vpack.c.bf16 %v1085_v38, %v3083_v27  ;;  %v3541_v13 = vcombine.low %v2958_v2, %v2996_v49  ;;  %v1104_v39 = vpack.c.bf16 %v1082_v59, %v337_v42  ;;  %v1414_v2 = vld [vmem:[%s3526_s5 + $0x8] sm:$0xff]  ;;  %v1419_v47 = vld [vmem:[%s3526_s5 + $0x30] sm:$0xff]  ;;  %v1420_v15 = vld [vmem:[%s3526_s5 + $0x38] sm:$0xff] }
  0x5b   :  { %607 = vmatmul.mubr.bf16.gmra.mrb[28].mxu0 %v387_v48  ;;  %v3543_v9 = vcombine.high %v3006_v51, %v3542_v3  ;;  %v3544_v16 = vcombine.low %v3006_v51, %v3542_v3  ;;  %v2538_v60 = vmov 0.0|0.0   ;;  %v2389_v49 = vpack.c.bf16 %v1414_v2, %v1413_v54  ;;  %v1415_v51 = vld [vmem:[%s3526_s5 + $0x10] sm:$0xff] }
  0x5c   :  { %800 = vmatmul.mubr.bf16.gmra.mrb[28].mxu1 %v1800_v23  ;;  %985 = vmatprep.mubr.bf16.mxu0 %v1867_v63  ;;  %v2392_v21 = vpack.c.bf16 %v1416_v8, %v1415_v51  ;;  %v2395_v45 = vpack.c.bf16 %v1418_v43, %v1417_v11  ;;  %v2398_v27 = vpack.c.bf16 %v1420_v15, %v1419_v47 }
  0x5d   :  { %1267 = vmatprep.mubr.bf16.mxu1 %v1091_v58  ;;  %2388 = vmatprep.subr.bf16.mxu0 %v2538_v60  ;;  %v2401_v5 = vpack.c.bf16 %v1422_v44, %v1421_v19 }
  0x5e   :  { %2412 = vmatprep.subr.bf16.mxu1 %v2538_v60 }
  0x63   :  { %986 = vmatmul.mubr.bf16.vlgmr.msra.gmra.mrb[32].mxu0 %v3534_v29  ;;  %v1424_v29 = vld [vmem:[%s3526_s5 + $0x58] sm:$0xff] }
  0x64   :  { %1268 = vmatmul.mubr.bf16.vlgmr.msra.gmra.mrb[32].mxu1 %v1090_v17  ;;  %993 = vmatprep.mubr.bf16.mxu0 %v1869_v6  ;;  %v1423_v6 = vld [vmem:[%s3526_s5 + $0x50] sm:$0xff] }
  0x65   :  { %1275 = vmatprep.mubr.bf16.mxu1 %v1093_v7  ;;  %2390 = vmatpush3.bf16.msra.mxu0 %v2389_v49 }
  0x66   :  { %2414 = vmatpush3.bf16.msra.mxu1 %v2389_v49  ;;  %2391 = vmatprep.subr.bf16.mxu0 %v2538_v60 }
  0x67   :  { %2415 = vmatprep.subr.bf16.mxu1 %v2538_v60 }
  0x69   :  { %2393 = vmatpush3.bf16.msra.mxu0 %v2392_v21 }
  0x6a   :  { %2417 = vmatpush3.bf16.msra.mxu1 %v2392_v21  ;;  %2394 = vmatprep.subr.bf16.mxu0 %v2538_v60 }
  0x6b   :  { %994 = vmatmul.mubr.bf16.gmra.mrb[36].mxu0 %v3535_v31  ;;  %2418 = vmatprep.subr.bf16.mxu1 %v2538_v60 }
  0x6c   :  { %1276 = vmatmul.mubr.bf16.gmra.mrb[36].mxu1 %v1092_v40  ;;  %1001 = vmatprep.mubr.bf16.mxu0 %v1871_v26  ;;  %v2404_v26 = vpack.c.bf16 %v1424_v29, %v1423_v6 }
  0x6d   :  { %1283 = vmatprep.mubr.bf16.mxu1 %v1095_v12  ;;  %2396 = vmatpush3.bf16.msra.mxu0 %v2395_v45 }
  0x6e   :  { %2420 = vmatpush3.bf16.msra.mxu1 %v2395_v45  ;;  %2397 = vmatprep.subr.bf16.mxu0 %v2538_v60 }
  0x6f   :  { %2421 = vmatprep.subr.bf16.mxu1 %v2538_v60 }
  0x71   :  { %2399 = vmatpush3.bf16.msra.mxu0 %v2398_v27 }
  0x72   :  { %2423 = vmatpush3.bf16.msra.mxu1 %v2398_v27  ;;  %2400 = vmatprep.subr.bf16.mxu0 %v2538_v60 }
  0x73   :  { %1002 = vmatmul.mubr.bf16.gmra.mrb[40].mxu0 %v3536_v32  ;;  %2424 = vmatprep.subr.bf16.mxu1 %v2538_v60 }
  0x74   :  { %1284 = vmatmul.mubr.bf16.gmra.mrb[40].mxu1 %v1094_v34  ;;  %1009 = vmatprep.mubr.bf16.mxu0 %v3537_v1  ;;  %v1426_v1 = vld [vmem:[%s3526_s5 + $0x68] sm:$0xff] }
  0x75   :  { %1291 = vmatprep.mubr.bf16.mxu1 %v1097_v36  ;;  %2402 = vmatpush3.bf16.msra.mxu0 %v2401_v5 }
  0x76   :  { %2426 = vmatpush3.bf16.msra.mxu1 %v2401_v5  ;;  %2403 = vmatprep.subr.bf16.mxu0 %v2538_v60 }
  0x77   :  { %2427 = vmatprep.subr.bf16.mxu1 %v2538_v60 }
  0x79   :  { %2405 = vmatpush3.bf16.msra.mxu0 %v2404_v26 }
  0x7a   :  { %2429 = vmatpush3.bf16.msra.mxu1 %v2404_v26  ;;  %2406 = vmatprep.subr.bf16.mxu0 %v2538_v60 }
  0x7b   :  { %1010 = vmatmul.mubr.bf16.gmra.mrb[44].mxu0 %v3538_v10  ;;  %2430 = vmatprep.subr.bf16.mxu1 %v2538_v60 }
  0x7c   :  { %1292 = vmatmul.mubr.bf16.gmra.mrb[44].mxu1 %v1096_v57  ;;  %1017 = vmatprep.mubr.bf16.mxu0 %v1875_v28  ;;  %v1425_v57 = vld [vmem:[%s3526_s5 + $0x60] sm:$0xff] }
  0x7d   :  { %1299 = vmatprep.mubr.bf16.mxu1 %v1099_v4 }
  0x83   :  { %1018 = vmatmul.mubr.bf16.gmra.mrb[48].mxu0 %v3539_v33 }
  0x84   :  { %1300 = vmatmul.mubr.bf16.gmra.mrb[48].mxu1 %v1098_v35  ;;  %1025 = vmatprep.mubr.bf16.mxu0 %v1877_v14  ;;  %v2407_v35 = vpack.c.bf16 %v1426_v1, %v1425_v57 }
  0x85   :  { %1307 = vmatprep.mubr.bf16.mxu1 %v1101_v62 }
  0x86   :  { %2408 = vmatpush3.bf16.msra.mxu0 %v2407_v35  ;;  %2432 = vmatpush3.bf16.msra.mxu1 %v2407_v35 }
  0x87   :  { %2409 = vmatprep.subr.bf16.mxu0 %v2538_v60  ;;  %2433 = vmatprep.subr.bf16.mxu1 %v2538_v60 }
  0x8b   :  { %1026 = vmatmul.mubr.bf16.gmra.mrb[52].mxu0 %v3540_v53 }
  0x8c   :  { %1308 = vmatmul.mubr.bf16.gmra.mrb[52].mxu1 %v1100_v0  ;;  %1033 = vmatprep.mubr.bf16.mxu0 %v1879_v52  ;;  %v1428_v52 = vld [vmem:[%s3526_s5 + $0x78] sm:$0xff] }
  0x8d   :  { %1315 = vmatprep.mubr.bf16.mxu1 %v1103_v37  ;;  %v1427_v37 = vld [vmem:[%s3526_s5 + $0x70] sm:$0xff] }
  0x93   :  { %1034 = vmatmul.mubr.bf16.gmra.mrb[56].mxu0 %v3541_v13 }
  0x94   :  { %1316 = vmatmul.mubr.bf16.gmra.mrb[56].mxu1 %v1102_v18  ;;  %1041 = vmatprep.mubr.bf16.mxu0 %v3543_v9  ;;  %v2410_v18 = vpack.c.bf16 %v1428_v52, %v1427_v37 }
  0x95   :  { %1323 = vmatprep.mubr.bf16.mxu1 %v1105_v41  ;;  %v2540_v41 = vmov 0.0  }
  0x96   :  { %2411 = vmatpush3.bf16.msra.mxu0 %v2410_v18  ;;  %2435 = vmatpush3.bf16.msra.mxu1 %v2410_v18 }
  0x9b   :  { %1042 = vmatmul.mubr.bf16.gmra.mrb[60].mxu0 %v3544_v16 }
  0x9c   :  { %1324 = vmatmul.mubr.bf16.gmra.mrb[60].mxu1 %v1104_v39  ;;  %2350 = vmatprep.mubr.msk.f32.mxu0 %vm2539_vm1, %v2540_v41 }
  0x9d   :  { %2385 = vmatprep.mubr.msk.f32.mxu1 %vm2539_vm1, %v2540_v41 }
  0xf6   :  { %v2044_v20 = vpop.f32.mrb[0].mxu0 }
  0xf7   :  { %v2108_v56 = vpop.f32.mrb[0].mxu1  ;;  %v2045_v25 = vpop.f32.mrb[1].mxu0 }
  0xf8   :  { %v2109_v46 = vpop.f32.mrb[1].mxu1  ;;  %v2046_v30 = vadd.f32 %v2045_v25, %v2044_v20  ;;  %v2047_v38 = vpop.f32.mrb[2].mxu0 }
  0xf9   :  { %v2110_v48 = vadd.f32 %v2109_v46, %v2108_v56  ;;  %v2111_v55 = vpop.f32.mrb[2].mxu1  ;;  %v2048_v58 = vpop.f32.mrb[3].mxu0 }
  0xfa   :  { %v2112_v61 = vpop.f32.mrb[3].mxu1  ;;  %v2049_v23 = vadd.f32 %v2048_v58, %v2047_v38 }
  0xfb   :  { %v2113_v24 = vadd.f32 %v2112_v61, %v2111_v55  ;;  %v3227_v22 = vadd.f32 %v2110_v48, %v2046_v30 }
  0xfd   :  { %v3229_v59 = vadd.f32 %v2113_v24, %v2049_v23 }
  0xfe   :  { %v2050_v40 = vpop.f32.mrb[4].mxu0 }
  0xff   :  { %v2114_v50 = vpop.f32.mrb[4].mxu1  ;;  %v2051_v31 = vpop.f32.mrb[5].mxu0 }
 0x100   :  { %v2115_v42 = vpop.f32.mrb[5].mxu1  ;;  %v2052_v34 = vadd.f32 %v2051_v31, %v2050_v40  ;;  %v2053_v36 = vpop.f32.mrb[6].mxu0 }
 0x101   :  { %v2116_v63 = vadd.f32 %v2115_v42, %v2114_v50  ;;  %v2117_v17 = vpop.f32.mrb[6].mxu1  ;;  %v2054_v32 = vpop.f32.mrb[7].mxu0 }
 0x102   :  { %v2118_v7 = vpop.f32.mrb[7].mxu1  ;;  %v2055_v28 = vadd.f32 %v2054_v32, %v2053_v36 }
 0x103   :  { %v2119_v12 = vadd.f32 %v2118_v7, %v2117_v17  ;;  %v3245_v4 = vadd.f32 %v2116_v63, %v2052_v34 }
 0x105   :  { %v3247_v14 = vadd.f32 %v2119_v12, %v2055_v28 }
 0x106   :  { %v2056_v13 = vpop.f32.mrb[8].mxu0 }
 0x107   :  { %v2120_v10 = vpop.f32.mrb[8].mxu1  ;;  %v2057_v3 = vpop.f32.mrb[9].mxu0 }
 0x108   :  { %v2121_v62 = vpop.f32.mrb[9].mxu1  ;;  %v2058_v9 = vadd.f32 %v2057_v3, %v2056_v13  ;;  %v2059_v16 = vpop.f32.mrb[10].mxu0 }
 0x109   :  { %v2122_v33 = vadd.f32 %v2121_v62, %v2120_v10  ;;  %v2123_v0 = vpop.f32.mrb[10].mxu1  ;;  %v2060_v54 = vpop.f32.mrb[11].mxu0 }
 0x10a   :  { %v2124_v53 = vpop.f32.mrb[11].mxu1  ;;  %v2061_v49 = vadd.f32 %v2060_v54, %v2059_v16 }
 0x10b   :  { %v2125_v39 = vadd.f32 %v2124_v53, %v2123_v0  ;;  %v3257_v2 = vadd.f32 %v2122_v33, %v2058_v9 }
 0x10d   :  { %v3259_v11 = vadd.f32 %v2125_v39, %v2061_v49 }
 0x10e   :  { %v2062_v47 = vpop.f32.mrb[12].mxu0 }
 0x10f   :  { %v2126_v51 = vpop.f32.mrb[12].mxu1  ;;  %v2063_v60 = vpop.f32.mrb[13].mxu0 }
 0x110   :  { %v2127_v8 = vpop.f32.mrb[13].mxu1  ;;  %v2064_v27 = vadd.f32 %v2063_v60, %v2062_v47  ;;  %v2065_v56 = vpop.f32.mrb[14].mxu0 }
 0x111   :  { %v2128_v21 = vadd.f32 %v2127_v8, %v2126_v51  ;;  %v2129_v43 = vpop.f32.mrb[14].mxu1  ;;  %v2066_v46 = vpop.f32.mrb[15].mxu0 }
 0x112   :  { %v2130_v45 = vpop.f32.mrb[15].mxu1  ;;  %v2067_v55 = vadd.f32 %v2066_v46, %v2065_v56 }
 0x113   :  { %v2131_v15 = vadd.f32 %v2130_v45, %v2129_v43  ;;  %v3261_v48 = vadd.f32 %v2128_v21, %v2064_v27 }
 0x115   :  { %v3263_v61 = vadd.f32 %v2131_v15, %v2067_v55 }
 0x116   :  { %v2068_v25 = vpop.f32.mrb[16].mxu0 }
 0x117   :  { %v2132_v19 = vpop.f32.mrb[16].mxu1  ;;  %v2069_v38 = vpop.f32.mrb[17].mxu0 }
 0x118   :  { %v2133_v44 = vpop.f32.mrb[17].mxu1  ;;  %v2070_v58 = vadd.f32 %v2069_v38, %v2068_v25  ;;  %v2071_v23 = vpop.f32.mrb[18].mxu0 }
 0x119   :  { %v2134_v5 = vadd.f32 %v2133_v44, %v2132_v19  ;;  %v2135_v20 = vpop.f32.mrb[18].mxu1  ;;  %v2072_v50 = vpop.f32.mrb[19].mxu0 }
 0x11a   :  { %v2136_v24 = vpop.f32.mrb[19].mxu1  ;;  %v2073_v63 = vadd.f32 %v2072_v50, %v2071_v23 }
 0x11b   :  { %v2137_v30 = vadd.f32 %v2136_v24, %v2135_v20  ;;  %v3265_v42 = vadd.f32 %v2134_v5, %v2070_v58 }
 0x11d   :  { %v3267_v6 = vadd.f32 %v2137_v30, %v2073_v63 }
 0x11e   :  { %v2074_v26 = vpop.f32.mrb[20].mxu0 }
 0x11f   :  { %v2138_v17 = vpop.f32.mrb[20].mxu1  ;;  %v2075_v34 = vpop.f32.mrb[21].mxu0 }
 0x120   :  { %v2139_v7 = vpop.f32.mrb[21].mxu1  ;;  %v2076_v36 = vadd.f32 %v2075_v34, %v2074_v26  ;;  %v2077_v32 = vpop.f32.mrb[22].mxu0 }
 0x121   :  { %v2140_v29 = vadd.f32 %v2139_v7, %v2138_v17  ;;  %v2141_v40 = vpop.f32.mrb[22].mxu1  ;;  %v2078_v57 = vpop.f32.mrb[23].mxu0 }
 0x122   :  { %v2142_v12 = vpop.f32.mrb[23].mxu1  ;;  %v2079_v28 = vadd.f32 %v2078_v57, %v2077_v32 }
 0x123   :  { %v2143_v31 = vadd.f32 %v2142_v12, %v2141_v40  ;;  %v3269_v1 = vadd.f32 %v2140_v29, %v2076_v36 }
 0x125   :  { %v3271_v62 = vadd.f32 %v2143_v31, %v2079_v28 }
 0x126   :  { %v2080_v52 = vpop.f32.mrb[24].mxu0 }
 0x127   :  { %v2144_v10 = vpop.f32.mrb[24].mxu1  ;;  %v2081_v18 = vpop.f32.mrb[25].mxu0 }
 0x128   :  { %v2145_v35 = vpop.f32.mrb[25].mxu1  ;;  %v2082_v41 = vadd.f32 %v2081_v18, %v2080_v52  ;;  %v2083_v13 = vpop.f32.mrb[26].mxu0 }
 0x129   :  { %v2146_v33 = vadd.f32 %v2145_v35, %v2144_v10  ;;  %v2147_v0 = vpop.f32.mrb[26].mxu1  ;;  %v2084_v39 = vpop.f32.mrb[27].mxu0 }
 0x12a   :  { %v2148_v37 = vpop.f32.mrb[27].mxu1  ;;  %v2085_v9 = vadd.f32 %v2084_v39, %v2083_v13 }
 0x12b   :  { %v2149_v53 = vadd.f32 %v2148_v37, %v2147_v0  ;;  %v3273_v3 = vadd.f32 %v2146_v33, %v2082_v41 }
 0x12d   :  { %v3275_v49 = vadd.f32 %v2149_v53, %v2085_v9 }
 0x12e   :  { %v2086_v43 = vpop.f32.mrb[28].mxu0 }
 0x12f   :  { %v2150_v16 = vpop.f32.mrb[28].mxu1  ;;  %v2087_v47 = vpop.f32.mrb[29].mxu0 }
 0x130   :  { %v2151_v54 = vpop.f32.mrb[29].mxu1  ;;  %v2088_v15 = vadd.f32 %v2087_v47, %v2086_v43  ;;  %v2089_v60 = vpop.f32.mrb[30].mxu0 }
 0x131   :  { %v2152_v51 = vadd.f32 %v2151_v54, %v2150_v16  ;;  %v2153_v8 = vpop.f32.mrb[30].mxu1  ;;  %v2090_v27 = vpop.f32.mrb[31].mxu0 }
 0x132   :  { %v2154_v21 = vpop.f32.mrb[31].mxu1  ;;  %v2091_v46 = vadd.f32 %v2090_v27, %v2089_v60 }
 0x133   :  { %v2155_v45 = vadd.f32 %v2154_v21, %v2153_v8  ;;  %v3277_v56 = vadd.f32 %v2152_v51, %v2088_v15 }
 0x135   :  { %v3279_v44 = vadd.f32 %v2155_v45, %v2091_v46 }
 0x136   :  { %v2172_v25 = vpop.f32.mrb[32].mxu0 }
 0x137   :  { %v2236_v55 = vpop.f32.mrb[32].mxu1  ;;  %v2173_v38 = vpop.f32.mrb[33].mxu0 }
 0x138   :  { %v2237_v19 = vpop.f32.mrb[33].mxu1  ;;  %v2174_v58 = vadd.f32 %v2173_v38, %v2172_v25  ;;  %v2175_v23 = vpop.f32.mrb[34].mxu0 }
 0x139   :  { %v2238_v5 = vadd.f32 %v2237_v19, %v2236_v55  ;;  %v2239_v20 = vpop.f32.mrb[34].mxu1  ;;  %v2176_v50 = vpop.f32.mrb[35].mxu0 }
 0x13a   :  { %v2240_v24 = vpop.f32.mrb[35].mxu1  ;;  %v1050_v63 = vadd.f32 %v2174_v58, %v3227_v22  ;;  %v2177_v17 = vadd.f32 %v2176_v50, %v2175_v23  ;;  %v3291_v50 = vld [vmem:[%s3527_s2] ss:$0 sm:$0xff] }
 0x13b   :  { %v2241_v30 = vadd.f32 %v2240_v24, %v2239_v20 }
 0x13c   :  { %v1332_v40 = vadd.f32 %v2238_v5, %v1050_v63  ;;  %v1051_v12 = vadd.f32 %v2177_v17, %v3229_v59 }
 0x13e   :  { %v1333_v36 = vadd.f32 %v2241_v30, %v1051_v12  ;;  %v2178_v32 = vpop.f32.mrb[36].mxu0 }
 0x13f   :  { %v2242_v7 = vpop.f32.mrb[36].mxu1  ;;  %v2179_v28 = vpop.f32.mrb[37].mxu0 }
 0x140   :  { %v2243_v29 = vpop.f32.mrb[37].mxu1  ;;  %v2180_v10 = vadd.f32 %v2179_v28, %v2178_v32  ;;  %v2181_v35 = vpop.f32.mrb[38].mxu0 }
 0x141   :  { %v2244_v26 = vadd.f32 %v2243_v29, %v2242_v7  ;;  %v2245_v31 = vpop.f32.mrb[38].mxu1  ;;  %v2182_v33 = vpop.f32.mrb[39].mxu0  ;;  %v3295_v29 = vadd.f32 %v3291_v50, %v1333_v36 }
 0x142   :  { %v2246_v34 = vpop.f32.mrb[39].mxu1  ;;  %v1052_v0 = vadd.f32 %v2180_v10, %v3245_v4  ;;  %v2183_v37 = vadd.f32 %v2182_v33, %v2181_v35 }
 0x143   :  { %v2247_v57 = vadd.f32 %v2246_v34, %v2245_v31  ;;  %v3298_v34 = vadd.f32 %v3291_v50, %v1332_v40 }
 0x144   :  { %v1334_v53 = vadd.f32 %v2244_v26, %v1052_v0  ;;  %v1053_v18 = vadd.f32 %v2183_v37, %v3247_v14 }
 0x145   :  { %v1371_v37 = vmax.f32 %v3298_v34, 0.0 }
 0x146   :  { %v1335_v39 = vadd.f32 %v2247_v57, %v1053_v18  ;;  %v2184_v9 = vpop.f32.mrb[40].mxu0  ;;  %v3301_v32 = vadd.f32 %v3291_v50, %v1334_v53 }
 0x147   :  { %v2248_v22 = vpop.f32.mrb[40].mxu1  ;;  %v2185_v54 = vpop.f32.mrb[41].mxu0 }
 0x148   :  { %v2249_v52 = vpop.f32.mrb[41].mxu1  ;;  %v2186_v51 = vadd.f32 %v2185_v54, %v2184_v9  ;;  %v2187_v8 = vpop.f32.mrb[42].mxu0  ;;  %v3308_v40 = vadd.f32 %v3291_v50, %v1335_v39 }
 0x149   :  { %v2250_v41 = vadd.f32 %v2249_v52, %v2248_v22  ;;  %v2251_v59 = vpop.f32.mrb[42].mxu1  ;;  %v2188_v21 = vpop.f32.mrb[43].mxu0  ;;  %v1373_v22 = vmax.f32 %v3301_v32, 0.0 }
 0x14a   :  { %v2252_v13 = vpop.f32.mrb[43].mxu1  ;;  %v1054_v43 = vadd.f32 %v2186_v51, %v3257_v2  ;;  %v2189_v45 = vadd.f32 %v2188_v21, %v2187_v8  ;;  %v1374_v8 = vmax.f32 %v3308_v40, 0.0 }
 0x14b   :  { %v2253_v16 = vadd.f32 %v2252_v13, %v2251_v59 }
 0x14c   :  { %v1336_v15 = vadd.f32 %v2250_v41, %v1054_v43  ;;  %v1055_v60 = vadd.f32 %v2189_v45, %v3259_v11 }
 0x14e   :  { %v1337_v55 = vadd.f32 %v2253_v16, %v1055_v60  ;;  %v2190_v19 = vpop.f32.mrb[44].mxu0  ;;  %v3316_v13 = vadd.f32 %v3291_v50, %v1336_v15 }
 0x14f   :  { %v2254_v4 = vpop.f32.mrb[44].mxu1  ;;  %v2191_v20 = vpop.f32.mrb[45].mxu0 }
 0x150   :  { %v2255_v47 = vpop.f32.mrb[45].mxu1  ;;  %v2192_v24 = vadd.f32 %v2191_v20, %v2190_v19  ;;  %v2193_v25 = vpop.f32.mrb[46].mxu0  ;;  %v1375_v45 = vmax.f32 %v3316_v13, 0.0 }
 0x151   :  { %v2256_v27 = vadd.f32 %v2255_v47, %v2254_v4  ;;  %v2257_v14 = vpop.f32.mrb[46].mxu1  ;;  %v2194_v30 = vpop.f32.mrb[47].mxu0  ;;  %v3323_v4 = vadd.f32 %v3291_v50, %v1337_v55 }
 0x152   :  { %v2258_v46 = vpop.f32.mrb[47].mxu1  ;;  %v1056_v38 = vadd.f32 %v2192_v24, %v3261_v48  ;;  %v2195_v58 = vadd.f32 %v2194_v30, %v2193_v25 }
 0x153   :  { %v2259_v5 = vadd.f32 %v2258_v46, %v2257_v14 }
 0x154   :  { %v1338_v11 = vadd.f32 %v2256_v27, %v1056_v38  ;;  %v1057_v63 = vadd.f32 %v2195_v58, %v3263_v61  ;;  %v1372_v61 = vmax.f32 %v3295_v29, 0.0 }
 0x156   :  { %v1339_v26 = vadd.f32 %v2259_v5, %v1057_v63  ;;  %v2196_v31 = vpop.f32.mrb[48].mxu0  ;;  %v3329_v46 = vadd.f32 %v3291_v50, %v1338_v11 }
 0x157   :  { %v2260_v2 = vpop.f32.mrb[48].mxu1  ;;  %v2197_v57 = vpop.f32.mrb[49].mxu0 }
 0x158   :  { %v2261_v23 = vpop.f32.mrb[49].mxu1  ;;  %v2198_v28 = vadd.f32 %v2197_v57, %v2196_v31  ;;  %v2199_v10 = vpop.f32.mrb[50].mxu0 }
 0x159   :  { %v2262_v17 = vadd.f32 %v2261_v23, %v2260_v2  ;;  %v2263_v7 = vpop.f32.mrb[50].mxu1  ;;  %v2200_v35 = vpop.f32.mrb[51].mxu0 }
 0x15a   :  { %v2264_v12 = vpop.f32.mrb[51].mxu1  ;;  %v1058_v33 = vadd.f32 %v2198_v28, %v3265_v42  ;;  %v2201_v36 = vadd.f32 %v2200_v35, %v2199_v10  ;;  %v1387_v42 = vadd.f32 %v1372_v61, %v1371_v37 }
 0x15b   :  { %v2265_v48 = vadd.f32 %v2264_v12, %v2263_v7 }
 0x15c   :  { %v1340_v53 = vadd.f32 %v2262_v17, %v1058_v33  ;;  %v1059_v18 = vadd.f32 %v2201_v36, %v3267_v6  ;;  %v1388_v39 = vadd.f32 %v1387_v42, %v1373_v22  ;;  %v1377_v17 = vmax.f32 %v3329_v46, 0.0 }
 0x15e   :  { %v1341_v16 = vadd.f32 %v2265_v48, %v1059_v18  ;;  %v2202_v54 = vpop.f32.mrb[52].mxu0  ;;  %v1389_v14 = vadd.f32 %v1388_v39, %v1374_v8  ;;  %v3339_v30 = vadd.f32 %v3291_v50, %v1340_v53 }
 0x15f   :  { %v2266_v0 = vpop.f32.mrb[52].mxu1  ;;  %v2203_v6 = vpop.f32.mrb[53].mxu0 }
 0x160   :  { %v2267_v52 = vpop.f32.mrb[53].mxu1  ;;  %v2204_v21 = vadd.f32 %v2203_v6, %v2202_v54  ;;  %v2205_v43 = vpop.f32.mrb[54].mxu0  ;;  %v3332_v19 = vadd.f32 %v3291_v50, %v1341_v16  ;;  %v1390_v25 = vadd.f32 %v1389_v14, %v1375_v45  ;;  %v1379_v28 = vmax.f32 %v3339_v30, 0.0 }
 0x161   :  { %v2268_v41 = vadd.f32 %v2267_v52, %v2266_v0  ;;  %v2269_v59 = vpop.f32.mrb[54].mxu1  ;;  %v2206_v47 = vpop.f32.mrb[55].mxu0 }
 0x162   :  { %v2270_v9 = vpop.f32.mrb[55].mxu1  ;;  %v1060_v15 = vadd.f32 %v2204_v21, %v3269_v1  ;;  %v2207_v60 = vadd.f32 %v2206_v47, %v2205_v43  ;;  %v1376_v1 = vmax.f32 %v3323_v4, 0.0  ;;  %v1380_v7 = vmax.f32 %v3332_v19, 0.0 }
 0x163   :  { %v2271_v51 = vadd.f32 %v2270_v9, %v2269_v59 }
 0x164   :  { %v1342_v20 = vadd.f32 %v2268_v41, %v1060_v15  ;;  %v1061_v24 = vadd.f32 %v2207_v60, %v3271_v62  ;;  %v3346_v62 = vadd.f32 %v3291_v50, %v1339_v26  ;;  %v1391_v57 = vadd.f32 %v1390_v25, %v1376_v1 }
 0x165   :  { %v1400_v18 = vadd.f32 %v1380_v7, %v1379_v28 }
 0x166   :  { %v3342_v2 = vadd.f32 %v3291_v50, %v1342_v20  ;;  %v1343_v23 = vadd.f32 %v2271_v51, %v1061_v24  ;;  %v2208_v11 = vpop.f32.mrb[56].mxu0  ;;  %v1392_v52 = vadd.f32 %v1391_v57, %v1377_v17  ;;  %v1378_v53 = vmax.f32 %v3346_v62, 0.0 }
 0x167   :  { %v2272_v27 = vpop.f32.mrb[56].mxu1  ;;  %v2209_v12 = vpop.f32.mrb[57].mxu0 }
 0x168   :  { %v2273_v5 = vpop.f32.mrb[57].mxu1  ;;  %v2210_v31 = vadd.f32 %v2209_v12, %v2208_v11  ;;  %v2211_v48 = vpop.f32.mrb[58].mxu0  ;;  %v1381_v10 = vmax.f32 %v3342_v2, 0.0  ;;  %v3354_v33 = vadd.f32 %v3291_v50, %v1343_v23  ;;  %v1393_v47 = vadd.f32 %v1392_v52, %v1378_v53 }
 0x169   :  { %v2275_v55 = vpop.f32.mrb[58].mxu1  ;;  %v2274_v38 = vadd.f32 %v2273_v5, %v2272_v27  ;;  %v2212_v35 = vpop.f32.mrb[59].mxu0 }
 0x16a   :  { %v2276_v58 = vpop.f32.mrb[59].mxu1  ;;  %v1062_v36 = vadd.f32 %v2210_v31, %v3273_v3  ;;  %v2213_v26 = vadd.f32 %v2212_v35, %v2211_v48  ;;  %v1401_v3 = vadd.f32 %v1400_v18, %v1381_v10  ;;  %v1382_v51 = vmax.f32 %v3354_v33, 0.0 }
 0x16b   :  { %v2277_v63 = vadd.f32 %v2276_v58, %v2275_v55  ;;  %v1394_v25 = vrot.slane %v1393_v47, 4 }
 0x16c   :  { %v1344_v59 = vadd.f32 %v2274_v38, %v1062_v36  ;;  %v1063_v42 = vadd.f32 %v2213_v26, %v3275_v49  ;;  %v1402_v20 = vadd.f32 %v1401_v3, %v1382_v51 }
 0x16d   :  { %v1395_v31 = vadd.f32 %v1394_v25, %v1393_v47 }
 0x16e   :  { %v3369_v39 = vadd.f32 %v3291_v50, %v1344_v59  ;;  %v1345_v6 = vadd.f32 %v2277_v63, %v1063_v42  ;;  %v2214_v21 = vpop.f32.mrb[60].mxu0 }
 0x16f   :  { %v2278_v0 = vpop.f32.mrb[60].mxu1  ;;  %v2215_v15 = vpop.f32.mrb[61].mxu0  ;;  %v1396_v26 = vrot.slane %v1395_v31, 2 }
 0x170   :  { %v2279_v41 = vpop.f32.mrb[61].mxu1  ;;  %v1383_v49 = vmax.f32 %v3369_v39, 0.0  ;;  %v3375_v60 = vadd.f32 %v3291_v50, %v1345_v6  ;;  %v2216_v27 = vadd.f32 %v2215_v15, %v2214_v21  ;;  %v2217_v14 = vpop.f32.mrb[62].mxu0  ;;  %v1508_v21 = vlaneseq }
 0x171   :  { %v2280_v9 = vadd.f32 %v2279_v41, %v2278_v0  ;;  %v2281_v16 = vpop.f32.mrb[62].mxu1  ;;  %v2218_v5 = vpop.f32.mrb[63].mxu0  ;;  %v1397_v18 = vadd.f32 %v1396_v26, %v1395_v31 }
 0x172   :  { %v2282_v54 = vpop.f32.mrb[63].mxu1  ;;  %v1064_v24 = vadd.f32 %v2216_v27, %v3277_v56  ;;  %v2219_v55 = vadd.f32 %v2218_v5, %v2217_v14  ;;  %v1403_v38 = vadd.f32 %v1402_v20, %v1383_v49  ;;  %v1384_v58 = vmax.f32 %v3375_v60, 0.0 }
 0x173   :  { %v2283_v43 = vadd.f32 %v2282_v54, %v2281_v16  ;;  %v1398_v42 = vrot.slane %v1397_v18, 1  ;;  %v1509_v47 = vshrl.u32 %v1508_v21, 7 }
 0x174   :  { %v1346_v23 = vadd.f32 %v2280_v9, %v1064_v24  ;;  %v1065_v11 = vadd.f32 %v2219_v55, %v3279_v44  ;;  %v1404_v48 = vadd.f32 %v1403_v38, %v1384_v58 }
 0x175   :  { %v1399_v16 = vadd.f32 %v1398_v42, %v1397_v18  ;;  %v3396_v14 = vsub.s32 0, %v1509_v47 }
 0x176   :  { %v3385_v63 = vadd.f32 %v3291_v50, %v1346_v23  ;;  %v1347_v12 = vadd.f32 %v2283_v43, %v1065_v11 }
 0x178   :  { %v1385_v57 = vmax.f32 %v3385_v63, 0.0  ;;  %v3389_v56 = vadd.f32 %v3291_v50, %v1347_v12  ;;  %v2541_v50 = vmov 1966171168  }
 0x179   :  { %v1506_v6 = vunpack.c.l.s4 %v2541_v50 }
 0x17a   :  { %v1405_v35 = vadd.f32 %v1404_v48, %v1385_v57  ;;  %v1386_v36 = vmax.f32 %v3389_v56, 0.0 }
 0x17b   :  { %v1507_v43 = vunpack.c.0.s8 %v1506_v6 }
 0x17c   :  { %v1406_v0 = vadd.f32 %v1405_v35, %v1386_v36 }
 0x17d   :  { %v3393_v15 = vsub.s32 %v1507_v43, %v1509_v47 }
 0x17e   :  { %v1407_v52 = vrot.slane %v1406_v0, 4 }
 0x180   :  { %v1408_v41 = vadd.f32 %v1407_v52, %v1406_v0 }
 0x182   :  { %v1409_v44 = vrot.slane %v1408_v41, 2 }
 0x184   :  { %v1410_v59 = vadd.f32 %v1409_v44, %v1408_v41 }
 0x186   :  { %v1411_v9 = vrot.slane %v1410_v59, 1 }
 0x188   :  { %v1412_v3 = vadd.f32 %v1411_v9, %v1410_v59 }
 0x18a   :  { %v1432_v54 = vsel %vm1431_vm2, %v1412_v3, %v1399_v16 }
 0x18b   :  { %2351 = vmatmul.mubr.f32.vlgmr.msra.gmra.mrb[64].mxu0 %v1432_v54 }
 0x25e   :  { %v1500_v60 = vpop.f32.mrb[64].mxu0 }
 0x25f   :  { %v1511_v27 = vrot.slane %v1500_v60, %v3393_v15  ;;  %v2352_v5 = vpop.f32.mrb[65].mxu0 }
 0x261   :  { %v1512_v20 = vcombine.high %v1511_v27, %v1511_v27  ;;  %v1519_v24 = vrot.slane %v1511_v27, %v3393_v15 }
 0x263   :  { %v1526_v55 = vrot.slane %v1512_v20, %v3393_v15  ;;  %v1530_v25 = vrot.slane %v1519_v24, %v3396_v14 }
 0x265   :  { %v1534_v38 = vrot.slane %v1526_v55, %v3396_v14  ;;  %v3404_v23 = vsub.f32 %v1371_v37, %v1530_v25  ;;  %v3408_v11 = vsub.f32 %v1372_v61, %v1530_v25  ;;  %v3420_v31 = vsub.f32 %v1373_v22, %v1530_v25 }
 0x266   :  { %v3432_v37 = vsub.f32 %v1374_v8, %v1530_v25  ;;  %v3444_v30 = vsub.f32 %v1375_v45, %v1530_v25  ;;  %v1544_v35 = vsub.f32 %v1378_v53, %v1530_v25 }
 0x267   :  { %v3412_v63 = vsub.f32 %v1379_v28, %v1534_v38  ;;  %v3416_v12 = vsub.f32 %v1380_v7, %v1534_v38  ;;  %v3424_v34 = vsub.f32 %v1381_v10, %v1534_v38  ;;  %v1553_v29 = vmul.f32 %v3404_v23, %v3404_v23 }
 0x268   :  { %v1554_v61 = vmul.f32 %v3408_v11, %v3408_v11  ;;  %v3436_v19 = vsub.f32 %v1382_v51, %v1534_v38  ;;  %v3448_v2 = vsub.f32 %v1383_v49, %v1534_v38  ;;  %v1555_v40 = vmul.f32 %v3420_v31, %v3420_v31 }
 0x269   :  { %v1561_v32 = vmul.f32 %v3412_v63, %v3412_v63  ;;  %v1562_v22 = vmul.f32 %v3416_v12, %v3416_v12  ;;  %v1563_v8 = vmul.f32 %v3424_v34, %v3424_v34  ;;  %v1542_v10 = vsub.f32 %v1376_v1, %v1530_v25 }
 0x26a   :  { %v1569_v7 = vadd.f32 %v1554_v61, %v1553_v29  ;;  %v3456_v33 = vsub.f32 %v1384_v58, %v1534_v38  ;;  %v1556_v13 = vmul.f32 %v3432_v37, %v3432_v37  ;;  %v1564_v45 = vmul.f32 %v3436_v19, %v3436_v19  ;;  %v1979_v29 = vld [vmem:[%s3528_s3] ss:$0 sm:$0xff] }
 0x26b   :  { %v1582_v28 = vadd.f32 %v1562_v22, %v1561_v32  ;;  %v1543_v49 = vsub.f32 %v1377_v17, %v1530_v25  ;;  %v3464_v48 = vsub.f32 %v1385_v57, %v1534_v38  ;;  %v1557_v56 = vmul.f32 %v3444_v30, %v3444_v30 }
 0x26c   :  { %v1570_v51 = vadd.f32 %v1569_v7, %v1555_v40  ;;  %v1565_v4 = vmul.f32 %v3448_v2, %v3448_v2  ;;  %v1552_v26 = vsub.f32 %v1386_v36, %v1534_v38  ;;  %v1558_v0 = vmul.f32 %v1542_v10, %v1542_v10 }
 0x26d   :  { %v1583_v39 = vadd.f32 %v1582_v28, %v1563_v8  ;;  %v1566_v52 = vmul.f32 %v3456_v33, %v3456_v33  ;;  %v1559_v57 = vmul.f32 %v1543_v49, %v1543_v49  ;;  %v1567_v18 = vmul.f32 %v3464_v48, %v3464_v48 }
 0x26e   :  { %v1571_v1 = vadd.f32 %v1570_v51, %v1556_v13  ;;  %v1560_v59 = vmul.f32 %v1544_v35, %v1544_v35  ;;  %v1568_v42 = vmul.f32 %v1552_v26, %v1552_v26 }
 0x26f   :  { %v1584_v58 = vadd.f32 %v1583_v39, %v1564_v45 }
 0x270   :  { %v1572_v46 = vadd.f32 %v1571_v1, %v1557_v56 }
 0x271   :  { %v1585_v17 = vadd.f32 %v1584_v58, %v1565_v4 }
 0x272   :  { %v1573_v41 = vadd.f32 %v1572_v46, %v1558_v0 }
 0x273   :  { %v1586_v44 = vadd.f32 %v1585_v17, %v1566_v52 }
 0x274   :  { %v1574_v9 = vadd.f32 %v1573_v41, %v1559_v57 }
 0x275   :  { %v1587_v16 = vadd.f32 %v1586_v44, %v1567_v18 }
 0x276   :  { %v1575_v3 = vadd.f32 %v1574_v9, %v1560_v59 }
 0x277   :  { %v1588_v62 = vadd.f32 %v1587_v16, %v1568_v42 }
 0x278   :  { %v1576_v53 = vrot.slane %v1575_v3, 4 }
 0x279   :  { %v1589_v36 = vrot.slane %v1588_v62, 4 }
 0x27a   :  { %v1577_v54 = vadd.f32 %v1576_v53, %v1575_v3 }
 0x27b   :  { %v1590_v50 = vadd.f32 %v1589_v36, %v1588_v62 }
 0x27c   :  { %v1578_v6 = vrot.slane %v1577_v54, 2 }
 0x27d   :  { %v1591_v21 = vrot.slane %v1590_v50, 2 }
 0x27e   :  { %v1579_v43 = vadd.f32 %v1578_v6, %v1577_v54 }
 0x27f   :  { %v1592_v47 = vadd.f32 %v1591_v21, %v1590_v50 }
 0x280   :  { %v1580_v60 = vrot.slane %v1579_v43, 1 }
 0x281   :  { %v1593_v27 = vrot.slane %v1592_v47, 1 }
 0x282   :  { %v1581_v5 = vadd.f32 %v1580_v60, %v1579_v43 }
 0x283   :  { %v1594_v20 = vadd.f32 %v1593_v27, %v1592_v47 }
 0x285   :  { %v1597_v24 = vsel %vm1431_vm2, %v1594_v20, %v1581_v5 }
 0x286   :  { %2386 = vmatmul.mubr.f32.vlgmr.msra.gmra.mrb[64].mxu1 %v1597_v24 }
 0x359   :  { %v1665_v55 = vpop.f32.mrb[64].mxu1 }
 0x35a   :  { %v1666_v25 = vadd.f32 1e-05, %v1665_v55  ;;  %v2387_v38 = vpop.f32.mrb[65].mxu1 }
 0x35c   :  { %2536 = vrsqrt.f32 %v1666_v25 }
 0x366   :  { %v2537_v61 = vpop.eup %2536 }
 0x367   :  { %v1677_v32 = vmul.f32 %v2537_v61, %v1979_v29 }
 0x369   :  { %v1685_v22 = vrot.slane %v1677_v32, %v3393_v15 }
 0x36b   :  { %v1686_v40 = vcombine.high %v1685_v22, %v1685_v22  ;;  %v1693_v8 = vrot.slane %v1685_v22, %v3393_v15 }
 0x36d   :  { %v1700_v7 = vrot.slane %v1686_v40, %v3393_v15  ;;  %v1704_v28 = vrot.slane %v1693_v8, %v3396_v14  ;;  %v1980_v15 = vld [vmem:[%s3529_s4] ss:$0 sm:$0xff] }
 0x36f   :  { %v1708_v13 = vrot.slane %v1700_v7, %v3396_v14  ;;  %v1711_v45 = vmul.f32 %v1704_v28, %v3404_v23  ;;  %v1712_v51 = vmul.f32 %v1704_v28, %v3408_v11  ;;  %v1713_v39 = vmul.f32 %v1704_v28, %v3420_v31 }
 0x370   :  { %v1714_v56 = vmul.f32 %v1704_v28, %v3432_v37  ;;  %v1715_v4 = vmul.f32 %v1704_v28, %v3444_v30  ;;  %v1716_v1 = vmul.f32 %v1704_v28, %v1542_v10  ;;  %v1717_v58 = vmul.f32 %v1704_v28, %v1543_v49 }
 0x371   :  { %v1718_v0 = vmul.f32 %v1704_v28, %v1544_v35  ;;  %v1719_v52 = vmul.f32 %v1708_v13, %v3412_v63  ;;  %v1720_v14 = vmul.f32 %v1708_v13, %v3416_v12  ;;  %v1721_v23 = vmul.f32 %v1708_v13, %v3424_v34 }
 0x372   :  { %v1722_v11 = vmul.f32 %v1708_v13, %v3436_v19  ;;  %v1723_v31 = vmul.f32 %v1708_v13, %v3448_v2  ;;  %v1724_v37 = vmul.f32 %v1708_v13, %v3456_v33  ;;  %v1725_v30 = vmul.f32 %v1708_v13, %v3464_v48 }
 0x373   :  { %v1726_v10 = vmul.f32 %v1708_v13, %v1552_v26  ;;  %v1734_v49 = vadd.f32 %v1980_v15, %v1711_v45  ;;  %v1735_v46 = vadd.f32 %v1980_v15, %v1712_v51  ;;  %v1736_v17 = vadd.f32 %v1980_v15, %v1713_v39 }
 0x374   :  { %v1737_v57 = vadd.f32 %v1980_v15, %v1714_v56  ;;  %v1738_v35 = vadd.f32 %v1980_v15, %v1715_v4  ;;  %v1739_v18 = vadd.f32 %v1980_v15, %v1716_v1  ;;  %v1740_v63 = vadd.f32 %v1980_v15, %v1717_v58 }
 0x375   :  { %v1741_v41 = vadd.f32 %v1980_v15, %v1718_v0  ;;  %v1742_v12 = vadd.f32 %v1980_v15, %v1719_v52  ;;  %v1743_v44 = vadd.f32 %v1980_v15, %v1720_v14  ;;  %v1744_v34 = vadd.f32 %v1980_v15, %v1721_v23 }
 0x376   :  { %v1745_v59 = vadd.f32 %v1980_v15, %v1722_v11  ;;  %v1746_v19 = vadd.f32 %v1980_v15, %v1723_v31  ;;  %v1747_v42 = vadd.f32 %v1980_v15, %v1724_v37  ;;  %v1748_v2 = vadd.f32 %v1980_v15, %v1725_v30 }
 0x377   :  { %v1749_v9 = vadd.f32 %v1980_v15, %v1726_v10  ;;  %v1984_v33 = vpack.c.bf16 %v1735_v46, %v1734_v49  ;;  %v1989_v16 = vpack.c.bf16 %v1737_v57, %v1736_v17  ;;  %v1994_v48 = vpack.c.bf16 %v1739_v18, %v1738_v35 }
 0x378   :  { %v1999_v26 = vpack.c.bf16 %v1741_v41, %v1740_v63  ;;  %v2004_v3 = vpack.c.bf16 %v1743_v44, %v1742_v12  ;;  %v2009_v62 = vpack.c.bf16 %v1745_v59, %v1744_v34  ;;  %v2014_v53 = vpack.c.bf16 %v1747_v42, %v1746_v19 }
 0x379   :  { %1985 = vst [vmem:[%s3530_s6] sm:$0xff] %v1984_v33   ;;  %2021 = vst [vmem:[%s3530_s6 + $0x8] sm:$0xff] %v1989_v16   ;;  %v2019_v36 = vpack.c.bf16 %v1749_v9, %v1748_v2 }
 0x37a   :  { %2022 = vst [vmem:[%s3530_s6 + $0x10] sm:$0xff] %v1994_v48   ;;  %2023 = vst [vmem:[%s3530_s6 + $0x18] sm:$0xff] %v1999_v26  }
 0x37b   :  { %2024 = vst [vmem:[%s3530_s6 + $0x20] sm:$0xff] %v2004_v3   ;;  %2025 = vst [vmem:[%s3530_s6 + $0x28] sm:$0xff] %v2009_v62  }
 0x37c   :  { %2026 = vst [vmem:[%s3530_s6 + $0x30] sm:$0xff] %v2014_v53   ;;  %2027 = vst [vmem:[%s3530_s6 + $0x38] sm:$0xff] %v2019_v36  }

// kernel: mnist_cnn_forward.6
= control target key start
LH: loop header
LB: loop body
LE: loop exit
PB: predicated region body
PF: predicated region fallthrough
CT: control target
= control target key end

     0   :  { %vm160_vm0 = vcmask 1046528   ;;  %vm540_vm1 = vcmask 1045504   ;;  %vm3444_vm2 = vmmov 0   ;;  %vm2012_vm3 = vcmask 1041409   ;;  %s4712_s1 = inlined_call_operand.vmem [shape: bf16[9,128,128], index: 1, kind: input, shape index: {}]   ;;  %s4713_s0 = inlined_call_operand.vmem [shape: bf16[2,10,10,128], index: 0, kind: input, shape index: {}]   ;;  %s4714_s5 = inlined_call_operand.vmem [shape: f32[128,128], index: 5, kind: input, shape index: {}]   ;;  %s4715_s2 = inlined_call_operand.vmem [shape: f32[1,128], index: 2, kind: input, shape index: {}]   ;;  %s4716_s3 = inlined_call_operand.vmem [shape: f32[1,128], index: 3, kind: input, shape index: {}]   ;;  %s4717_s4 = inlined_call_operand.vmem [shape: f32[1,128], index: 4, kind: input, shape index: {}]   ;;  %s4718_s6 = inlined_call_operand.vmem [shape: bf16[2,8,8,128], index: 6, kind: output, shape index: {}]  }
   0x1   :  { %v3351_v0 = vld [vmem:[%s4712_s1 + $0x40] sm:$0xff]   ;;  %v3353_v2 = vld [vmem:[%s4712_s1 + $0x48] sm:$0xff]   ;;  %v3355_v4 = vld [vmem:[%s4712_s1 + $0x50] sm:$0xff]  }
   0x2   :  { %v3352_v1 = vld [vmem:[%s4712_s1 + $0x100] sm:$0xff]   ;;  %2813 = vmatprep.subr.bf16.mxu1 %v3351_v0  ;;  %v3354_v3 = vld [vmem:[%s4712_s1 + $0x108] sm:$0xff]   ;;  %v3356_v5 = vld [vmem:[%s4712_s1 + $0x110] sm:$0xff]  }
   0x3   :  { %2941 = vmatprep.subr.bf16.mxu0 %v3352_v1  ;;  %2814 = vmatpush3.bf16.msra.mxu1 %v3351_v0  ;;  %v3357_v6 = vld [vmem:[%s4712_s1 + $0x58] sm:$0xff]   ;;  %v3359_v8 = vld [vmem:[%s4712_s1 + $0x60] sm:$0xff]   ;;  %v3361_v10 = vld [vmem:[%s4712_s1 + $0x68] sm:$0xff]  }
   0x4   :  { %2942 = vmatpush3.bf16.msra.mxu0 %v3352_v1  ;;  %2815 = vmatprep.subr.bf16.mxu1 %v3353_v2  ;;  %v3358_v7 = vld [vmem:[%s4712_s1 + $0x118] sm:$0xff]   ;;  %v3360_v9 = vld [vmem:[%s4712_s1 + $0x120] sm:$0xff]   ;;  %v3362_v11 = vld [vmem:[%s4712_s1 + $0x128] sm:$0xff]  }
   0x5   :  { %2943 = vmatprep.subr.bf16.mxu0 %v3354_v3  ;;  %v3521_v12 = vld [vmem:[%s4713_s0] sm:$0xf]  ;;  %v3526_v13 = vld [vmem:[%s4713_s0 + $0x4] sm:$0x1]  ;;  %v3531_v14 = vld [vmem:[%s4713_s0 + $0x8] sm:$0xf] }
   0x6   :  { %v3536_v15 = vld [vmem:[%s4713_s0 + $0xc] sm:$0x1]  ;;  %v4720_v16 = vunpack.c.l.bf16 %v3521_v12  ;;  %v4719_v17 = vunpack.c.l.bf16 %v3526_v13  ;;  %v66_v18 = vunpack.c.l.bf16 %v3531_v14  ;;  %v3544_v19 = vld [vmem:[%s4713_s0 + $0x10] sm:$0xf]  ;;  %v3549_v20 = vld [vmem:[%s4713_s0 + $0x14] sm:$0x1] }
   0x7   :  { %2816 = vmatpush3.bf16.msra.mxu1 %v3353_v2  ;;  %v67_v21 = vunpack.c.l.bf16 %v3536_v15  ;;  %v3555_v22 = vld [vmem:[%s4713_s0 + $0x18] sm:$0xf]  ;;  %v3560_v23 = vld [vmem:[%s4713_s0 + $0x1c] sm:$0x1]  ;;  %v4748_v24 = vunpack.c.l.bf16 %v3544_v19  ;;  %v4747_v25 = vunpack.c.l.bf16 %v3549_v20  ;;  %v3363_v31 = vld [vmem:[%s4712_s1 + $0x70] sm:$0xff]  }
   0x8   :  { %2944 = vmatpush3.bf16.msra.mxu0 %v3354_v3  ;;  %2817 = vmatprep.subr.bf16.mxu1 %v3355_v4  ;;  %v161_v27 = vrot.slane %v4720_v16, 1  ;;  %v162_v28 = vrot.slane %v4719_v17, 1  ;;  %v164_v29 = vrot.slane %v66_v18, 1  ;;  %v4746_v30 = vunpack.c.l.bf16 %v3555_v22  ;;  %v3586_v36 = vld [vmem:[%s4713_s0 + $0x20] sm:$0xf]  ;;  %v3364_v37 = vld [vmem:[%s4712_s1 + $0x130] sm:$0xff]  }
   0x9   :  { %2945 = vmatprep.subr.bf16.mxu0 %v3356_v5  ;;  %v165_v32 = vrot.slane %v67_v21, 1  ;;  %v4742_v33 = vunpack.c.l.bf16 %v3560_v23  ;;  %v167_v34 = vrot.slane %v4748_v24, 1  ;;  %v168_v35 = vrot.slane %v4747_v25, 1  ;;  %v3597_v40 = vld [vmem:[%s4713_s0 + $0x24] sm:$0x1]  ;;  %v3365_v46 = vld [vmem:[%s4712_s1 + $0x78] sm:$0xff]  }
   0xa   :  { %v163_v38 = vsel %vm160_vm0, %v161_v27, %v162_v28  ;;  %v170_v39 = vrot.slane %v4746_v30, 1  ;;  %v4740_v41 = vunpack.c.l.bf16 %v3586_v36  ;;  %v4739_v45 = vunpack.c.l.bf16 %v3597_v40  ;;  %v3366_v51 = vld [vmem:[%s4712_s1 + $0x138] sm:$0xff]   ;;  %v3620_v53 = vld [vmem:[%s4713_s0 + $0x28] sm:$0xf]  ;;  %v3625_v54 = vld [vmem:[%s4713_s0 + $0x2c] sm:$0x1] }
   0xb   :  { %2818 = vmatpush3.bf16.msra.mxu1 %v3355_v4  ;;  %v166_v42 = vsel %vm160_vm0, %v164_v29, %v165_v32  ;;  %v169_v43 = vsel %vm160_vm0, %v167_v34, %v168_v35  ;;  %v171_v44 = vrot.slane %v4742_v33, 1  ;;  %v4738_v55 = vunpack.c.l.bf16 %v3620_v53  ;;  %v3631_v56 = vld [vmem:[%s4713_s0 + $0x30] sm:$0xf]  ;;  %v3636_v57 = vld [vmem:[%s4713_s0 + $0x34] sm:$0x1]  ;;  %v3367_v0 = vld [vmem:[%s4712_s1] sm:$0xff]  }
   0xc   :  { %2946 = vmatpush3.bf16.msra.mxu0 %v3356_v5  ;;  %2819 = vmatprep.subr.bf16.mxu1 %v3357_v6  ;;  %v225_v47 = vpack.c.bf16 %v166_v42, %v163_v38  ;;  %v989_v48 = vpack.c.bf16 %v169_v43, %v166_v42  ;;  %v173_v49 = vrot.slane %v4740_v41, 1  ;;  %v174_v52 = vrot.slane %v4739_v45, 1  ;;  %v3645_v62 = vld [vmem:[%s4713_s0 + $0x38] sm:$0xf]  ;;  %v3650_v63 = vld [vmem:[%s4713_s0 + $0x3c] sm:$0x1] }
   0xd   :  { %2947 = vmatprep.subr.bf16.mxu0 %v3358_v7  ;;  %v172_v58 = vsel %vm160_vm0, %v170_v39, %v171_v44  ;;  %v4737_v59 = vunpack.c.l.bf16 %v3625_v54  ;;  %v4736_v60 = vunpack.c.l.bf16 %v3631_v56  ;;  %v4735_v61 = vunpack.c.l.bf16 %v3636_v57  ;;  %v3663_v5 = vld [vmem:[%s4713_s0 + $0x40] sm:$0xf]  ;;  %v3369_v32 = vld [vmem:[%s4712_s1 + $0x8] sm:$0xff]   ;;  %v3371_v16 = vld [vmem:[%s4712_s1 + $0x10] sm:$0xff]  }
   0xe   :  { %2829 = vmatprep.mubr.bf16.mxu1 %v225_v47  ;;  %2957 = vmatprep.mubr.bf16.mxu0 %v989_v48  ;;  %v175_v1 = vsel %vm160_vm0, %v173_v49, %v174_v52  ;;  %v176_v2 = vrot.slane %v4738_v55, 1  ;;  %v4730_v3 = vunpack.c.l.bf16 %v3645_v62  ;;  %v4729_v4 = vunpack.c.l.bf16 %v3650_v63  ;;  %v3370_v42 = vld [vmem:[%s4712_s1 + $0x148] sm:$0xff]   ;;  %v3706_v48 = vld [vmem:[%s4713_s0 + $0x50] sm:$0xf]  ;;  %v3716_v49 = vld [vmem:[%s4713_s0 + $0x58] sm:$0xf] }
   0xf   :  { %2820 = vmatpush3.bf16.msra.mxu1 %v3357_v6  ;;  %v3368_v6 = vld [vmem:[%s4712_s1 + $0x140] sm:$0xff]   ;;  %v3680_v27 = vpack.c.bf16 %v172_v58, %v169_v43  ;;  %v990_v39 = vpack.c.bf16 %v175_v1, %v172_v58  ;;  %v3726_v58 = vld [vmem:[%s4713_s0 + $0x5c] sm:$0x1]  ;;  %v3751_v38 = vld [vmem:[%s4713_s0 + $0x68] sm:$0xf] }
  0x10   :  { %2948 = vmatpush3.bf16.msra.mxu0 %v3358_v7  ;;  %2821 = vmatprep.subr.bf16.mxu1 %v3359_v8  ;;  %v177_v7 = vrot.slane %v4737_v59, 1  ;;  %v182_v28 = vrot.slane %v4730_v3, 1  ;;  %v183_v29 = vrot.slane %v4729_v4, 1  ;;  %v3756_v50 = vld [vmem:[%s4713_s0 + $0x6c] sm:$0x1]  ;;  %v4731_v17 = vunpack.c.l.bf16 %v3751_v38  ;;  %v3376_v33 = vld [vmem:[%s4712_s1 + $0x160] sm:$0xff]  }
  0x11   :  { %2949 = vmatprep.subr.bf16.mxu0 %v3360_v9  ;;  %v3851_v59 = vld [vmem:[%s4713_s0 + $0x8c] sm:$0x1]  ;;  %v3861_v41 = vld [vmem:[%s4713_s0 + $0x90] sm:$0xf] }
  0x12   :  { %v178_v34 = vsel %vm160_vm0, %v176_v2, %v177_v7  ;;  %v3721_v52 = vsel %vm160_vm0, %v182_v28, %v183_v29  ;;  %v4723_v7 = vunpack.c.l.bf16 %v3716_v49  ;;  %v4725_v29 = vunpack.c.l.bf16 %v3726_v58  ;;  %v3379_v15 = vld [vmem:[%s4712_s1 + $0x30] sm:$0xff]  }
  0x13   :  { %2822 = vmatpush3.bf16.msra.mxu1 %v3359_v8  ;;  %v179_v8 = vrot.slane %v4736_v60, 1  ;;  %v3701_v44 = vpack.c.bf16 %v178_v34, %v175_v1  ;;  %v4722_v1 = vunpack.c.l.bf16 %v3706_v48  ;;  %v3846_v60 = vld [vmem:[%s4713_s0 + $0x88] sm:$0xf]  ;;  %v4751_v45 = vunpack.c.l.bf16 %v3851_v59 }
  0x14   :  { %2950 = vmatpush3.bf16.msra.mxu0 %v3360_v9  ;;  %2823 = vmatprep.subr.bf16.mxu1 %v3361_v10  ;;  %v180_v9 = vrot.slane %v4735_v61, 1  ;;  %v188_v26 = vrot.slane %v4723_v7, 1  ;;  %4756 = vst [vmem:[#allocation2_spill] sm:$0xff] %v3846_v60  ;;  %v4752_v55 = vunpack.c.l.bf16 %v3846_v60 }
  0x15   :  { %2951 = vmatprep.subr.bf16.mxu0 %v3362_v11  ;;  %v207_v25 = vrot.slane %v4751_v45, 1  ;;  %v4758_v45 = vunpack.c.l.bf16 %v3549_v20  ;;  %v3380_v20 = vld [vmem:[%s4712_s1 + $0x170] sm:$0xff]  }
  0x16   :  { %v181_v35 = vsel %vm160_vm0, %v179_v8, %v180_v9  ;;  %v3734_v8 = vld [vmem:[%s4713_s0 + $0x60] sm:$0xf]  ;;  %v3739_v9 = vld [vmem:[%s4713_s0 + $0x64] sm:$0x1]  ;;  %v206_v30 = vrot.slane %v4752_v55, 1 }
  0x17   :  { %2824 = vmatpush3.bf16.msra.mxu1 %v3361_v10  ;;  %v3677_v10 = vld [vmem:[%s4713_s0 + $0x44] sm:$0x1]  ;;  %v991_v47 = vpack.c.bf16 %v181_v35, %v178_v34  ;;  %v4724_v34 = vunpack.c.l.bf16 %v3734_v8  ;;  %v3782_v7 = vpack.c.bf16 %v3721_v52, %v181_v35  ;;  %v548_v55 = vrot.slane %v4758_v45, 2 }
  0x18   :  { %2952 = vmatpush3.bf16.msra.mxu0 %v3362_v11  ;;  %2825 = vmatprep.subr.bf16.mxu1 %v3363_v31  ;;  %v4728_v11 = vunpack.c.l.bf16 %v3663_v5 }
  0x19   :  { %2953 = vmatprep.subr.bf16.mxu0 %v3364_v37 }
  0x1b   :  { %2826 = vmatpush3.bf16.msra.mxu1 %v3363_v31  ;;  %v4727_v31 = vunpack.c.l.bf16 %v3677_v10 }
  0x1c   :  { %2954 = vmatpush3.bf16.msra.mxu0 %v3364_v37  ;;  %2827 = vmatprep.subr.bf16.mxu1 %v3365_v46  ;;  %v981_v37 = vrot.slane %v4728_v11, 1 }
  0x1d   :  { %2955 = vmatprep.subr.bf16.mxu0 %v3366_v51  ;;  %v982_v43 = vrot.slane %v4727_v31, 1  ;;  %v3793_v31 = vld [vmem:[%s4713_s0 + $0x74] sm:$0x1] }
  0x1f   :  { %2828 = vmatpush3.bf16.msra.mxu1 %v3365_v46  ;;  %v3711_v46 = vld [vmem:[%s4713_s0 + $0x54] sm:$0x1]  ;;  %v3743_v28 = vsel %vm160_vm0, %v981_v37, %v982_v43  ;;  %v185_v37 = vrot.slane %v4722_v1, 1  ;;  %v4734_v1 = vunpack.c.l.bf16 %v3756_v50 }
  0x20   :  { %2956 = vmatpush3.bf16.msra.mxu0 %v3366_v51  ;;  %2845 = vmatprep.subr.bf16.mxu1 %v3367_v0  ;;  %v4721_v2 = vunpack.c.l.bf16 %v3711_v46  ;;  %v4726_v51 = vunpack.c.l.bf16 %v3739_v9 }
  0x21   :  { %2973 = vmatprep.subr.bf16.mxu0 %v3368_v6  ;;  %v195_v3 = vrot.slane %v4734_v1, 1  ;;  %v3831_v1 = vld [vmem:[%s4713_s0 + $0x80] sm:$0xf] }
  0x22   :  { %2830 = vmatmul.mubr.bf16.vlgmr.msra.gmra.mrb[0].mxu1 %v3680_v27  ;;  %v186_v43 = vrot.slane %v4721_v2, 1  ;;  %v192_v2 = vrot.slane %v4726_v51, 1  ;;  %v194_v51 = vrot.slane %v4731_v17, 1  ;;  %v3373_v17 = vld [vmem:[%s4712_s1 + $0x18] sm:$0xff]  }
  0x23   :  { %2958 = vmatmul.mubr.bf16.vlgmr.msra.gmra.mrb[0].mxu0 %v990_v39  ;;  %2846 = vmatpush3.bf16.msra.mxu1 %v3367_v0  ;;  %v189_v0 = vrot.slane %v4725_v29, 1  ;;  %v191_v39 = vrot.slane %v4724_v34, 1  ;;  %v3372_v34 = vld [vmem:[%s4712_s1 + $0x150] sm:$0xff]  }
  0x24   :  { %2974 = vmatpush3.bf16.msra.mxu0 %v3368_v6  ;;  %2847 = vmatprep.subr.bf16.mxu1 %v3369_v32  ;;  %v3778_v6 = vld [vmem:[%s4713_s0 + $0x70] sm:$0xf]  ;;  %v187_v29 = vsel %vm160_vm0, %v185_v37, %v186_v43  ;;  %v4733_v37 = vunpack.c.l.bf16 %v3793_v31  ;;  %v992_v43 = vpack.c.bf16 %v3743_v28, %v3721_v52  ;;  %v3836_v52 = vld [vmem:[%s4713_s0 + $0x84] sm:$0x1] }
  0x25   :  { %2975 = vmatprep.subr.bf16.mxu0 %v3370_v42  ;;  %2833 = vmatprep.mubr.bf16.mxu1 %v3701_v44  ;;  %v4732_v11 = vunpack.c.l.bf16 %v3778_v6  ;;  %v190_v35 = vsel %vm160_vm0, %v188_v26, %v189_v0  ;;  %v193_v4 = vsel %vm160_vm0, %v191_v39, %v192_v2  ;;  %v3374_v26 = vld [vmem:[%s4712_s1 + $0x158] sm:$0xff]   ;;  %v4744_v0 = vunpack.c.l.bf16 %v3831_v1 }
  0x26   :  { %2961 = vmatprep.mubr.bf16.mxu0 %v991_v47  ;;  %v198_v2 = vrot.slane %v4733_v37, 1  ;;  %v993_v39 = vpack.c.bf16 %v193_v4, %v190_v35  ;;  %v4745_v61 = vunpack.c.l.bf16 %v3836_v52 }
  0x27   :  { %2848 = vmatpush3.bf16.msra.mxu1 %v3369_v32  ;;  %v197_v47 = vrot.slane %v4732_v11, 1  ;;  %v3816_v32 = vld [vmem:[%s4713_s0 + $0x78] sm:$0xf]  ;;  %v3825_v11 = vld [vmem:[%s4713_s0 + $0x7c] sm:$0x1] }
  0x28   :  { %2976 = vmatpush3.bf16.msra.mxu0 %v3370_v42  ;;  %2849 = vmatprep.subr.bf16.mxu1 %v3371_v16  ;;  %v229_v42 = vpack.c.bf16 %v190_v35, %v187_v29  ;;  %v4741_v37 = vunpack.c.l.bf16 %v3816_v32  ;;  %v196_v29 = vsel %vm160_vm0, %v194_v51, %v195_v3  ;;  %v4743_v35 = vunpack.c.l.bf16 %v3825_v11 }
  0x29   :  { %2977 = vmatprep.subr.bf16.mxu0 %v3372_v34  ;;  %v199_v3 = vsel %vm160_vm0, %v197_v47, %v198_v2  ;;  %v203_v47 = vrot.slane %v4744_v0, 1  ;;  %v204_v2 = vrot.slane %v4745_v61, 1  ;;  %v3882_v0 = vpack.c.bf16 %v196_v29, %v193_v4 }
  0x2a   :  { %2834 = vmatmul.mubr.bf16.gmra.mrb[4].mxu1 %v3782_v7  ;;  %v200_v51 = vrot.slane %v4741_v37, 1  ;;  %v3875_v37 = vld [vmem:[%s4713_s0 + $0x94] sm:$0x1]  ;;  %v994_v24 = vpack.c.bf16 %v199_v3, %v196_v29 }
  0x2b   :  { %2962 = vmatmul.mubr.bf16.gmra.mrb[4].mxu0 %v992_v43  ;;  %2850 = vmatpush3.bf16.msra.mxu1 %v3371_v16  ;;  %v3375_v16 = vld [vmem:[%s4712_s1 + $0x20] sm:$0xff]   ;;  %v201_v43 = vrot.slane %v4743_v35, 1  ;;  %v4749_v35 = vunpack.c.l.bf16 %v3875_v37 }
  0x2c   :  { %2978 = vmatpush3.bf16.msra.mxu0 %v3372_v34  ;;  %2851 = vmatprep.subr.bf16.mxu1 %v3373_v17  ;;  %v4750_v34 = vunpack.c.l.bf16 %v3861_v41 }
  0x2d   :  { %2979 = vmatprep.subr.bf16.mxu0 %v3374_v26  ;;  %2837 = vmatprep.mubr.bf16.mxu1 %v229_v42  ;;  %v202_v61 = vsel %vm160_vm0, %v200_v51, %v201_v43  ;;  %v205_v42 = vsel %vm160_vm0, %v203_v47, %v204_v2  ;;  %v985_v51 = vrot.slane %v4749_v35, 1  ;;  %v545_v43 = vrot.slane %v67_v21, 2 }
  0x2e   :  { %2965 = vmatprep.mubr.bf16.mxu0 %v993_v39  ;;  %v3377_v39 = vld [vmem:[%s4712_s1 + $0x28] sm:$0xff]   ;;  %v984_v4 = vrot.slane %v4750_v34, 1  ;;  %v3900_v29 = vpack.c.bf16 %v202_v61, %v199_v3  ;;  %v995_v47 = vpack.c.bf16 %v205_v42, %v202_v61  ;;  %v208_v2 = vsel %vm160_vm0, %v206_v30, %v207_v25 }
  0x2f   :  { %2852 = vmatpush3.bf16.msra.mxu1 %v3373_v17  ;;  %v3378_v17 = vld [vmem:[%s4712_s1 + $0x168] sm:$0xff]   ;;  %v4757_v35 = vunpack.c.l.bf16 %v3544_v19  ;;  %v3921_v21 = vpack.c.bf16 %v208_v2, %v205_v42  ;;  %v4760_v30 = vunpack.c.l.bf16 %v3560_v23  ;;  %v4762_v42 = vunpack.c.l.bf16 %v3597_v40 }
  0x30   :  { %2980 = vmatpush3.bf16.msra.mxu0 %v3374_v26  ;;  %2853 = vmatprep.subr.bf16.mxu1 %v3375_v16  ;;  %v544_v26 = vrot.slane %v66_v18, 2  ;;  %v3918_v18 = vsel %vm160_vm0, %v984_v4, %v985_v51  ;;  %v2367_v40 = vcombine.low %v3521_v12, %v3531_v14 }
  0x31   :  { %2981 = vmatprep.subr.bf16.mxu0 %v3376_v33  ;;  %v547_v34 = vrot.slane %v4757_v35, 2  ;;  %v4761_v35 = vunpack.c.l.bf16 %v3586_v36  ;;  %v554_v4 = vrot.slane %v4762_v42, 2  ;;  %v996_v51 = vpack.c.bf16 %v3918_v18, %v208_v2 }
  0x32   :  { %2838 = vmatmul.mubr.bf16.gmra.mrb[8].mxu1 %v3882_v0  ;;  %v3931_v45 = vsel %vm540_vm1, %v544_v26, %v545_v43  ;;  %v3381_v26 = vld [vmem:[%s4712_s1 + $0x38] sm:$0xff]   ;;  %v4764_v43 = vunpack.c.l.bf16 %v3625_v54  ;;  %v4765_v2 = vunpack.c.l.bf16 %v3631_v56  ;;  %v3385_v54 = vld [vmem:[%s4712_s1 + $0x80] sm:$0xff]  }
  0x33   :  { %2966 = vmatmul.mubr.bf16.gmra.mrb[8].mxu0 %v994_v24  ;;  %2854 = vmatpush3.bf16.msra.mxu1 %v3375_v16  ;;  %v4759_v24 = vunpack.c.l.bf16 %v3555_v22  ;;  %v3934_v61 = vsel %vm540_vm1, %v547_v34, %v548_v55  ;;  %v553_v16 = vrot.slane %v4761_v35, 2  ;;  %v3382_v55 = vld [vmem:[%s4712_s1 + $0x178] sm:$0xff]  }
  0x34   :  { %2982 = vmatpush3.bf16.msra.mxu0 %v3376_v33  ;;  %2855 = vmatprep.subr.bf16.mxu1 %v3377_v39  ;;  %v551_v33 = vrot.slane %v4760_v30, 2  ;;  %v1183_v34 = vpack.c.bf16 %v3934_v61, %v3931_v45  ;;  %v4766_v30 = vunpack.c.l.bf16 %v3636_v57  ;;  %v3386_v57 = vld [vmem:[%s4712_s1 + $0x180] sm:$0xff]  }
  0x35   :  { %2983 = vmatprep.subr.bf16.mxu0 %v3378_v17  ;;  %2841 = vmatprep.mubr.bf16.mxu1 %v3900_v29  ;;  %v550_v25 = vrot.slane %v4759_v24, 2  ;;  %v559_v24 = vrot.slane %v4765_v2, 2  ;;  %v3966_v23 = vsel %vm540_vm1, %v553_v16, %v554_v4  ;;  %v4768_v4 = vunpack.c.l.bf16 %v3650_v63 }
  0x36   :  { %2969 = vmatprep.mubr.bf16.mxu0 %v995_v47  ;;  %v557_v47 = vrot.slane %v4764_v43, 2  ;;  %v560_v35 = vrot.slane %v4766_v30, 2  ;;  %v4769_v43 = vunpack.c.l.bf16 %v3663_v5  ;;  %v4770_v30 = vunpack.c.l.bf16 %v3677_v10 }
  0x37   :  { %2856 = vmatpush3.bf16.msra.mxu1 %v3377_v39  ;;  %v4763_v39 = vunpack.c.l.bf16 %v3620_v53  ;;  %v3963_v42 = vsel %vm540_vm1, %v550_v25, %v551_v33  ;;  %v3978_v25 = vcombine.low %v3544_v19, %v3555_v22  ;;  %v4767_v33 = vunpack.c.l.bf16 %v3645_v62 }
  0x38   :  { %2984 = vmatpush3.bf16.msra.mxu0 %v3378_v17  ;;  %2857 = vmatprep.subr.bf16.mxu1 %v3379_v15  ;;  %v1175_v2 = vrot.slane %v4769_v43, 2  ;;  %v4771_v63 = vunpack.c.l.bf16 %v3716_v49  ;;  %v4775_v43 = vunpack.c.l.bf16 %v3739_v9  ;;  %v3391_v9 = vld [vmem:[%s4712_s1 + $0x90] sm:$0xff]  }
  0x39   :  { %2985 = vmatprep.subr.bf16.mxu0 %v3380_v20  ;;  %v556_v17 = vrot.slane %v4763_v39, 2  ;;  %v562_v16 = vrot.slane %v4767_v33, 2  ;;  %v3994_v39 = vsel %vm540_vm1, %v559_v24, %v560_v35  ;;  %v1176_v33 = vrot.slane %v4770_v30, 2 }
  0x3a   :  { %2842 = vmatmul.mubr.bf16.gmra.mrb[12].mxu1 %v3921_v21  ;;  %v4774_v35 = vunpack.c.l.bf16 %v3521_v12  ;;  %v4776_v30 = vunpack.c.l.bf16 %v3526_v13  ;;  %v4777_v12 = vunpack.c.l.bf16 %v3706_v48 }
  0x3b   :  { %2970 = vmatmul.mubr.bf16.gmra.mrb[12].mxu0 %v996_v51  ;;  %2858 = vmatpush3.bf16.msra.mxu1 %v3379_v15  ;;  %v1184_v15 = vpack.c.bf16 %v3966_v23, %v3963_v42  ;;  %v563_v51 = vrot.slane %v4768_v4, 2  ;;  %v4772_v4 = vunpack.c.l.bf16 %v3726_v58  ;;  %v572_v58 = vrot.slane %v4775_v43, 2 }
  0x3c   :  { %2986 = vmatpush3.bf16.msra.mxu0 %v3380_v20  ;;  %2859 = vmatprep.subr.bf16.mxu1 %v3381_v26  ;;  %v3387_v20 = vld [vmem:[%s4712_s1 + $0x88] sm:$0xff]   ;;  %v541_v10 = vrot.slane %v4774_v35, 2  ;;  %v565_v35 = vrot.slane %v4777_v12, 2 }
  0x3d   :  { %2987 = vmatprep.subr.bf16.mxu0 %v3382_v55  ;;  %2861 = vmatprep.mubr.bf16.mxu1 %v2367_v40  ;;  %v3388_v40 = vld [vmem:[%s4712_s1 + $0x188] sm:$0xff]   ;;  %v569_v3 = vrot.slane %v4772_v4, 2  ;;  %v4020_v4 = vsel %vm540_vm1, %v562_v16, %v563_v51  ;;  %v4038_v16 = vcombine.low %v3631_v56, %v3645_v62 }
  0x3e   :  { %2989 = vmatprep.mubr.bf16.mxu0 %v1183_v34  ;;  %v3991_v34 = vsel %vm540_vm1, %v556_v17, %v557_v47  ;;  %v4006_v17 = vcombine.low %v3586_v36, %v3620_v53  ;;  %v4773_v47 = vunpack.c.l.bf16 %v3734_v8 }
  0x3f   :  { %2860 = vmatpush3.bf16.msra.mxu1 %v3381_v26  ;;  %v568_v26 = vrot.slane %v4771_v63, 2  ;;  %v542_v63 = vrot.slane %v4776_v30, 2  ;;  %v4780_v30 = vunpack.c.l.bf16 %v3756_v50  ;;  %v2371_v50 = vcombine.low %v3706_v48, %v3716_v49 }
  0x40   :  { %2988 = vmatpush3.bf16.msra.mxu0 %v3382_v55  ;;  %2877 = vmatprep.subr.bf16.mxu1 %v3385_v54  ;;  %v571_v24 = vrot.slane %v4773_v47, 2  ;;  %v1185_v55 = vpack.c.bf16 %v3994_v39, %v3991_v34  ;;  %v4023_v47 = vsel %vm540_vm1, %v1175_v2, %v1176_v33 }
  0x41   :  { %3005 = vmatprep.subr.bf16.mxu0 %v3386_v57  ;;  %v4031_v13 = vsel %vm540_vm1, %v541_v10, %v542_v63  ;;  %v1186_v51 = vpack.c.bf16 %v4023_v47, %v4020_v4  ;;  %v4046_v2 = vsel %vm540_vm1, %v568_v26, %v569_v3  ;;  %v4779_v10 = vunpack.c.l.bf16 %v3751_v38  ;;  %v3393_v26 = vld [vmem:[%s4712_s1 + $0x98] sm:$0xff]  }
  0x42   :  { %2862 = vmatmul.mubr.bf16.vlgmr.msra.gmra.mrb[0].mxu1 %v3978_v25  ;;  %v575_v63 = vrot.slane %v4780_v30, 2  ;;  %v4786_v30 = vunpack.c.l.bf16 %v3836_v52  ;;  %v3398_v52 = vld [vmem:[%s4712_s1 + $0x1a0] sm:$0xff]  }
  0x43   :  { %2990 = vmatmul.mubr.bf16.vlgmr.msra.gmra.mrb[0].mxu0 %v1184_v15  ;;  %2878 = vmatpush3.bf16.msra.mxu1 %v3385_v54  ;;  %v4778_v54 = vunpack.c.l.bf16 %v3711_v46  ;;  %v4049_v46 = vsel %vm540_vm1, %v571_v24, %v572_v58  ;;  %v574_v43 = vrot.slane %v4779_v10, 2  ;;  %v4784_v58 = vunpack.c.l.bf16 %v3825_v11  ;;  %v3397_v11 = vld [vmem:[%s4712_s1 + $0xa0] sm:$0xff]  }
  0x44   :  { %3006 = vmatpush3.bf16.msra.mxu0 %v3386_v57  ;;  %2879 = vmatprep.subr.bf16.mxu1 %v3387_v20  ;;  %v3392_v57 = vld [vmem:[%s4712_s1 + $0x190] sm:$0xff]   ;;  %v1187_v24 = vpack.c.bf16 %v4049_v46, %v4046_v2 }
  0x45   :  { %v566_v15 = vrot.slane %v4778_v54, 2  ;;  %3007 = vmatprep.subr.bf16.mxu0 %v3388_v40  ;;  %2865 = vmatprep.mubr.bf16.mxu1 %v4006_v17  ;;  %v4782_v54 = vunpack.c.l.bf16 %v3793_v31  ;;  %v4783_v31 = vunpack.c.l.bf16 %v3816_v32  ;;  %v4082_v48 = vsel %vm540_vm1, %v574_v43, %v575_v63 }
  0x46   :  { %2993 = vmatprep.mubr.bf16.mxu0 %v1185_v55  ;;  %v4781_v55 = vunpack.c.l.bf16 %v3778_v6 }
  0x47   :  { %v4052_v33 = vsel %vm540_vm1, %v565_v35, %v566_v15  ;;  %2880 = vmatpush3.bf16.msra.mxu1 %v3387_v20  ;;  %v578_v3 = vrot.slane %v4782_v54, 2  ;;  %v3394_v20 = vld [vmem:[%s4712_s1 + $0x198] sm:$0xff]   ;;  %v581_v35 = vrot.slane %v4784_v58, 2  ;;  %v4785_v15 = vunpack.c.l.bf16 %v3831_v1 }
  0x48   :  { %v577_v12 = vrot.slane %v4781_v55, 2  ;;  %3008 = vmatpush3.bf16.msra.mxu0 %v3388_v40  ;;  %2881 = vmatprep.subr.bf16.mxu1 %v3391_v9  ;;  %v580_v40 = vrot.slane %v4783_v31, 2  ;;  %v584_v55 = vrot.slane %v4786_v30, 2  ;;  %v4790_v58 = vunpack.c.l.bf16 %v3875_v37  ;;  %v4129_v37 = vld [vmem:[%s4713_s0 + $0x48] sm:$0xf] }
  0x49   :  { %3009 = vmatprep.subr.bf16.mxu0 %v3392_v57  ;;  %v583_v10 = vrot.slane %v4785_v15, 2 }
  0x4a   :  { %2866 = vmatmul.mubr.bf16.gmra.mrb[4].mxu1 %v4038_v16  ;;  %v4085_v54 = vsel %vm540_vm1, %v577_v12, %v578_v3  ;;  %v4103_v43 = vsel %vm540_vm1, %v580_v40, %v581_v35  ;;  %v4787_v12 = vunpack.c.l.bf16 %v3846_v60  ;;  %v1179_v15 = vrot.slane %v4790_v58, 2  ;;  %v3400_v40 = vld [vmem:[%s4712_s1 + $0x1a8] sm:$0xff]  }
  0x4b   :  { %2994 = vmatmul.mubr.bf16.gmra.mrb[4].mxu0 %v1186_v51  ;;  %2882 = vmatpush3.bf16.msra.mxu1 %v3391_v9  ;;  %v4095_v9 = vcombine.low %v3734_v8, %v3751_v38  ;;  %v1188_v51 = vpack.c.bf16 %v4085_v54, %v4082_v48  ;;  %v4106_v63 = vsel %vm540_vm1, %v583_v10, %v584_v55  ;;  %v4753_v55 = vunpack.c.l.bf16 %v4129_v37 }
  0x4c   :  { %3010 = vmatpush3.bf16.msra.mxu0 %v3392_v57  ;;  %2883 = vmatprep.subr.bf16.mxu1 %v3393_v26  ;;  %v3399_v57 = vld [vmem:[%s4712_s1 + $0xa8] sm:$0xff]   ;;  %v586_v3 = vrot.slane %v4787_v12, 2  ;;  %v4121_v35 = vcombine.low %v3778_v6, %v3816_v32  ;;  %v605_v58 = vpack.c.bf16 %v3931_v45, %v4031_v13  ;;  %v3407_v45 = vld [vmem:[%s4712_s1 + $0xc0] sm:$0xff]  }
  0x4d   :  { %3011 = vmatprep.subr.bf16.mxu0 %v3394_v20  ;;  %2869 = vmatprep.mubr.bf16.mxu1 %v2371_v50  ;;  %v4788_v50 = vunpack.c.l.bf16 %v3851_v59  ;;  %v1189_v59 = vpack.c.bf16 %v4106_v63, %v4103_v43  ;;  %v1741_v12 = vrot.slane %v4753_v55, 2 }
  0x4e   :  { %2997 = vmatprep.mubr.bf16.mxu0 %v1187_v24 }
  0x4f   :  { %2884 = vmatpush3.bf16.msra.mxu1 %v3393_v26  ;;  %v587_v24 = vrot.slane %v4788_v50, 2  ;;  %v4789_v26 = vunpack.c.l.bf16 %v3861_v41  ;;  %v4161_v50 = vld [vmem:[%s4713_s0 + $0x98] sm:$0xf] }
  0x50   :  { %3012 = vmatpush3.bf16.msra.mxu0 %v3394_v20  ;;  %2885 = vmatprep.subr.bf16.mxu1 %v3397_v11  ;;  %v3403_v20 = vld [vmem:[%s4712_s1 + $0xb0] sm:$0xff]  }
  0x51   :  { %v1178_v31 = vrot.slane %v4789_v26, 2  ;;  %3013 = vmatprep.subr.bf16.mxu0 %v3398_v52  ;;  %v4135_v10 = vsel %vm540_vm1, %v586_v3, %v587_v24  ;;  %v3405_v26 = vld [vmem:[%s4712_s1 + $0xb8] sm:$0xff]  }
  0x52   :  { %2870 = vmatmul.mubr.bf16.gmra.mrb[8].mxu1 %v4095_v9 }
  0x53   :  { %2998 = vmatmul.mubr.bf16.gmra.mrb[8].mxu0 %v1188_v51  ;;  %2886 = vmatpush3.bf16.msra.mxu1 %v3397_v11  ;;  %v4138_v30 = vsel %vm540_vm1, %v1178_v31, %v1179_v15  ;;  %v3404_v11 = vld [vmem:[%s4712_s1 + $0x1b0] sm:$0xff]   ;;  %v4152_v51 = vcombine.low %v3831_v1, %v3846_v60  ;;  %v102_v31 = vunpack.c.l.bf16 %v4161_v50  ;;  %v4176_v15 = vld [vmem:[%s4713_s0 + $0x9c] sm:$0x1] }
  0x54   :  { %3014 = vmatpush3.bf16.msra.mxu0 %v3398_v52  ;;  %2887 = vmatprep.subr.bf16.mxu1 %v3399_v57  ;;  %v4148_v52 = vld [vmem:[%s4713_s0 + $0x4c] sm:$0x1]  ;;  %v1190_v3 = vpack.c.bf16 %v4138_v30, %v4135_v10  ;;  %v103_v55 = vunpack.c.l.bf16 %v4176_v15  ;;  %v2001_v15 = vld [vmem:[%s4714_s5 + $0x38] sm:$0xff] }
  0x55   :  { %3015 = vmatprep.subr.bf16.mxu0 %v3400_v40  ;;  %2873 = vmatprep.mubr.bf16.mxu1 %v4121_v35  ;;  %v4755_v24 = vunpack.c.l.bf16 %v4148_v52 }
  0x56   :  { %3001 = vmatprep.mubr.bf16.mxu0 %v1189_v59  ;;  %v1744_v59 = vrot.slane %v102_v31, 2 }
  0x57   :  { %2888 = vmatpush3.bf16.msra.mxu1 %v3399_v57  ;;  %v3406_v57 = vld [vmem:[%s4712_s1 + $0x1b8] sm:$0xff]  }
  0x58   :  { %3016 = vmatpush3.bf16.msra.mxu0 %v3400_v40  ;;  %2889 = vmatprep.subr.bf16.mxu1 %v3403_v20  ;;  %v1742_v40 = vrot.slane %v4755_v24, 2  ;;  %v1745_v24 = vrot.slane %v103_v55, 2 }
  0x59   :  { %3017 = vmatprep.subr.bf16.mxu0 %v3404_v11 }
  0x5a   :  { %2874 = vmatmul.mubr.bf16.gmra.mrb[12].mxu1 %v4152_v51  ;;  %v4185_v60 = vsel %vm540_vm1, %v1741_v12, %v1742_v40  ;;  %v4203_v12 = vsel %vm540_vm1, %v1744_v59, %v1745_v24  ;;  %v3413_v24 = vld [vmem:[%s4712_s1 + $0x1d0] sm:$0xff]   ;;  %v4261_v40 = vpack.c.bf16 %v4103_v43, %v4085_v54  ;;  %v4275_v54 = vpack.c.bf16 %v4135_v10, %v4106_v63  ;;  %v3423_v43 = vld [vmem:[%s4712_s1 + $0xf8] sm:$0xff]   ;;  %v3427_v10 = vld [vmem:[%s4712_s1 + $0x200] sm:$0xff]  }
  0x5b   :  { %3002 = vmatmul.mubr.bf16.gmra.mrb[12].mxu0 %v1190_v3  ;;  %2890 = vmatpush3.bf16.msra.mxu1 %v3403_v20  ;;  %v1749_v13 = vpack.c.bf16 %v4185_v60, %v4023_v47  ;;  %v3408_v20 = vld [vmem:[%s4712_s1 + $0x1c0] sm:$0xff]   ;;  %v1750_v3 = vpack.c.bf16 %v4203_v12, %v4138_v30  ;;  %v4791_v63 = vcombine.low %v3531_v14, %v3544_v19  ;;  %v3428_v14 = vld [vmem:[%s4712_s1 + $0x208] sm:$0xff]  }
  0x5c   :  { %3018 = vmatpush3.bf16.msra.mxu0 %v3404_v11  ;;  %2891 = vmatprep.subr.bf16.mxu1 %v3405_v26  ;;  %v4199_v11 = vpack.c.bf16 %v3963_v42, %v3934_v61  ;;  %v3410_v61 = vld [vmem:[%s4712_s1 + $0x1c8] sm:$0xff]   ;;  %v4215_v42 = vpack.c.bf16 %v3991_v34, %v3966_v23  ;;  %v4229_v23 = vpack.c.bf16 %v4020_v4, %v3994_v39  ;;  %v3416_v39 = vld [vmem:[%s4712_s1 + $0xe0] sm:$0xff]  }
  0x5d   :  { %3019 = vmatprep.subr.bf16.mxu0 %v3406_v57  ;;  %2893 = vmatprep.mubr.bf16.mxu1 %v605_v58  ;;  %v3409_v58 = vld [vmem:[%s4712_s1 + $0xc8] sm:$0xff]   ;;  %v2511_v34 = vcombine.low %v3663_v5, %v4129_v37  ;;  %v3417_v4 = vld [vmem:[%s4712_s1 + $0x1e0] sm:$0xff]   ;;  %v4794_v19 = vcombine.low %v3555_v22, %v3586_v36  ;;  %v3432_v22 = vld [vmem:[%s4712_s1 + $0x218] sm:$0xff]   ;;  %v4796_v36 = vcombine.low %v3645_v62, %v3663_v5  ;;  %v1557_v62 = vrot.slane %v103_v55, 1 }
  0x5e   :  { %3021 = vmatprep.mubr.bf16.mxu0 %v3978_v25  ;;  %v3411_v25 = vld [vmem:[%s4712_s1 + $0xd0] sm:$0xff]   ;;  %v3436_v5 = vld [vmem:[%s4712_s1 + $0x228] sm:$0xff]   ;;  %v1998_v30 = vld [vmem:[%s4714_s5 + $0x20] sm:$0xff] }
  0x5f   :  { %2892 = vmatpush3.bf16.msra.mxu1 %v3405_v26  ;;  %v3415_v26 = vld [vmem:[%s4712_s1 + $0x1d8] sm:$0xff]   ;;  %v1999_v55 = vld [vmem:[%s4714_s5 + $0x28] sm:$0xff] }
  0x60   :  { %3020 = vmatpush3.bf16.msra.mxu0 %v3406_v57  ;;  %2909 = vmatprep.subr.bf16.mxu1 %v3407_v45  ;;  %v3419_v57 = vld [vmem:[%s4712_s1 + $0x1e8] sm:$0xff]  }
  0x61   :  { %3037 = vmatprep.subr.bf16.mxu0 %v3408_v20  ;;  %v2003_v12 = vld [vmem:[%s4714_s5 + $0x48] sm:$0xff] }
  0x62   :  { %2894 = vmatmul.mubr.bf16.vlgmr.msra.gmra.mrb[0].mxu1 %v4199_v11 }
  0x63   :  { %3022 = vmatmul.mubr.bf16.vlgmr.msra.gmra.mrb[0].mxu0 %v4006_v17  ;;  %2910 = vmatpush3.bf16.msra.mxu1 %v3407_v45  ;;  %v3414_v17 = vld [vmem:[%s4712_s1 + $0xd8] sm:$0xff]   ;;  %v4793_v45 = vunpack.c.l.bf16 %v4148_v52  ;;  %v3431_v52 = vld [vmem:[%s4712_s1 + $0x210] sm:$0xff]  }
  0x64   :  { %3038 = vmatpush3.bf16.msra.mxu0 %v3408_v20  ;;  %2911 = vmatprep.subr.bf16.mxu1 %v3409_v58 }
  0x65   :  { %3039 = vmatprep.subr.bf16.mxu0 %v3410_v61  ;;  %2897 = vmatprep.mubr.bf16.mxu1 %v4215_v42  ;;  %v1554_v20 = vrot.slane %v4793_v45, 1 }
  0x66   :  { %3025 = vmatprep.mubr.bf16.mxu0 %v4038_v16  ;;  %v609_v16 = vpack.c.bf16 %v4046_v2, %v4052_v33  ;;  %v4251_v2 = vpack.c.bf16 %v4082_v48, %v4049_v46  ;;  %v3418_v33 = vld [vmem:[%s4712_s1 + $0xe8] sm:$0xff]   ;;  %v3420_v46 = vld [vmem:[%s4712_s1 + $0xf0] sm:$0xff]  }
  0x67   :  { %2912 = vmatpush3.bf16.msra.mxu1 %v3409_v58  ;;  %v3422_v48 = vld [vmem:[%s4712_s1 + $0x1f0] sm:$0xff]  }
  0x68   :  { %3040 = vmatpush3.bf16.msra.mxu0 %v3410_v61  ;;  %2913 = vmatprep.subr.bf16.mxu1 %v3411_v25  ;;  %v2004_v61 = vld [vmem:[%s4714_s5 + $0x50] sm:$0xff] }
  0x69   :  { %3041 = vmatprep.subr.bf16.mxu0 %v3413_v24 }
  0x6a   :  { %2898 = vmatmul.mubr.bf16.gmra.mrb[4].mxu1 %v4229_v23 }
  0x6b   :  { %3026 = vmatmul.mubr.bf16.gmra.mrb[4].mxu0 %v2511_v34  ;;  %2914 = vmatpush3.bf16.msra.mxu1 %v3411_v25 }
  0x6c   :  { %3042 = vmatpush3.bf16.msra.mxu0 %v3413_v24  ;;  %2915 = vmatprep.subr.bf16.mxu1 %v3414_v17  ;;  %v2006_v24 = vld [vmem:[%s4714_s5 + $0x60] sm:$0xff] }
  0x6d   :  { %3043 = vmatprep.subr.bf16.mxu0 %v3415_v26  ;;  %2901 = vmatprep.mubr.bf16.mxu1 %v609_v16  ;;  %v3445_v16 = vmov 0.0  }
  0x6e   :  { %3029 = vmatprep.mubr.bf16.mxu0 %v4095_v9  ;;  %v2512_v9 = vcombine.low %v3861_v41, %v4161_v50  ;;  %v4391_v50 = vpack.c.bf16 %v1999_v55, %v1998_v30 }
  0x6f   :  { %2916 = vmatpush3.bf16.msra.mxu1 %v3414_v17  ;;  %v2008_v17 = vld [vmem:[%s4714_s5 + $0x70] sm:$0xff] }
  0x70   :  { %3044 = vmatpush3.bf16.msra.mxu0 %v3415_v26  ;;  %2917 = vmatprep.subr.bf16.mxu1 %v3416_v39  ;;  %v2009_v26 = vld [vmem:[%s4714_s5 + $0x78] sm:$0xff] }
  0x71   :  { %3045 = vmatprep.subr.bf16.mxu0 %v3417_v4 }
  0x72   :  { %2902 = vmatmul.mubr.bf16.gmra.mrb[8].mxu1 %v4251_v2 }
  0x73   :  { %3030 = vmatmul.mubr.bf16.gmra.mrb[8].mxu0 %v4121_v35  ;;  %2918 = vmatpush3.bf16.msra.mxu1 %v3416_v39  ;;  %v3424_v35 = vld [vmem:[%s4712_s1 + $0x1f8] sm:$0xff]   ;;  %v4442_v39 = vpack.c.bf16 %v2009_v26, %v2008_v17 }
  0x74   :  { %3046 = vmatpush3.bf16.msra.mxu0 %v3417_v4  ;;  %2919 = vmatprep.subr.bf16.mxu1 %v3418_v33 }
  0x75   :  { %3047 = vmatprep.subr.bf16.mxu0 %v3419_v57  ;;  %2905 = vmatprep.mubr.bf16.mxu1 %v4261_v40 }
  0x76   :  { %3033 = vmatprep.mubr.bf16.mxu0 %v4152_v51  ;;  %v4792_v51 = vunpack.c.l.bf16 %v4129_v37 }
  0x77   :  { %2920 = vmatpush3.bf16.msra.mxu1 %v3418_v33 }
  0x78   :  { %3048 = vmatpush3.bf16.msra.mxu0 %v3419_v57  ;;  %2921 = vmatprep.subr.bf16.mxu1 %v3420_v46  ;;  %v1553_v59 = vrot.slane %v4792_v51, 1 }
  0x79   :  { %3049 = vmatprep.subr.bf16.mxu0 %v3422_v48 }
  0x7a   :  { %2906 = vmatmul.mubr.bf16.gmra.mrb[12].mxu1 %v4275_v54  ;;  %v1555_v37 = vsel %vm160_vm0, %v1553_v59, %v1554_v20 }
  0x7b   :  { %3034 = vmatmul.mubr.bf16.gmra.mrb[12].mxu0 %v2512_v9  ;;  %2922 = vmatpush3.bf16.msra.mxu1 %v3420_v46  ;;  %v1561_v58 = vpack.c.bf16 %v1555_v37, %v3743_v28  ;;  %v3439_v28 = vld [vmem:[%s4712_s1 + $0x230] sm:$0xff]  }
  0x7c   :  { %3050 = vmatpush3.bf16.msra.mxu0 %v3422_v48  ;;  %2923 = vmatprep.subr.bf16.mxu1 %v3423_v43 }
  0x7d   :  { %3051 = vmatprep.subr.bf16.mxu0 %v3424_v35  ;;  %2925 = vmatprep.mubr.bf16.mxu1 %v4791_v63 }
  0x7e   :  { %3053 = vmatprep.mubr.bf16.mxu0 %v3680_v27  ;;  %v4795_v27 = vcombine.low %v3620_v53, %v3631_v56  ;;  %v4797_v53 = vcombine.low %v3716_v49, %v3734_v8  ;;  %v3435_v56 = vld [vmem:[%s4712_s1 + $0x220] sm:$0xff]   ;;  %v4798_v49 = vcombine.low %v3751_v38, %v3778_v6  ;;  %v3440_v38 = vld [vmem:[%s4712_s1 + $0x238] sm:$0xff]  }
  0x7f   :  { %2924 = vmatpush3.bf16.msra.mxu1 %v3423_v43 }
  0x80   :  { %3052 = vmatpush3.bf16.msra.mxu0 %v3424_v35 }
  0x81   :  { %3069 = vmatprep.subr.bf16.mxu0 %v3427_v10 }
  0x82   :  { %2926 = vmatmul.mubr.bf16.vlgmr.msra.gmra.mrb[0].mxu1 %v4794_v19  ;;  %v4456_v19 = vld [vmem:[%s4715_s2] ss:$0 sm:$0xff] }
  0x83   :  { %3054 = vmatmul.mubr.bf16.vlgmr.msra.gmra.mrb[0].mxu0 %v3701_v44  ;;  %2929 = vmatprep.mubr.bf16.mxu1 %v4795_v27  ;;  %v1556_v44 = vrot.slane %v102_v31, 1  ;;  %v2000_v31 = vld [vmem:[%s4714_s5 + $0x30] sm:$0xff] }
  0x84   :  { %3070 = vmatpush3.bf16.msra.mxu0 %v3427_v10  ;;  %3057 = vmatprep.mubr.bf16.mxu0 %v3782_v7  ;;  %v4799_v7 = vcombine.low %v3816_v32, %v3831_v1  ;;  %v4800_v1 = vld [vmem:[#allocation2_spill] sm:$0xff]  ;;  %v1995_v32 = vld [vmem:[%s4714_s5 + $0x8] sm:$0xff] }
  0x85   :  { %3071 = vmatprep.subr.bf16.mxu0 %v3428_v14  ;;  %v1558_v8 = vsel %vm160_vm0, %v1556_v44, %v1557_v62  ;;  %v4801_v6 = vcombine.low %v4800_v1, %v3861_v41  ;;  %v1994_v41 = vld [vmem:[%s4714_s5] sm:$0xff] }
  0x86   :  { %v4370_v60 = vpack.c.bf16 %v1995_v32, %v1994_v41 }
  0x88   :  { %3072 = vmatpush3.bf16.msra.mxu0 %v3428_v14 }
  0x89   :  { %3073 = vmatprep.subr.bf16.mxu0 %v3431_v52 }
  0x8a   :  { %2930 = vmatmul.mubr.bf16.gmra.mrb[4].mxu1 %v4796_v36 }
  0x8b   :  { %3058 = vmatmul.mubr.bf16.gmra.mrb[4].mxu0 %v1561_v58  ;;  %2933 = vmatprep.mubr.bf16.mxu1 %v4797_v53 }
  0x8c   :  { %3074 = vmatpush3.bf16.msra.mxu0 %v3431_v52  ;;  %3061 = vmatprep.mubr.bf16.mxu0 %v3882_v0  ;;  %v1562_v0 = vpack.c.bf16 %v1558_v8, %v3918_v18  ;;  %v1996_v18 = vld [vmem:[%s4714_s5 + $0x10] sm:$0xff] }
  0x8d   :  { %3075 = vmatprep.subr.bf16.mxu0 %v3432_v22 }
  0x90   :  { %3076 = vmatpush3.bf16.msra.mxu0 %v3432_v22 }
  0x91   :  { %3077 = vmatprep.subr.bf16.mxu0 %v3435_v56 }
  0x92   :  { %2934 = vmatmul.mubr.bf16.gmra.mrb[8].mxu1 %v4798_v49 }
  0x93   :  { %3062 = vmatmul.mubr.bf16.gmra.mrb[8].mxu0 %v3900_v29  ;;  %2937 = vmatprep.mubr.bf16.mxu1 %v4799_v7  ;;  %v3443_v29 = vmov 0.0|0.0  }
  0x94   :  { %3078 = vmatpush3.bf16.msra.mxu0 %v3435_v56  ;;  %3065 = vmatprep.mubr.bf16.mxu0 %v3921_v21  ;;  %v1997_v21 = vld [vmem:[%s4714_s5 + $0x18] sm:$0xff] }
  0x95   :  { %3079 = vmatprep.subr.bf16.mxu0 %v3436_v5  ;;  %3171 = vmatprep.subr.bf16.mxu1 %v3443_v29  ;;  %v4381_v47 = vpack.c.bf16 %v1997_v21, %v1996_v18 }
  0x96   :  { %3173 = vmatpush3.bf16.msra.mxu1 %v4370_v60 }
  0x97   :  { %3174 = vmatprep.subr.bf16.mxu1 %v3443_v29 }
  0x98   :  { %3080 = vmatpush3.bf16.msra.mxu0 %v3436_v5 }
  0x99   :  { %3081 = vmatprep.subr.bf16.mxu0 %v3439_v28 }
  0x9a   :  { %2938 = vmatmul.mubr.bf16.gmra.mrb[12].mxu1 %v4801_v6 }
  0x9b   :  { %3066 = vmatmul.mubr.bf16.gmra.mrb[12].mxu0 %v1562_v0  ;;  %3176 = vmatpush3.bf16.msra.mxu1 %v4381_v47 }
  0x9c   :  { %3082 = vmatpush3.bf16.msra.mxu0 %v3439_v28  ;;  %3085 = vmatprep.mubr.bf16.mxu0 %v4199_v11  ;;  %v2002_v11 = vld [vmem:[%s4714_s5 + $0x40] sm:$0xff] }
  0x9d   :  { %3083 = vmatprep.subr.bf16.mxu0 %v3440_v38  ;;  %3177 = vmatprep.subr.bf16.mxu1 %v3443_v29 }
  0x9e   :  { %3133 = vmatprep.mubr.msk.f32.mxu1 %vm3444_vm2, %v3445_v16 }
  0x9f   :  { %3179 = vmatpush3.bf16.msra.mxu1 %v4391_v50 }
  0xa0   :  { %3084 = vmatpush3.bf16.msra.mxu0 %v3440_v38  ;;  %3180 = vmatprep.subr.bf16.mxu1 %v3443_v29 }
  0xa3   :  { %3086 = vmatmul.mubr.bf16.vlgmr.msra.gmra.mrb[0].mxu0 %v4215_v42  ;;  %v2005_v42 = vld [vmem:[%s4714_s5 + $0x58] sm:$0xff] }
  0xa4   :  { %3089 = vmatprep.mubr.bf16.mxu0 %v4229_v23  ;;  %v4421_v25 = vpack.c.bf16 %v2005_v42, %v2004_v61  ;;  %v2007_v23 = vld [vmem:[%s4714_s5 + $0x68] sm:$0xff] }
  0xa5   :  { %v4431_v34 = vpack.c.bf16 %v2007_v23, %v2006_v24 }
  0xab   :  { %3090 = vmatmul.mubr.bf16.gmra.mrb[4].mxu0 %v1749_v13  ;;  %v4401_v13 = vpack.c.bf16 %v2001_v15, %v2000_v31 }
  0xac   :  { %3093 = vmatprep.mubr.bf16.mxu0 %v4251_v2 }
  0xad   :  { %3182 = vmatpush3.bf16.msra.mxu1 %v4401_v13 }
  0xae   :  { %3183 = vmatprep.subr.bf16.mxu1 %v3443_v29 }
  0xb3   :  { %3094 = vmatmul.mubr.bf16.gmra.mrb[8].mxu0 %v4261_v40 }
  0xb4   :  { %3097 = vmatprep.mubr.bf16.mxu0 %v4275_v54 }
  0xbb   :  { %3098 = vmatmul.mubr.bf16.gmra.mrb[12].mxu0 %v1750_v3  ;;  %v4411_v3 = vpack.c.bf16 %v2003_v12, %v2002_v11 }
  0xbd   :  { %3185 = vmatpush3.bf16.msra.mxu1 %v4411_v3 }
  0xbe   :  { %3186 = vmatprep.subr.bf16.mxu1 %v3443_v29 }
  0xc1   :  { %3188 = vmatpush3.bf16.msra.mxu1 %v4421_v25 }
  0xc2   :  { %3189 = vmatprep.subr.bf16.mxu1 %v3443_v29 }
  0xc5   :  { %3191 = vmatpush3.bf16.msra.mxu1 %v4431_v34 }
  0xc6   :  { %3192 = vmatprep.subr.bf16.mxu1 %v3443_v29 }
  0xc9   :  { %3194 = vmatpush3.bf16.msra.mxu1 %v4442_v39 }
  0xca   :  { %3195 = vmatprep.subr.bf16.mxu1 %v3443_v29 }
 0x155   :  { %v2927_v4 = vpop.f32.mrb[0].mxu1 }
 0x156   :  { %v898_v2 = vpop.f32.mrb[1].mxu1 }
 0x157   :  { %v2928_v33 = vpop.f32.mrb[2].mxu1 }
 0x158   :  { %v901_v57 = vpop.f32.mrb[3].mxu1 }
 0x15d   :  { %v2931_v40 = vpop.f32.mrb[4].mxu1 }
 0x15e   :  { %v914_v46 = vpop.f32.mrb[5].mxu1 }
 0x15f   :  { %v2932_v48 = vpop.f32.mrb[6].mxu1 }
 0x160   :  { %v917_v54 = vpop.f32.mrb[7].mxu1 }
 0x165   :  { %v2935_v9 = vpop.f32.mrb[8].mxu1 }
 0x166   :  { %v930_v43 = vpop.f32.mrb[9].mxu1 }
 0x167   :  { %v2936_v35 = vpop.f32.mrb[10].mxu1 }
 0x168   :  { %v933_v63 = vpop.f32.mrb[11].mxu1 }
 0x16d   :  { %v2939_v10 = vpop.f32.mrb[12].mxu1 }
 0x16e   :  { %v4447_v51 = vpop.f32.mrb[13].mxu1 }
 0x16f   :  { %v4449_v59 = vpop.f32.mrb[14].mxu1 }
 0x170   :  { %v4451_v45 = vpop.f32.mrb[15].mxu1 }
 0x176   :  { %v3087_v20 = vpop.f32.mrb[0].mxu0 }
 0x177   :  { %v3219_v14 = vadd.f32 %v3087_v20, %v2927_v4  ;;  %v1850_v27 = vpop.f32.mrb[1].mxu0 }
 0x178   :  { %v3220_v37 = vadd.f32 %v1850_v27, %v898_v2  ;;  %v3088_v52 = vpop.f32.mrb[2].mxu0 }
 0x179   :  { %v3221_v58 = vadd.f32 %v3088_v52, %v2928_v33  ;;  %v1853_v22 = vpop.f32.mrb[3].mxu0  ;;  %v4462_v56 = vadd.f32 %v3219_v14, %v4456_v19 }
 0x17a   :  { %v4459_v36 = vadd.f32 %v3220_v37, %v4456_v19  ;;  %v3222_v53 = vadd.f32 %v1853_v22, %v901_v57 }
 0x17b   :  { %v4469_v5 = vadd.f32 %v3221_v58, %v4456_v19  ;;  %v1954_v0 = vmax.f32 %v4462_v56, 0.0 }
 0x17c   :  { %v4465_v44 = vadd.f32 %v3222_v53, %v4456_v19  ;;  %v1952_v62 = vmax.f32 %v4459_v36, 0.0 }
 0x17d   :  { %v1955_v18 = vmax.f32 %v4469_v5, 0.0 }
 0x17e   :  { %v1953_v49 = vmax.f32 %v4465_v44, 0.0  ;;  %v3091_v7 = vpop.f32.mrb[4].mxu0 }
 0x17f   :  { %v3223_v8 = vadd.f32 %v3091_v7, %v2931_v40  ;;  %v1866_v28 = vpop.f32.mrb[5].mxu0 }
 0x180   :  { %v1968_v38 = vadd.f32 %v1953_v49, %v1952_v62  ;;  %v3224_v1 = vadd.f32 %v1866_v28, %v914_v46  ;;  %v3092_v6 = vpop.f32.mrb[6].mxu0 }
 0x181   :  { %v3225_v41 = vadd.f32 %v3092_v6, %v2932_v48  ;;  %v1869_v32 = vpop.f32.mrb[7].mxu0  ;;  %v4490_v12 = vadd.f32 %v3223_v8, %v4456_v19 }
 0x182   :  { %v1969_v21 = vadd.f32 %v1968_v38, %v1954_v0  ;;  %v4481_v30 = vadd.f32 %v3224_v1, %v4456_v19  ;;  %v3226_v55 = vadd.f32 %v1869_v32, %v917_v54 }
 0x183   :  { %v1958_v33 = vmax.f32 %v4490_v12, 0.0  ;;  %v4499_v57 = vadd.f32 %v3225_v41, %v4456_v19 }
 0x184   :  { %v1956_v31 = vmax.f32 %v4481_v30, 0.0  ;;  %v1970_v15 = vadd.f32 %v1969_v21, %v1955_v18  ;;  %v4487_v11 = vadd.f32 %v3226_v55, %v4456_v19 }
 0x185   :  { %v1959_v14 = vmax.f32 %v4499_v57, 0.0 }
 0x186   :  { %v1971_v61 = vadd.f32 %v1970_v15, %v1956_v31  ;;  %v1957_v42 = vmax.f32 %v4487_v11, 0.0  ;;  %v3095_v24 = vpop.f32.mrb[8].mxu0 }
 0x187   :  { %v3227_v23 = vadd.f32 %v3095_v24, %v2935_v9  ;;  %v1882_v17 = vpop.f32.mrb[9].mxu0 }
 0x188   :  { %v1972_v26 = vadd.f32 %v1971_v61, %v1957_v42  ;;  %v3228_v4 = vadd.f32 %v1882_v17, %v930_v43  ;;  %v3096_v2 = vpop.f32.mrb[10].mxu0 }
 0x189   :  { %v3229_v40 = vadd.f32 %v3096_v2, %v2936_v35  ;;  %v1885_v46 = vpop.f32.mrb[11].mxu0  ;;  %v4507_v20 = vadd.f32 %v3227_v23, %v4456_v19 }
 0x18a   :  { %v4502_v48 = vadd.f32 %v3228_v4, %v4456_v19  ;;  %v3230_v54 = vadd.f32 %v1885_v46, %v933_v63  ;;  %v1973_v9 = vadd.f32 %v1972_v26, %v1958_v33 }
 0x18b   :  { %v4515_v35 = vadd.f32 %v3229_v40, %v4456_v19  ;;  %v1962_v53 = vmax.f32 %v4507_v20, 0.0 }
 0x18c   :  { %v4510_v43 = vadd.f32 %v3230_v54, %v4456_v19  ;;  %v1960_v27 = vmax.f32 %v4502_v48, 0.0  ;;  %v1974_v63 = vadd.f32 %v1973_v9, %v1959_v14 }
 0x18d   :  { %v1963_v6 = vmax.f32 %v4515_v35, 0.0 }
 0x18e   :  { %v1961_v37 = vmax.f32 %v4510_v43, 0.0  ;;  %v3099_v52 = vpop.f32.mrb[12].mxu0  ;;  %v1975_v21 = vrot.slane %v1974_v63, 4 }
 0x18f   :  { %v3231_v58 = vadd.f32 %v3099_v52, %v2939_v10  ;;  %v1898_v22 = vpop.f32.mrb[13].mxu0 }
 0x190   :  { %v1981_v7 = vadd.f32 %v1961_v37, %v1960_v27  ;;  %v3232_v8 = vadd.f32 %v1898_v22, %v4447_v51  ;;  %v3100_v28 = vpop.f32.mrb[14].mxu0  ;;  %v1976_v23 = vadd.f32 %v1975_v21, %v1974_v63 }
 0x191   :  { %v3233_v38 = vadd.f32 %v3100_v28, %v4449_v59  ;;  %v1901_v1 = vpop.f32.mrb[15].mxu0  ;;  %v4535_v55 = vadd.f32 %v3231_v58, %v4456_v19 }
 0x192   :  { %v1982_v41 = vadd.f32 %v1981_v7, %v1962_v53  ;;  %v4531_v10 = vadd.f32 %v3232_v8, %v4456_v19  ;;  %v3234_v32 = vadd.f32 %v1901_v1, %v4451_v45  ;;  %v1977_v40 = vrot.slane %v1976_v23, 2 }
 0x193   :  { %v4546_v24 = vadd.f32 %v3233_v38, %v4456_v19  ;;  %v1966_v17 = vmax.f32 %v4535_v55, 0.0 }
 0x194   :  { %v1964_v51 = vmax.f32 %v4531_v10, 0.0  ;;  %v1983_v59 = vadd.f32 %v1982_v41, %v1963_v6  ;;  %v4541_v15 = vadd.f32 %v3234_v32, %v4456_v19  ;;  %v1978_v9 = vadd.f32 %v1977_v40, %v1976_v23 }
 0x195   :  { %v1967_v4 = vmax.f32 %v4546_v24, 0.0 }
 0x196   :  { %v1984_v61 = vadd.f32 %v1983_v59, %v1964_v51  ;;  %v1965_v45 = vmax.f32 %v4541_v15, 0.0  ;;  %v1979_v58 = vrot.slane %v1978_v9, 1 }
 0x198   :  { %v1985_v26 = vadd.f32 %v1984_v61, %v1965_v45  ;;  %v1980_v7 = vadd.f32 %v1979_v58, %v1978_v9 }
 0x19a   :  { %v1986_v2 = vadd.f32 %v1985_v26, %v1966_v17 }
 0x19c   :  { %v1987_v46 = vadd.f32 %v1986_v2, %v1967_v4 }
 0x19e   :  { %v1988_v54 = vrot.slane %v1987_v46, 4 }
 0x1a0   :  { %v1989_v19 = vadd.f32 %v1988_v54, %v1987_v46 }
 0x1a2   :  { %v1990_v52 = vrot.slane %v1989_v19, 2 }
 0x1a4   :  { %v1991_v63 = vadd.f32 %v1990_v52, %v1989_v19 }
 0x1a6   :  { %v1992_v22 = vrot.slane %v1991_v63, 1 }
 0x1a8   :  { %v1993_v8 = vadd.f32 %v1992_v22, %v1991_v63 }
 0x1aa   :  { %v2013_v28 = vsel %vm2012_vm3, %v1993_v8, %v1980_v7 }
 0x1ab   :  { %3134 = vmatmul.mubr.f32.vlgmr.msra.gmra.mrb[16].mxu1 %v2013_v28 }
 0x1ac   :  { %3197 = vmatpush3.bf16.msra.mxu1 %v4370_v60  ;;  %3168 = vmatprep.mubr.msk.f32.mxu1 %vm3444_vm2, %v3445_v16  ;;  %v3446_v60 = vmov 1966171168  }
 0x1ad   :  { %3198 = vmatprep.subr.bf16.mxu1 %v3443_v29 }
 0x1b0   :  { %3200 = vmatpush3.bf16.msra.mxu1 %v4381_v47  ;;  %v2087_v47 = vunpack.c.l.s4 %v3446_v60 }
 0x1b1   :  { %3201 = vmatprep.subr.bf16.mxu1 %v3443_v29 }
 0x1b4   :  { %3203 = vmatpush3.bf16.msra.mxu1 %v4391_v50  ;;  %v2089_v50 = vlaneseq }
 0x1b5   :  { %3204 = vmatprep.subr.bf16.mxu1 %v3443_v29 }
 0x1b6   :  { %v2090_v16 = vshrl.u32 %v2089_v50, 7 }
 0x1b8   :  { %3206 = vmatpush3.bf16.msra.mxu1 %v4401_v13  ;;  %v2088_v13 = vunpack.c.0.s8 %v2087_v47  ;;  %v4578_v41 = vsub.s32 0, %v2090_v16 }
 0x1b9   :  { %3207 = vmatprep.subr.bf16.mxu1 %v3443_v29 }
 0x1ba   :  { %v4575_v38 = vsub.s32 %v2088_v13, %v2090_v16 }
 0x1bc   :  { %3209 = vmatpush3.bf16.msra.mxu1 %v4411_v3 }
 0x1bd   :  { %3210 = vmatprep.subr.bf16.mxu1 %v3443_v29 }
 0x1c0   :  { %3212 = vmatpush3.bf16.msra.mxu1 %v4421_v25 }
 0x1c1   :  { %3213 = vmatprep.subr.bf16.mxu1 %v3443_v29 }
 0x1c4   :  { %3215 = vmatpush3.bf16.msra.mxu1 %v4431_v34 }
 0x1c5   :  { %3216 = vmatprep.subr.bf16.mxu1 %v3443_v29 }
 0x1c8   :  { %3218 = vmatpush3.bf16.msra.mxu1 %v4442_v39 }
 0x27e   :  { %v2081_v3 = vpop.f32.mrb[16].mxu1 }
 0x27f   :  { %v2092_v1 = vrot.slane %v2081_v3, %v4575_v38  ;;  %v3135_v25 = vpop.f32.mrb[17].mxu1 }
 0x281   :  { %v2093_v32 = vcombine.high %v2092_v1, %v2092_v1  ;;  %v2100_v34 = vrot.slane %v2092_v1, %v4575_v38 }
 0x283   :  { %v2107_v29 = vrot.slane %v2093_v32, %v4575_v38  ;;  %v2111_v39 = vrot.slane %v2100_v34, %v4578_v41 }
 0x285   :  { %v2115_v21 = vrot.slane %v2107_v29, %v4578_v41  ;;  %v4586_v59 = vsub.f32 %v1952_v62, %v2111_v39  ;;  %v4590_v61 = vsub.f32 %v1953_v49, %v2111_v39  ;;  %v4602_v2 = vsub.f32 %v1954_v0, %v2111_v39 }
 0x286   :  { %v4614_v49 = vsub.f32 %v1955_v18, %v2111_v39  ;;  %v4626_v20 = vsub.f32 %v1956_v31, %v2111_v39  ;;  %v2125_v46 = vsub.f32 %v1959_v14, %v2111_v39 }
 0x287   :  { %v4594_v23 = vsub.f32 %v1960_v27, %v2115_v21  ;;  %v4598_v26 = vsub.f32 %v1961_v37, %v2115_v21  ;;  %v4606_v36 = vsub.f32 %v1962_v53, %v2115_v21  ;;  %v2134_v44 = vmul.f32 %v4586_v59, %v4586_v59 }
 0x288   :  { %v2135_v62 = vmul.f32 %v4590_v61, %v4590_v61  ;;  %v4618_v48 = vsub.f32 %v1963_v6, %v2115_v21  ;;  %v4630_v43 = vsub.f32 %v1964_v51, %v2115_v21  ;;  %v2136_v5 = vmul.f32 %v4602_v2, %v4602_v2 }
 0x289   :  { %v2142_v56 = vmul.f32 %v4594_v23, %v4594_v23  ;;  %v2143_v0 = vmul.f32 %v4598_v26, %v4598_v26  ;;  %v2144_v18 = vmul.f32 %v4606_v36, %v4606_v36  ;;  %v2123_v37 = vsub.f32 %v1957_v42, %v2111_v39 }
 0x28a   :  { %v2150_v27 = vadd.f32 %v2135_v62, %v2134_v44  ;;  %v4640_v30 = vsub.f32 %v1965_v45, %v2115_v21  ;;  %v2137_v31 = vmul.f32 %v4614_v49, %v4614_v49  ;;  %v2145_v53 = vmul.f32 %v4618_v48, %v4618_v48  ;;  %v2586_v44 = vld [vmem:[%s4716_s3] ss:$0 sm:$0xff] }
 0x28b   :  { %v2163_v35 = vadd.f32 %v2143_v0, %v2142_v56  ;;  %v2124_v51 = vsub.f32 %v1958_v33, %v2111_v39  ;;  %v4650_v40 = vsub.f32 %v1966_v17, %v2115_v21  ;;  %v2138_v11 = vmul.f32 %v4626_v20, %v4626_v20 }
 0x28c   :  { %v2151_v6 = vadd.f32 %v2150_v27, %v2136_v5  ;;  %v2146_v42 = vmul.f32 %v4630_v43, %v4630_v43  ;;  %v2133_v54 = vsub.f32 %v1967_v4, %v2115_v21  ;;  %v2139_v12 = vmul.f32 %v2123_v37, %v2123_v37 }
 0x28d   :  { %v2164_v10 = vadd.f32 %v2163_v35, %v2144_v18  ;;  %v2147_v33 = vmul.f32 %v4640_v30, %v4640_v30  ;;  %v2140_v19 = vmul.f32 %v2124_v51, %v2124_v51  ;;  %v2148_v9 = vmul.f32 %v4650_v40, %v4650_v40 }
 0x28e   :  { %v2152_v15 = vadd.f32 %v2151_v6, %v2137_v31  ;;  %v2141_v63 = vmul.f32 %v2125_v46, %v2125_v46  ;;  %v2149_v22 = vmul.f32 %v2133_v54, %v2133_v54 }
 0x28f   :  { %v2165_v45 = vadd.f32 %v2164_v10, %v2145_v53 }
 0x290   :  { %v2153_v55 = vadd.f32 %v2152_v15, %v2138_v11 }
 0x291   :  { %v2166_v17 = vadd.f32 %v2165_v45, %v2146_v42 }
 0x292   :  { %v2154_v52 = vadd.f32 %v2153_v55, %v2139_v12 }
 0x293   :  { %v2167_v58 = vadd.f32 %v2166_v17, %v2147_v33 }
 0x294   :  { %v2155_v7 = vadd.f32 %v2154_v52, %v2140_v19 }
 0x295   :  { %v2168_v57 = vadd.f32 %v2167_v58, %v2148_v9 }
 0x296   :  { %v2156_v14 = vadd.f32 %v2155_v7, %v2141_v63 }
 0x297   :  { %v2169_v8 = vadd.f32 %v2168_v57, %v2149_v22 }
 0x298   :  { %v2157_v24 = vrot.slane %v2156_v14, 4 }
 0x299   :  { %v2170_v4 = vrot.slane %v2169_v8, 4 }
 0x29a   :  { %v2158_v28 = vadd.f32 %v2157_v24, %v2156_v14 }
 0x29b   :  { %v2171_v60 = vadd.f32 %v2170_v4, %v2169_v8 }
 0x29c   :  { %v2159_v47 = vrot.slane %v2158_v28, 2 }
 0x29d   :  { %v2172_v50 = vrot.slane %v2171_v60, 2 }
 0x29e   :  { %v2160_v13 = vadd.f32 %v2159_v47, %v2158_v28 }
 0x29f   :  { %v2173_v16 = vadd.f32 %v2172_v50, %v2171_v60 }
 0x2a0   :  { %v2161_v3 = vrot.slane %v2160_v13, 1 }
 0x2a1   :  { %v2174_v1 = vrot.slane %v2173_v16, 1 }
 0x2a2   :  { %v2162_v25 = vadd.f32 %v2161_v3, %v2160_v13 }
 0x2a3   :  { %v2175_v32 = vadd.f32 %v2174_v1, %v2173_v16 }
 0x2a5   :  { %v2178_v34 = vsel %vm2012_vm3, %v2175_v32, %v2162_v25 }
 0x2a6   :  { %3169 = vmatmul.mubr.f32.vlgmr.msra.gmra.mrb[18].mxu1 %v2178_v34 }
 0x379   :  { %v2246_v29 = vpop.f32.mrb[18].mxu1 }
 0x37a   :  { %v2247_v39 = vadd.f32 1e-05, %v2246_v29  ;;  %v3170_v21 = vpop.f32.mrb[19].mxu1 }
 0x37c   :  { %3441 = vrsqrt.f32 %v2247_v39 }
 0x386   :  { %v3442_v62 = vpop.eup %3441 }
 0x387   :  { %v2258_v56 = vmul.f32 %v3442_v62, %v2586_v44 }
 0x389   :  { %v2266_v0 = vrot.slane %v2258_v56, %v4575_v38 }
 0x38b   :  { %v2267_v5 = vcombine.high %v2266_v0, %v2266_v0  ;;  %v2274_v18 = vrot.slane %v2266_v0, %v4575_v38 }
 0x38d   :  { %v2281_v27 = vrot.slane %v2267_v5, %v4575_v38  ;;  %v2285_v35 = vrot.slane %v2274_v18, %v4578_v41  ;;  %v2587_v38 = vld [vmem:[%s4717_s4] ss:$0 sm:$0xff] }
 0x38f   :  { %v2289_v31 = vrot.slane %v2281_v27, %v4578_v41  ;;  %v2292_v53 = vmul.f32 %v2285_v35, %v4586_v59  ;;  %v2293_v6 = vmul.f32 %v2285_v35, %v4590_v61  ;;  %v2294_v10 = vmul.f32 %v2285_v35, %v4602_v2 }
 0x390   :  { %v2295_v11 = vmul.f32 %v2285_v35, %v4614_v49  ;;  %v2296_v42 = vmul.f32 %v2285_v35, %v4626_v20  ;;  %v2297_v15 = vmul.f32 %v2285_v35, %v2123_v37  ;;  %v2298_v45 = vmul.f32 %v2285_v35, %v2124_v51 }
 0x391   :  { %v2299_v12 = vmul.f32 %v2285_v35, %v2125_v46  ;;  %v2300_v33 = vmul.f32 %v2289_v31, %v4594_v23  ;;  %v2301_v41 = vmul.f32 %v2289_v31, %v4598_v26  ;;  %v2302_v59 = vmul.f32 %v2289_v31, %v4606_v36 }
 0x392   :  { %v2303_v61 = vmul.f32 %v2289_v31, %v4618_v48  ;;  %v2304_v2 = vmul.f32 %v2289_v31, %v4630_v43  ;;  %v2305_v49 = vmul.f32 %v2289_v31, %v4640_v30  ;;  %v2306_v20 = vmul.f32 %v2289_v31, %v4650_v40 }
 0x393   :  { %v2307_v37 = vmul.f32 %v2289_v31, %v2133_v54  ;;  %v2315_v51 = vadd.f32 %v2587_v38, %v2292_v53  ;;  %v2316_v55 = vadd.f32 %v2587_v38, %v2293_v6  ;;  %v2317_v17 = vadd.f32 %v2587_v38, %v2294_v10 }
 0x394   :  { %v2318_v19 = vadd.f32 %v2587_v38, %v2295_v11  ;;  %v2319_v46 = vadd.f32 %v2587_v38, %v2296_v42  ;;  %v2320_v9 = vadd.f32 %v2587_v38, %v2297_v15  ;;  %v2321_v23 = vadd.f32 %v2587_v38, %v2298_v45 }
 0x395   :  { %v2322_v52 = vadd.f32 %v2587_v38, %v2299_v12  ;;  %v2323_v26 = vadd.f32 %v2587_v38, %v2300_v33  ;;  %v2324_v58 = vadd.f32 %v2587_v38, %v2301_v41  ;;  %v2325_v36 = vadd.f32 %v2587_v38, %v2302_v59 }
 0x396   :  { %v2326_v63 = vadd.f32 %v2587_v38, %v2303_v61  ;;  %v2327_v48 = vadd.f32 %v2587_v38, %v2304_v2  ;;  %v2328_v22 = vadd.f32 %v2587_v38, %v2305_v49  ;;  %v2329_v43 = vadd.f32 %v2587_v38, %v2306_v20 }
 0x397   :  { %v2330_v7 = vadd.f32 %v2587_v38, %v2307_v37  ;;  %v2591_v30 = vpack.c.bf16 %v2316_v55, %v2315_v51  ;;  %v2596_v57 = vpack.c.bf16 %v2318_v19, %v2317_v17  ;;  %v2601_v40 = vpack.c.bf16 %v2320_v9, %v2319_v46 }
 0x398   :  { %v2606_v54 = vpack.c.bf16 %v2322_v52, %v2321_v23  ;;  %v2611_v14 = vpack.c.bf16 %v2324_v58, %v2323_v26  ;;  %v2616_v8 = vpack.c.bf16 %v2326_v63, %v2325_v36  ;;  %v2621_v24 = vpack.c.bf16 %v2328_v22, %v2327_v48 }
 0x399   :  { %2592 = vst [vmem:[%s4718_s6] sm:$0xff] %v2591_v30   ;;  %2628 = vst [vmem:[%s4718_s6 + $0x8] sm:$0xff] %v2596_v57   ;;  %v2626_v4 = vpack.c.bf16 %v2330_v7, %v2329_v43 }
 0x39a   :  { %2629 = vst [vmem:[%s4718_s6 + $0x10] sm:$0xff] %v2601_v40   ;;  %2630 = vst [vmem:[%s4718_s6 + $0x18] sm:$0xff] %v2606_v54  }
 0x39b   :  { %2631 = vst [vmem:[%s4718_s6 + $0x20] sm:$0xff] %v2611_v14   ;;  %2632 = vst [vmem:[%s4718_s6 + $0x28] sm:$0xff] %v2616_v8  }
 0x39c   :  { %2633 = vst [vmem:[%s4718_s6 + $0x30] sm:$0xff] %v2621_v24   ;;  %2634 = vst [vmem:[%s4718_s6 + $0x38] sm:$0xff] %v2626_v4  }

// kernel: mnist_cnn_forward.7
= control target key start
LH: loop header
LB: loop body
LE: loop exit
PB: predicated region body
PF: predicated region fallthrough
CT: control target
= control target key end

     0   :  { %vm161_vm0 = vcmask 1046528   ;;  %vm541_vm1 = vcmask 1045504   ;;  %s4710_s0 = inlined_call_operand.vmem [shape: bf16[2,10,10,128], index: 0, kind: input, shape index: {}]   ;;  %s4711_s1 = inlined_call_operand.vmem [shape: bf16[9,128,128], index: 1, kind: input, shape index: {}]   ;;  %s4712_s2 = inlined_call_operand.vmem [shape: f32[1,128], index: 2, kind: input, shape index: {}]   ;;  %s4713_s3 = inlined_call_operand.vmem [shape: f32[1,128], index: 3, kind: input, shape index: {}]   ;;  %s4714_s4 = inlined_call_operand.vmem [shape: f32[1,128], index: 4, kind: input, shape index: {}]   ;;  %s4715_s5 = inlined_call_operand.vmem [shape: f32[128,128], index: 5, kind: input, shape index: {}]   ;;  %s4716_s6 = inlined_call_operand.hbm [shape: f32[2,128], index: 6, kind: output, shape index: {}]  }
   0x1   :  { %v3318_v0 = vld [vmem:[%s4711_s1 + $0x40] sm:$0xff]   ;;  %v3320_v2 = vld [vmem:[%s4711_s1 + $0x48] sm:$0xff]   ;;  %v3322_v4 = vld [vmem:[%s4711_s1 + $0x50] sm:$0xff]  }
   0x2   :  { %v3319_v1 = vld [vmem:[%s4711_s1 + $0x100] sm:$0xff]   ;;  %2779 = vmatprep.subr.bf16.mxu1 %v3318_v0  ;;  %v3321_v3 = vld [vmem:[%s4711_s1 + $0x108] sm:$0xff]   ;;  %v3323_v5 = vld [vmem:[%s4711_s1 + $0x110] sm:$0xff]  }
   0x3   :  { %2907 = vmatprep.subr.bf16.mxu0 %v3319_v1  ;;  %2780 = vmatpush3.bf16.msra.mxu1 %v3318_v0  ;;  %v3324_v6 = vld [vmem:[%s4711_s1 + $0x58] sm:$0xff]   ;;  %v3326_v8 = vld [vmem:[%s4711_s1 + $0x60] sm:$0xff]   ;;  %v3328_v10 = vld [vmem:[%s4711_s1 + $0x68] sm:$0xff]  }
   0x4   :  { %2908 = vmatpush3.bf16.msra.mxu0 %v3319_v1  ;;  %2781 = vmatprep.subr.bf16.mxu1 %v3320_v2  ;;  %v3325_v7 = vld [vmem:[%s4711_s1 + $0x118] sm:$0xff]   ;;  %v3327_v9 = vld [vmem:[%s4711_s1 + $0x120] sm:$0xff]   ;;  %v3329_v11 = vld [vmem:[%s4711_s1 + $0x128] sm:$0xff]  }
   0x5   :  { %2909 = vmatprep.subr.bf16.mxu0 %v3321_v3  ;;  %v3513_v12 = vld [vmem:[%s4710_s0] sm:$0xf]  ;;  %v3518_v13 = vld [vmem:[%s4710_s0 + $0x4] sm:$0x1]  ;;  %v3523_v14 = vld [vmem:[%s4710_s0 + $0x8] sm:$0xf] }
   0x6   :  { %v3528_v15 = vld [vmem:[%s4710_s0 + $0xc] sm:$0x1]  ;;  %v4718_v16 = vunpack.c.l.bf16 %v3513_v12  ;;  %v4717_v17 = vunpack.c.l.bf16 %v3518_v13  ;;  %v67_v18 = vunpack.c.l.bf16 %v3523_v14  ;;  %v3536_v19 = vld [vmem:[%s4710_s0 + $0x10] sm:$0xf]  ;;  %v3541_v20 = vld [vmem:[%s4710_s0 + $0x14] sm:$0x1] }
   0x7   :  { %2782 = vmatpush3.bf16.msra.mxu1 %v3320_v2  ;;  %v68_v21 = vunpack.c.l.bf16 %v3528_v15  ;;  %v3547_v22 = vld [vmem:[%s4710_s0 + $0x18] sm:$0xf]  ;;  %v3552_v23 = vld [vmem:[%s4710_s0 + $0x1c] sm:$0x1]  ;;  %v4746_v24 = vunpack.c.l.bf16 %v3536_v19  ;;  %v4745_v25 = vunpack.c.l.bf16 %v3541_v20  ;;  %v3330_v31 = vld [vmem:[%s4711_s1 + $0x70] sm:$0xff]  }
   0x8   :  { %2910 = vmatpush3.bf16.msra.mxu0 %v3321_v3  ;;  %2783 = vmatprep.subr.bf16.mxu1 %v3322_v4  ;;  %v162_v27 = vrot.slane %v4718_v16, 1  ;;  %v163_v28 = vrot.slane %v4717_v17, 1  ;;  %v165_v29 = vrot.slane %v67_v18, 1  ;;  %v4744_v30 = vunpack.c.l.bf16 %v3547_v22  ;;  %v3578_v36 = vld [vmem:[%s4710_s0 + $0x20] sm:$0xf]  ;;  %v3331_v37 = vld [vmem:[%s4711_s1 + $0x130] sm:$0xff]  }
   0x9   :  { %2911 = vmatprep.subr.bf16.mxu0 %v3323_v5  ;;  %v166_v32 = vrot.slane %v68_v21, 1  ;;  %v4740_v33 = vunpack.c.l.bf16 %v3552_v23  ;;  %v168_v34 = vrot.slane %v4746_v24, 1  ;;  %v169_v35 = vrot.slane %v4745_v25, 1  ;;  %v3589_v40 = vld [vmem:[%s4710_s0 + $0x24] sm:$0x1]  ;;  %v3332_v46 = vld [vmem:[%s4711_s1 + $0x78] sm:$0xff]  }
   0xa   :  { %v164_v38 = vsel %vm161_vm0, %v162_v27, %v163_v28  ;;  %v171_v39 = vrot.slane %v4744_v30, 1  ;;  %v4738_v41 = vunpack.c.l.bf16 %v3578_v36  ;;  %v4737_v45 = vunpack.c.l.bf16 %v3589_v40  ;;  %v3333_v51 = vld [vmem:[%s4711_s1 + $0x138] sm:$0xff]   ;;  %v3612_v53 = vld [vmem:[%s4710_s0 + $0x28] sm:$0xf]  ;;  %v3617_v54 = vld [vmem:[%s4710_s0 + $0x2c] sm:$0x1] }
   0xb   :  { %2784 = vmatpush3.bf16.msra.mxu1 %v3322_v4  ;;  %v167_v42 = vsel %vm161_vm0, %v165_v29, %v166_v32  ;;  %v170_v43 = vsel %vm161_vm0, %v168_v34, %v169_v35  ;;  %v172_v44 = vrot.slane %v4740_v33, 1  ;;  %v4736_v55 = vunpack.c.l.bf16 %v3612_v53  ;;  %v3623_v56 = vld [vmem:[%s4710_s0 + $0x30] sm:$0xf]  ;;  %v3628_v57 = vld [vmem:[%s4710_s0 + $0x34] sm:$0x1]  ;;  %v3334_v0 = vld [vmem:[%s4711_s1] sm:$0xff]  }
   0xc   :  { %2912 = vmatpush3.bf16.msra.mxu0 %v3323_v5  ;;  %2785 = vmatprep.subr.bf16.mxu1 %v3324_v6  ;;  %v226_v47 = vpack.c.bf16 %v167_v42, %v164_v38  ;;  %v990_v48 = vpack.c.bf16 %v170_v43, %v167_v42  ;;  %v174_v49 = vrot.slane %v4738_v41, 1  ;;  %v175_v52 = vrot.slane %v4737_v45, 1  ;;  %v3637_v62 = vld [vmem:[%s4710_s0 + $0x38] sm:$0xf]  ;;  %v3642_v63 = vld [vmem:[%s4710_s0 + $0x3c] sm:$0x1] }
   0xd   :  { %2913 = vmatprep.subr.bf16.mxu0 %v3325_v7  ;;  %v173_v58 = vsel %vm161_vm0, %v171_v39, %v172_v44  ;;  %v4735_v59 = vunpack.c.l.bf16 %v3617_v54  ;;  %v4734_v60 = vunpack.c.l.bf16 %v3623_v56  ;;  %v4733_v61 = vunpack.c.l.bf16 %v3628_v57  ;;  %v3655_v5 = vld [vmem:[%s4710_s0 + $0x40] sm:$0xf]  ;;  %v3336_v32 = vld [vmem:[%s4711_s1 + $0x8] sm:$0xff]   ;;  %v3338_v16 = vld [vmem:[%s4711_s1 + $0x10] sm:$0xff]  }
   0xe   :  { %2795 = vmatprep.mubr.bf16.mxu1 %v226_v47  ;;  %2923 = vmatprep.mubr.bf16.mxu0 %v990_v48  ;;  %v176_v1 = vsel %vm161_vm0, %v174_v49, %v175_v52  ;;  %v177_v2 = vrot.slane %v4736_v55, 1  ;;  %v4728_v3 = vunpack.c.l.bf16 %v3637_v62  ;;  %v4727_v4 = vunpack.c.l.bf16 %v3642_v63  ;;  %v3337_v42 = vld [vmem:[%s4711_s1 + $0x148] sm:$0xff]   ;;  %v3698_v48 = vld [vmem:[%s4710_s0 + $0x50] sm:$0xf]  ;;  %v3708_v49 = vld [vmem:[%s4710_s0 + $0x58] sm:$0xf] }
   0xf   :  { %2786 = vmatpush3.bf16.msra.mxu1 %v3324_v6  ;;  %v3335_v6 = vld [vmem:[%s4711_s1 + $0x140] sm:$0xff]   ;;  %v3672_v27 = vpack.c.bf16 %v173_v58, %v170_v43  ;;  %v991_v39 = vpack.c.bf16 %v176_v1, %v173_v58  ;;  %v3718_v58 = vld [vmem:[%s4710_s0 + $0x5c] sm:$0x1]  ;;  %v3743_v38 = vld [vmem:[%s4710_s0 + $0x68] sm:$0xf] }
  0x10   :  { %2914 = vmatpush3.bf16.msra.mxu0 %v3325_v7  ;;  %2787 = vmatprep.subr.bf16.mxu1 %v3326_v8  ;;  %v178_v7 = vrot.slane %v4735_v59, 1  ;;  %v183_v28 = vrot.slane %v4728_v3, 1  ;;  %v184_v29 = vrot.slane %v4727_v4, 1  ;;  %v3748_v50 = vld [vmem:[%s4710_s0 + $0x6c] sm:$0x1]  ;;  %v4729_v17 = vunpack.c.l.bf16 %v3743_v38  ;;  %v3343_v33 = vld [vmem:[%s4711_s1 + $0x160] sm:$0xff]  }
  0x11   :  { %2915 = vmatprep.subr.bf16.mxu0 %v3327_v9  ;;  %v3843_v59 = vld [vmem:[%s4710_s0 + $0x8c] sm:$0x1]  ;;  %v3853_v41 = vld [vmem:[%s4710_s0 + $0x90] sm:$0xf] }
  0x12   :  { %v179_v34 = vsel %vm161_vm0, %v177_v2, %v178_v7  ;;  %v3713_v52 = vsel %vm161_vm0, %v183_v28, %v184_v29  ;;  %v4721_v7 = vunpack.c.l.bf16 %v3708_v49  ;;  %v4723_v29 = vunpack.c.l.bf16 %v3718_v58  ;;  %v3346_v15 = vld [vmem:[%s4711_s1 + $0x30] sm:$0xff]  }
  0x13   :  { %2788 = vmatpush3.bf16.msra.mxu1 %v3326_v8  ;;  %v180_v8 = vrot.slane %v4734_v60, 1  ;;  %v3693_v44 = vpack.c.bf16 %v179_v34, %v176_v1  ;;  %v4720_v1 = vunpack.c.l.bf16 %v3698_v48  ;;  %v3838_v60 = vld [vmem:[%s4710_s0 + $0x88] sm:$0xf]  ;;  %v4749_v45 = vunpack.c.l.bf16 %v3843_v59 }
  0x14   :  { %2916 = vmatpush3.bf16.msra.mxu0 %v3327_v9  ;;  %2789 = vmatprep.subr.bf16.mxu1 %v3328_v10  ;;  %v181_v9 = vrot.slane %v4733_v61, 1  ;;  %v189_v26 = vrot.slane %v4721_v7, 1  ;;  %4754 = vst [vmem:[#allocation5_spill] sm:$0xff] %v3838_v60  ;;  %v4750_v55 = vunpack.c.l.bf16 %v3838_v60 }
  0x15   :  { %2917 = vmatprep.subr.bf16.mxu0 %v3329_v11  ;;  %v208_v25 = vrot.slane %v4749_v45, 1  ;;  %v4756_v45 = vunpack.c.l.bf16 %v3541_v20  ;;  %v3347_v20 = vld [vmem:[%s4711_s1 + $0x170] sm:$0xff]  }
  0x16   :  { %v182_v35 = vsel %vm161_vm0, %v180_v8, %v181_v9  ;;  %v3726_v8 = vld [vmem:[%s4710_s0 + $0x60] sm:$0xf]  ;;  %v3731_v9 = vld [vmem:[%s4710_s0 + $0x64] sm:$0x1]  ;;  %v207_v30 = vrot.slane %v4750_v55, 1 }
  0x17   :  { %2790 = vmatpush3.bf16.msra.mxu1 %v3328_v10  ;;  %v3669_v10 = vld [vmem:[%s4710_s0 + $0x44] sm:$0x1]  ;;  %v992_v47 = vpack.c.bf16 %v182_v35, %v179_v34  ;;  %v4722_v34 = vunpack.c.l.bf16 %v3726_v8  ;;  %v3774_v7 = vpack.c.bf16 %v3713_v52, %v182_v35  ;;  %v549_v55 = vrot.slane %v4756_v45, 2 }
  0x18   :  { %2918 = vmatpush3.bf16.msra.mxu0 %v3329_v11  ;;  %2791 = vmatprep.subr.bf16.mxu1 %v3330_v31  ;;  %v4726_v11 = vunpack.c.l.bf16 %v3655_v5 }
  0x19   :  { %2919 = vmatprep.subr.bf16.mxu0 %v3331_v37 }
  0x1b   :  { %2792 = vmatpush3.bf16.msra.mxu1 %v3330_v31  ;;  %v4725_v31 = vunpack.c.l.bf16 %v3669_v10 }
  0x1c   :  { %2920 = vmatpush3.bf16.msra.mxu0 %v3331_v37  ;;  %2793 = vmatprep.subr.bf16.mxu1 %v3332_v46  ;;  %v982_v37 = vrot.slane %v4726_v11, 1 }
  0x1d   :  { %2921 = vmatprep.subr.bf16.mxu0 %v3333_v51  ;;  %v983_v43 = vrot.slane %v4725_v31, 1  ;;  %v3785_v31 = vld [vmem:[%s4710_s0 + $0x74] sm:$0x1] }
  0x1f   :  { %2794 = vmatpush3.bf16.msra.mxu1 %v3332_v46  ;;  %v3703_v46 = vld [vmem:[%s4710_s0 + $0x54] sm:$0x1]  ;;  %v3735_v28 = vsel %vm161_vm0, %v982_v37, %v983_v43  ;;  %v186_v37 = vrot.slane %v4720_v1, 1  ;;  %v4732_v1 = vunpack.c.l.bf16 %v3748_v50 }
  0x20   :  { %2922 = vmatpush3.bf16.msra.mxu0 %v3333_v51  ;;  %2811 = vmatprep.subr.bf16.mxu1 %v3334_v0  ;;  %v4719_v2 = vunpack.c.l.bf16 %v3703_v46  ;;  %v4724_v51 = vunpack.c.l.bf16 %v3731_v9 }
  0x21   :  { %2939 = vmatprep.subr.bf16.mxu0 %v3335_v6  ;;  %v196_v3 = vrot.slane %v4732_v1, 1  ;;  %v3823_v1 = vld [vmem:[%s4710_s0 + $0x80] sm:$0xf] }
  0x22   :  { %2796 = vmatmul.mubr.bf16.vlgmr.msra.gmra.mrb[0].mxu1 %v3672_v27  ;;  %v187_v43 = vrot.slane %v4719_v2, 1  ;;  %v193_v2 = vrot.slane %v4724_v51, 1  ;;  %v195_v51 = vrot.slane %v4729_v17, 1  ;;  %v3340_v17 = vld [vmem:[%s4711_s1 + $0x18] sm:$0xff]  }
  0x23   :  { %2924 = vmatmul.mubr.bf16.vlgmr.msra.gmra.mrb[0].mxu0 %v991_v39  ;;  %2812 = vmatpush3.bf16.msra.mxu1 %v3334_v0  ;;  %v190_v0 = vrot.slane %v4723_v29, 1  ;;  %v192_v39 = vrot.slane %v4722_v34, 1  ;;  %v3339_v34 = vld [vmem:[%s4711_s1 + $0x150] sm:$0xff]  }
  0x24   :  { %2940 = vmatpush3.bf16.msra.mxu0 %v3335_v6  ;;  %2813 = vmatprep.subr.bf16.mxu1 %v3336_v32  ;;  %v3770_v6 = vld [vmem:[%s4710_s0 + $0x70] sm:$0xf]  ;;  %v188_v29 = vsel %vm161_vm0, %v186_v37, %v187_v43  ;;  %v4731_v37 = vunpack.c.l.bf16 %v3785_v31  ;;  %v993_v43 = vpack.c.bf16 %v3735_v28, %v3713_v52  ;;  %v3828_v52 = vld [vmem:[%s4710_s0 + $0x84] sm:$0x1] }
  0x25   :  { %2941 = vmatprep.subr.bf16.mxu0 %v3337_v42  ;;  %2799 = vmatprep.mubr.bf16.mxu1 %v3693_v44  ;;  %v4730_v11 = vunpack.c.l.bf16 %v3770_v6  ;;  %v191_v35 = vsel %vm161_vm0, %v189_v26, %v190_v0  ;;  %v194_v4 = vsel %vm161_vm0, %v192_v39, %v193_v2  ;;  %v3341_v26 = vld [vmem:[%s4711_s1 + $0x158] sm:$0xff]   ;;  %v4742_v0 = vunpack.c.l.bf16 %v3823_v1 }
  0x26   :  { %2927 = vmatprep.mubr.bf16.mxu0 %v992_v47  ;;  %v199_v2 = vrot.slane %v4731_v37, 1  ;;  %v994_v39 = vpack.c.bf16 %v194_v4, %v191_v35  ;;  %v4743_v61 = vunpack.c.l.bf16 %v3828_v52 }
  0x27   :  { %2814 = vmatpush3.bf16.msra.mxu1 %v3336_v32  ;;  %v198_v47 = vrot.slane %v4730_v11, 1  ;;  %v3808_v32 = vld [vmem:[%s4710_s0 + $0x78] sm:$0xf]  ;;  %v3817_v11 = vld [vmem:[%s4710_s0 + $0x7c] sm:$0x1] }
  0x28   :  { %2942 = vmatpush3.bf16.msra.mxu0 %v3337_v42  ;;  %2815 = vmatprep.subr.bf16.mxu1 %v3338_v16  ;;  %v230_v42 = vpack.c.bf16 %v191_v35, %v188_v29  ;;  %v4739_v37 = vunpack.c.l.bf16 %v3808_v32  ;;  %v197_v29 = vsel %vm161_vm0, %v195_v51, %v196_v3  ;;  %v4741_v35 = vunpack.c.l.bf16 %v3817_v11 }
  0x29   :  { %2943 = vmatprep.subr.bf16.mxu0 %v3339_v34  ;;  %v200_v3 = vsel %vm161_vm0, %v198_v47, %v199_v2  ;;  %v204_v47 = vrot.slane %v4742_v0, 1  ;;  %v205_v2 = vrot.slane %v4743_v61, 1  ;;  %v3874_v0 = vpack.c.bf16 %v197_v29, %v194_v4 }
  0x2a   :  { %2800 = vmatmul.mubr.bf16.gmra.mrb[4].mxu1 %v3774_v7  ;;  %v201_v51 = vrot.slane %v4739_v37, 1  ;;  %v3867_v37 = vld [vmem:[%s4710_s0 + $0x94] sm:$0x1]  ;;  %v995_v24 = vpack.c.bf16 %v200_v3, %v197_v29 }
  0x2b   :  { %2928 = vmatmul.mubr.bf16.gmra.mrb[4].mxu0 %v993_v43  ;;  %2816 = vmatpush3.bf16.msra.mxu1 %v3338_v16  ;;  %v3342_v16 = vld [vmem:[%s4711_s1 + $0x20] sm:$0xff]   ;;  %v202_v43 = vrot.slane %v4741_v35, 1  ;;  %v4747_v35 = vunpack.c.l.bf16 %v3867_v37 }
  0x2c   :  { %2944 = vmatpush3.bf16.msra.mxu0 %v3339_v34  ;;  %2817 = vmatprep.subr.bf16.mxu1 %v3340_v17  ;;  %v4748_v34 = vunpack.c.l.bf16 %v3853_v41 }
  0x2d   :  { %2945 = vmatprep.subr.bf16.mxu0 %v3341_v26  ;;  %2803 = vmatprep.mubr.bf16.mxu1 %v230_v42  ;;  %v203_v61 = vsel %vm161_vm0, %v201_v51, %v202_v43  ;;  %v206_v42 = vsel %vm161_vm0, %v204_v47, %v205_v2  ;;  %v986_v51 = vrot.slane %v4747_v35, 1  ;;  %v546_v43 = vrot.slane %v68_v21, 2 }
  0x2e   :  { %2931 = vmatprep.mubr.bf16.mxu0 %v994_v39  ;;  %v3344_v39 = vld [vmem:[%s4711_s1 + $0x28] sm:$0xff]   ;;  %v985_v4 = vrot.slane %v4748_v34, 1  ;;  %v3892_v29 = vpack.c.bf16 %v203_v61, %v200_v3  ;;  %v996_v47 = vpack.c.bf16 %v206_v42, %v203_v61  ;;  %v209_v2 = vsel %vm161_vm0, %v207_v30, %v208_v25 }
  0x2f   :  { %2818 = vmatpush3.bf16.msra.mxu1 %v3340_v17  ;;  %v3345_v17 = vld [vmem:[%s4711_s1 + $0x168] sm:$0xff]   ;;  %v4755_v35 = vunpack.c.l.bf16 %v3536_v19  ;;  %v3913_v21 = vpack.c.bf16 %v209_v2, %v206_v42  ;;  %v4758_v30 = vunpack.c.l.bf16 %v3552_v23  ;;  %v4760_v42 = vunpack.c.l.bf16 %v3589_v40 }
  0x30   :  { %2946 = vmatpush3.bf16.msra.mxu0 %v3341_v26  ;;  %2819 = vmatprep.subr.bf16.mxu1 %v3342_v16  ;;  %v545_v26 = vrot.slane %v67_v18, 2  ;;  %v3910_v18 = vsel %vm161_vm0, %v985_v4, %v986_v51  ;;  %v2380_v40 = vcombine.low %v3513_v12, %v3523_v14 }
  0x31   :  { %2947 = vmatprep.subr.bf16.mxu0 %v3343_v33  ;;  %v548_v34 = vrot.slane %v4755_v35, 2  ;;  %v4759_v35 = vunpack.c.l.bf16 %v3578_v36  ;;  %v555_v4 = vrot.slane %v4760_v42, 2  ;;  %v997_v51 = vpack.c.bf16 %v3910_v18, %v209_v2 }
  0x32   :  { %2804 = vmatmul.mubr.bf16.gmra.mrb[8].mxu1 %v3874_v0  ;;  %v3923_v45 = vsel %vm541_vm1, %v545_v26, %v546_v43  ;;  %v3348_v26 = vld [vmem:[%s4711_s1 + $0x38] sm:$0xff]   ;;  %v4762_v43 = vunpack.c.l.bf16 %v3617_v54  ;;  %v4763_v2 = vunpack.c.l.bf16 %v3623_v56  ;;  %v3352_v54 = vld [vmem:[%s4711_s1 + $0x80] sm:$0xff]  }
  0x33   :  { %2932 = vmatmul.mubr.bf16.gmra.mrb[8].mxu0 %v995_v24  ;;  %2820 = vmatpush3.bf16.msra.mxu1 %v3342_v16  ;;  %v4757_v24 = vunpack.c.l.bf16 %v3547_v22  ;;  %v3926_v61 = vsel %vm541_vm1, %v548_v34, %v549_v55  ;;  %v554_v16 = vrot.slane %v4759_v35, 2  ;;  %v3349_v55 = vld [vmem:[%s4711_s1 + $0x178] sm:$0xff]  }
  0x34   :  { %2948 = vmatpush3.bf16.msra.mxu0 %v3343_v33  ;;  %2821 = vmatprep.subr.bf16.mxu1 %v3344_v39  ;;  %v552_v33 = vrot.slane %v4758_v30, 2  ;;  %v1184_v34 = vpack.c.bf16 %v3926_v61, %v3923_v45  ;;  %v4764_v30 = vunpack.c.l.bf16 %v3628_v57  ;;  %v3353_v57 = vld [vmem:[%s4711_s1 + $0x180] sm:$0xff]  }
  0x35   :  { %2949 = vmatprep.subr.bf16.mxu0 %v3345_v17  ;;  %2807 = vmatprep.mubr.bf16.mxu1 %v3892_v29  ;;  %v551_v25 = vrot.slane %v4757_v24, 2  ;;  %v560_v24 = vrot.slane %v4763_v2, 2  ;;  %v3958_v23 = vsel %vm541_vm1, %v554_v16, %v555_v4  ;;  %v4766_v4 = vunpack.c.l.bf16 %v3642_v63 }
  0x36   :  { %2935 = vmatprep.mubr.bf16.mxu0 %v996_v47  ;;  %v558_v47 = vrot.slane %v4762_v43, 2  ;;  %v561_v35 = vrot.slane %v4764_v30, 2  ;;  %v4767_v43 = vunpack.c.l.bf16 %v3655_v5  ;;  %v4768_v30 = vunpack.c.l.bf16 %v3669_v10 }
  0x37   :  { %2822 = vmatpush3.bf16.msra.mxu1 %v3344_v39  ;;  %v4761_v39 = vunpack.c.l.bf16 %v3612_v53  ;;  %v3955_v42 = vsel %vm541_vm1, %v551_v25, %v552_v33  ;;  %v3970_v25 = vcombine.low %v3536_v19, %v3547_v22  ;;  %v4765_v33 = vunpack.c.l.bf16 %v3637_v62 }
  0x38   :  { %2950 = vmatpush3.bf16.msra.mxu0 %v3345_v17  ;;  %2823 = vmatprep.subr.bf16.mxu1 %v3346_v15  ;;  %v1176_v2 = vrot.slane %v4767_v43, 2  ;;  %v4769_v63 = vunpack.c.l.bf16 %v3708_v49  ;;  %v4773_v43 = vunpack.c.l.bf16 %v3731_v9  ;;  %v3358_v9 = vld [vmem:[%s4711_s1 + $0x90] sm:$0xff]  }
  0x39   :  { %2951 = vmatprep.subr.bf16.mxu0 %v3347_v20  ;;  %v557_v17 = vrot.slane %v4761_v39, 2  ;;  %v563_v16 = vrot.slane %v4765_v33, 2  ;;  %v3986_v39 = vsel %vm541_vm1, %v560_v24, %v561_v35  ;;  %v1177_v33 = vrot.slane %v4768_v30, 2 }
  0x3a   :  { %2808 = vmatmul.mubr.bf16.gmra.mrb[12].mxu1 %v3913_v21  ;;  %v4772_v35 = vunpack.c.l.bf16 %v3513_v12  ;;  %v4774_v30 = vunpack.c.l.bf16 %v3518_v13  ;;  %v4775_v12 = vunpack.c.l.bf16 %v3698_v48 }
  0x3b   :  { %2936 = vmatmul.mubr.bf16.gmra.mrb[12].mxu0 %v997_v51  ;;  %2824 = vmatpush3.bf16.msra.mxu1 %v3346_v15  ;;  %v1185_v15 = vpack.c.bf16 %v3958_v23, %v3955_v42  ;;  %v564_v51 = vrot.slane %v4766_v4, 2  ;;  %v4770_v4 = vunpack.c.l.bf16 %v3718_v58  ;;  %v573_v58 = vrot.slane %v4773_v43, 2 }
  0x3c   :  { %2952 = vmatpush3.bf16.msra.mxu0 %v3347_v20  ;;  %2825 = vmatprep.subr.bf16.mxu1 %v3348_v26  ;;  %v3354_v20 = vld [vmem:[%s4711_s1 + $0x88] sm:$0xff]   ;;  %v542_v10 = vrot.slane %v4772_v35, 2  ;;  %v566_v35 = vrot.slane %v4775_v12, 2 }
  0x3d   :  { %2953 = vmatprep.subr.bf16.mxu0 %v3349_v55  ;;  %2827 = vmatprep.mubr.bf16.mxu1 %v2380_v40  ;;  %v3355_v40 = vld [vmem:[%s4711_s1 + $0x188] sm:$0xff]   ;;  %v570_v3 = vrot.slane %v4770_v4, 2  ;;  %v4012_v4 = vsel %vm541_vm1, %v563_v16, %v564_v51  ;;  %v4030_v16 = vcombine.low %v3623_v56, %v3637_v62 }
  0x3e   :  { %2955 = vmatprep.mubr.bf16.mxu0 %v1184_v34  ;;  %v3983_v34 = vsel %vm541_vm1, %v557_v17, %v558_v47  ;;  %v3998_v17 = vcombine.low %v3578_v36, %v3612_v53  ;;  %v4771_v47 = vunpack.c.l.bf16 %v3726_v8 }
  0x3f   :  { %2826 = vmatpush3.bf16.msra.mxu1 %v3348_v26  ;;  %v569_v26 = vrot.slane %v4769_v63, 2  ;;  %v543_v63 = vrot.slane %v4774_v30, 2  ;;  %v4778_v30 = vunpack.c.l.bf16 %v3748_v50  ;;  %v2384_v50 = vcombine.low %v3698_v48, %v3708_v49 }
  0x40   :  { %2954 = vmatpush3.bf16.msra.mxu0 %v3349_v55  ;;  %2843 = vmatprep.subr.bf16.mxu1 %v3352_v54  ;;  %v572_v24 = vrot.slane %v4771_v47, 2  ;;  %v1186_v55 = vpack.c.bf16 %v3986_v39, %v3983_v34  ;;  %v4015_v47 = vsel %vm541_vm1, %v1176_v2, %v1177_v33 }
  0x41   :  { %2971 = vmatprep.subr.bf16.mxu0 %v3353_v57  ;;  %v4023_v13 = vsel %vm541_vm1, %v542_v10, %v543_v63  ;;  %v1187_v51 = vpack.c.bf16 %v4015_v47, %v4012_v4  ;;  %v4038_v2 = vsel %vm541_vm1, %v569_v26, %v570_v3  ;;  %v4777_v10 = vunpack.c.l.bf16 %v3743_v38  ;;  %v3360_v26 = vld [vmem:[%s4711_s1 + $0x98] sm:$0xff]  }
  0x42   :  { %2828 = vmatmul.mubr.bf16.vlgmr.msra.gmra.mrb[0].mxu1 %v3970_v25  ;;  %v576_v63 = vrot.slane %v4778_v30, 2  ;;  %v4784_v30 = vunpack.c.l.bf16 %v3828_v52  ;;  %v3365_v52 = vld [vmem:[%s4711_s1 + $0x1a0] sm:$0xff]  }
  0x43   :  { %2956 = vmatmul.mubr.bf16.vlgmr.msra.gmra.mrb[0].mxu0 %v1185_v15  ;;  %2844 = vmatpush3.bf16.msra.mxu1 %v3352_v54  ;;  %v4776_v54 = vunpack.c.l.bf16 %v3703_v46  ;;  %v4041_v46 = vsel %vm541_vm1, %v572_v24, %v573_v58  ;;  %v575_v43 = vrot.slane %v4777_v10, 2  ;;  %v4782_v58 = vunpack.c.l.bf16 %v3817_v11  ;;  %v3364_v11 = vld [vmem:[%s4711_s1 + $0xa0] sm:$0xff]  }
  0x44   :  { %2972 = vmatpush3.bf16.msra.mxu0 %v3353_v57  ;;  %2845 = vmatprep.subr.bf16.mxu1 %v3354_v20  ;;  %v3359_v57 = vld [vmem:[%s4711_s1 + $0x190] sm:$0xff]   ;;  %v1188_v24 = vpack.c.bf16 %v4041_v46, %v4038_v2 }
  0x45   :  { %v567_v15 = vrot.slane %v4776_v54, 2  ;;  %2973 = vmatprep.subr.bf16.mxu0 %v3355_v40  ;;  %2831 = vmatprep.mubr.bf16.mxu1 %v3998_v17  ;;  %v4780_v54 = vunpack.c.l.bf16 %v3785_v31  ;;  %v4781_v31 = vunpack.c.l.bf16 %v3808_v32  ;;  %v4074_v48 = vsel %vm541_vm1, %v575_v43, %v576_v63 }
  0x46   :  { %2959 = vmatprep.mubr.bf16.mxu0 %v1186_v55  ;;  %v4779_v55 = vunpack.c.l.bf16 %v3770_v6 }
  0x47   :  { %v4044_v33 = vsel %vm541_vm1, %v566_v35, %v567_v15  ;;  %2846 = vmatpush3.bf16.msra.mxu1 %v3354_v20  ;;  %v579_v3 = vrot.slane %v4780_v54, 2  ;;  %v3361_v20 = vld [vmem:[%s4711_s1 + $0x198] sm:$0xff]   ;;  %v582_v35 = vrot.slane %v4782_v58, 2  ;;  %v4783_v15 = vunpack.c.l.bf16 %v3823_v1 }
  0x48   :  { %v578_v12 = vrot.slane %v4779_v55, 2  ;;  %2974 = vmatpush3.bf16.msra.mxu0 %v3355_v40  ;;  %2847 = vmatprep.subr.bf16.mxu1 %v3358_v9  ;;  %v581_v40 = vrot.slane %v4781_v31, 2  ;;  %v585_v55 = vrot.slane %v4784_v30, 2  ;;  %v4788_v58 = vunpack.c.l.bf16 %v3867_v37  ;;  %v4121_v37 = vld [vmem:[%s4710_s0 + $0x48] sm:$0xf] }
  0x49   :  { %2975 = vmatprep.subr.bf16.mxu0 %v3359_v57  ;;  %v584_v10 = vrot.slane %v4783_v15, 2 }
  0x4a   :  { %2832 = vmatmul.mubr.bf16.gmra.mrb[4].mxu1 %v4030_v16  ;;  %v4077_v54 = vsel %vm541_vm1, %v578_v12, %v579_v3  ;;  %v4095_v43 = vsel %vm541_vm1, %v581_v40, %v582_v35  ;;  %v4785_v12 = vunpack.c.l.bf16 %v3838_v60  ;;  %v1180_v15 = vrot.slane %v4788_v58, 2  ;;  %v3367_v40 = vld [vmem:[%s4711_s1 + $0x1a8] sm:$0xff]  }
  0x4b   :  { %2960 = vmatmul.mubr.bf16.gmra.mrb[4].mxu0 %v1187_v51  ;;  %2848 = vmatpush3.bf16.msra.mxu1 %v3358_v9  ;;  %v4087_v9 = vcombine.low %v3726_v8, %v3743_v38  ;;  %v1189_v51 = vpack.c.bf16 %v4077_v54, %v4074_v48  ;;  %v4098_v63 = vsel %vm541_vm1, %v584_v10, %v585_v55  ;;  %v4751_v55 = vunpack.c.l.bf16 %v4121_v37 }
  0x4c   :  { %2976 = vmatpush3.bf16.msra.mxu0 %v3359_v57  ;;  %2849 = vmatprep.subr.bf16.mxu1 %v3360_v26  ;;  %v3366_v57 = vld [vmem:[%s4711_s1 + $0xa8] sm:$0xff]   ;;  %v587_v3 = vrot.slane %v4785_v12, 2  ;;  %v4113_v35 = vcombine.low %v3770_v6, %v3808_v32  ;;  %v606_v58 = vpack.c.bf16 %v3923_v45, %v4023_v13  ;;  %v3374_v45 = vld [vmem:[%s4711_s1 + $0xc0] sm:$0xff]  }
  0x4d   :  { %2977 = vmatprep.subr.bf16.mxu0 %v3361_v20  ;;  %2835 = vmatprep.mubr.bf16.mxu1 %v2384_v50  ;;  %v4786_v50 = vunpack.c.l.bf16 %v3843_v59  ;;  %v1190_v59 = vpack.c.bf16 %v4098_v63, %v4095_v43  ;;  %v1742_v12 = vrot.slane %v4751_v55, 2 }
  0x4e   :  { %2963 = vmatprep.mubr.bf16.mxu0 %v1188_v24 }
  0x4f   :  { %2850 = vmatpush3.bf16.msra.mxu1 %v3360_v26  ;;  %v588_v24 = vrot.slane %v4786_v50, 2  ;;  %v4787_v26 = vunpack.c.l.bf16 %v3853_v41  ;;  %v4153_v50 = vld [vmem:[%s4710_s0 + $0x98] sm:$0xf] }
  0x50   :  { %2978 = vmatpush3.bf16.msra.mxu0 %v3361_v20  ;;  %2851 = vmatprep.subr.bf16.mxu1 %v3364_v11  ;;  %v3370_v20 = vld [vmem:[%s4711_s1 + $0xb0] sm:$0xff]  }
  0x51   :  { %v1179_v31 = vrot.slane %v4787_v26, 2  ;;  %2979 = vmatprep.subr.bf16.mxu0 %v3365_v52  ;;  %v4127_v10 = vsel %vm541_vm1, %v587_v3, %v588_v24  ;;  %v3372_v26 = vld [vmem:[%s4711_s1 + $0xb8] sm:$0xff]  }
  0x52   :  { %2836 = vmatmul.mubr.bf16.gmra.mrb[8].mxu1 %v4087_v9 }
  0x53   :  { %2964 = vmatmul.mubr.bf16.gmra.mrb[8].mxu0 %v1189_v51  ;;  %2852 = vmatpush3.bf16.msra.mxu1 %v3364_v11  ;;  %v4130_v30 = vsel %vm541_vm1, %v1179_v31, %v1180_v15  ;;  %v3371_v11 = vld [vmem:[%s4711_s1 + $0x1b0] sm:$0xff]   ;;  %v4144_v51 = vcombine.low %v3823_v1, %v3838_v60  ;;  %v103_v31 = vunpack.c.l.bf16 %v4153_v50  ;;  %v4168_v15 = vld [vmem:[%s4710_s0 + $0x9c] sm:$0x1] }
  0x54   :  { %2980 = vmatpush3.bf16.msra.mxu0 %v3365_v52  ;;  %2853 = vmatprep.subr.bf16.mxu1 %v3366_v57  ;;  %v4140_v52 = vld [vmem:[%s4710_s0 + $0x4c] sm:$0x1]  ;;  %v1191_v3 = vpack.c.bf16 %v4130_v30, %v4127_v10  ;;  %v104_v55 = vunpack.c.l.bf16 %v4168_v15 }
  0x55   :  { %2981 = vmatprep.subr.bf16.mxu0 %v3367_v40  ;;  %2839 = vmatprep.mubr.bf16.mxu1 %v4113_v35  ;;  %v4753_v24 = vunpack.c.l.bf16 %v4140_v52 }
  0x56   :  { %2967 = vmatprep.mubr.bf16.mxu0 %v1190_v59  ;;  %v1745_v59 = vrot.slane %v103_v31, 2 }
  0x57   :  { %2854 = vmatpush3.bf16.msra.mxu1 %v3366_v57  ;;  %v3373_v57 = vld [vmem:[%s4711_s1 + $0x1b8] sm:$0xff]  }
  0x58   :  { %2982 = vmatpush3.bf16.msra.mxu0 %v3367_v40  ;;  %2855 = vmatprep.subr.bf16.mxu1 %v3370_v20  ;;  %v1743_v40 = vrot.slane %v4753_v24, 2  ;;  %v1746_v24 = vrot.slane %v104_v55, 2 }
  0x59   :  { %2983 = vmatprep.subr.bf16.mxu0 %v3371_v11 }
  0x5a   :  { %2840 = vmatmul.mubr.bf16.gmra.mrb[12].mxu1 %v4144_v51  ;;  %v4177_v60 = vsel %vm541_vm1, %v1742_v12, %v1743_v40 }
  0x5b   :  { %2968 = vmatmul.mubr.bf16.gmra.mrb[12].mxu0 %v1191_v3  ;;  %2856 = vmatpush3.bf16.msra.mxu1 %v3370_v20  ;;  %v1750_v13 = vpack.c.bf16 %v4177_v60, %v4015_v47 }
  0x5c   :  { %2984 = vmatpush3.bf16.msra.mxu0 %v3371_v11  ;;  %2857 = vmatprep.subr.bf16.mxu1 %v3372_v26 }
  0x5d   :  { %11 = vsyncpa [#allocation3], 0  ;;  %2985 = vmatprep.subr.bf16.mxu0 %v3373_v57  ;;  %2859 = vmatprep.mubr.bf16.mxu1 %v606_v58  ;;  %v3375_v20 = vld [vmem:[%s4711_s1 + $0x1c0] sm:$0xff]   ;;  %v4191_v11 = vpack.c.bf16 %v3955_v42, %v3926_v61  ;;  %v4195_v12 = vsel %vm541_vm1, %v1745_v59, %v1746_v24  ;;  %v3376_v58 = vld [vmem:[%s4711_s1 + $0xc8] sm:$0xff]   ;;  %v4207_v42 = vpack.c.bf16 %v3983_v34, %v3958_v23  ;;  %vm3435_vm2 = vmmov 0  }
  0x5e   :  { %2987 = vmatprep.mubr.bf16.mxu0 %v3970_v25  ;;  %v1751_v3 = vpack.c.bf16 %v4195_v12, %v4130_v30  ;;  %v3377_v61 = vld [vmem:[%s4711_s1 + $0x1c8] sm:$0xff]   ;;  %v3378_v25 = vld [vmem:[%s4711_s1 + $0xd0] sm:$0xff]   ;;  %v4221_v23 = vpack.c.bf16 %v4012_v4, %v3986_v39  ;;  %v2524_v34 = vcombine.low %v3655_v5, %v4121_v37  ;;  %v3383_v39 = vld [vmem:[%s4711_s1 + $0xe0] sm:$0xff]   ;;  %v4253_v40 = vpack.c.bf16 %v4095_v43, %v4077_v54 }
  0x5f   :  { %2858 = vmatpush3.bf16.msra.mxu1 %v3372_v26  ;;  %v3380_v24 = vld [vmem:[%s4711_s1 + $0x1d0] sm:$0xff]   ;;  %v3382_v26 = vld [vmem:[%s4711_s1 + $0x1d8] sm:$0xff]   ;;  %v3384_v4 = vld [vmem:[%s4711_s1 + $0x1e0] sm:$0xff]   ;;  %v4267_v54 = vpack.c.bf16 %v4127_v10, %v4098_v63  ;;  %v4789_v63 = vcombine.low %v3523_v14, %v3536_v19  ;;  %v4792_v19 = vcombine.low %v3547_v22, %v3578_v36  ;;  %v4794_v36 = vcombine.low %v3637_v62, %v3655_v5 }
  0x60   :  { %2986 = vmatpush3.bf16.msra.mxu0 %v3373_v57  ;;  %2875 = vmatprep.subr.bf16.mxu1 %v3374_v45  ;;  %v3386_v57 = vld [vmem:[%s4711_s1 + $0x1e8] sm:$0xff]   ;;  %v3390_v43 = vld [vmem:[%s4711_s1 + $0xf8] sm:$0xff]   ;;  %v3394_v10 = vld [vmem:[%s4711_s1 + $0x200] sm:$0xff]   ;;  %v1558_v62 = vrot.slane %v104_v55, 1  ;;  %vm2013_vm3 = vcmask 1041409  }
  0x61   :  { %3003 = vmatprep.subr.bf16.mxu0 %v3375_v20  ;;  %v3395_v14 = vld [vmem:[%s4711_s1 + $0x208] sm:$0xff]   ;;  %v3399_v22 = vld [vmem:[%s4711_s1 + $0x218] sm:$0xff]   ;;  %v1999_v30 = vld [vmem:[%s4715_s5 + $0x20] sm:$0xff] }
  0x62   :  { %2860 = vmatmul.mubr.bf16.vlgmr.msra.gmra.mrb[0].mxu1 %v4191_v11  ;;  %v3403_v5 = vld [vmem:[%s4711_s1 + $0x228] sm:$0xff]   ;;  %v2002_v15 = vld [vmem:[%s4715_s5 + $0x38] sm:$0xff] }
  0x63   :  { %2988 = vmatmul.mubr.bf16.vlgmr.msra.gmra.mrb[0].mxu0 %v3998_v17  ;;  %2876 = vmatpush3.bf16.msra.mxu1 %v3374_v45  ;;  %v3381_v17 = vld [vmem:[%s4711_s1 + $0xd8] sm:$0xff]   ;;  %v4791_v45 = vunpack.c.l.bf16 %v4140_v52  ;;  %v3398_v52 = vld [vmem:[%s4711_s1 + $0x210] sm:$0xff]   ;;  %v2000_v55 = vld [vmem:[%s4715_s5 + $0x28] sm:$0xff] }
  0x64   :  { %3004 = vmatpush3.bf16.msra.mxu0 %v3375_v20  ;;  %2877 = vmatprep.subr.bf16.mxu1 %v3376_v58  ;;  %v2004_v12 = vld [vmem:[%s4715_s5 + $0x48] sm:$0xff] }
  0x65   :  { %3005 = vmatprep.subr.bf16.mxu0 %v3377_v61  ;;  %2863 = vmatprep.mubr.bf16.mxu1 %v4207_v42  ;;  %v1555_v20 = vrot.slane %v4791_v45, 1 }
  0x66   :  { %2991 = vmatprep.mubr.bf16.mxu0 %v4030_v16  ;;  %v610_v16 = vpack.c.bf16 %v4038_v2, %v4044_v33  ;;  %v4243_v2 = vpack.c.bf16 %v4074_v48, %v4041_v46  ;;  %v3385_v33 = vld [vmem:[%s4711_s1 + $0xe8] sm:$0xff]   ;;  %v3387_v46 = vld [vmem:[%s4711_s1 + $0xf0] sm:$0xff]  }
  0x67   :  { %2878 = vmatpush3.bf16.msra.mxu1 %v3376_v58  ;;  %v3389_v48 = vld [vmem:[%s4711_s1 + $0x1f0] sm:$0xff]  }
  0x68   :  { %3006 = vmatpush3.bf16.msra.mxu0 %v3377_v61  ;;  %2879 = vmatprep.subr.bf16.mxu1 %v3378_v25  ;;  %v2005_v61 = vld [vmem:[%s4715_s5 + $0x50] sm:$0xff] }
  0x69   :  { %3007 = vmatprep.subr.bf16.mxu0 %v3380_v24 }
  0x6a   :  { %2864 = vmatmul.mubr.bf16.gmra.mrb[4].mxu1 %v4221_v23 }
  0x6b   :  { %2992 = vmatmul.mubr.bf16.gmra.mrb[4].mxu0 %v2524_v34  ;;  %2880 = vmatpush3.bf16.msra.mxu1 %v3378_v25 }
  0x6c   :  { %3008 = vmatpush3.bf16.msra.mxu0 %v3380_v24  ;;  %2881 = vmatprep.subr.bf16.mxu1 %v3381_v17  ;;  %v2007_v24 = vld [vmem:[%s4715_s5 + $0x60] sm:$0xff] }
  0x6d   :  { %3009 = vmatprep.subr.bf16.mxu0 %v3382_v26  ;;  %2867 = vmatprep.mubr.bf16.mxu1 %v610_v16  ;;  %v3436_v16 = vmov 0.0  }
  0x6e   :  { %2995 = vmatprep.mubr.bf16.mxu0 %v4087_v9  ;;  %v2525_v9 = vcombine.low %v3853_v41, %v4153_v50  ;;  %v4383_v50 = vpack.c.bf16 %v2000_v55, %v1999_v30 }
  0x6f   :  { %2882 = vmatpush3.bf16.msra.mxu1 %v3381_v17  ;;  %v2009_v17 = vld [vmem:[%s4715_s5 + $0x70] sm:$0xff] }
  0x70   :  { %3010 = vmatpush3.bf16.msra.mxu0 %v3382_v26  ;;  %2883 = vmatprep.subr.bf16.mxu1 %v3383_v39  ;;  %v2010_v26 = vld [vmem:[%s4715_s5 + $0x78] sm:$0xff] }
  0x71   :  { %3011 = vmatprep.subr.bf16.mxu0 %v3384_v4 }
  0x72   :  { %2868 = vmatmul.mubr.bf16.gmra.mrb[8].mxu1 %v4243_v2 }
  0x73   :  { %2996 = vmatmul.mubr.bf16.gmra.mrb[8].mxu0 %v4113_v35  ;;  %2884 = vmatpush3.bf16.msra.mxu1 %v3383_v39  ;;  %v3391_v35 = vld [vmem:[%s4711_s1 + $0x1f8] sm:$0xff]   ;;  %v4434_v39 = vpack.c.bf16 %v2010_v26, %v2009_v17 }
  0x74   :  { %3012 = vmatpush3.bf16.msra.mxu0 %v3384_v4  ;;  %2885 = vmatprep.subr.bf16.mxu1 %v3385_v33 }
  0x75   :  { %3013 = vmatprep.subr.bf16.mxu0 %v3386_v57  ;;  %2871 = vmatprep.mubr.bf16.mxu1 %v4253_v40 }
  0x76   :  { %2999 = vmatprep.mubr.bf16.mxu0 %v4144_v51  ;;  %v4790_v51 = vunpack.c.l.bf16 %v4121_v37 }
  0x77   :  { %2886 = vmatpush3.bf16.msra.mxu1 %v3385_v33 }
  0x78   :  { %3014 = vmatpush3.bf16.msra.mxu0 %v3386_v57  ;;  %2887 = vmatprep.subr.bf16.mxu1 %v3387_v46  ;;  %v1554_v59 = vrot.slane %v4790_v51, 1 }
  0x79   :  { %3015 = vmatprep.subr.bf16.mxu0 %v3389_v48 }
  0x7a   :  { %2872 = vmatmul.mubr.bf16.gmra.mrb[12].mxu1 %v4267_v54  ;;  %v1556_v37 = vsel %vm161_vm0, %v1554_v59, %v1555_v20 }
  0x7b   :  { %3000 = vmatmul.mubr.bf16.gmra.mrb[12].mxu0 %v2525_v9  ;;  %2888 = vmatpush3.bf16.msra.mxu1 %v3387_v46  ;;  %v1562_v58 = vpack.c.bf16 %v1556_v37, %v3735_v28  ;;  %v3406_v28 = vld [vmem:[%s4711_s1 + $0x230] sm:$0xff]  }
  0x7c   :  { %3016 = vmatpush3.bf16.msra.mxu0 %v3389_v48  ;;  %2889 = vmatprep.subr.bf16.mxu1 %v3390_v43 }
  0x7d   :  { %3017 = vmatprep.subr.bf16.mxu0 %v3391_v35  ;;  %2891 = vmatprep.mubr.bf16.mxu1 %v4789_v63 }
  0x7e   :  { %3019 = vmatprep.mubr.bf16.mxu0 %v3672_v27  ;;  %v4793_v27 = vcombine.low %v3612_v53, %v3623_v56  ;;  %v4795_v53 = vcombine.low %v3708_v49, %v3726_v8  ;;  %v3402_v56 = vld [vmem:[%s4711_s1 + $0x220] sm:$0xff]   ;;  %v4796_v49 = vcombine.low %v3743_v38, %v3770_v6  ;;  %v3407_v38 = vld [vmem:[%s4711_s1 + $0x238] sm:$0xff]  }
  0x7f   :  { %2890 = vmatpush3.bf16.msra.mxu1 %v3390_v43 }
  0x80   :  { %3018 = vmatpush3.bf16.msra.mxu0 %v3391_v35 }
  0x81   :  { %3035 = vmatprep.subr.bf16.mxu0 %v3394_v10 }
  0x82   :  { %2892 = vmatmul.mubr.bf16.vlgmr.msra.gmra.mrb[0].mxu1 %v4792_v19  ;;  %v4446_v19 = vld [vmem:[%s4712_s2] ss:$0 sm:$0xff] }
  0x83   :  { %3020 = vmatmul.mubr.bf16.vlgmr.msra.gmra.mrb[0].mxu0 %v3693_v44  ;;  %2895 = vmatprep.mubr.bf16.mxu1 %v4793_v27  ;;  %v1557_v44 = vrot.slane %v103_v31, 1  ;;  %v2001_v31 = vld [vmem:[%s4715_s5 + $0x30] sm:$0xff] }
  0x84   :  { %3036 = vmatpush3.bf16.msra.mxu0 %v3394_v10  ;;  %3023 = vmatprep.mubr.bf16.mxu0 %v3774_v7  ;;  %v4797_v7 = vcombine.low %v3808_v32, %v3823_v1  ;;  %v4798_v1 = vld [vmem:[#allocation5_spill] sm:$0xff] }
  0x85   :  { %3037 = vmatprep.subr.bf16.mxu0 %v3395_v14  ;;  %v1559_v8 = vsel %vm161_vm0, %v1557_v44, %v1558_v62  ;;  %v4799_v6 = vcombine.low %v4798_v1, %v3853_v41  ;;  %v1995_v41 = vld [vmem:[%s4715_s5] sm:$0xff]  ;;  %v1996_v32 = vld [vmem:[%s4715_s5 + $0x8] sm:$0xff] }
  0x86   :  { %v4362_v60 = vpack.c.bf16 %v1996_v32, %v1995_v41 }
  0x88   :  { %3038 = vmatpush3.bf16.msra.mxu0 %v3395_v14 }
  0x89   :  { %3039 = vmatprep.subr.bf16.mxu0 %v3398_v52 }
  0x8a   :  { %2896 = vmatmul.mubr.bf16.gmra.mrb[4].mxu1 %v4794_v36 }
  0x8b   :  { %3024 = vmatmul.mubr.bf16.gmra.mrb[4].mxu0 %v1562_v58  ;;  %2899 = vmatprep.mubr.bf16.mxu1 %v4795_v53 }
  0x8c   :  { %3040 = vmatpush3.bf16.msra.mxu0 %v3398_v52  ;;  %3027 = vmatprep.mubr.bf16.mxu0 %v3874_v0  ;;  %v1563_v0 = vpack.c.bf16 %v1559_v8, %v3910_v18  ;;  %v1997_v18 = vld [vmem:[%s4715_s5 + $0x10] sm:$0xff] }
  0x8d   :  { %3041 = vmatprep.subr.bf16.mxu0 %v3399_v22 }
  0x90   :  { %3042 = vmatpush3.bf16.msra.mxu0 %v3399_v22 }
  0x91   :  { %3043 = vmatprep.subr.bf16.mxu0 %v3402_v56 }
  0x92   :  { %2900 = vmatmul.mubr.bf16.gmra.mrb[8].mxu1 %v4796_v49 }
  0x93   :  { %3028 = vmatmul.mubr.bf16.gmra.mrb[8].mxu0 %v3892_v29  ;;  %2903 = vmatprep.mubr.bf16.mxu1 %v4797_v7  ;;  %v3434_v29 = vmov 0.0|0.0  }
  0x94   :  { %3044 = vmatpush3.bf16.msra.mxu0 %v3402_v56  ;;  %3031 = vmatprep.mubr.bf16.mxu0 %v3913_v21  ;;  %v1998_v21 = vld [vmem:[%s4715_s5 + $0x18] sm:$0xff] }
  0x95   :  { %3045 = vmatprep.subr.bf16.mxu0 %v3403_v5  ;;  %3137 = vmatprep.subr.bf16.mxu1 %v3434_v29  ;;  %v4373_v47 = vpack.c.bf16 %v1998_v21, %v1997_v18 }
  0x96   :  { %3139 = vmatpush3.bf16.msra.mxu1 %v4362_v60 }
  0x97   :  { %3140 = vmatprep.subr.bf16.mxu1 %v3434_v29 }
  0x98   :  { %3046 = vmatpush3.bf16.msra.mxu0 %v3403_v5 }
  0x99   :  { %3047 = vmatprep.subr.bf16.mxu0 %v3406_v28 }
  0x9a   :  { %2904 = vmatmul.mubr.bf16.gmra.mrb[12].mxu1 %v4799_v6 }
  0x9b   :  { %3032 = vmatmul.mubr.bf16.gmra.mrb[12].mxu0 %v1563_v0  ;;  %3142 = vmatpush3.bf16.msra.mxu1 %v4373_v47 }
  0x9c   :  { %3048 = vmatpush3.bf16.msra.mxu0 %v3406_v28  ;;  %3051 = vmatprep.mubr.bf16.mxu0 %v4191_v11  ;;  %v2003_v11 = vld [vmem:[%s4715_s5 + $0x40] sm:$0xff] }
  0x9d   :  { %3049 = vmatprep.subr.bf16.mxu0 %v3407_v38  ;;  %3143 = vmatprep.subr.bf16.mxu1 %v3434_v29 }
  0x9e   :  { %3099 = vmatprep.mubr.msk.f32.mxu1 %vm3435_vm2, %v3436_v16 }
  0x9f   :  { %3145 = vmatpush3.bf16.msra.mxu1 %v4383_v50 }
  0xa0   :  { %3050 = vmatpush3.bf16.msra.mxu0 %v3407_v38  ;;  %3146 = vmatprep.subr.bf16.mxu1 %v3434_v29 }
  0xa3   :  { %3052 = vmatmul.mubr.bf16.vlgmr.msra.gmra.mrb[0].mxu0 %v4207_v42  ;;  %v2006_v42 = vld [vmem:[%s4715_s5 + $0x58] sm:$0xff] }
  0xa4   :  { %3055 = vmatprep.mubr.bf16.mxu0 %v4221_v23  ;;  %v4413_v25 = vpack.c.bf16 %v2006_v42, %v2005_v61  ;;  %v2008_v23 = vld [vmem:[%s4715_s5 + $0x68] sm:$0xff] }
  0xa5   :  { %v4423_v34 = vpack.c.bf16 %v2008_v23, %v2007_v24 }
  0xab   :  { %3056 = vmatmul.mubr.bf16.gmra.mrb[4].mxu0 %v1750_v13  ;;  %v4393_v13 = vpack.c.bf16 %v2002_v15, %v2001_v31 }
  0xac   :  { %3059 = vmatprep.mubr.bf16.mxu0 %v4243_v2 }
  0xad   :  { %3148 = vmatpush3.bf16.msra.mxu1 %v4393_v13 }
  0xae   :  { %3149 = vmatprep.subr.bf16.mxu1 %v3434_v29 }
  0xb3   :  { %3060 = vmatmul.mubr.bf16.gmra.mrb[8].mxu0 %v4253_v40 }
  0xb4   :  { %3063 = vmatprep.mubr.bf16.mxu0 %v4267_v54 }
  0xbb   :  { %3064 = vmatmul.mubr.bf16.gmra.mrb[12].mxu0 %v1751_v3  ;;  %v4403_v3 = vpack.c.bf16 %v2004_v12, %v2003_v11 }
  0xbd   :  { %3151 = vmatpush3.bf16.msra.mxu1 %v4403_v3 }
  0xbe   :  { %3152 = vmatprep.subr.bf16.mxu1 %v3434_v29 }
  0xc1   :  { %3154 = vmatpush3.bf16.msra.mxu1 %v4413_v25 }
  0xc2   :  { %3155 = vmatprep.subr.bf16.mxu1 %v3434_v29 }
  0xc5   :  { %3157 = vmatpush3.bf16.msra.mxu1 %v4423_v34 }
  0xc6   :  { %3158 = vmatprep.subr.bf16.mxu1 %v3434_v29 }
  0xc9   :  { %3160 = vmatpush3.bf16.msra.mxu1 %v4434_v39 }
  0xca   :  { %3161 = vmatprep.subr.bf16.mxu1 %v3434_v29 }
 0x155   :  { %v2893_v4 = vpop.f32.mrb[0].mxu1 }
 0x156   :  { %v899_v2 = vpop.f32.mrb[1].mxu1 }
 0x157   :  { %v2894_v33 = vpop.f32.mrb[2].mxu1 }
 0x158   :  { %v902_v57 = vpop.f32.mrb[3].mxu1 }
 0x15d   :  { %v2897_v40 = vpop.f32.mrb[4].mxu1 }
 0x15e   :  { %v915_v46 = vpop.f32.mrb[5].mxu1 }
 0x15f   :  { %v2898_v48 = vpop.f32.mrb[6].mxu1 }
 0x160   :  { %v918_v54 = vpop.f32.mrb[7].mxu1 }
 0x165   :  { %v2901_v9 = vpop.f32.mrb[8].mxu1 }
 0x166   :  { %v931_v43 = vpop.f32.mrb[9].mxu1 }
 0x167   :  { %v2902_v35 = vpop.f32.mrb[10].mxu1 }
 0x168   :  { %v934_v63 = vpop.f32.mrb[11].mxu1 }
 0x16d   :  { %v2905_v10 = vpop.f32.mrb[12].mxu1 }
 0x16e   :  { %v947_v51 = vpop.f32.mrb[13].mxu1 }
 0x16f   :  { %v4439_v59 = vpop.f32.mrb[14].mxu1 }
 0x170   :  { %v4441_v45 = vpop.f32.mrb[15].mxu1 }
 0x176   :  { %v3053_v20 = vpop.f32.mrb[0].mxu0 }
 0x177   :  { %v3185_v14 = vadd.f32 %v3053_v20, %v2893_v4  ;;  %v1851_v27 = vpop.f32.mrb[1].mxu0 }
 0x178   :  { %v3186_v37 = vadd.f32 %v1851_v27, %v899_v2  ;;  %v3054_v52 = vpop.f32.mrb[2].mxu0 }
 0x179   :  { %v3187_v58 = vadd.f32 %v3054_v52, %v2894_v33  ;;  %v1854_v22 = vpop.f32.mrb[3].mxu0  ;;  %v4452_v56 = vadd.f32 %v3185_v14, %v4446_v19 }
 0x17a   :  { %v4449_v36 = vadd.f32 %v3186_v37, %v4446_v19  ;;  %v3188_v53 = vadd.f32 %v1854_v22, %v902_v57 }
 0x17b   :  { %v4459_v5 = vadd.f32 %v3187_v58, %v4446_v19  ;;  %v1955_v0 = vmax.f32 %v4452_v56, 0.0 }
 0x17c   :  { %v4455_v44 = vadd.f32 %v3188_v53, %v4446_v19  ;;  %v1953_v62 = vmax.f32 %v4449_v36, 0.0 }
 0x17d   :  { %v1956_v18 = vmax.f32 %v4459_v5, 0.0 }
 0x17e   :  { %v1954_v49 = vmax.f32 %v4455_v44, 0.0  ;;  %v3057_v7 = vpop.f32.mrb[4].mxu0 }
 0x17f   :  { %v3189_v8 = vadd.f32 %v3057_v7, %v2897_v40  ;;  %v1867_v28 = vpop.f32.mrb[5].mxu0 }
 0x180   :  { %v1969_v38 = vadd.f32 %v1954_v49, %v1953_v62  ;;  %v3190_v1 = vadd.f32 %v1867_v28, %v915_v46  ;;  %v3058_v6 = vpop.f32.mrb[6].mxu0 }
 0x181   :  { %v3191_v41 = vadd.f32 %v3058_v6, %v2898_v48  ;;  %v1870_v32 = vpop.f32.mrb[7].mxu0  ;;  %v4480_v12 = vadd.f32 %v3189_v8, %v4446_v19 }
 0x182   :  { %v1970_v21 = vadd.f32 %v1969_v38, %v1955_v0  ;;  %v4471_v30 = vadd.f32 %v3190_v1, %v4446_v19  ;;  %v3192_v55 = vadd.f32 %v1870_v32, %v918_v54 }
 0x183   :  { %v1959_v33 = vmax.f32 %v4480_v12, 0.0  ;;  %v4489_v57 = vadd.f32 %v3191_v41, %v4446_v19 }
 0x184   :  { %v1957_v31 = vmax.f32 %v4471_v30, 0.0  ;;  %v1971_v15 = vadd.f32 %v1970_v21, %v1956_v18  ;;  %v4477_v11 = vadd.f32 %v3192_v55, %v4446_v19 }
 0x185   :  { %v1960_v14 = vmax.f32 %v4489_v57, 0.0 }
 0x186   :  { %v1972_v61 = vadd.f32 %v1971_v15, %v1957_v31  ;;  %v1958_v42 = vmax.f32 %v4477_v11, 0.0  ;;  %v3061_v24 = vpop.f32.mrb[8].mxu0 }
 0x187   :  { %v3193_v23 = vadd.f32 %v3061_v24, %v2901_v9  ;;  %v1883_v17 = vpop.f32.mrb[9].mxu0 }
 0x188   :  { %v1973_v26 = vadd.f32 %v1972_v61, %v1958_v42  ;;  %v3194_v4 = vadd.f32 %v1883_v17, %v931_v43  ;;  %v3062_v2 = vpop.f32.mrb[10].mxu0 }
 0x189   :  { %v3195_v40 = vadd.f32 %v3062_v2, %v2902_v35  ;;  %v1886_v46 = vpop.f32.mrb[11].mxu0  ;;  %v4497_v20 = vadd.f32 %v3193_v23, %v4446_v19 }
 0x18a   :  { %v4492_v48 = vadd.f32 %v3194_v4, %v4446_v19  ;;  %v3196_v54 = vadd.f32 %v1886_v46, %v934_v63  ;;  %v1974_v9 = vadd.f32 %v1973_v26, %v1959_v33 }
 0x18b   :  { %v4505_v35 = vadd.f32 %v3195_v40, %v4446_v19  ;;  %v1963_v53 = vmax.f32 %v4497_v20, 0.0 }
 0x18c   :  { %v4500_v43 = vadd.f32 %v3196_v54, %v4446_v19  ;;  %v1961_v27 = vmax.f32 %v4492_v48, 0.0  ;;  %v1975_v63 = vadd.f32 %v1974_v9, %v1960_v14 }
 0x18d   :  { %v1964_v6 = vmax.f32 %v4505_v35, 0.0 }
 0x18e   :  { %v1962_v37 = vmax.f32 %v4500_v43, 0.0  ;;  %v3065_v52 = vpop.f32.mrb[12].mxu0  ;;  %v1976_v21 = vrot.slane %v1975_v63, 4 }
 0x18f   :  { %v3197_v58 = vadd.f32 %v3065_v52, %v2905_v10  ;;  %v1899_v22 = vpop.f32.mrb[13].mxu0 }
 0x190   :  { %v1982_v7 = vadd.f32 %v1962_v37, %v1961_v27  ;;  %v3198_v8 = vadd.f32 %v1899_v22, %v947_v51  ;;  %v3066_v28 = vpop.f32.mrb[14].mxu0  ;;  %v1977_v23 = vadd.f32 %v1976_v21, %v1975_v63 }
 0x191   :  { %v3199_v38 = vadd.f32 %v3066_v28, %v4439_v59  ;;  %v1902_v1 = vpop.f32.mrb[15].mxu0  ;;  %v4524_v55 = vadd.f32 %v3197_v58, %v4446_v19 }
 0x192   :  { %v1983_v41 = vadd.f32 %v1982_v7, %v1963_v53  ;;  %v4520_v10 = vadd.f32 %v3198_v8, %v4446_v19  ;;  %v3200_v32 = vadd.f32 %v1902_v1, %v4441_v45  ;;  %v1978_v40 = vrot.slane %v1977_v23, 2 }
 0x193   :  { %v4535_v24 = vadd.f32 %v3199_v38, %v4446_v19  ;;  %v1967_v17 = vmax.f32 %v4524_v55, 0.0 }
 0x194   :  { %v1965_v51 = vmax.f32 %v4520_v10, 0.0  ;;  %v1984_v59 = vadd.f32 %v1983_v41, %v1964_v6  ;;  %v4530_v15 = vadd.f32 %v3200_v32, %v4446_v19  ;;  %v1979_v9 = vadd.f32 %v1978_v40, %v1977_v23 }
 0x195   :  { %v1968_v4 = vmax.f32 %v4535_v24, 0.0 }
 0x196   :  { %v1985_v61 = vadd.f32 %v1984_v59, %v1965_v51  ;;  %v1966_v45 = vmax.f32 %v4530_v15, 0.0  ;;  %v1980_v58 = vrot.slane %v1979_v9, 1 }
 0x198   :  { %v1986_v26 = vadd.f32 %v1985_v61, %v1966_v45  ;;  %v1981_v7 = vadd.f32 %v1980_v58, %v1979_v9 }
 0x19a   :  { %v1987_v2 = vadd.f32 %v1986_v26, %v1967_v17 }
 0x19c   :  { %v1988_v46 = vadd.f32 %v1987_v2, %v1968_v4 }
 0x19e   :  { %v1989_v54 = vrot.slane %v1988_v46, 4 }
 0x1a0   :  { %v1990_v19 = vadd.f32 %v1989_v54, %v1988_v46 }
 0x1a2   :  { %v1991_v52 = vrot.slane %v1990_v19, 2 }
 0x1a4   :  { %v1992_v63 = vadd.f32 %v1991_v52, %v1990_v19 }
 0x1a6   :  { %v1993_v22 = vrot.slane %v1992_v63, 1 }
 0x1a8   :  { %v1994_v8 = vadd.f32 %v1993_v22, %v1992_v63 }
 0x1aa   :  { %v2014_v28 = vsel %vm2013_vm3, %v1994_v8, %v1981_v7 }
 0x1ab   :  { %3100 = vmatmul.mubr.f32.vlgmr.msra.gmra.mrb[16].mxu1 %v2014_v28 }
 0x1ac   :  { %3163 = vmatpush3.bf16.msra.mxu1 %v4362_v60  ;;  %3134 = vmatprep.mubr.msk.f32.mxu1 %vm3435_vm2, %v3436_v16  ;;  %v3437_v60 = vmov 1966171168  }
 0x1ad   :  { %3164 = vmatprep.subr.bf16.mxu1 %v3434_v29 }
 0x1b0   :  { %3166 = vmatpush3.bf16.msra.mxu1 %v4373_v47  ;;  %v2088_v47 = vunpack.c.l.s4 %v3437_v60 }
 0x1b1   :  { %3167 = vmatprep.subr.bf16.mxu1 %v3434_v29 }
 0x1b4   :  { %3169 = vmatpush3.bf16.msra.mxu1 %v4383_v50  ;;  %v2090_v50 = vlaneseq }
 0x1b5   :  { %3170 = vmatprep.subr.bf16.mxu1 %v3434_v29 }
 0x1b6   :  { %v2091_v16 = vshrl.u32 %v2090_v50, 7 }
 0x1b8   :  { %3172 = vmatpush3.bf16.msra.mxu1 %v4393_v13  ;;  %v2089_v13 = vunpack.c.0.s8 %v2088_v47  ;;  %v4567_v41 = vsub.s32 0, %v2091_v16 }
 0x1b9   :  { %3173 = vmatprep.subr.bf16.mxu1 %v3434_v29 }
 0x1ba   :  { %v4564_v38 = vsub.s32 %v2089_v13, %v2091_v16 }
 0x1bc   :  { %3175 = vmatpush3.bf16.msra.mxu1 %v4403_v3 }
 0x1bd   :  { %3176 = vmatprep.subr.bf16.mxu1 %v3434_v29 }
 0x1c0   :  { %3178 = vmatpush3.bf16.msra.mxu1 %v4413_v25 }
 0x1c1   :  { %3179 = vmatprep.subr.bf16.mxu1 %v3434_v29 }
 0x1c4   :  { %3181 = vmatpush3.bf16.msra.mxu1 %v4423_v34 }
 0x1c5   :  { %3182 = vmatprep.subr.bf16.mxu1 %v3434_v29 }
 0x1c8   :  { %3184 = vmatpush3.bf16.msra.mxu1 %v4434_v39 }
 0x27e   :  { %v2082_v3 = vpop.f32.mrb[16].mxu1 }
 0x27f   :  { %v2093_v1 = vrot.slane %v2082_v3, %v4564_v38  ;;  %v3101_v25 = vpop.f32.mrb[17].mxu1 }
 0x281   :  { %v2094_v32 = vcombine.high %v2093_v1, %v2093_v1  ;;  %v2101_v34 = vrot.slane %v2093_v1, %v4564_v38 }
 0x283   :  { %v2108_v29 = vrot.slane %v2094_v32, %v4564_v38  ;;  %v2112_v39 = vrot.slane %v2101_v34, %v4567_v41 }
 0x285   :  { %v2116_v21 = vrot.slane %v2108_v29, %v4567_v41  ;;  %v4575_v59 = vsub.f32 %v1953_v62, %v2112_v39  ;;  %v4579_v61 = vsub.f32 %v1954_v49, %v2112_v39  ;;  %v4591_v2 = vsub.f32 %v1955_v0, %v2112_v39 }
 0x286   :  { %v4603_v49 = vsub.f32 %v1956_v18, %v2112_v39  ;;  %v4615_v20 = vsub.f32 %v1957_v31, %v2112_v39  ;;  %v4651_v46 = vsub.f32 %v1960_v14, %v2112_v39 }
 0x287   :  { %v4583_v23 = vsub.f32 %v1961_v27, %v2116_v21  ;;  %v4587_v26 = vsub.f32 %v1962_v37, %v2116_v21  ;;  %v4595_v36 = vsub.f32 %v1963_v53, %v2116_v21  ;;  %v2135_v44 = vmul.f32 %v4575_v59, %v4575_v59 }
 0x288   :  { %v2136_v62 = vmul.f32 %v4579_v61, %v4579_v61  ;;  %v4607_v48 = vsub.f32 %v1964_v6, %v2116_v21  ;;  %v4619_v43 = vsub.f32 %v1965_v51, %v2116_v21  ;;  %v2137_v5 = vmul.f32 %v4591_v2, %v4591_v2 }
 0x289   :  { %v2143_v56 = vmul.f32 %v4583_v23, %v4583_v23  ;;  %v2144_v0 = vmul.f32 %v4587_v26, %v4587_v26  ;;  %v2145_v18 = vmul.f32 %v4595_v36, %v4595_v36  ;;  %v4627_v37 = vsub.f32 %v1958_v42, %v2112_v39 }
 0x28a   :  { %v2151_v27 = vadd.f32 %v2136_v62, %v2135_v44  ;;  %v4631_v30 = vsub.f32 %v1966_v45, %v2116_v21  ;;  %v2138_v31 = vmul.f32 %v4603_v49, %v4603_v49  ;;  %v2146_v53 = vmul.f32 %v4607_v48, %v4607_v48  ;;  %v2599_v44 = vld [vmem:[%s4713_s3] ss:$0 sm:$0xff]  ;;  %s3438_s3 = smov [#allocation2]  }
 0x28b   :  { %v2164_v35 = vadd.f32 %v2144_v0, %v2143_v56  ;;  %v4639_v51 = vsub.f32 %v1959_v33, %v2112_v39  ;;  %v4643_v11 = vsub.f32 %v1967_v17, %v2116_v21  ;;  %v2139_v42 = vmul.f32 %v4615_v20, %v4615_v20 }
 0x28c   :  { %v2152_v6 = vadd.f32 %v2151_v27, %v2137_v5  ;;  %v2147_v15 = vmul.f32 %v4619_v43, %v4619_v43  ;;  %v4655_v12 = vsub.f32 %v1968_v4, %v2116_v21  ;;  %v2140_v33 = vmul.f32 %v4627_v37, %v4627_v37 }
 0x28d   :  { %v2165_v10 = vadd.f32 %v2164_v35, %v2145_v18  ;;  %v2148_v55 = vmul.f32 %v4631_v30, %v4631_v30  ;;  %v2141_v19 = vmul.f32 %v4639_v51, %v4639_v51  ;;  %v2149_v57 = vmul.f32 %v4643_v11, %v4643_v11 }
 0x28e   :  { %v2153_v45 = vadd.f32 %v2152_v6, %v2138_v31  ;;  %v2142_v24 = vmul.f32 %v4651_v46, %v4651_v46  ;;  %v2150_v4 = vmul.f32 %v4655_v12, %v4655_v12 }
 0x28f   :  { %v2166_v40 = vadd.f32 %v2165_v10, %v2146_v53  ;;  %v2600_v10 = vld [vmem:[%s4714_s4] ss:$0 sm:$0xff]  ;;  %s2372_s4 = sshll.u32 %s3438_s3, 4  ;;  %s2373_s4 = int_to_ptr.vmem [resolvable:$true] %s2372_s4 }
 0x290   :  { %v2154_v17 = vadd.f32 %v2153_v45, %v2139_v42  ;;  %s3410_s11 = scalar_lea.vmem %s2373_s4, 32  ;;  %p3415_p1 = scmp.lt.s32.totalorder %s2373_s4, %s2373_s4 }
 0x291   :  { %v2167_v54 = vadd.f32 %v2166_v40, %v2147_v15  ;;  %p3411_p0 = scmp.ne.s32.totalorder %s2373_s4, %s3410_s11  ;;  %p3416_p2 = scmp.lt.s32.totalorder %s3410_s11, %s3410_s11 }
 0x292   :  { %v2155_v14 = vadd.f32 %v2154_v17, %v2140_v33 }
 0x293   :  { %v2168_v9 = vadd.f32 %v2167_v54, %v2148_v55  ;;  %p3417_p3 = por %p3416_p2, %p3415_p1 }
 0x294   :  { %v2156_v52 = vadd.f32 %v2155_v14, %v2141_v19 }
 0x295   :  { %v2169_v58 = vadd.f32 %v2168_v9, %v2149_v57  ;;  %p3418_p4 = pnand %p3417_p3, %p3411_p0 }
 0x296   :  { %v2157_v63 = vadd.f32 %v2156_v52, %v2142_v24 }
 0x297   :  { %v2170_v22 = vadd.f32 %v2169_v58, %v2150_v4 }
 0x298   :  { %v2158_v7 = vrot.slane %v2157_v63, 4 }
 0x299   :  { %v2171_v8 = vrot.slane %v2170_v22, 4 }
 0x29a   :  { %v2159_v28 = vadd.f32 %v2158_v7, %v2157_v63 }
 0x29b   :  { %v2172_v60 = vadd.f32 %v2171_v8, %v2170_v22 }
 0x29c   :  { %v2160_v47 = vrot.slane %v2159_v28, 2 }
 0x29d   :  { %v2173_v50 = vrot.slane %v2172_v60, 2 }
 0x29e   :  { %v2161_v13 = vadd.f32 %v2160_v47, %v2159_v28 }
 0x29f   :  { %v2174_v16 = vadd.f32 %v2173_v50, %v2172_v60 }
 0x2a0   :  { %v2162_v3 = vrot.slane %v2161_v13, 1 }
 0x2a1   :  { %v2175_v1 = vrot.slane %v2174_v16, 1 }
 0x2a2   :  { %v2163_v25 = vadd.f32 %v2162_v3, %v2161_v13 }
 0x2a3   :  { %v2176_v32 = vadd.f32 %v2175_v1, %v2174_v16 }
 0x2a5   :  { %v2179_v34 = vsel %vm2013_vm3, %v2176_v32, %v2163_v25 }
 0x2a6   :  { %3135 = vmatmul.mubr.f32.vlgmr.msra.gmra.mrb[18].mxu1 %v2179_v34 }
 0x379   :  { %v2247_v29 = vpop.f32.mrb[18].mxu1 }
 0x37a   :  { %v2248_v39 = vadd.f32 1e-05, %v2247_v29  ;;  %v3136_v21 = vpop.f32.mrb[19].mxu1 }
 0x37c   :  { %3408 = vrsqrt.f32 %v2248_v39 }
 0x386   :  { %v3409_v62 = vpop.eup %3408 }
 0x387   :  { %v2259_v56 = vmul.f32 %v3409_v62, %v2599_v44 }
 0x389   :  { %v2267_v0 = vrot.slane %v2259_v56, %v4564_v38 }
 0x38b   :  { %v2268_v5 = vcombine.high %v2267_v0, %v2267_v0  ;;  %v2275_v18 = vrot.slane %v2267_v0, %v4564_v38 }
 0x38d   :  { %v2282_v27 = vrot.slane %v2268_v5, %v4564_v38  ;;  %v2286_v35 = vrot.slane %v2275_v18, %v4567_v41 }
 0x38f   :  { %v2290_v31 = vrot.slane %v2282_v27, %v4567_v41  ;;  %v2293_v53 = vmul.f32 %v2286_v35, %v4575_v59  ;;  %v2294_v6 = vmul.f32 %v2286_v35, %v4579_v61  ;;  %v2295_v45 = vmul.f32 %v2286_v35, %v4591_v2 }
 0x390   :  { %v2296_v41 = vmul.f32 %v2286_v35, %v4603_v49  ;;  %v2297_v17 = vmul.f32 %v2286_v35, %v4615_v20  ;;  %v2298_v2 = vmul.f32 %v2286_v35, %v4627_v37  ;;  %v2300_v63 = vmul.f32 %v2286_v35, %v4651_v46 }
 0x391   :  { %v2301_v42 = vmul.f32 %v2290_v31, %v4583_v23  ;;  %v2302_v15 = vmul.f32 %v2290_v31, %v4587_v26  ;;  %v2303_v38 = vmul.f32 %v2290_v31, %v4595_v36  ;;  %v2316_v40 = vadd.f32 %v2600_v10, %v2293_v53 }
 0x392   :  { %v2317_v33 = vadd.f32 %v2600_v10, %v2294_v6  ;;  %v2304_v59 = vmul.f32 %v2290_v31, %v4607_v48  ;;  %v2305_v54 = vmul.f32 %v2290_v31, %v4619_v43  ;;  %v2318_v19 = vadd.f32 %v2600_v10, %v2295_v45 }
 0x393   :  { %v2324_v55 = vadd.f32 %v2600_v10, %v2301_v42  ;;  %v2325_v61 = vadd.f32 %v2600_v10, %v2302_v15  ;;  %v2326_v23 = vadd.f32 %v2600_v10, %v2303_v38  ;;  %v2306_v36 = vmul.f32 %v2290_v31, %v4631_v30 }
 0x394   :  { %v2332_v57 = vadd.f32 %v2317_v33, %v2316_v40  ;;  %v2319_v14 = vadd.f32 %v2600_v10, %v2296_v41  ;;  %v2327_v9 = vadd.f32 %v2600_v10, %v2304_v59  ;;  %v2299_v48 = vmul.f32 %v2286_v35, %v4639_v51 }
 0x395   :  { %v2345_v26 = vadd.f32 %v2325_v61, %v2324_v55  ;;  %v2307_v4 = vmul.f32 %v2290_v31, %v4643_v11  ;;  %v2320_v52 = vadd.f32 %v2600_v10, %v2297_v17  ;;  %v2328_v20 = vadd.f32 %v2600_v10, %v2305_v54 }
 0x396   :  { %v2333_v24 = vadd.f32 %v2332_v57, %v2318_v19  ;;  %v2308_v22 = vmul.f32 %v2290_v31, %v4655_v12  ;;  %v2321_v7 = vadd.f32 %v2600_v10, %v2298_v2  ;;  %v2329_v37 = vadd.f32 %v2600_v10, %v2306_v36 }
 0x397   :  { %v2346_v49 = vadd.f32 %v2345_v26, %v2326_v23  ;;  %v2322_v28 = vadd.f32 %v2600_v10, %v2299_v48  ;;  %v2330_v60 = vadd.f32 %v2600_v10, %v2307_v4  ;;  %v2323_v13 = vadd.f32 %v2600_v10, %v2300_v63 }
 0x398   :  { %v2334_v58 = vadd.f32 %v2333_v24, %v2319_v14  ;;  %v2331_v51 = vadd.f32 %v2600_v10, %v2308_v22 }
 0x399   :  { %v2347_v43 = vadd.f32 %v2346_v49, %v2327_v9 }
 0x39a   :  { %v2335_v8 = vadd.f32 %v2334_v58, %v2320_v52 }
 0x39b   :  { %v2348_v30 = vadd.f32 %v2347_v43, %v2328_v20 }
 0x39c   :  { %v2336_v47 = vadd.f32 %v2335_v8, %v2321_v7 }
 0x39d   :  { %v2349_v50 = vadd.f32 %v2348_v30, %v2329_v37 }
 0x39e   :  { %v2337_v16 = vadd.f32 %v2336_v47, %v2322_v28 }
 0x39f   :  { %v2350_v11 = vadd.f32 %v2349_v50, %v2330_v60 }
 0x3a0   :  { %v2338_v3 = vadd.f32 %v2337_v16, %v2323_v13 }
 0x3a1   :  { %v2351_v1 = vadd.f32 %v2350_v11, %v2331_v51 }
 0x3a2   :  { %v2339_v25 = vrot.slane %v2338_v3, 4 }
 0x3a3   :  { %v2352_v32 = vrot.slane %v2351_v1, 4 }
 0x3a4   :  { %v2340_v34 = vadd.f32 %v2339_v25, %v2338_v3 }
 0x3a5   :  { %v2353_v46 = vadd.f32 %v2352_v32, %v2351_v1 }
 0x3a6   :  { %v2341_v29 = vrot.slane %v2340_v34, 2 }
 0x3a7   :  { %v2354_v12 = vrot.slane %v2353_v46, 2 }
 0x3a8   :  { %v2342_v39 = vadd.f32 %v2341_v29, %v2340_v34 }
 0x3a9   :  { %v2355_v21 = vadd.f32 %v2354_v12, %v2353_v46 }
 0x3aa   :  { %v2343_v44 = vrot.slane %v2342_v39, 1 }
 0x3ab   :  { %v2356_v62 = vrot.slane %v2355_v21, 1 }
 0x3ac   :  { %v2344_v56 = vadd.f32 %v2343_v44, %v2342_v39 }
 0x3ad   :  { %v2357_v0 = vadd.f32 %v2356_v62, %v2355_v21 }
 0x3ae   :  { %v2359_v5 = vmul.f32 0.015625, %v2344_v56 }
 0x3af   :  { %v2360_v18 = vmul.f32 0.015625, %v2357_v0 }
 0x3b1   :  { %v2363_v27 = vsel %vm2013_vm3, %v2360_v18, %v2359_v5 }
 0x3b2   :  { %2365 = vst [vmem:[#allocation2] sm:$0x3] %v2363_v27 }
 0x3b3   :  { %3421 = shalt.err (!%p3418_p4)
}
 0x3b4   :  { %s3422_s14 = scalar_lea.hbm %s4716_s6, 32 }
 0x3b5   :  { %p3423_p5 = scmp.ne.s32.totalorder %s4716_s6, %s3422_s14  ;;  %p3426_p6 = scmp.lt.u32.totalorder %s3422_s14, %s4716_s6 }
 0x3b7   :  { %p3428_p7 = pnand %p3426_p6, %p3423_p5 }
 0x3b9   :  { %3431 = shalt.err (!%p3428_p7)
}
 0x3ba   :  { %2375 = dma.vmem_to_hbm [thread:$0]  %s2373_s4, 32, %s4716_s6, [#allocation3]  }
 0x3bb   :  { %3432 = dma.done.wait [#allocation3], 32  }
 0x3bc   :  { %3433 = vsyncadd [#allocation3], 4294967264 }
 0x3bd   :  { %2379 = vsyncpa [#allocation3], 1 }

// kernel: mnist_cnn_forward.4
= control target key start
LH: loop header
LB: loop body
LE: loop exit
PB: predicated region body
PF: predicated region fallthrough
CT: control target
= control target key end

     0   :  { %vm725_vm0 = vcmask 1041408   ;;  %vm369_vm1 = vcmask 1046528   ;;  %vm628_vm2 = vcmask 31744   ;;  %vm1406_vm3 = vcmask 1045504   ;;  %s11750_s1 = inlined_call_operand.vmem [shape: bf16[9,4,64], index: 1, kind: input, shape index: {}]   ;;  %s11751_s0 = inlined_call_operand.vmem [shape: bf16[2,18,18,4], index: 0, kind: input, shape index: {}]   ;;  %s11752_s5 = inlined_call_operand.vmem [shape: f32[64,64], index: 5, kind: input, shape index: {}]   ;;  %s11753_s2 = inlined_call_operand.vmem [shape: f32[1,64], index: 2, kind: input, shape index: {}]   ;;  %s11754_s3 = inlined_call_operand.vmem [shape: f32[1,64], index: 3, kind: input, shape index: {}]   ;;  %s11755_s4 = inlined_call_operand.vmem [shape: f32[1,64], index: 4, kind: input, shape index: {}]   ;;  %s11756_s6 = inlined_call_operand.vmem [shape: bf16[2,16,16,64], index: 6, kind: output, shape index: {}]  }
   0x1   :  { %v5780_v0 = vld [vmem:[%s11750_s1 + $0x8] sm:$0x3]  ;;  %v5647_v1 = vld [vmem:[%s11750_s1 + $0x2] sm:$0x3]  ;;  %v7737_v8 = vld [vmem:[%s11751_s0 + $0xc] sm:$0xff]   ;;  %vm4516_vm4 = vcmask 523264  }
   0x2   :  { %v7719_v2 = vld [vmem:[%s11751_s0] sm:$0xff]   ;;  %7569 = vmatprep.subr.msk.bf16.mxu0 %vm725_vm0, %v5780_v0  ;;  %7565 = vmatprep.subr.msk.bf16.mxu1 %vm725_vm0, %v5647_v1  ;;  %v7724_v3 = vsel %vm725_vm0, %v5780_v0, 0  ;;  %v727_v4 = vsel %vm725_vm0, %v5647_v1, 0  ;;  %v7730_v5 = vld [vmem:[%s11751_s0 + $0x8] sm:$0x1]  ;;  %v135_v11 = vunpack.c.l.bf16 %v7737_v8  ;;  %v136_v12 = vunpack.c.h.bf16 %v7737_v8  ;;  %v7759_v16 = vld [vmem:[%s11751_s0 + $0x18] sm:$0xff]  }
   0x3   :  { %12017 = vst [vmem:[#allocation2_spill] sm:$0xff] %v7719_v2  ;;  %12018 = vst [vmem:[#allocation3_spill] sm:$0xff] %v7724_v3  ;;  %v11759_v6 = vunpack.c.l.bf16 %v7719_v2  ;;  %v11758_v7 = vunpack.c.h.bf16 %v7719_v2  ;;  %6660 = vmatpush3.bf16.msra.mxu0 %v7724_v3  ;;  %6396 = vmatpush3.bf16.msra.mxu1 %v727_v4  ;;  %v11757_v9 = vunpack.c.l.bf16 %v7730_v5  ;;  %v7744_v10 = vld [vmem:[%s11751_s0 + $0x14] sm:$0x1]  ;;  %v5813_v13 = vld [vmem:[%s11750_s1 + $0xa] sm:$0x3]  ;;  %v11789_v25 = vunpack.c.l.bf16 %v7759_v16 }
   0x4   :  { %12019 = vst [vmem:[#allocation4_spill] sm:$0xff] %v7730_v5  ;;  %7571 = vmatprep.subr.msk.bf16.mxu0 %vm725_vm0, %v5813_v13  ;;  %v137_v18 = vunpack.c.l.bf16 %v7744_v10  ;;  %v375_v19 = vrot.slane %v135_v11, 1  ;;  %v7769_v20 = vld [vmem:[%s11751_s0 + $0x20] sm:$0x1]  ;;  %v376_v22 = vrot.slane %v136_v12, 1  ;;  %v11788_v28 = vunpack.c.h.bf16 %v7759_v16  ;;  %v7784_v30 = vld [vmem:[%s11751_s0 + $0x24] sm:$0xff]  }
   0x5   :  { %v370_v14 = vrot.slane %v11759_v6, 1  ;;  %v371_v15 = vrot.slane %v11758_v7, 1  ;;  %v373_v17 = vrot.slane %v11757_v9, 1  ;;  %v11787_v29 = vunpack.c.l.bf16 %v7769_v20  ;;  %v7789_v31 = vld [vmem:[%s11751_s0 + $0x2c] sm:$0x1]  ;;  %v7797_v34 = vld [vmem:[%s11751_s0 + $0x30] sm:$0xff]  }
   0x6   :  { %v378_v24 = vrot.slane %v137_v18, 1  ;;  %v377_v27 = vsel %vm369_vm1, %v375_v19, %v376_v22  ;;  %v380_v33 = vrot.slane %v11789_v25, 1  ;;  %v381_v36 = vrot.slane %v11788_v28, 1  ;;  %v7807_v38 = vld [vmem:[%s11750_s1] sm:$0x3]  ;;  %v7853_v58 = vld [vmem:[%s11751_s0 + $0x48] sm:$0xff]  }
   0x7   :  { %v372_v21 = vsel %vm369_vm1, %v370_v14, %v371_v15  ;;  %v374_v23 = vsel %vm369_vm1, %v371_v15, %v373_v17  ;;  %v383_v37 = vrot.slane %v11787_v29, 1  ;;  %v2894_v39 = vsel %vm725_vm0, %v5813_v13, 0  ;;  %v7816_v43 = vld [vmem:[%s11751_s0 + $0x38] sm:$0x1]  ;;  %v7821_v44 = vld [vmem:[%s11751_s0 + $0x3c] sm:$0xff]   ;;  %7566 = vmatprep.subr.msk.bf16.mxu1 %vm725_vm0, %v7807_v38 }
   0x8   :  { %v594_v26 = vpack.c.bf16 %v374_v23, %v372_v21  ;;  %v379_v32 = vsel %vm369_vm1, %v376_v22, %v378_v24  ;;  %v11786_v40 = vunpack.c.l.bf16 %v7784_v30  ;;  %v11785_v41 = vunpack.c.h.bf16 %v7784_v30  ;;  %v7834_v49 = vld [vmem:[%s11751_s0 + $0x44] sm:$0x1]  ;;  %v7866_v63 = vld [vmem:[%s11751_s0 + $0x50] sm:$0x1]  ;;  %v7871_v0 = vld [vmem:[%s11751_s0 + $0x54] sm:$0xff]  }
   0x9   :  { %v595_v35 = vpack.c.bf16 %v379_v32, %v377_v27  ;;  %v11783_v42 = vunpack.c.l.bf16 %v7789_v31  ;;  %v382_v45 = vsel %vm369_vm1, %v380_v33, %v381_v36  ;;  %v384_v46 = vsel %vm369_vm1, %v381_v36, %v383_v37  ;;  %v7889_v22 = vld [vmem:[%s11751_s0 + $0x5c] sm:$0x1]  ;;  %v7900_v32 = vld [vmem:[%s11751_s0 + $0x60] sm:$0xff]  }
   0xa   :  { %6397 = vmatprep.mubr.msk.bf16.mxu1 %vm628_vm2, %v594_v26  ;;  %v11782_v47 = vunpack.c.l.bf16 %v7797_v34  ;;  %v11778_v48 = vunpack.c.h.bf16 %v7797_v34  ;;  %v7836_v50 = vpack.c.bf16 %v384_v46, %v382_v45  ;;  %v385_v51 = vrot.slane %v11786_v40, 1  ;;  %v7916_v45 = vld [vmem:[%s11750_s1 + $0xc] sm:$0x3] }
   0xb   :  { %6661 = vmatprep.mubr.msk.bf16.mxu0 %vm628_vm2, %v595_v35  ;;  %6398 = vmatmul.mubr.msk.bf16.vlgmr.msra.gmra.mrb[0].mxu1 %vm628_vm2, %v595_v35  ;;  %v386_v52 = vrot.slane %v11785_v41, 1  ;;  %v388_v53 = vrot.slane %v11783_v42, 1  ;;  %v11777_v54 = vunpack.c.l.bf16 %v7816_v43  ;;  %v11776_v57 = vunpack.c.l.bf16 %v7821_v44 }
   0xc   :  { %12020 = vst [vmem:[#allocation5_spill] sm:$0xff] %v7836_v50  ;;  %v390_v55 = vrot.slane %v11782_v47, 1  ;;  %v391_v56 = vrot.slane %v11778_v48, 1  ;;  %6662 = vmatmul.mubr.msk.bf16.vlgmr.msra.gmra.mrb[0].mxu0 %vm628_vm2, %v7836_v50  ;;  %6401 = vmatprep.mubr.msk.bf16.mxu1 %vm628_vm2, %v7836_v50  ;;  %v11773_v61 = vunpack.c.h.bf16 %v7821_v44  ;;  %v11772_v62 = vunpack.c.l.bf16 %v7834_v49 }
   0xd   :  { %v387_v59 = vsel %vm369_vm1, %v385_v51, %v386_v52  ;;  %v389_v60 = vsel %vm369_vm1, %v386_v52, %v388_v53  ;;  %6726 = vmatpush3.bf16.msra.mxu0 %v2894_v39  ;;  %v393_v13 = vrot.slane %v11777_v54, 1  ;;  %v395_v14 = vrot.slane %v11776_v57, 1  ;;  %v7911_v39 = vld [vmem:[%s11751_s0 + $0x68] sm:$0x1] }
   0xe   :  { %v7873_v1 = vpack.c.bf16 %v389_v60, %v387_v59  ;;  %v392_v4 = vsel %vm369_vm1, %v390_v55, %v391_v56  ;;  %v396_v15 = vrot.slane %v11773_v61, 1  ;;  %v398_v17 = vrot.slane %v11772_v62, 1  ;;  %7572 = vmatprep.subr.msk.bf16.mxu0 %vm725_vm0, %v7916_v45  ;;  %v8041_v62 = vld [vmem:[%s11751_s0 + $0xa4] sm:$0x1]  ;;  %v8046_v61 = vld [vmem:[%s11751_s0 + $0xa8] sm:$0xff]  }
   0xf   :  { %v11771_v19 = vunpack.c.l.bf16 %v7853_v58  ;;  %v11770_v21 = vunpack.c.h.bf16 %v7853_v58  ;;  %v394_v23 = vsel %vm369_vm1, %v391_v56, %v393_v13  ;;  %v11769_v24 = vunpack.c.l.bf16 %v7866_v63 }
  0x10   :  { %12021 = vst [vmem:[#allocation6_spill] sm:$0xff] %v7873_v1  ;;  %6665 = vmatprep.mubr.msk.bf16.mxu0 %vm628_vm2, %v7873_v1  ;;  %v11768_v26 = vunpack.c.l.bf16 %v7871_v0  ;;  %v11765_v27 = vunpack.c.h.bf16 %v7871_v0  ;;  %v7902_v33 = vpack.c.bf16 %v394_v23, %v392_v4  ;;  %v397_v35 = vsel %vm369_vm1, %v395_v14, %v396_v15  ;;  %v7940_v4 = vld [vmem:[%s11751_s0 + $0x6c] sm:$0xff]  }
  0x11   :  { %v399_v36 = vsel %vm369_vm1, %v396_v15, %v398_v17  ;;  %v400_v37 = vrot.slane %v11771_v19, 1  ;;  %v401_v51 = vrot.slane %v11770_v21, 1  ;;  %v403_v52 = vrot.slane %v11769_v24, 1  ;;  %v7949_v17 = vld [vmem:[%s11751_s0 + $0x74] sm:$0x1]  ;;  %v8028_v24 = vld [vmem:[%s11751_s0 + $0x9c] sm:$0xff]  }
  0x12   :  { %12022 = vst [vmem:[#allocation7_spill] sm:$0xff] %v7902_v33  ;;  %v7920_v46 = vpack.c.bf16 %v399_v36, %v397_v35  ;;  %v11763_v53 = vunpack.c.l.bf16 %v7889_v22  ;;  %v405_v55 = vrot.slane %v11768_v26, 1  ;;  %v406_v56 = vrot.slane %v11765_v27, 1  ;;  %v8023_v26 = vld [vmem:[%s11751_s0 + $0x98] sm:$0x1] }
  0x13   :  { %6402 = vmatmul.mubr.msk.bf16.gmra.mrb[4].mxu1 %vm628_vm2, %v7873_v1  ;;  %v11761_v59 = vunpack.c.l.bf16 %v7900_v32  ;;  %v11760_v60 = vunpack.c.h.bf16 %v7900_v32  ;;  %v402_v13 = vsel %vm369_vm1, %v400_v37, %v401_v51  ;;  %v11762_v15 = vunpack.c.l.bf16 %v7911_v39 }
  0x14   :  { %12023 = vst [vmem:[#allocation8_spill] sm:$0xff] %v7920_v46  ;;  %6405 = vmatprep.mubr.msk.bf16.mxu1 %vm628_vm2, %v7902_v33  ;;  %v408_v14 = vrot.slane %v11763_v53, 1  ;;  %6666 = vmatmul.mubr.msk.bf16.gmra.mrb[4].mxu0 %vm628_vm2, %v7902_v33  ;;  %v404_v23 = vsel %vm369_vm1, %v401_v51, %v403_v52  ;;  %v407_v35 = vsel %vm369_vm1, %v405_v55, %v406_v56  ;;  %v11764_v6 = vunpack.c.l.bf16 %v7940_v4 }
  0x15   :  { %v410_v36 = vrot.slane %v11761_v59, 1  ;;  %v411_v37 = vrot.slane %v11760_v60, 1  ;;  %6669 = vmatprep.mubr.msk.bf16.mxu0 %vm628_vm2, %v7920_v46  ;;  %v413_v7 = vrot.slane %v11762_v15, 1  ;;  %v11766_v51 = vunpack.c.h.bf16 %v7940_v4  ;;  %v7972_v60 = vld [vmem:[%s11751_s0 + $0x78] sm:$0xff]  }
  0x16   :  { %v409_v9 = vsel %vm369_vm1, %v406_v56, %v408_v14  ;;  %v11767_v52 = vunpack.c.l.bf16 %v7949_v17  ;;  %v1115_v55 = vsel %vm725_vm0, %v7807_v38, 0  ;;  %v7974_v59 = vpack.c.bf16 %v404_v23, %v402_v13  ;;  %v7979_v56 = vld [vmem:[%s11751_s0 + $0x80] sm:$0x1]  ;;  %v7984_v14 = vld [vmem:[%s11751_s0 + $0x84] sm:$0xff]   ;;  %v7995_v23 = vld [vmem:[%s11751_s0 + $0x8c] sm:$0x1] }
  0x17   :  { %6462 = vmatpush3.bf16.msra.mxu1 %v1115_v55  ;;  %v7986_v15 = vpack.c.bf16 %v409_v9, %v407_v35  ;;  %v412_v38 = vsel %vm369_vm1, %v410_v36, %v411_v37  ;;  %v414_v53 = vsel %vm369_vm1, %v411_v37, %v413_v7  ;;  %v415_v13 = vrot.slane %v11764_v6, 1 }
  0x18   :  { %12024 = vst [vmem:[#allocation9_spill] sm:$0xff] %v7974_v59  ;;  %v416_v55 = vrot.slane %v11766_v51, 1  ;;  %v418_v9 = vrot.slane %v11767_v52, 1  ;;  %v11775_v35 = vunpack.c.l.bf16 %v7972_v60  ;;  %v11774_v7 = vunpack.c.h.bf16 %v7972_v60  ;;  %v8014_v51 = vld [vmem:[%s11751_s0 + $0x90] sm:$0xff]  }
  0x19   :  { %12025 = vst [vmem:[#allocation10_spill] sm:$0xff] %v7986_v15  ;;  %v11779_v36 = vunpack.c.l.bf16 %v7979_v56  ;;  %v11780_v37 = vunpack.c.l.bf16 %v7984_v14  ;;  %v11781_v6 = vunpack.c.h.bf16 %v7984_v14  ;;  %v11784_v27 = vunpack.c.l.bf16 %v7995_v23 }
  0x1a   :  { %v8018_v52 = vpack.c.bf16 %v414_v53, %v412_v38  ;;  %v417_v21 = vsel %vm369_vm1, %v415_v13, %v416_v55  ;;  %v419_v19 = vsel %vm369_vm1, %v416_v55, %v418_v9  ;;  %v420_v53 = vrot.slane %v11775_v35, 1 }
  0x1b   :  { %6406 = vmatmul.mubr.msk.bf16.gmra.mrb[8].mxu1 %vm628_vm2, %v7920_v46  ;;  %v421_v38 = vrot.slane %v11774_v7, 1  ;;  %v423_v13 = vrot.slane %v11779_v36, 1  ;;  %v425_v55 = vrot.slane %v11780_v37, 1  ;;  %v426_v9 = vrot.slane %v11781_v6, 1  ;;  %v8063_v36 = vld [vmem:[%s11751_s0 + $0xb0] sm:$0x1] }
  0x1c   :  { %6409 = vmatprep.mubr.msk.bf16.mxu1 %vm628_vm2, %v7974_v59  ;;  %6670 = vmatmul.mubr.msk.bf16.gmra.mrb[8].mxu0 %vm628_vm2, %v7974_v59  ;;  %12026 = vst [vmem:[#allocation11_spill] sm:$0xff] %v8018_v52  ;;  %v11793_v7 = vunpack.c.l.bf16 %v8014_v51  ;;  %v428_v35 = vrot.slane %v11784_v27, 1  ;;  %v11792_v57 = vunpack.c.h.bf16 %v8014_v51  ;;  %v11791_v54 = vunpack.c.l.bf16 %v8023_v26 }
  0x1d   :  { %6673 = vmatprep.mubr.msk.bf16.mxu0 %vm628_vm2, %v7986_v15  ;;  %v11790_v48 = vunpack.c.l.bf16 %v8028_v24  ;;  %v11794_v37 = vunpack.c.h.bf16 %v8028_v24  ;;  %v11795_v6 = vunpack.c.l.bf16 %v8041_v62  ;;  %v11798_v47 = vunpack.c.l.bf16 %v8046_v61 }
  0x1e   :  { %v11797_v42 = vunpack.c.h.bf16 %v8046_v61  ;;  %v8071_v27 = vrot.slane %v135_v11, 2  ;;  %v8075_v41 = vrot.slane %v136_v12, 2  ;;  %v8079_v40 = vpack.c.bf16 %v419_v19, %v417_v21  ;;  %v8092_v12 = vld [vmem:[%s11751_s0 + $0xb4] sm:$0xff]  }
  0x1f   :  { %v422_v29 = vsel %vm369_vm1, %v420_v53, %v421_v38  ;;  %v424_v28 = vsel %vm369_vm1, %v421_v38, %v423_v13  ;;  %v427_v25 = vsel %vm369_vm1, %v425_v55, %v426_v9  ;;  %v430_v11 = vrot.slane %v11793_v7, 1  ;;  %v8104_v13 = vld [vmem:[%s11751_s0 + $0xbc] sm:$0x1]  ;;  %v8109_v55 = vld [vmem:[%s11751_s0 + $0xc0] sm:$0xff]  }
  0x20   :  { %12027 = vst [vmem:[#allocation12_spill] sm:$0xff] %v8079_v40  ;;  %v429_v19 = vsel %vm369_vm1, %v426_v9, %v428_v35  ;;  %v431_v21 = vrot.slane %v11792_v57, 1  ;;  %v433_v53 = vrot.slane %v11791_v54, 1  ;;  %v435_v38 = vrot.slane %v11790_v48, 1  ;;  %12028 = vst [vmem:[#allocation13_spill] sm:$0xff] %v8104_v13 }
  0x21   :  { %12029 = vst [vmem:[#allocation14_spill] sm:$0xff] %v8109_v55  ;;  %v436_v35 = vrot.slane %v11794_v37, 1  ;;  %v438_v9 = vrot.slane %v11795_v6, 1  ;;  %v440_v48 = vrot.slane %v11798_v47, 1  ;;  %v441_v54 = vrot.slane %v11797_v42, 1 }
  0x22   :  { %v8124_v57 = vld [vmem:[%s11750_s1 + $0x4] sm:$0x3]  ;;  %v8128_v7 = vrot.slane %v137_v18, 2  ;;  %v12031_v37 = vunpack.c.l.bf16 %v7759_v16  ;;  %v12032_v6 = vunpack.c.h.bf16 %v7759_v16  ;;  %v8140_v42 = vpack.c.bf16 %v424_v28, %v422_v29  ;;  %v8157_v16 = vld [vmem:[%s11751_s0 + $0xd8] sm:$0xff]   ;;  %v8162_v28 = vld [vmem:[%s11751_s0 + $0xe0] sm:$0x1] }
  0x23   :  { %6410 = vmatmul.mubr.msk.bf16.gmra.mrb[12].mxu1 %vm628_vm2, %v7986_v15  ;;  %12030 = vst [vmem:[#allocation15_spill] sm:$0xff] %v8124_v57  ;;  %7567 = vmatprep.subr.msk.bf16.mxu1 %vm725_vm0, %v8124_v57  ;;  %v12034_v10 = vunpack.c.l.bf16 %v8063_v36  ;;  %12036 = vst [vmem:[#allocation18_spill] sm:$0xff] %v8157_v16  ;;  %v8164_v29 = vpack.c.bf16 %v429_v19, %v427_v25  ;;  %v437_v47 = vsel %vm369_vm1, %v435_v38, %v436_v35  ;;  %v8176_v25 = vld [vmem:[%s11751_s0 + $0xe4] sm:$0xff]   ;;  %v8192_v38 = vld [vmem:[%s11751_s0 + $0xf0] sm:$0xff]   ;;  %vm7672_vm5 = vmmov 0  }
  0x24   :  { %6413 = vmatprep.mubr.msk.bf16.mxu1 %vm628_vm2, %v8018_v52  ;;  %6674 = vmatmul.mubr.msk.bf16.gmra.mrb[12].mxu0 %vm628_vm2, %v8018_v52  ;;  %v8132_v8 = vrot.slane %v12031_v37, 2  ;;  %v8136_v3 = vrot.slane %v12032_v6, 2  ;;  %12033 = vst [vmem:[#allocation16_spill] sm:$0xff] %v8140_v42  ;;  %v8152_v6 = vld [vmem:[%s11751_s0 + $0xc8] sm:$0x1]  ;;  %12037 = vst [vmem:[#allocation19_spill] sm:$0xff] %v8162_v28  ;;  %v434_v52 = vsel %vm369_vm1, %v431_v21, %v433_v53  ;;  %v12042_v53 = vunpack.c.h.bf16 %v8092_v12 }
  0x25   :  { %6677 = vmatprep.mubr.msk.bf16.mxu0 %vm628_vm2, %v8079_v40  ;;  %v443_v18 = vrot.slane %v12034_v10, 1  ;;  %12035 = vst [vmem:[#allocation17_spill] sm:$0xff] %v8152_v6  ;;  %12038 = vst [vmem:[#allocation20_spill] sm:$0xff] %v8164_v29  ;;  %v432_v10 = vsel %vm369_vm1, %v430_v11, %v431_v21  ;;  %v439_v15 = vsel %vm369_vm1, %v436_v35, %v438_v9  ;;  %v8181_v11 = vld [vmem:[%s11751_s0 + $0xec] sm:$0x1]  ;;  %v12041_v21 = vunpack.c.l.bf16 %v8092_v12 }
  0x26   :  { %v442_v59 = vsel %vm369_vm1, %v440_v48, %v441_v54  ;;  %12039 = vst [vmem:[#allocation21_spill] sm:$0xff] %v8176_v25  ;;  %v8197_v35 = vld [vmem:[%s11751_s0 + $0xf8] sm:$0x1]  ;;  %v446_v19 = vrot.slane %v12042_v53, 1  ;;  %v12043_v46 = vunpack.c.l.bf16 %v8104_v13  ;;  %v12047_v57 = vunpack.c.l.bf16 %v8157_v16 }
  0x27   :  { %12040 = vst [vmem:[#allocation22_spill] sm:$0xff] %v8197_v35  ;;  %v444_v9 = vsel %vm369_vm1, %v441_v54, %v443_v18  ;;  %v445_v48 = vrot.slane %v12041_v21, 1  ;;  %v12045_v54 = vunpack.c.h.bf16 %v8109_v55  ;;  %v12050_v21 = vunpack.c.l.bf16 %v7769_v20  ;;  %v8248_v20 = vld [vmem:[%s11751_s0 + $0xfc] sm:$0xff]  }
  0x28   :  { %v448_v37 = vrot.slane %v12043_v46, 1  ;;  %v450_v1 = vrot.slane %v12047_v57, 1  ;;  %v8234_v46 = vpack.c.bf16 %v439_v15, %v437_v47  ;;  %v8236_v13 = vpack.c.bf16 %v444_v9, %v442_v59  ;;  %12057 = vst [vmem:[#allocation26_spill] sm:$0xff] %v8248_v20 }
  0x29   :  { %v2490_v18 = vrot.slane %v12045_v54, 1  ;;  %v12049_v54 = vunpack.c.l.bf16 %v8162_v28  ;;  %v1420_v53 = vrot.slane %v12050_v21, 2  ;;  %v12056_v28 = vunpack.c.l.bf16 %v8181_v11 }
  0x2a   :  { %12052 = vst [vmem:[#allocation24_spill] sm:$0xff] %v8234_v46  ;;  %12053 = vst [vmem:[#allocation25_spill] sm:$0xff] %v8236_v13  ;;  %v449_v47 = vsel %vm369_vm1, %v446_v19, %v448_v37  ;;  %v12058_v59 = vunpack.c.l.bf16 %v8192_v38  ;;  %vm4665_vm6 = vcmask 1041409   ;;  %vm5546_vm7 = vcmask 519168  }
  0x2b   :  { %6414 = vmatmul.mubr.msk.bf16.gmra.mrb[16].mxu1 %vm628_vm2, %v8079_v40  ;;  %v12044_v40 = vunpack.c.l.bf16 %v8109_v55  ;;  %v453_v2 = vrot.slane %v12049_v54, 1  ;;  %v8232_v55 = vpack.c.bf16 %v434_v52, %v432_v10  ;;  %v458_v54 = vrot.slane %v12056_v28, 1 }
  0x2c   :  { %6417 = vmatprep.mubr.msk.bf16.mxu1 %vm628_vm2, %v8140_v42  ;;  %6678 = vmatmul.mubr.msk.bf16.gmra.mrb[16].mxu0 %vm628_vm2, %v8140_v42  ;;  %v12048_v42 = vunpack.c.h.bf16 %v8157_v16  ;;  %v12055_v16 = vunpack.c.h.bf16 %v8176_v25  ;;  %v460_v15 = vrot.slane %v12058_v59, 1  ;;  %v12059_v52 = vunpack.c.h.bf16 %v8192_v38 }
  0x2d   :  { %v2489_v33 = vrot.slane %v12044_v40, 1  ;;  %6681 = vmatprep.mubr.msk.bf16.mxu0 %vm628_vm2, %v8164_v29  ;;  %v12046_v40 = vunpack.c.l.bf16 %v8152_v6  ;;  %12051 = vst [vmem:[#allocation23_spill] sm:$0xff] %v8232_v55  ;;  %v12054_v6 = vunpack.c.l.bf16 %v8176_v25 }
  0x2e   :  { %v451_v5 = vrot.slane %v12048_v42, 1  ;;  %v456_v42 = vrot.slane %v12055_v16, 1  ;;  %v461_v10 = vrot.slane %v12059_v52, 1  ;;  %v8260_v16 = vld [vmem:[%s11751_s0 + $0x104] sm:$0x1]  ;;  %v8279_v52 = vld [vmem:[%s11751_s0 + $0x108] sm:$0xff]  }
  0x2f   :  { %v2492_v50 = vrot.slane %v12046_v40, 1  ;;  %v447_v40 = vsel %vm369_vm1, %v445_v48, %v446_v19  ;;  %v455_v57 = vrot.slane %v12054_v6, 1  ;;  %v12060_v6 = vunpack.c.l.bf16 %v8197_v35  ;;  %12061 = vst [vmem:[#allocation27_spill] sm:$0xff] %v8260_v16  ;;  %12062 = vst [vmem:[#allocation28_spill] sm:$0xff] %v8279_v52 }
  0x30   :  { %v2491_v28 = vsel %vm369_vm1, %v2489_v33, %v2490_v18  ;;  %v8267_v19 = vsel %vm369_vm1, %v450_v1, %v451_v5  ;;  %v8270_v9 = vsel %vm369_vm1, %v451_v5, %v453_v2  ;;  %v1416_v2 = vsel %vm1406_vm3, %v8075_v41, %v8128_v7 }
  0x31   :  { %v463_v48 = vrot.slane %v12060_v6, 1  ;;  %v2493_v37 = vsel %vm369_vm1, %v2490_v18, %v2492_v50  ;;  %v1414_v50 = vsel %vm1406_vm3, %v8071_v27, %v8075_v41  ;;  %v457_v5 = vsel %vm369_vm1, %v455_v57, %v456_v42  ;;  %v8303_v41 = vld [vmem:[%s11751_s0 + $0x110] sm:$0x1]  ;;  %v8313_v57 = vld [vmem:[%s11751_s0 + $0x114] sm:$0xff]  }
  0x32   :  { %v459_v1 = vsel %vm369_vm1, %v456_v42, %v458_v54  ;;  %v11819_v33 = vunpack.c.l.bf16 %v8260_v16  ;;  %v8290_v18 = vpack.c.bf16 %v1416_v2, %v1414_v50  ;;  %v8294_v6 = vpack.c.bf16 %v449_v47, %v447_v40  ;;  %12066 = vst [vmem:[#allocation32_spill] sm:$0xff] %v8303_v41  ;;  %12067 = vst [vmem:[#allocation33_spill] sm:$0xff] %v8313_v57 }
  0x33   :  { %6418 = vmatmul.mubr.msk.bf16.gmra.mrb[20].mxu1 %vm628_vm2, %v8164_v29  ;;  %v8296_v59 = vpack.c.bf16 %v2493_v37, %v2491_v28  ;;  %v462_v27 = vsel %vm369_vm1, %v460_v15, %v461_v10  ;;  %v464_v21 = vsel %vm369_vm1, %v461_v10, %v463_v48  ;;  %v11820_v40 = vunpack.c.l.bf16 %v8279_v52  ;;  %v8329_v37 = vld [vmem:[%s11751_s0 + $0x11c] sm:$0x1] }
  0x34   :  { %6421 = vmatprep.mubr.msk.bf16.mxu1 %vm628_vm2, %v8232_v55  ;;  %12063 = vst [vmem:[#allocation29_spill] sm:$0xff] %v8290_v18  ;;  %6682 = vmatmul.mubr.msk.bf16.gmra.mrb[20].mxu0 %vm628_vm2, %v8232_v55  ;;  %12064 = vst [vmem:[#allocation30_spill] sm:$0xff] %v8294_v6  ;;  %v1419_v42 = vsel %vm1406_vm3, %v8132_v8, %v8136_v3  ;;  %v1421_v54 = vsel %vm1406_vm3, %v8136_v3, %v1420_v53  ;;  %v12068_v15 = vunpack.c.l.bf16 %v8248_v20  ;;  %v8336_v8 = vld [vmem:[%s11751_s0 + $0x120] sm:$0xff]  }
  0x35   :  { %12065 = vst [vmem:[#allocation31_spill] sm:$0xff] %v8296_v59  ;;  %6685 = vmatprep.mubr.msk.bf16.mxu0 %vm628_vm2, %v8234_v46  ;;  %v8320_v47 = vpack.c.bf16 %v459_v1, %v457_v5  ;;  %v12069_v48 = vunpack.c.h.bf16 %v8248_v20  ;;  %12070 = vst [vmem:[#allocation34_spill] sm:$0xff] %v8329_v37  ;;  %v8331_v50 = vpack.c.bf16 %v1421_v54, %v1419_v42  ;;  %v468_v53 = vrot.slane %v11819_v33, 1  ;;  %v8347_v1 = vld [vmem:[%s11751_s0 + $0x128] sm:$0x1]  ;;  %v8352_v42 = vld [vmem:[%s11751_s0 + $0x12c] sm:$0xff]  }
  0x36   :  { %v465_v10 = vrot.slane %v12068_v15, 1  ;;  %12071 = vst [vmem:[#allocation35_spill] sm:$0xff] %v8336_v8  ;;  %v8338_v3 = vpack.c.bf16 %v464_v21, %v462_v27  ;;  %12073 = vst [vmem:[#allocation37_spill] sm:$0xff] %v8347_v1  ;;  %v12074_v54 = vunpack.c.l.bf16 %v7784_v30  ;;  %v470_v7 = vrot.slane %v11820_v40, 1  ;;  %v8370_v27 = vld [vmem:[%s11751_s0 + $0x134] sm:$0x1] }
  0x37   :  { %v466_v28 = vrot.slane %v12069_v48, 1  ;;  %v12075_v48 = vunpack.c.h.bf16 %v7784_v30  ;;  %v12077_v2 = vunpack.c.h.bf16 %v8279_v52  ;;  %v12079_v16 = vunpack.c.l.bf16 %v7797_v34 }
  0x38   :  { %12072 = vst [vmem:[#allocation36_spill] sm:$0xff] %v8338_v3  ;;  %v1422_v15 = vrot.slane %v12074_v54, 2 }
  0x39   :  { %v1423_v33 = vrot.slane %v12075_v48, 2  ;;  %v12076_v48 = vunpack.c.l.bf16 %v7789_v31  ;;  %v471_v21 = vrot.slane %v12077_v2, 1  ;;  %v1427_v20 = vrot.slane %v12079_v16, 2 }
  0x3a   :  { %v12087_v2 = vunpack.c.l.bf16 %v8347_v1  ;;  %v12091_v1 = vunpack.c.l.bf16 %v8370_v27 }
  0x3b   :  { %6422 = vmatmul.mubr.msk.bf16.gmra.mrb[24].mxu1 %vm628_vm2, %v8234_v46  ;;  %v1424_v54 = vsel %vm1406_vm3, %v1422_v15, %v1423_v33  ;;  %v1425_v40 = vrot.slane %v12076_v48, 2  ;;  %v12078_v46 = vunpack.c.l.bf16 %v8303_v41  ;;  %v12080_v15 = vunpack.c.l.bf16 %v8313_v57 }
  0x3c   :  { %6425 = vmatprep.mubr.msk.bf16.mxu1 %vm628_vm2, %v8236_v13  ;;  %6686 = vmatmul.mubr.msk.bf16.gmra.mrb[24].mxu0 %vm628_vm2, %v8236_v13  ;;  %v12081_v48 = vunpack.c.h.bf16 %v8313_v57  ;;  %v12083_v13 = vunpack.c.h.bf16 %v7797_v34  ;;  %v483_v35 = vrot.slane %v12087_v2, 1  ;;  %v488_v2 = vrot.slane %v12091_v1, 1 }
  0x3d   :  { %v473_v55 = vrot.slane %v12078_v46, 1  ;;  %v475_v31 = vrot.slane %v12080_v15, 1  ;;  %v1426_v30 = vsel %vm1406_vm3, %v1423_v33, %v1425_v40  ;;  %6689 = vmatprep.mubr.msk.bf16.mxu0 %vm628_vm2, %v8294_v6  ;;  %v12082_v46 = vunpack.c.l.bf16 %v8329_v37 }
  0x3e   :  { %v476_v5 = vrot.slane %v12081_v48, 1  ;;  %v8398_v16 = vpack.c.bf16 %v1426_v30, %v1424_v54  ;;  %v1428_v41 = vrot.slane %v12083_v13, 2  ;;  %v12084_v15 = vunpack.c.l.bf16 %v7816_v43 }
  0x3f   :  { %v478_v29 = vrot.slane %v12082_v46, 1  ;;  %v12085_v48 = vunpack.c.l.bf16 %v8336_v8  ;;  %v12086_v33 = vunpack.c.h.bf16 %v8336_v8  ;;  %v12088_v37 = vunpack.c.l.bf16 %v8352_v42 }
  0x40   :  { %v1430_v52 = vrot.slane %v12084_v15, 2  ;;  %v12089_v30 = vunpack.c.h.bf16 %v8352_v42  ;;  %v1429_v34 = vsel %vm1406_vm3, %v1427_v20, %v1428_v41  ;;  %v12090_v13 = vunpack.c.l.bf16 %v7821_v44 }
  0x41   :  { %v480_v57 = vrot.slane %v12085_v48, 1  ;;  %v481_v40 = vrot.slane %v12086_v33, 1  ;;  %v485_v46 = vrot.slane %v12088_v37, 1  ;;  %v467_v48 = vsel %vm369_vm1, %v465_v10, %v466_v28 }
  0x42   :  { %v486_v54 = vrot.slane %v12089_v30, 1  ;;  %v1431_v43 = vsel %vm1406_vm3, %v1428_v41, %v1430_v52  ;;  %v1432_v15 = vrot.slane %v12090_v13, 2  ;;  %v469_v33 = vsel %vm369_vm1, %v466_v28, %v468_v53  ;;  %v8431_v52 = vld [vmem:[%s11751_s0 + $0x138] sm:$0xff]  }
  0x43   :  { %v8422_v8 = vpack.c.bf16 %v1431_v43, %v1429_v34  ;;  %6426 = vmatmul.mubr.msk.bf16.gmra.mrb[28].mxu1 %vm628_vm2, %v8294_v6  ;;  %v472_v37 = vsel %vm369_vm1, %v470_v7, %v471_v21  ;;  %v474_v20 = vsel %vm369_vm1, %v471_v21, %v473_v55  ;;  %v12092_v41 = vunpack.c.h.bf16 %v7821_v44  ;;  %v8449_v44 = vld [vmem:[%s11751_s0 + $0x140] sm:$0x1] }
  0x44   :  { %v12093_v28 = vunpack.c.l.bf16 %v7834_v49  ;;  %v12094_v1 = vpack.c.bf16 %v8270_v9, %v8267_v19  ;;  %v477_v7 = vsel %vm369_vm1, %v475_v31, %v476_v5  ;;  %v479_v55 = vsel %vm369_vm1, %v476_v5, %v478_v29  ;;  %6690 = vmatmul.mubr.msk.bf16.gmra.mrb[28].mxu0 %vm628_vm2, %v8296_v59 }
  0x45   :  { %v1433_v10 = vrot.slane %v12092_v41, 2  ;;  %v482_v21 = vsel %vm369_vm1, %v480_v57, %v481_v40  ;;  %v484_v30 = vsel %vm369_vm1, %v481_v40, %v483_v35  ;;  %v487_v34 = vsel %vm369_vm1, %v485_v46, %v486_v54  ;;  %6693 = vmatprep.mubr.msk.bf16.mxu0 %vm628_vm2, %v8320_v47 }
  0x46   :  { %v1435_v53 = vrot.slane %v12093_v28, 2  ;;  %6429 = vmatprep.mubr.msk.bf16.mxu1 %vm628_vm2, %v12094_v1  ;;  %v12095_v9 = vunpack.c.l.bf16 %v7853_v58  ;;  %v489_v29 = vsel %vm369_vm1, %v486_v54, %v488_v2  ;;  %v11840_v35 = vunpack.c.l.bf16 %v8431_v52 }
  0x47   :  { %v1434_v49 = vsel %vm1406_vm3, %v1432_v15, %v1433_v10  ;;  %v11839_v57 = vunpack.c.h.bf16 %v8431_v52  ;;  %v8464_v40 = vpack.c.bf16 %v469_v33, %v467_v48  ;;  %v8466_v46 = vpack.c.bf16 %v474_v20, %v472_v37  ;;  %v8482_v48 = vld [vmem:[%s11751_s0 + $0x144] sm:$0xff]  }
  0x48   :  { %v1436_v19 = vsel %vm1406_vm3, %v1433_v10, %v1435_v53  ;;  %v1437_v31 = vrot.slane %v12095_v9, 2  ;;  %v12099_v43 = vunpack.c.h.bf16 %v7853_v58  ;;  %v12100_v15 = vunpack.c.l.bf16 %v7866_v63  ;;  %v8487_v58 = vld [vmem:[%s11751_s0 + $0x14c] sm:$0x1]  ;;  %v8500_v53 = vld [vmem:[%s11751_s0 + $0x150] sm:$0xff]  }
  0x49   :  { %v8460_v5 = vpack.c.bf16 %v1436_v19, %v1434_v49  ;;  %12097 = vst [vmem:[#allocation39_spill] sm:$0xff] %v8464_v40  ;;  %12098 = vst [vmem:[#allocation40_spill] sm:$0xff] %v8466_v46  ;;  %v8472_v54 = vpack.c.bf16 %v479_v55, %v477_v7  ;;  %v8476_v2 = vsel %vm725_vm0, %v7916_v45, 0  ;;  %v11838_v10 = vunpack.c.l.bf16 %v8449_v44  ;;  %v8518_v49 = vld [vmem:[%s11751_s0 + $0x15c] sm:$0xff]  }
  0x4a   :  { %v1438_v13 = vrot.slane %v12099_v43, 2  ;;  %v1440_v41 = vrot.slane %v12100_v15, 2  ;;  %v12102_v63 = vunpack.c.l.bf16 %v7871_v0  ;;  %v8491_v37 = vpack.c.bf16 %v484_v30, %v482_v21  ;;  %12105 = vst [vmem:[#allocation44_spill] sm:$0xff] %v8500_v53  ;;  %v8511_v21 = vld [vmem:[%s11751_s0 + $0x158] sm:$0x1] }
  0x4b   :  { %12096 = vst [vmem:[#allocation38_spill] sm:$0xff] %v8460_v5  ;;  %12101 = vst [vmem:[#allocation41_spill] sm:$0xff] %v8472_v54  ;;  %v8493_v20 = vpack.c.bf16 %v489_v29, %v487_v34  ;;  %v490_v1 = vrot.slane %v11840_v35, 1  ;;  %v491_v7 = vrot.slane %v11839_v57, 1  ;;  %v12107_v30 = vunpack.c.h.bf16 %v7871_v0  ;;  %6430 = vmatmul.mubr.msk.bf16.gmra.mrb[32].mxu1 %vm628_vm2, %v8320_v47 }
  0x4c   :  { %v1442_v33 = vrot.slane %v12102_v63, 2  ;;  %12103 = vst [vmem:[#allocation42_spill] sm:$0xff] %v8491_v37  ;;  %v1439_v45 = vsel %vm1406_vm3, %v1437_v31, %v1438_v13  ;;  %v1441_v28 = vsel %vm1406_vm3, %v1438_v13, %v1440_v41  ;;  %v11844_v19 = vunpack.c.l.bf16 %v8482_v48  ;;  %6433 = vmatprep.mubr.msk.bf16.mxu1 %vm628_vm2, %v8338_v3  ;;  %6694 = vmatmul.mubr.msk.bf16.gmra.mrb[32].mxu0 %vm628_vm2, %v8338_v3 }
  0x4d   :  { %12104 = vst [vmem:[#allocation43_spill] sm:$0xff] %v8493_v20  ;;  %v8506_v55 = vpack.c.bf16 %v1441_v28, %v1439_v45  ;;  %v1443_v34 = vrot.slane %v12107_v30, 2  ;;  %v11841_v9 = vunpack.c.h.bf16 %v8482_v48  ;;  %v11842_v31 = vunpack.c.l.bf16 %v8487_v58  ;;  %6697 = vmatprep.mubr.msk.bf16.mxu0 %vm628_vm2, %v8464_v40 }
  0x4e   :  { %v12108_v29 = vunpack.c.l.bf16 %v7889_v22  ;;  %v493_v0 = vrot.slane %v11838_v10, 1  ;;  %v11843_v13 = vunpack.c.l.bf16 %v8500_v53  ;;  %v12109_v47 = vunpack.c.l.bf16 %v7900_v32 }
  0x4f   :  { %12106 = vst [vmem:[#allocation45_spill] sm:$0xff] %v8506_v55  ;;  %v1444_v15 = vsel %vm1406_vm3, %v1442_v33, %v1443_v34  ;;  %v11853_v63 = vunpack.c.h.bf16 %v8500_v53  ;;  %v11850_v45 = vunpack.c.l.bf16 %v8511_v21  ;;  %v11851_v28 = vunpack.c.l.bf16 %v8518_v49  ;;  %v8546_v33 = vld [vmem:[%s11751_s0 + $0x164] sm:$0x1] }
  0x50   :  { %v1445_v43 = vrot.slane %v12108_v29, 2  ;;  %v1447_v41 = vrot.slane %v12109_v47, 2  ;;  %v11852_v29 = vunpack.c.h.bf16 %v8518_v49  ;;  %v12111_v47 = vunpack.c.h.bf16 %v7900_v32 }
  0x51   :  { %v12112_v57 = vunpack.c.l.bf16 %v7911_v39  ;;  %v498_v35 = vrot.slane %v11842_v31, 1  ;;  %v500_v32 = vrot.slane %v11843_v13, 1  ;;  %v501_v13 = vrot.slane %v11853_v63, 1 }
  0x52   :  { %v1446_v22 = vsel %vm1406_vm3, %v1443_v34, %v1445_v43  ;;  %v1448_v10 = vrot.slane %v12111_v47, 2  ;;  %v492_v43 = vsel %vm369_vm1, %v490_v1, %v491_v7  ;;  %v8569_v1 = vld [vmem:[%s11751_s0 + $0x168] sm:$0xff]   ;;  %v8574_v47 = vld [vmem:[%s11751_s0 + $0x170] sm:$0x1]  ;;  %v506_v3 = vrot.slane %v11852_v29, 1 }
  0x53   :  { %v8541_v30 = vpack.c.bf16 %v1446_v22, %v1444_v15  ;;  %v1450_v34 = vrot.slane %v12112_v57, 2  ;;  %v495_v15 = vrot.slane %v11844_v19, 1  ;;  %v496_v22 = vrot.slane %v11841_v9, 1  ;;  %6434 = vmatmul.mubr.msk.bf16.gmra.mrb[36].mxu1 %vm628_vm2, %v8464_v40 }
  0x54   :  { %v1449_v39 = vsel %vm1406_vm3, %v1447_v41, %v1448_v10  ;;  %v12113_v9 = vunpack.c.l.bf16 %v7940_v4  ;;  %v503_v41 = vrot.slane %v11850_v45, 1  ;;  %v505_v19 = vrot.slane %v11851_v28, 1  ;;  %6437 = vmatprep.mubr.msk.bf16.mxu1 %vm628_vm2, %v8466_v46  ;;  %6698 = vmatmul.mubr.msk.bf16.gmra.mrb[36].mxu0 %vm628_vm2, %v8466_v46 }
  0x55   :  { %12110 = vst [vmem:[#allocation46_spill] sm:$0xff] %v8541_v30  ;;  %v1451_v57 = vsel %vm1406_vm3, %v1448_v10, %v1450_v34  ;;  %v11854_v10 = vunpack.c.l.bf16 %v8546_v33  ;;  %v12114_v59 = vunpack.c.h.bf16 %v7940_v4  ;;  %v494_v45 = vsel %vm369_vm1, %v491_v7, %v493_v0  ;;  %6727 = vmatprep.mubr.msk.bf16.mxu0 %vm628_vm2, %v8290_v18 }
  0x56   :  { %v1452_v31 = vrot.slane %v12113_v9, 2  ;;  %v8583_v34 = vpack.c.bf16 %v1451_v57, %v1449_v39  ;;  %v12115_v9 = vunpack.c.l.bf16 %v7949_v17  ;;  %v11856_v39 = vunpack.c.l.bf16 %v8569_v1 }
  0x57   :  { %v1453_v6 = vrot.slane %v12114_v59, 2  ;;  %v11858_v57 = vunpack.c.h.bf16 %v8569_v1  ;;  %v497_v4 = vsel %vm369_vm1, %v495_v15, %v496_v22  ;;  %v499_v7 = vsel %vm369_vm1, %v496_v22, %v498_v35  ;;  %v8615_v15 = vld [vmem:[%s11751_s0 + $0x174] sm:$0xff]   ;;  %v8624_v35 = vld [vmem:[%s11751_s0 + $0x17c] sm:$0x1] }
  0x58   :  { %v1455_v53 = vrot.slane %v12115_v9, 2  ;;  %v12116_v9 = vunpack.c.l.bf16 %v7972_v60  ;;  %v502_v0 = vsel %vm369_vm1, %v500_v32, %v501_v13  ;;  %v508_v63 = vrot.slane %v11854_v10, 1 }
  0x59   :  { %v1454_v59 = vsel %vm1406_vm3, %v1452_v31, %v1453_v6  ;;  %v12117_v31 = vunpack.c.h.bf16 %v7972_v60  ;;  %v12118_v32 = vunpack.c.l.bf16 %v7979_v56  ;;  %v8650_v18 = vpack.c.bf16 %v494_v45, %v492_v43 }
  0x5a   :  { %v1456_v17 = vsel %vm1406_vm3, %v1453_v6, %v1455_v53  ;;  %v1457_v29 = vrot.slane %v12116_v9, 2  ;;  %v504_v6 = vsel %vm369_vm1, %v501_v13, %v503_v41  ;;  %v507_v53 = vsel %vm369_vm1, %v505_v19, %v506_v3 }
  0x5b   :  { %v8610_v28 = vpack.c.bf16 %v1456_v17, %v1454_v59  ;;  %v1458_v22 = vrot.slane %v12117_v31, 2  ;;  %v1460_v59 = vrot.slane %v12118_v32, 2  ;;  %v510_v17 = vrot.slane %v11856_v39, 1  ;;  %12123 = vst [vmem:[#allocation48_spill] sm:$0xff] %v8650_v18  ;;  %6438 = vmatmul.mubr.msk.bf16.gmra.mrb[40].mxu1 %vm628_vm2, %v8472_v54 }
  0x5c   :  { %v511_v19 = vrot.slane %v11858_v57, 1  ;;  %v12119_v13 = vunpack.c.l.bf16 %v8574_v47  ;;  %v12120_v9 = vunpack.c.l.bf16 %v7984_v14  ;;  %v509_v46 = vsel %vm369_vm1, %v506_v3, %v508_v63  ;;  %6441 = vmatprep.mubr.msk.bf16.mxu1 %vm628_vm2, %v8491_v37  ;;  %6728 = vmatmul.mubr.msk.bf16.vlgmr.msra.gmra.mrb[0].mxu0 %vm628_vm2, %v8331_v50 }
  0x5d   :  { %v1459_v31 = vsel %vm1406_vm3, %v1457_v29, %v1458_v22  ;;  %v1461_v32 = vsel %vm1406_vm3, %v1458_v22, %v1460_v59  ;;  %v11860_v39 = vunpack.c.l.bf16 %v8624_v35  ;;  %v12122_v57 = vunpack.c.h.bf16 %v7984_v14  ;;  %v8665_v14 = vld [vmem:[%s11751_s0 + $0x180] sm:$0xff]   ;;  %6792 = vmatpush3.bf16.msra.mxu0 %v8476_v2  ;;  %6731 = vmatprep.mubr.msk.bf16.mxu0 %vm628_vm2, %v8398_v16 }
  0x5e   :  { %v513_v41 = vrot.slane %v12119_v13, 1  ;;  %v1462_v10 = vrot.slane %v12120_v9, 2  ;;  %v8646_v40 = vpack.c.bf16 %v1461_v32, %v1459_v31  ;;  %v8652_v9 = vpack.c.bf16 %v499_v7, %v497_v4 }
  0x5f   :  { %v1463_v13 = vrot.slane %v12122_v57, 2  ;;  %v8654_v60 = vpack.c.bf16 %v504_v6, %v502_v0  ;;  %v12126_v56 = vunpack.c.l.bf16 %v7995_v23  ;;  %v512_v3 = vsel %vm369_vm1, %v510_v17, %v511_v19 }
  0x60   :  { %12121 = vst [vmem:[#allocation47_spill] sm:$0xff] %v8646_v40  ;;  %12124 = vst [vmem:[#allocation49_spill] sm:$0xff] %v8652_v9  ;;  %v514_v63 = vsel %vm369_vm1, %v511_v19, %v513_v41  ;;  %v12127_v43 = vunpack.c.l.bf16 %v8014_v51  ;;  %v8672_v23 = vpack.c.bf16 %v509_v46, %v507_v53  ;;  %v12129_v4 = vunpack.c.l.bf16 %v8615_v15  ;;  %v8690_v53 = vld [vmem:[%s11750_s1 + $0xe] sm:$0x3] }
  0x61   :  { %12125 = vst [vmem:[#allocation50_spill] sm:$0xff] %v8654_v60  ;;  %v1465_v29 = vrot.slane %v12126_v56, 2  ;;  %v1464_v45 = vsel %vm1406_vm3, %v1462_v10, %v1463_v13  ;;  %v12130_v0 = vunpack.c.h.bf16 %v8615_v15  ;;  %v518_v59 = vrot.slane %v11860_v39, 1  ;;  %7573 = vmatprep.subr.msk.bf16.mxu0 %vm725_vm0, %v8690_v53 }
  0x62   :  { %v1467_v57 = vrot.slane %v12127_v43, 2  ;;  %12128 = vst [vmem:[#allocation51_spill] sm:$0xff] %v8672_v23  ;;  %v515_v7 = vrot.slane %v12129_v4, 1  ;;  %v12132_v17 = vunpack.c.h.bf16 %v8014_v51  ;;  %v12133_v41 = vunpack.c.l.bf16 %v8023_v26 }
  0x63   :  { %v516_v6 = vrot.slane %v12130_v0, 1  ;;  %v1466_v22 = vsel %vm1406_vm3, %v1463_v13, %v1465_v29  ;;  %v8694_v56 = vpack.c.bf16 %v514_v63, %v512_v3  ;;  %v11862_v31 = vunpack.c.l.bf16 %v8665_v14  ;;  %6442 = vmatmul.mubr.msk.bf16.gmra.mrb[44].mxu1 %vm628_vm2, %v8493_v20 }
  0x64   :  { %v8681_v10 = vpack.c.bf16 %v1466_v22, %v1464_v45  ;;  %v1468_v19 = vrot.slane %v12132_v17, 2  ;;  %v1470_v46 = vrot.slane %v12133_v41, 2  ;;  %v12135_v32 = vunpack.c.l.bf16 %v8028_v24  ;;  %6445 = vmatprep.mubr.msk.bf16.mxu1 %vm628_vm2, %v8650_v18  ;;  %6732 = vmatmul.mubr.msk.bf16.gmra.mrb[4].mxu0 %vm628_vm2, %v8422_v8 }
  0x65   :  { %12134 = vst [vmem:[#allocation53_spill] sm:$0xff] %v8694_v56  ;;  %v12136_v51 = vunpack.c.h.bf16 %v8028_v24  ;;  %v11861_v26 = vunpack.c.h.bf16 %v8665_v14  ;;  %v12137_v63 = vunpack.c.l.bf16 %v8041_v62  ;;  %v517_v4 = vsel %vm369_vm1, %v515_v7, %v516_v6  ;;  %v8713_v24 = vld [vmem:[%s11751_s0 + $0x188] sm:$0x1]  ;;  %6735 = vmatprep.mubr.msk.bf16.mxu0 %vm628_vm2, %v8460_v5 }
  0x66   :  { %12131 = vst [vmem:[#allocation52_spill] sm:$0xff] %v8681_v10  ;;  %v1472_v13 = vrot.slane %v12135_v32, 2  ;;  %v1469_v45 = vsel %vm1406_vm3, %v1467_v57, %v1468_v19  ;;  %v1471_v3 = vsel %vm1406_vm3, %v1468_v19, %v1470_v46  ;;  %v12139_v22 = vunpack.c.l.bf16 %v8046_v61 }
  0x67   :  { %v1473_v29 = vrot.slane %v12136_v51, 2  ;;  %v1475_v43 = vrot.slane %v12137_v63, 2  ;;  %v8715_v2 = vpack.c.bf16 %v1471_v3, %v1469_v45  ;;  %v519_v62 = vsel %vm369_vm1, %v516_v6, %v518_v59  ;;  %v12144_v63 = vld [vmem:[#allocation13_spill] sm:$0xff]  ;;  %v12146_v59 = vld [vmem:[#allocation14_spill] sm:$0xff] }
  0x68   :  { %v1477_v17 = vrot.slane %v12139_v22, 2  ;;  %v12140_v7 = vunpack.c.h.bf16 %v8046_v61  ;;  %v12141_v41 = vunpack.c.l.bf16 %v8063_v36  ;;  %v12143_v45 = vunpack.c.h.bf16 %v8092_v12 }
  0x69   :  { %12138 = vst [vmem:[#allocation54_spill] sm:$0xff] %v8715_v2  ;;  %v1474_v0 = vsel %vm1406_vm3, %v1472_v13, %v1473_v29  ;;  %v1476_v57 = vsel %vm1406_vm3, %v1473_v29, %v1475_v43  ;;  %v12142_v13 = vunpack.c.l.bf16 %v8092_v12  ;;  %v12145_v22 = vunpack.c.l.bf16 %v12144_v63 }
  0x6a   :  { %v1478_v19 = vrot.slane %v12140_v7, 2  ;;  %v1480_v46 = vrot.slane %v12141_v41, 2  ;;  %v8728_v32 = vpack.c.bf16 %v1476_v57, %v1474_v0  ;;  %v1483_v3 = vrot.slane %v12143_v45, 2 }
  0x6b   :  { %v1482_v51 = vrot.slane %v12142_v13, 2  ;;  %v1485_v39 = vrot.slane %v12145_v22, 2  ;;  %v11865_v61 = vunpack.c.l.bf16 %v8713_v24  ;;  %v12147_v29 = vunpack.c.l.bf16 %v12146_v59  ;;  %6446 = vmatmul.mubr.msk.bf16.gmra.mrb[48].mxu1 %vm628_vm2, %v8652_v9 }
  0x6c   :  { %v1479_v6 = vsel %vm1406_vm3, %v1477_v17, %v1478_v19  ;;  %v1481_v36 = vsel %vm1406_vm3, %v1478_v19, %v1480_v46  ;;  %v12148_v7 = vunpack.c.h.bf16 %v12146_v59  ;;  %v8751_v13 = vpack.c.bf16 %v519_v62, %v517_v4  ;;  %v12150_v19 = vld [vmem:[#allocation17_spill] sm:$0xff]  ;;  %6449 = vmatprep.mubr.msk.bf16.mxu1 %vm628_vm2, %v8654_v60  ;;  %6736 = vmatmul.mubr.msk.bf16.gmra.mrb[8].mxu0 %vm628_vm2, %v8506_v55 }
  0x6d   :  { %v2869_v43 = vrot.slane %v12147_v29, 2  ;;  %v8745_v12 = vpack.c.bf16 %v1481_v36, %v1479_v6  ;;  %v1484_v0 = vsel %vm1406_vm3, %v1482_v51, %v1483_v3  ;;  %v1486_v57 = vsel %vm1406_vm3, %v1483_v3, %v1485_v39  ;;  %6739 = vmatprep.mubr.msk.bf16.mxu0 %vm628_vm2, %v8541_v30 }
  0x6e   :  { %v2870_v41 = vrot.slane %v12148_v7, 2  ;;  %12149 = vst [vmem:[#allocation13_spill] sm:$0xff] %v8751_v13  ;;  %v8753_v17 = vpack.c.bf16 %v1486_v57, %v1484_v0  ;;  %v12151_v46 = vunpack.c.l.bf16 %v12150_v19  ;;  %v12152_v63 = vunpack.c.l.bf16 %v8176_v25  ;;  %v12157_v7 = vld [vmem:[#allocation22_spill] sm:$0xff] }
  0x6f   :  { %v520_v51 = vrot.slane %v11862_v31, 1  ;;  %v12153_v3 = vunpack.c.h.bf16 %v8176_v25  ;;  %v12154_v62 = vunpack.c.l.bf16 %v8181_v11  ;;  %v12155_v59 = vunpack.c.l.bf16 %v8192_v38  ;;  %v8782_v11 = vld [vmem:[%s11751_s0 + $0x18c] sm:$0xff]  }
  0x70   :  { %v2872_v45 = vrot.slane %v12151_v46, 2  ;;  %v1492_v22 = vrot.slane %v12152_v63, 2  ;;  %v2871_v39 = vsel %vm1406_vm3, %v2869_v43, %v2870_v41  ;;  %v12156_v0 = vunpack.c.h.bf16 %v8192_v38 }
  0x71   :  { %v1493_v4 = vrot.slane %v12153_v3, 2  ;;  %v1495_v6 = vrot.slane %v12154_v62, 2  ;;  %v1497_v29 = vrot.slane %v12155_v59, 2  ;;  %v12158_v19 = vunpack.c.l.bf16 %v12157_v7 }
  0x72   :  { %v2873_v36 = vsel %vm1406_vm3, %v2870_v41, %v2872_v45  ;;  %v1498_v57 = vrot.slane %v12156_v0, 2  ;;  %v521_v46 = vrot.slane %v11861_v26, 1  ;;  %v12160_v0 = vld [vmem:[#allocation26_spill] sm:$0xff]  ;;  %v523_v26 = vrot.slane %v11865_v61, 1  ;;  %v12170_v61 = vld [vmem:[#allocation33_spill] sm:$0xff] }
  0x73   :  { %v1500_v43 = vrot.slane %v12158_v19, 2  ;;  %v8784_v63 = vpack.c.bf16 %v2873_v36, %v2871_v39  ;;  %v1494_v41 = vsel %vm1406_vm3, %v1492_v22, %v1493_v4  ;;  %v1496_v45 = vsel %vm1406_vm3, %v1493_v4, %v1495_v6  ;;  %v12163_v22 = vld [vmem:[#allocation27_spill] sm:$0xff]  ;;  %v8807_v6 = vld [vmem:[%s11751_s0 + $0x194] sm:$0x1]  ;;  %6450 = vmatmul.mubr.msk.bf16.gmra.mrb[52].mxu1 %vm628_vm2, %v8672_v23 }
  0x74   :  { %v8788_v3 = vpack.c.bf16 %v1496_v45, %v1494_v41  ;;  %v1499_v62 = vsel %vm1406_vm3, %v1497_v29, %v1498_v57  ;;  %v12161_v7 = vunpack.c.l.bf16 %v12160_v0  ;;  %v12162_v39 = vunpack.c.h.bf16 %v12160_v0  ;;  %6453 = vmatprep.mubr.msk.bf16.mxu1 %vm628_vm2, %v8694_v56  ;;  %6740 = vmatmul.mubr.msk.bf16.gmra.mrb[12].mxu0 %vm628_vm2, %v8583_v34 }
  0x75   :  { %12159 = vst [vmem:[#allocation14_spill] sm:$0xff] %v8784_v63  ;;  %v1501_v59 = vsel %vm1406_vm3, %v1498_v57, %v1500_v43  ;;  %v12164_v18 = vunpack.c.l.bf16 %v12163_v22  ;;  %v12165_v57 = vld [vmem:[#allocation28_spill] sm:$0xff]  ;;  %v12171_v9 = vunpack.c.l.bf16 %v12170_v61  ;;  %v12172_v29 = vunpack.c.h.bf16 %v12170_v61  ;;  %6743 = vmatprep.mubr.msk.bf16.mxu0 %vm628_vm2, %v8610_v28 }
  0x76   :  { %v1502_v19 = vrot.slane %v12161_v7, 2  ;;  %v8796_v31 = vpack.c.bf16 %v1501_v59, %v1499_v62  ;;  %v1503_v36 = vrot.slane %v12162_v39, 2  ;;  %v12166_v43 = vunpack.c.l.bf16 %v12165_v57  ;;  %v12168_v59 = vld [vmem:[#allocation32_spill] sm:$0xff] }
  0x77   :  { %v1505_v4 = vrot.slane %v12164_v18, 2  ;;  %v12167_v45 = vunpack.c.h.bf16 %v12165_v57  ;;  %v12169_v7 = vunpack.c.l.bf16 %v12168_v59  ;;  %v1512_v20 = vrot.slane %v12171_v9, 2 }
  0x78   :  { %v1507_v41 = vrot.slane %v12166_v43, 2  ;;  %v1504_v18 = vsel %vm1406_vm3, %v1502_v19, %v1503_v36  ;;  %v1513_v37 = vrot.slane %v12172_v29, 2  ;;  %v12181_v60 = vunpack.c.h.bf16 %v8352_v42 }
  0x79   :  { %v1508_v62 = vrot.slane %v12167_v45, 2  ;;  %v1510_v39 = vrot.slane %v12169_v7, 2  ;;  %v1506_v22 = vsel %vm1406_vm3, %v1503_v36, %v1505_v4  ;;  %v12173_v7 = vld [vmem:[#allocation34_spill] sm:$0xff]  ;;  %v522_v36 = vsel %vm369_vm1, %v520_v51, %v521_v46 }
  0x7a   :  { %v8824_v43 = vpack.c.bf16 %v1506_v22, %v1504_v18  ;;  %v12174_v54 = vunpack.c.l.bf16 %v12173_v7  ;;  %v1514_v4 = vsel %vm1406_vm3, %v1512_v20, %v1513_v37  ;;  %v12178_v22 = vld [vmem:[#allocation37_spill] sm:$0xff]  ;;  %v12180_v20 = vunpack.c.l.bf16 %v8352_v42 }
  0x7b   :  { %v1509_v45 = vsel %vm1406_vm3, %v1507_v41, %v1508_v62  ;;  %v1511_v59 = vsel %vm1406_vm3, %v1508_v62, %v1510_v39  ;;  %v12175_v41 = vld [vmem:[#allocation35_spill] sm:$0xff]  ;;  %v12179_v7 = vunpack.c.l.bf16 %v12178_v22  ;;  %v1523_v30 = vrot.slane %v12181_v60, 2  ;;  %6454 = vmatmul.mubr.msk.bf16.gmra.mrb[56].mxu1 %vm628_vm2, %v8751_v13 }
  0x7c   :  { %v1515_v5 = vrot.slane %v12174_v54, 2  ;;  %v8834_v9 = vpack.c.bf16 %v1511_v59, %v1509_v45  ;;  %v12176_v62 = vunpack.c.l.bf16 %v12175_v41  ;;  %v12177_v54 = vunpack.c.h.bf16 %v12175_v41  ;;  %6744 = vmatmul.mubr.msk.bf16.gmra.mrb[16].mxu0 %vm628_vm2, %v8646_v40 }
  0x7d   :  { %v1520_v19 = vrot.slane %v12179_v7, 2  ;;  %v1522_v59 = vrot.slane %v12180_v20, 2  ;;  %v12184_v20 = vunpack.c.h.bf16 %v8431_v52  ;;  %v12185_v60 = vunpack.c.l.bf16 %v8782_v11  ;;  %6747 = vmatprep.mubr.msk.bf16.mxu0 %vm628_vm2, %v8681_v10 }
  0x7e   :  { %v1516_v29 = vsel %vm1406_vm3, %v1513_v37, %v1515_v5  ;;  %v1517_v39 = vrot.slane %v12176_v62, 2  ;;  %v1518_v18 = vrot.slane %v12177_v54, 2  ;;  %v524_v5 = vsel %vm369_vm1, %v521_v46, %v523_v26 }
  0x7f   :  { %v8847_v45 = vpack.c.bf16 %v1516_v29, %v1514_v4  ;;  %v12182_v54 = vunpack.c.l.bf16 %v8370_v27  ;;  %v1524_v51 = vsel %vm1406_vm3, %v1522_v59, %v1523_v30  ;;  %v12183_v4 = vunpack.c.l.bf16 %v8431_v52 }
  0x80   :  { %v1519_v37 = vsel %vm1406_vm3, %v1517_v39, %v1518_v18  ;;  %v1521_v62 = vsel %vm1406_vm3, %v1518_v18, %v1520_v19  ;;  %v1528_v55 = vrot.slane %v12184_v20, 2  ;;  %v525_v26 = vrot.slane %v12185_v60, 1  ;;  %v12191_v60 = vld [vmem:[#allocation44_spill] sm:$0xff] }
  0x81   :  { %v1525_v22 = vrot.slane %v12182_v54, 2  ;;  %v8858_v7 = vpack.c.bf16 %v1521_v62, %v1519_v37  ;;  %v1527_v29 = vrot.slane %v12183_v4, 2  ;;  %v12186_v27 = vunpack.c.l.bf16 %v8449_v44 }
  0x82   :  { %v12187_v39 = vunpack.c.l.bf16 %v8482_v48  ;;  %v12188_v62 = vunpack.c.h.bf16 %v8482_v48  ;;  %v12189_v4 = vunpack.c.l.bf16 %v8487_v58  ;;  %v12193_v56 = vunpack.c.h.bf16 %v12191_v60 }
  0x83   :  { %v1526_v46 = vsel %vm1406_vm3, %v1523_v30, %v1525_v22  ;;  %v1530_v19 = vrot.slane %v12186_v27, 2  ;;  %v1529_v37 = vsel %vm1406_vm3, %v1527_v29, %v1528_v55  ;;  %v12190_v30 = vunpack.c.h.bf16 %v8782_v11 }
  0x84   :  { %v1532_v18 = vrot.slane %v12187_v39, 2  ;;  %v8876_v59 = vpack.c.bf16 %v1526_v46, %v1524_v51  ;;  %v1533_v54 = vrot.slane %v12188_v62, 2  ;;  %v1535_v20 = vrot.slane %v12189_v4, 2  ;;  %6748 = vmatmul.mubr.msk.bf16.gmra.mrb[20].mxu0 %vm628_vm2, %v8715_v2 }
  0x85   :  { %v526_v44 = vrot.slane %v12190_v30, 1  ;;  %v1531_v22 = vsel %vm1406_vm3, %v1528_v55, %v1530_v19  ;;  %v12192_v27 = vunpack.c.l.bf16 %v12191_v60  ;;  %v1538_v51 = vrot.slane %v12193_v56, 2  ;;  %6751 = vmatprep.mubr.msk.bf16.mxu0 %vm628_vm2, %v8728_v32 }
  0x86   :  { %v8892_v29 = vpack.c.bf16 %v1531_v22, %v1529_v37  ;;  %v1534_v46 = vsel %vm1406_vm3, %v1532_v18, %v1533_v54  ;;  %v1536_v58 = vsel %vm1406_vm3, %v1533_v54, %v1535_v20  ;;  %v12194_v62 = vunpack.c.l.bf16 %v8511_v21 }
  0x87   :  { %v1537_v39 = vrot.slane %v12192_v27, 2  ;;  %v8900_v55 = vpack.c.bf16 %v524_v5, %v522_v36  ;;  %v8902_v19 = vpack.c.bf16 %v1536_v58, %v1534_v46  ;;  %v12197_v30 = vunpack.c.l.bf16 %v8518_v49 }
  0x88   :  { %v1540_v4 = vrot.slane %v12194_v62, 2  ;;  %v12198_v22 = vunpack.c.l.bf16 %v8807_v6  ;;  %v12199_v21 = vunpack.c.h.bf16 %v8518_v49  ;;  %v12200_v27 = vunpack.c.l.bf16 %v8546_v33 }
  0x89   :  { %12195 = vst [vmem:[#allocation17_spill] sm:$0xff] %v8900_v55  ;;  %12196 = vst [vmem:[#allocation22_spill] sm:$0xff] %v8902_v19  ;;  %v1539_v56 = vsel %vm1406_vm3, %v1537_v39, %v1538_v51  ;;  %v1542_v37 = vrot.slane %v12197_v30, 2  ;;  %v12202_v5 = vunpack.c.l.bf16 %v8569_v1  ;;  %v12203_v39 = vunpack.c.h.bf16 %v8569_v1  ;;  %6457 = vmatprep.mubr.msk.bf16.mxu1 %vm628_vm2, %v8900_v55  ;;  %v9148_v55 = vld [vmem:[%s11751_s0 + $0x1a0] sm:$0x1] }
  0x8a   :  { %v528_v18 = vrot.slane %v12198_v22, 1  ;;  %v1541_v54 = vsel %vm1406_vm3, %v1538_v51, %v1540_v4  ;;  %v1543_v20 = vrot.slane %v12199_v21, 2  ;;  %v1545_v62 = vrot.slane %v12200_v27, 2 }
  0x8b   :  { %v8914_v36 = vpack.c.bf16 %v1541_v54, %v1539_v56  ;;  %v1547_v46 = vrot.slane %v12202_v5, 2  ;;  %v1548_v58 = vrot.slane %v12203_v39, 2  ;;  %v12204_v30 = vunpack.c.l.bf16 %v8574_v47 }
  0x8c   :  { %v527_v22 = vsel %vm369_vm1, %v525_v26, %v526_v44  ;;  %v1544_v51 = vsel %vm1406_vm3, %v1542_v37, %v1543_v20  ;;  %v1546_v4 = vsel %vm1406_vm3, %v1543_v20, %v1545_v62  ;;  %v12205_v33 = vunpack.c.l.bf16 %v8615_v15  ;;  %6752 = vmatmul.mubr.msk.bf16.gmra.mrb[24].mxu0 %vm628_vm2, %v8745_v12 }
  0x8d   :  { %12201 = vst [vmem:[#allocation26_spill] sm:$0xff] %v8914_v36  ;;  %v1550_v23 = vrot.slane %v12204_v30, 2  ;;  %v8929_v56 = vpack.c.bf16 %v1546_v4, %v1544_v51  ;;  %v1549_v54 = vsel %vm1406_vm3, %v1547_v46, %v1548_v58  ;;  %v12207_v47 = vunpack.c.h.bf16 %v8615_v15  ;;  %6755 = vmatprep.mubr.msk.bf16.mxu0 %vm628_vm2, %v8753_v17 }
  0x8e   :  { %v1552_v21 = vrot.slane %v12205_v33, 2  ;;  %v529_v26 = vsel %vm369_vm1, %v526_v44, %v528_v18  ;;  %v12209_v20 = vunpack.c.l.bf16 %v8624_v35  ;;  %v12210_v39 = vunpack.c.l.bf16 %v8665_v14 }
  0x8f   :  { %12206 = vst [vmem:[#allocation27_spill] sm:$0xff] %v8929_v56  ;;  %v1551_v27 = vsel %vm1406_vm3, %v1548_v58, %v1550_v23  ;;  %v1553_v5 = vrot.slane %v12207_v47, 2  ;;  %v12211_v23 = vunpack.c.h.bf16 %v8665_v14  ;;  %v12212_v51 = vunpack.c.l.bf16 %v8713_v24 }
  0x90   :  { %v8938_v37 = vpack.c.bf16 %v1551_v27, %v1549_v54  ;;  %v1555_v62 = vrot.slane %v12209_v20, 2  ;;  %v1557_v30 = vrot.slane %v12210_v39, 2  ;;  %v12213_v18 = vunpack.c.l.bf16 %v8782_v11 }
  0x91   :  { %v1554_v46 = vsel %vm1406_vm3, %v1552_v21, %v1553_v5  ;;  %v1558_v58 = vrot.slane %v12211_v23, 2  ;;  %v1560_v4 = vrot.slane %v12212_v51, 2  ;;  %v12214_v33 = vunpack.c.h.bf16 %v8782_v11 }
  0x92   :  { %12208 = vst [vmem:[#allocation28_spill] sm:$0xff] %v8938_v37  ;;  %v1556_v44 = vsel %vm1406_vm3, %v1553_v5, %v1555_v62  ;;  %v1562_v35 = vrot.slane %v12213_v18, 2  ;;  %v12215_v27 = vunpack.c.l.bf16 %v8807_v6  ;;  %v8960_v47 = vpack.c.bf16 %v529_v26, %v527_v22  ;;  %v7653_v62 = vld [vmem:[%s11751_s0] sm:$0xff]   ;;  %v12223_v18 = vld [vmem:[#allocation4_spill] sm:$0xff] }
  0x93   :  { %v1563_v54 = vrot.slane %v12214_v33, 2  ;;  %v8962_v24 = vpack.c.bf16 %v1556_v44, %v1554_v46  ;;  %v1559_v20 = vsel %vm1406_vm3, %v1557_v30, %v1558_v58  ;;  %v1561_v5 = vsel %vm1406_vm3, %v1558_v58, %v1560_v4  ;;  %v12220_v22 = vld [vmem:[#allocation2_spill] sm:$0xff] }
  0x94   :  { %v1565_v21 = vrot.slane %v12215_v27, 2  ;;  %12216 = vst [vmem:[#allocation32_spill] sm:$0xff] %v8960_v47  ;;  %v8969_v39 = vpack.c.bf16 %v1561_v5, %v1559_v20  ;;  %v12221_v26 = vunpack.c.l.bf16 %v12220_v22  ;;  %v12222_v44 = vunpack.c.h.bf16 %v12220_v22  ;;  %6458 = vmatmul.mubr.msk.bf16.gmra.mrb[60].mxu1 %vm628_vm2, %v8960_v47  ;;  %v12226_v20 = vld [vmem:[#allocation15_spill] sm:$0xff]  ;;  %6756 = vmatmul.mubr.msk.bf16.gmra.mrb[28].mxu0 %vm628_vm2, %v8784_v63  ;;  %v9134_v27 = vld [vmem:[%s11751_s0 + $0xb4] sm:$0xff]   ;;  %v12227_v63 = vld [vmem:[#allocation18_spill] sm:$0xff] }
  0x95   :  { %12217 = vst [vmem:[#allocation33_spill] sm:$0xff] %v8962_v24  ;;  %v1564_v6 = vsel %vm1406_vm3, %v1562_v35, %v1563_v54  ;;  %v12224_v58 = vunpack.c.l.bf16 %v12223_v18  ;;  %6463 = vmatprep.mubr.msk.bf16.mxu1 %vm628_vm2, %v7653_v62  ;;  %v1762_v5 = vsel %vm725_vm0, %v12226_v20, 0  ;;  %v9019_v62 = vld [vmem:[%s11751_s0 + $0x24] sm:$0xff]   ;;  %6759 = vmatprep.mubr.msk.bf16.mxu0 %vm628_vm2, %v8788_v3  ;;  %v9085_v18 = vld [vmem:[%s11751_s0 + $0x78] sm:$0xff]  }
  0x96   :  { %12218 = vst [vmem:[#allocation34_spill] sm:$0xff] %v8969_v39  ;;  %v1566_v23 = vsel %vm1406_vm3, %v1563_v54, %v1565_v21  ;;  %v1407_v46 = vrot.slane %v12221_v26, 2  ;;  %v1408_v30 = vrot.slane %v12222_v44, 2  ;;  %v8995_v54 = vld [vmem:[%s11751_s0 + $0xc] sm:$0xff]   ;;  %v9004_v21 = vld [vmem:[%s11751_s0 + $0x18] sm:$0xff]  }
  0x97   :  { %v8973_v51 = vpack.c.bf16 %v1566_v23, %v1564_v6  ;;  %v1410_v4 = vrot.slane %v12224_v58, 2  ;;  %12225 = vst [vmem:[#allocation37_spill] sm:$0xff] %v8995_v54  ;;  %v9024_v6 = vld [vmem:[%s11751_s0 + $0x30] sm:$0xff]   ;;  %v9037_v23 = vld [vmem:[%s11751_s0 + $0x3c] sm:$0xff]   ;;  %v9042_v22 = vld [vmem:[%s11751_s0 + $0x48] sm:$0xff]  }
  0x98   :  { %v8987_v35 = vsel %vm1406_vm3, %v1407_v46, %v1408_v30  ;;  %v9055_v26 = vld [vmem:[%s11751_s0 + $0x54] sm:$0xff]   ;;  %v9060_v46 = vld [vmem:[%s11751_s0 + $0x60] sm:$0xff]  }
  0x99   :  { %12219 = vst [vmem:[#allocation35_spill] sm:$0xff] %v8973_v51  ;;  %v8990_v33 = vsel %vm1406_vm3, %v1408_v30, %v1410_v4  ;;  %v9071_v44 = vld [vmem:[%s11750_s1 + $0x6] sm:$0x3]  ;;  %v9078_v30 = vld [vmem:[%s11751_s0 + $0x6c] sm:$0xff]   ;;  %v9116_v20 = vld [vmem:[%s11751_s0 + $0x9c] sm:$0xff]  }
  0x9a   :  { %v9098_v58 = vld [vmem:[%s11751_s0 + $0x84] sm:$0xff]   ;;  %v9103_v4 = vld [vmem:[%s11751_s0 + $0x90] sm:$0xff]   ;;  %v9143_v47 = vld [vmem:[%s11751_s0 + $0x198] sm:$0xff]  }
  0x9b   :  { %v11905_v13 = vunpack.c.l.bf16 %v9143_v47 }
  0x9c   :  { %6464 = vmatmul.mubr.msk.bf16.vlgmr.msra.gmra.mrb[0].mxu1 %vm628_vm2, %v8995_v54  ;;  %6760 = vmatmul.mubr.msk.bf16.gmra.mrb[32].mxu0 %vm628_vm2, %v8796_v31  ;;  %v11907_v54 = vunpack.c.h.bf16 %v9143_v47 }
  0x9d   :  { %6467 = vmatprep.mubr.msk.bf16.mxu1 %vm628_vm2, %v9004_v21  ;;  %6528 = vmatpush3.bf16.msra.mxu1 %v1762_v5  ;;  %v9121_v5 = vld [vmem:[%s11751_s0 + $0xa8] sm:$0xff]  }
  0x9e   :  { %6763 = vmatprep.mubr.msk.bf16.mxu0 %vm628_vm2, %v8824_v43  ;;  %7568 = vmatprep.subr.msk.bf16.mxu1 %vm725_vm0, %v9071_v44 }
  0xa4   :  { %6468 = vmatmul.mubr.msk.bf16.gmra.mrb[4].mxu1 %vm628_vm2, %v9019_v62  ;;  %6764 = vmatmul.mubr.msk.bf16.gmra.mrb[36].mxu0 %vm628_vm2, %v8834_v9 }
  0xa5   :  { %6471 = vmatprep.mubr.msk.bf16.mxu1 %vm628_vm2, %v9024_v6  ;;  %6767 = vmatprep.mubr.msk.bf16.mxu0 %vm628_vm2, %v8847_v45 }
  0xac   :  { %6472 = vmatmul.mubr.msk.bf16.gmra.mrb[8].mxu1 %vm628_vm2, %v9037_v23  ;;  %6768 = vmatmul.mubr.msk.bf16.gmra.mrb[40].mxu0 %vm628_vm2, %v8858_v7 }
  0xad   :  { %6475 = vmatprep.mubr.msk.bf16.mxu1 %vm628_vm2, %v9042_v22  ;;  %6771 = vmatprep.mubr.msk.bf16.mxu0 %vm628_vm2, %v8876_v59 }
  0xb4   :  { %6476 = vmatmul.mubr.msk.bf16.gmra.mrb[12].mxu1 %vm628_vm2, %v9055_v26  ;;  %6772 = vmatmul.mubr.msk.bf16.gmra.mrb[44].mxu0 %vm628_vm2, %v8892_v29 }
  0xb5   :  { %6479 = vmatprep.mubr.msk.bf16.mxu1 %vm628_vm2, %v9060_v46  ;;  %6775 = vmatprep.mubr.msk.bf16.mxu0 %vm628_vm2, %v8902_v19  ;;  %v2875_v19 = vrot.slane %v11907_v54, 2  ;;  %v12236_v54 = vld [vmem:[#allocation19_spill] sm:$0xff] }
  0xbc   :  { %6480 = vmatmul.mubr.msk.bf16.gmra.mrb[16].mxu1 %vm628_vm2, %v9078_v30  ;;  %6776 = vmatmul.mubr.msk.bf16.gmra.mrb[48].mxu0 %vm628_vm2, %v8914_v36  ;;  %v2874_v36 = vrot.slane %v11905_v13, 2 }
  0xbd   :  { %6483 = vmatprep.mubr.msk.bf16.mxu1 %vm628_vm2, %v9085_v18  ;;  %6779 = vmatprep.mubr.msk.bf16.mxu0 %vm628_vm2, %v8929_v56  ;;  %v11906_v56 = vunpack.c.l.bf16 %v9148_v55 }
  0xc4   :  { %6484 = vmatmul.mubr.msk.bf16.gmra.mrb[20].mxu1 %vm628_vm2, %v9098_v58  ;;  %6780 = vmatmul.mubr.msk.bf16.gmra.mrb[52].mxu0 %vm628_vm2, %v8938_v37  ;;  %v2877_v37 = vrot.slane %v11906_v56, 2 }
  0xc5   :  { %6487 = vmatprep.mubr.msk.bf16.mxu1 %vm628_vm2, %v9103_v4  ;;  %6783 = vmatprep.mubr.msk.bf16.mxu0 %vm628_vm2, %v8962_v24 }
  0xc6   :  { %v2878_v24 = vsel %vm1406_vm3, %v2875_v19, %v2877_v37  ;;  %v12230_v37 = vld [vmem:[#allocation29_spill] sm:$0xff] }
  0xcc   :  { %6488 = vmatmul.mubr.msk.bf16.gmra.mrb[24].mxu1 %vm628_vm2, %v9116_v20  ;;  %6784 = vmatmul.mubr.msk.bf16.gmra.mrb[56].mxu0 %vm628_vm2, %v8969_v39 }
  0xcd   :  { %6491 = vmatprep.mubr.msk.bf16.mxu1 %vm628_vm2, %v9121_v5  ;;  %6787 = vmatprep.mubr.msk.bf16.mxu0 %vm628_vm2, %v8973_v51 }
  0xd4   :  { %6492 = vmatmul.mubr.msk.bf16.gmra.mrb[28].mxu1 %vm628_vm2, %v9134_v27 }
  0xd5   :  { %6495 = vmatprep.mubr.msk.bf16.mxu1 %vm628_vm2, %v12227_v63 }
  0xdc   :  { %6496 = vmatmul.mubr.msk.bf16.gmra.mrb[32].mxu1 %vm628_vm2, %v8176_v25  ;;  %v2876_v25 = vsel %vm1406_vm3, %v2874_v36, %v2875_v19  ;;  %v3646_v19 = vsel %vm725_vm0, %v8690_v53, 0  ;;  %v12229_v53 = vpack.c.bf16 %v8990_v33, %v8987_v35  ;;  %v2128_v36 = vsel %vm725_vm0, %v9071_v44, 0  ;;  %v7670_v35 = vld [vmem:[%s11750_s1 + $0x8] sm:$0x3]  ;;  %v9264_v33 = vld [vmem:[%s11751_s0 + $0xcc] sm:$0xff]   ;;  %v12231_v44 = vld [vmem:[#allocation38_spill] sm:$0xff] }
  0xdd   :  { %6499 = vmatprep.mubr.msk.bf16.mxu1 %vm628_vm2, %v8192_v38  ;;  %v9173_v13 = vpack.c.bf16 %v2878_v24, %v2876_v25  ;;  %v9192_v25 = vld [vmem:[%s11750_s1 + $0x10] sm:$0x3]  ;;  %v9249_v24 = vld [vmem:[%s11751_s0 + $0xc0] sm:$0xff]  }
  0xdf   :  { %12228 = vst [vmem:[#allocation44_spill] sm:$0xff] %v9173_v13  ;;  %6788 = vmatmul.mubr.msk.bf16.gmra.mrb[60].mxu0 %vm628_vm2, %v9173_v13  ;;  %v12237_v13 = vunpack.c.l.bf16 %v12236_v54  ;;  %v12242_v54 = vld [vmem:[#allocation9_spill] sm:$0xff] }
  0xe0   :  { %6793 = vmatprep.mubr.msk.bf16.mxu0 %vm628_vm2, %v9004_v21 }
  0xe4   :  { %6500 = vmatmul.mubr.msk.bf16.gmra.mrb[36].mxu1 %vm628_vm2, %v12160_v0 }
  0xe5   :  { %6503 = vmatprep.mubr.msk.bf16.mxu1 %vm628_vm2, %v12165_v57 }
  0xe7   :  { %6794 = vmatmul.mubr.msk.bf16.vlgmr.msra.gmra.mrb[0].mxu0 %vm628_vm2, %v9019_v62 }
  0xe8   :  { %6858 = vmatpush3.bf16.msra.mxu0 %v3646_v19  ;;  %6797 = vmatprep.mubr.msk.bf16.mxu0 %vm628_vm2, %v9024_v6  ;;  %v12232_v19 = vld [vmem:[#allocation45_spill] sm:$0xff] }
  0xe9   :  { %7574 = vmatprep.subr.msk.bf16.mxu0 %vm725_vm0, %v9192_v25 }
  0xec   :  { %6504 = vmatmul.mubr.msk.bf16.gmra.mrb[40].mxu1 %vm628_vm2, %v12170_v61 }
  0xed   :  { %6507 = vmatprep.mubr.msk.bf16.mxu1 %vm628_vm2, %v12175_v41 }
  0xef   :  { %6798 = vmatmul.mubr.msk.bf16.gmra.mrb[4].mxu0 %vm628_vm2, %v9037_v23 }
  0xf0   :  { %6801 = vmatprep.mubr.msk.bf16.mxu0 %vm628_vm2, %v9042_v22 }
  0xf4   :  { %6508 = vmatmul.mubr.msk.bf16.gmra.mrb[44].mxu1 %vm628_vm2, %v8352_v42 }
  0xf5   :  { %6511 = vmatprep.mubr.msk.bf16.mxu1 %vm628_vm2, %v8431_v52 }
  0xf7   :  { %6802 = vmatmul.mubr.msk.bf16.gmra.mrb[8].mxu0 %vm628_vm2, %v9055_v26 }
  0xf8   :  { %6805 = vmatprep.mubr.msk.bf16.mxu0 %vm628_vm2, %v9060_v46 }
  0xfc   :  { %6512 = vmatmul.mubr.msk.bf16.gmra.mrb[48].mxu1 %vm628_vm2, %v8482_v48 }
  0xfd   :  { %6515 = vmatprep.mubr.msk.bf16.mxu1 %vm628_vm2, %v12191_v60 }
  0xff   :  { %6806 = vmatmul.mubr.msk.bf16.gmra.mrb[12].mxu0 %vm628_vm2, %v9078_v30 }
 0x100   :  { %6809 = vmatprep.mubr.msk.bf16.mxu0 %vm628_vm2, %v9085_v18 }
 0x104   :  { %6516 = vmatmul.mubr.msk.bf16.gmra.mrb[52].mxu1 %vm628_vm2, %v8518_v49 }
 0x105   :  { %6519 = vmatprep.mubr.msk.bf16.mxu1 %vm628_vm2, %v8569_v1 }
 0x107   :  { %6810 = vmatmul.mubr.msk.bf16.gmra.mrb[16].mxu0 %vm628_vm2, %v9098_v58 }
 0x108   :  { %6813 = vmatprep.mubr.msk.bf16.mxu0 %vm628_vm2, %v9103_v4 }
 0x10c   :  { %6520 = vmatmul.mubr.msk.bf16.gmra.mrb[56].mxu1 %vm628_vm2, %v8615_v15 }
 0x10d   :  { %6523 = vmatprep.mubr.msk.bf16.mxu1 %vm628_vm2, %v8665_v14 }
 0x10f   :  { %6814 = vmatmul.mubr.msk.bf16.gmra.mrb[20].mxu0 %vm628_vm2, %v9116_v20 }
 0x110   :  { %6817 = vmatprep.mubr.msk.bf16.mxu0 %vm628_vm2, %v9121_v5 }
 0x114   :  { %6524 = vmatmul.mubr.msk.bf16.gmra.mrb[60].mxu1 %vm628_vm2, %v8782_v11 }
 0x115   :  { %6529 = vmatprep.mubr.msk.bf16.mxu1 %vm628_vm2, %v12229_v53  ;;  %v12233_v53 = vld [vmem:[#allocation46_spill] sm:$0xff] }
 0x117   :  { %6818 = vmatmul.mubr.msk.bf16.gmra.mrb[24].mxu0 %vm628_vm2, %v9134_v27 }
 0x118   :  { %6821 = vmatprep.mubr.msk.bf16.mxu0 %vm628_vm2, %v9249_v24 }
 0x11c   :  { %6530 = vmatmul.mubr.msk.bf16.vlgmr.msra.gmra.mrb[0].mxu1 %vm628_vm2, %v12230_v37 }
 0x11d   :  { %6533 = vmatprep.mubr.msk.bf16.mxu1 %vm628_vm2, %v8331_v50  ;;  %6594 = vmatpush3.bf16.msra.mxu1 %v2128_v36  ;;  %v12234_v36 = vunpack.c.l.bf16 %v12227_v63 }
 0x11e   :  { %7570 = vmatprep.subr.msk.bf16.mxu1 %vm725_vm0, %v7670_v35  ;;  %v12235_v35 = vunpack.c.h.bf16 %v12227_v63 }
 0x11f   :  { %6822 = vmatmul.mubr.msk.bf16.gmra.mrb[28].mxu0 %vm628_vm2, %v9264_v33  ;;  %v1487_v37 = vrot.slane %v12234_v36, 2  ;;  %v12244_v36 = vld [vmem:[#allocation26_spill] sm:$0xff] }
 0x120   :  { %6825 = vmatprep.mubr.msk.bf16.mxu0 %vm628_vm2, %v8192_v38  ;;  %v1488_v56 = vrot.slane %v12235_v35, 2  ;;  %v12246_v35 = vld [vmem:[#allocation11_spill] sm:$0xff] }
 0x124   :  { %6534 = vmatmul.mubr.msk.bf16.gmra.mrb[4].mxu1 %vm628_vm2, %v8398_v16 }
 0x125   :  { %6537 = vmatprep.mubr.msk.bf16.mxu1 %vm628_vm2, %v8422_v8 }
 0x127   :  { %6826 = vmatmul.mubr.msk.bf16.gmra.mrb[32].mxu0 %vm628_vm2, %v12160_v0 }
 0x128   :  { %6829 = vmatprep.mubr.msk.bf16.mxu0 %vm628_vm2, %v12165_v57 }
 0x12c   :  { %6538 = vmatmul.mubr.msk.bf16.gmra.mrb[8].mxu1 %vm628_vm2, %v12231_v44 }
 0x12d   :  { %6541 = vmatprep.mubr.msk.bf16.mxu1 %vm628_vm2, %v12232_v19 }
 0x12f   :  { %6830 = vmatmul.mubr.msk.bf16.gmra.mrb[36].mxu0 %vm628_vm2, %v12170_v61 }
 0x130   :  { %6833 = vmatprep.mubr.msk.bf16.mxu0 %vm628_vm2, %v12175_v41 }
 0x134   :  { %6542 = vmatmul.mubr.msk.bf16.gmra.mrb[12].mxu1 %vm628_vm2, %v12233_v53 }
 0x135   :  { %6545 = vmatprep.mubr.msk.bf16.mxu1 %vm628_vm2, %v8583_v34 }
 0x137   :  { %6834 = vmatmul.mubr.msk.bf16.gmra.mrb[40].mxu0 %vm628_vm2, %v8352_v42 }
 0x138   :  { %6837 = vmatprep.mubr.msk.bf16.mxu0 %vm628_vm2, %v8431_v52 }
 0x13c   :  { %6546 = vmatmul.mubr.msk.bf16.gmra.mrb[16].mxu1 %vm628_vm2, %v8610_v28 }
 0x13d   :  { %6549 = vmatprep.mubr.msk.bf16.mxu1 %vm628_vm2, %v8646_v40  ;;  %v1490_v40 = vrot.slane %v12237_v13, 2  ;;  %v12239_v13 = vld [vmem:[#allocation6_spill] sm:$0xff] }
 0x13f   :  { %6838 = vmatmul.mubr.msk.bf16.gmra.mrb[44].mxu0 %vm628_vm2, %v8482_v48 }
 0x140   :  { %6841 = vmatprep.mubr.msk.bf16.mxu0 %vm628_vm2, %v12191_v60 }
 0x144   :  { %6550 = vmatmul.mubr.msk.bf16.gmra.mrb[20].mxu1 %vm628_vm2, %v8681_v10  ;;  %v1491_v10 = vsel %vm1406_vm3, %v1488_v56, %v1490_v40  ;;  %v9340_v40 = vld [vmem:[%s11751_s0 + $0x1a4] sm:$0xff]  }
 0x145   :  { %6553 = vmatprep.mubr.msk.bf16.mxu1 %vm628_vm2, %v8715_v2  ;;  %v1489_v2 = vsel %vm1406_vm3, %v1487_v37, %v1488_v56  ;;  %v12241_v56 = vld [vmem:[#allocation8_spill] sm:$0xff]  ;;  %v12245_v37 = vld [vmem:[#allocation10_spill] sm:$0xff] }
 0x146   :  { %v1647_v63 = vpack.c.bf16 %v1491_v10, %v1489_v2  ;;  %v12238_v10 = vld [vmem:[#allocation5_spill] sm:$0xff]  ;;  %v4026_v2 = vsel %vm725_vm0, %v9192_v25, 0  ;;  %v12243_v25 = vld [vmem:[#allocation22_spill] sm:$0xff] }
 0x147   :  { %6842 = vmatmul.mubr.msk.bf16.gmra.mrb[48].mxu0 %vm628_vm2, %v8518_v49 }
 0x148   :  { %6845 = vmatprep.mubr.msk.bf16.mxu0 %vm628_vm2, %v8569_v1 }
 0x14c   :  { %6554 = vmatmul.mubr.msk.bf16.gmra.mrb[24].mxu1 %vm628_vm2, %v8728_v32 }
 0x14d   :  { %6557 = vmatprep.mubr.msk.bf16.mxu1 %vm628_vm2, %v8745_v12 }
 0x14f   :  { %6846 = vmatmul.mubr.msk.bf16.gmra.mrb[52].mxu0 %vm628_vm2, %v8615_v15 }
 0x150   :  { %6849 = vmatprep.mubr.msk.bf16.mxu0 %vm628_vm2, %v8665_v14 }
 0x154   :  { %6558 = vmatmul.mubr.msk.bf16.gmra.mrb[28].mxu1 %vm628_vm2, %v8753_v17 }
 0x155   :  { %6561 = vmatprep.mubr.msk.bf16.mxu1 %vm628_vm2, %v1647_v63  ;;  %v12247_v63 = vld [vmem:[#allocation27_spill] sm:$0xff] }
 0x157   :  { %6850 = vmatmul.mubr.msk.bf16.gmra.mrb[56].mxu0 %vm628_vm2, %v8782_v11 }
 0x158   :  { %6853 = vmatprep.mubr.msk.bf16.mxu0 %vm628_vm2, %v9143_v47 }
 0x15c   :  { %6562 = vmatmul.mubr.msk.bf16.gmra.mrb[32].mxu1 %vm628_vm2, %v8788_v3  ;;  %v12240_v3 = vld [vmem:[#allocation7_spill] sm:$0xff] }
 0x15d   :  { %6565 = vmatprep.mubr.msk.bf16.mxu1 %vm628_vm2, %v8796_v31 }
 0x15f   :  { %6854 = vmatmul.mubr.msk.bf16.gmra.mrb[60].mxu0 %vm628_vm2, %v9340_v40 }
 0x160   :  { %6859 = vmatprep.mubr.msk.bf16.mxu0 %vm628_vm2, %v12238_v10  ;;  %v12248_v10 = vld [vmem:[#allocation28_spill] sm:$0xff] }
 0x164   :  { %6566 = vmatmul.mubr.msk.bf16.gmra.mrb[36].mxu1 %vm628_vm2, %v8824_v43 }
 0x165   :  { %6569 = vmatprep.mubr.msk.bf16.mxu1 %vm628_vm2, %v8834_v9 }
 0x167   :  { %6860 = vmatmul.mubr.msk.bf16.vlgmr.msra.gmra.mrb[0].mxu0 %vm628_vm2, %v12239_v13  ;;  %v12250_v13 = vld [vmem:[#allocation16_spill] sm:$0xff] }
 0x168   :  { %6924 = vmatpush3.bf16.msra.mxu0 %v4026_v2  ;;  %6863 = vmatprep.mubr.msk.bf16.mxu0 %vm628_vm2, %v12240_v3  ;;  %v12249_v2 = vld [vmem:[#allocation12_spill] sm:$0xff]  ;;  %v12251_v3 = vld [vmem:[#allocation33_spill] sm:$0xff] }
 0x16c   :  { %6570 = vmatmul.mubr.msk.bf16.gmra.mrb[40].mxu1 %vm628_vm2, %v8847_v45 }
 0x16d   :  { %6573 = vmatprep.mubr.msk.bf16.mxu1 %vm628_vm2, %v8858_v7 }
 0x16f   :  { %6864 = vmatmul.mubr.msk.bf16.gmra.mrb[4].mxu0 %vm628_vm2, %v12241_v56  ;;  %v12252_v56 = vld [vmem:[#allocation20_spill] sm:$0xff] }
 0x170   :  { %6867 = vmatprep.mubr.msk.bf16.mxu0 %vm628_vm2, %v12242_v54  ;;  %v12253_v54 = vld [vmem:[#allocation23_spill] sm:$0xff] }
 0x174   :  { %6574 = vmatmul.mubr.msk.bf16.gmra.mrb[44].mxu1 %vm628_vm2, %v8876_v59 }
 0x175   :  { %6577 = vmatprep.mubr.msk.bf16.mxu1 %vm628_vm2, %v8892_v29 }
 0x177   :  { %6868 = vmatmul.mubr.msk.bf16.gmra.mrb[8].mxu0 %vm628_vm2, %v12245_v37  ;;  %v12254_v37 = vld [vmem:[#allocation37_spill] sm:$0xff] }
 0x178   :  { %6871 = vmatprep.mubr.msk.bf16.mxu0 %vm628_vm2, %v12246_v35  ;;  %v77_v35 = vld [vmem:[%s11751_s0 + $0xd4] sm:$0x1] }
 0x17c   :  { %6578 = vmatmul.mubr.msk.bf16.gmra.mrb[48].mxu1 %vm628_vm2, %v12243_v25 }
 0x17d   :  { %6581 = vmatprep.mubr.msk.bf16.mxu1 %vm628_vm2, %v12244_v36  ;;  %v12259_v36 = vld [vmem:[#allocation31_spill] sm:$0xff] }
 0x17f   :  { %6872 = vmatmul.mubr.msk.bf16.gmra.mrb[12].mxu0 %vm628_vm2, %v12249_v2  ;;  %v12255_v2 = vld [vmem:[#allocation24_spill] sm:$0xff] }
 0x180   :  { %6875 = vmatprep.mubr.msk.bf16.mxu0 %vm628_vm2, %v12250_v13  ;;  %v183_v13 = vunpack.c.l.bf16 %v9264_v33 }
 0x184   :  { %6582 = vmatmul.mubr.msk.bf16.gmra.mrb[52].mxu1 %vm628_vm2, %v12247_v63  ;;  %v4001_v63 = vrot.slane %v183_v13, 2 }
 0x185   :  { %6585 = vmatprep.mubr.msk.bf16.mxu1 %vm628_vm2, %v12248_v10  ;;  %v12257_v10 = vld [vmem:[#allocation3_spill] sm:$0xff] }
 0x187   :  { %6876 = vmatmul.mubr.msk.bf16.gmra.mrb[16].mxu0 %vm628_vm2, %v12252_v56  ;;  %v184_v56 = vunpack.c.h.bf16 %v9264_v33 }
 0x188   :  { %6879 = vmatprep.mubr.msk.bf16.mxu0 %vm628_vm2, %v12253_v54  ;;  %v185_v54 = vunpack.c.l.bf16 %v77_v35 }
 0x189   :  { %v4002_v33 = vrot.slane %v184_v56, 2 }
 0x18a   :  { %v4004_v25 = vrot.slane %v185_v54, 2 }
 0x18c   :  { %6586 = vmatmul.mubr.msk.bf16.gmra.mrb[56].mxu1 %vm628_vm2, %v12251_v3  ;;  %v3621_v3 = vrot.slane %v183_v13, 1 }
 0x18d   :  { %6589 = vmatprep.mubr.msk.bf16.mxu1 %vm628_vm2, %v8969_v39  ;;  %v12256_v39 = vld [vmem:[#allocation25_spill] sm:$0xff] }
 0x18f   :  { %6880 = vmatmul.mubr.msk.bf16.gmra.mrb[20].mxu0 %vm628_vm2, %v12255_v2  ;;  %v12258_v2 = vld [vmem:[#allocation30_spill] sm:$0xff] }
 0x190   :  { %6883 = vmatprep.mubr.msk.bf16.mxu0 %vm628_vm2, %v12256_v39 }
 0x194   :  { %6590 = vmatmul.mubr.msk.bf16.gmra.mrb[60].mxu1 %vm628_vm2, %v8973_v51  ;;  %v3622_v51 = vrot.slane %v184_v56, 1 }
 0x195   :  { %6595 = vmatprep.mubr.msk.bf16.mxu1 %vm628_vm2, %v12254_v37  ;;  %v3624_v37 = vrot.slane %v185_v54, 1  ;;  %v131_v54 = vld [vmem:[%s11751_s0 + $0x1ac] sm:$0x1] }
 0x196   :  { %v3623_v39 = vsel %vm369_vm1, %v3621_v3, %v3622_v51 }
 0x197   :  { %6884 = vmatmul.mubr.msk.bf16.gmra.mrb[24].mxu0 %vm628_vm2, %v12258_v2  ;;  %v3625_v35 = vsel %vm369_vm1, %v3622_v51, %v3624_v37  ;;  %v12260_v51 = vld [vmem:[#allocation36_spill] sm:$0xff]  ;;  %v237_v37 = vunpack.c.l.bf16 %v9340_v40  ;;  %v12275_v2 = vld [vmem:[#allocation13_spill] sm:$0xff] }
 0x198   :  { %6887 = vmatprep.mubr.msk.bf16.mxu0 %vm628_vm2, %v12259_v36 }
 0x19c   :  { %6596 = vmatmul.mubr.msk.bf16.vlgmr.msra.gmra.mrb[0].mxu1 %vm628_vm2, %v9004_v21  ;;  %v3635_v21 = vpack.c.bf16 %v3625_v35, %v3623_v39  ;;  %v239_v39 = vunpack.c.l.bf16 %v131_v54 }
 0x19d   :  { %6599 = vmatprep.mubr.msk.bf16.mxu1 %vm628_vm2, %v9019_v62  ;;  %7052 = vmatpush3.bf16.msra.mxu1 %v12257_v10  ;;  %v9419_v62 = vsel %vm1406_vm3, %v4001_v63, %v4002_v33  ;;  %v9422_v10 = vsel %vm1406_vm3, %v4002_v33, %v4004_v25  ;;  %v12262_v25 = vld [vmem:[#allocation40_spill] sm:$0xff]  ;;  %v12264_v63 = vld [vmem:[#allocation42_spill] sm:$0xff]  ;;  %v12276_v33 = vld [vmem:[#allocation17_spill] sm:$0xff] }
 0x19e   :  { %v4015_v36 = vpack.c.bf16 %v9422_v10, %v9419_v62 }
 0x19f   :  { %6888 = vmatmul.mubr.msk.bf16.gmra.mrb[28].mxu0 %vm628_vm2, %v3635_v21  ;;  %v3626_v21 = vrot.slane %v237_v37, 1 }
 0x1a0   :  { %6891 = vmatprep.mubr.msk.bf16.mxu0 %vm628_vm2, %v12260_v51 }
 0x1a4   :  { %6600 = vmatmul.mubr.msk.bf16.gmra.mrb[4].mxu1 %vm628_vm2, %v9024_v6  ;;  %v12261_v6 = vld [vmem:[#allocation39_spill] sm:$0xff] }
 0x1a5   :  { %6603 = vmatprep.mubr.msk.bf16.mxu1 %vm628_vm2, %v9037_v23  ;;  %v12263_v23 = vld [vmem:[#allocation41_spill] sm:$0xff] }
 0x1a7   :  { %6892 = vmatmul.mubr.msk.bf16.gmra.mrb[32].mxu0 %vm628_vm2, %v12261_v6  ;;  %v4006_v6 = vrot.slane %v237_v37, 2 }
 0x1a8   :  { %6895 = vmatprep.mubr.msk.bf16.mxu0 %vm628_vm2, %v12262_v25 }
 0x1ac   :  { %6604 = vmatmul.mubr.msk.bf16.gmra.mrb[8].mxu1 %vm628_vm2, %v9042_v22  ;;  %v12265_v22 = vld [vmem:[#allocation43_spill] sm:$0xff] }
 0x1ad   :  { %6607 = vmatprep.mubr.msk.bf16.mxu1 %vm628_vm2, %v9055_v26  ;;  %v12266_v26 = vld [vmem:[#allocation48_spill] sm:$0xff] }
 0x1af   :  { %6896 = vmatmul.mubr.msk.bf16.gmra.mrb[36].mxu0 %vm628_vm2, %v12263_v23 }
 0x1b0   :  { %6899 = vmatprep.mubr.msk.bf16.mxu0 %vm628_vm2, %v12264_v63 }
 0x1b4   :  { %6608 = vmatmul.mubr.msk.bf16.gmra.mrb[12].mxu1 %vm628_vm2, %v9060_v46  ;;  %v12267_v46 = vld [vmem:[#allocation49_spill] sm:$0xff] }
 0x1b5   :  { %6611 = vmatprep.mubr.msk.bf16.mxu1 %vm628_vm2, %v9078_v30  ;;  %v12268_v30 = vld [vmem:[#allocation50_spill] sm:$0xff] }
 0x1b7   :  { %6900 = vmatmul.mubr.msk.bf16.gmra.mrb[40].mxu0 %vm628_vm2, %v12265_v22 }
 0x1b8   :  { %6903 = vmatprep.mubr.msk.bf16.mxu0 %vm628_vm2, %v12266_v26 }
 0x1bc   :  { %6612 = vmatmul.mubr.msk.bf16.gmra.mrb[16].mxu1 %vm628_vm2, %v9085_v18  ;;  %v12269_v18 = vld [vmem:[#allocation51_spill] sm:$0xff] }
 0x1bd   :  { %6615 = vmatprep.mubr.msk.bf16.mxu1 %vm628_vm2, %v9098_v58  ;;  %v12270_v58 = vld [vmem:[#allocation53_spill] sm:$0xff] }
 0x1bf   :  { %6904 = vmatmul.mubr.msk.bf16.gmra.mrb[44].mxu0 %vm628_vm2, %v12267_v46 }
 0x1c0   :  { %6907 = vmatprep.mubr.msk.bf16.mxu0 %vm628_vm2, %v12268_v30 }
 0x1c4   :  { %6616 = vmatmul.mubr.msk.bf16.gmra.mrb[20].mxu1 %vm628_vm2, %v9103_v4  ;;  %v12271_v4 = vld [vmem:[#allocation21_spill] sm:$0xff] }
 0x1c5   :  { %6619 = vmatprep.mubr.msk.bf16.mxu1 %vm628_vm2, %v9116_v20  ;;  %v12272_v20 = vunpack.c.l.bf16 %v9143_v47 }
 0x1c7   :  { %6908 = vmatmul.mubr.msk.bf16.gmra.mrb[48].mxu0 %vm628_vm2, %v12269_v18  ;;  %v2494_v3 = vrot.slane %v12272_v20, 1  ;;  %v12277_v20 = vld [vmem:[#allocation32_spill] sm:$0xff] }
 0x1c8   :  { %6911 = vmatprep.mubr.msk.bf16.mxu0 %vm628_vm2, %v12270_v58 }
 0x1cc   :  { %6620 = vmatmul.mubr.msk.bf16.gmra.mrb[24].mxu1 %vm628_vm2, %v9121_v5  ;;  %v12273_v5 = vunpack.c.h.bf16 %v9143_v47 }
 0x1cd   :  { %6623 = vmatprep.mubr.msk.bf16.mxu1 %vm628_vm2, %v9134_v27  ;;  %v12274_v27 = vunpack.c.l.bf16 %v9148_v55 }
 0x1ce   :  { %v2495_v13 = vrot.slane %v12273_v5, 1 }
 0x1cf   :  { %v2497_v56 = vrot.slane %v12274_v27, 1  ;;  %6912 = vmatmul.mubr.msk.bf16.gmra.mrb[52].mxu0 %vm628_vm2, %v12275_v2  ;;  %v4009_v27 = vrot.slane %v239_v39, 2 }
 0x1d0   :  { %6915 = vmatprep.mubr.msk.bf16.mxu0 %vm628_vm2, %v12276_v33  ;;  %v2496_v35 = vsel %vm369_vm1, %v2494_v3, %v2495_v13 }
 0x1d1   :  { %v2498_v55 = vsel %vm369_vm1, %v2495_v13, %v2497_v56 }
 0x1d4   :  { %6624 = vmatmul.mubr.msk.bf16.gmra.mrb[28].mxu1 %vm628_vm2, %v9249_v24  ;;  %v238_v24 = vunpack.c.h.bf16 %v9340_v40  ;;  %v3629_v40 = vrot.slane %v239_v39, 1  ;;  %v4655_v39 = vld [vmem:[%s11752_s5] sm:$0xff] }
 0x1d5   :  { %6627 = vmatprep.mubr.msk.bf16.mxu1 %vm628_vm2, %v12271_v4  ;;  %v2504_v4 = vpack.c.bf16 %v2498_v55, %v2496_v35  ;;  %v4656_v35 = vld [vmem:[%s11752_s5 + $0x8] sm:$0xff] }
 0x1d6   :  { %v3627_v51 = vrot.slane %v238_v24, 1  ;;  %v4007_v25 = vrot.slane %v238_v24, 2 }
 0x1d7   :  { %6916 = vmatmul.mubr.msk.bf16.gmra.mrb[56].mxu0 %vm628_vm2, %v12277_v20 }
 0x1d8   :  { %6919 = vmatprep.mubr.msk.bf16.mxu0 %vm628_vm2, %v2504_v4  ;;  %v3628_v3 = vsel %vm369_vm1, %v3626_v21, %v3627_v51  ;;  %v3630_v5 = vsel %vm369_vm1, %v3627_v51, %v3629_v40  ;;  %v9502_v13 = vsel %vm1406_vm3, %v4006_v6, %v4007_v25  ;;  %v9690_v21 = vpack.c.bf16 %v4656_v35, %v4655_v39 }
 0x1d9   :  { %v3636_v56 = vpack.c.bf16 %v3630_v5, %v3628_v3  ;;  %v4658_v3 = vld [vmem:[%s11752_s5 + $0x18] sm:$0xff] }
 0x1dc   :  { %6628 = vmatmul.mubr.msk.bf16.gmra.mrb[32].mxu1 %vm628_vm2, %v8192_v38  ;;  %v4010_v38 = vsel %vm1406_vm3, %v4007_v25, %v4009_v27 }
 0x1dd   :  { %6631 = vmatprep.mubr.msk.bf16.mxu1 %vm628_vm2, %v12160_v0  ;;  %v4016_v54 = vpack.c.bf16 %v4010_v38, %v9502_v13  ;;  %v9717_v38 = vld [vmem:[%s11753_s2] ss:$0 sm:$0xff] }
 0x1df   :  { %6920 = vmatmul.mubr.msk.bf16.gmra.mrb[60].mxu0 %vm628_vm2, %v3636_v56 }
 0x1e0   :  { %6925 = vmatprep.mubr.msk.bf16.mxu0 %vm628_vm2, %v8331_v50  ;;  %v12278_v50 = vld [vmem:[#allocation47_spill] sm:$0xff] }
 0x1e4   :  { %6632 = vmatmul.mubr.msk.bf16.gmra.mrb[36].mxu1 %vm628_vm2, %v12165_v57 }
 0x1e5   :  { %6635 = vmatprep.mubr.msk.bf16.mxu1 %vm628_vm2, %v12170_v61 }
 0x1e7   :  { %6926 = vmatmul.mubr.msk.bf16.vlgmr.msra.gmra.mrb[0].mxu0 %vm628_vm2, %v8398_v16  ;;  %v12281_v16 = vld [vmem:[#allocation14_spill] sm:$0xff] }
 0x1e8   :  { %6929 = vmatprep.mubr.msk.bf16.mxu0 %vm628_vm2, %v8422_v8  ;;  %v12279_v8 = vld [vmem:[#allocation52_spill] sm:$0xff] }
 0x1ec   :  { %6636 = vmatmul.mubr.msk.bf16.gmra.mrb[40].mxu1 %vm628_vm2, %v12175_v41 }
 0x1ed   :  { %6639 = vmatprep.mubr.msk.bf16.mxu1 %vm628_vm2, %v8352_v42  ;;  %v12280_v42 = vld [vmem:[#allocation54_spill] sm:$0xff] }
 0x1ef   :  { %6930 = vmatmul.mubr.msk.bf16.gmra.mrb[4].mxu0 %vm628_vm2, %v12231_v44 }
 0x1f0   :  { %6933 = vmatprep.mubr.msk.bf16.mxu0 %vm628_vm2, %v12232_v19 }
 0x1f4   :  { %6640 = vmatmul.mubr.msk.bf16.gmra.mrb[44].mxu1 %vm628_vm2, %v8431_v52  ;;  %v12282_v52 = vld [vmem:[#allocation22_spill] sm:$0xff] }
 0x1f5   :  { %6643 = vmatprep.mubr.msk.bf16.mxu1 %vm628_vm2, %v8482_v48  ;;  %v12283_v48 = vld [vmem:[#allocation26_spill] sm:$0xff] }
 0x1f7   :  { %6934 = vmatmul.mubr.msk.bf16.gmra.mrb[8].mxu0 %vm628_vm2, %v12233_v53 }
 0x1f8   :  { %6937 = vmatprep.mubr.msk.bf16.mxu0 %vm628_vm2, %v8583_v34  ;;  %v12287_v34 = vld [vmem:[#allocation34_spill] sm:$0xff] }
 0x1fc   :  { %6644 = vmatmul.mubr.msk.bf16.gmra.mrb[48].mxu1 %vm628_vm2, %v12191_v60 }
 0x1fd   :  { %6647 = vmatprep.mubr.msk.bf16.mxu1 %vm628_vm2, %v8518_v49  ;;  %v12284_v49 = vld [vmem:[#allocation27_spill] sm:$0xff] }
 0x1ff   :  { %6938 = vmatmul.mubr.msk.bf16.gmra.mrb[12].mxu0 %vm628_vm2, %v8610_v28  ;;  %v12285_v28 = vld [vmem:[#allocation28_spill] sm:$0xff] }
 0x200   :  { %6941 = vmatprep.mubr.msk.bf16.mxu0 %vm628_vm2, %v12278_v50 }
 0x204   :  { %6648 = vmatmul.mubr.msk.bf16.gmra.mrb[52].mxu1 %vm628_vm2, %v8569_v1  ;;  %v12286_v1 = vld [vmem:[#allocation33_spill] sm:$0xff] }
 0x205   :  { %6651 = vmatprep.mubr.msk.bf16.mxu1 %vm628_vm2, %v8615_v15  ;;  %v12288_v15 = vld [vmem:[#allocation35_spill] sm:$0xff] }
 0x207   :  { %6942 = vmatmul.mubr.msk.bf16.gmra.mrb[16].mxu0 %vm628_vm2, %v12279_v8 }
 0x208   :  { %6945 = vmatprep.mubr.msk.bf16.mxu0 %vm628_vm2, %v12280_v42 }
 0x20c   :  { %6652 = vmatmul.mubr.msk.bf16.gmra.mrb[56].mxu1 %vm628_vm2, %v8665_v14  ;;  %v12289_v14 = vld [vmem:[#allocation44_spill] sm:$0xff] }
 0x20d   :  { %6655 = vmatprep.mubr.msk.bf16.mxu1 %vm628_vm2, %v8782_v11 }
 0x20f   :  { %6946 = vmatmul.mubr.msk.bf16.gmra.mrb[20].mxu0 %vm628_vm2, %v8728_v32 }
 0x210   :  { %6949 = vmatprep.mubr.msk.bf16.mxu0 %vm628_vm2, %v8745_v12 }
 0x214   :  { %6656 = vmatmul.mubr.msk.bf16.gmra.mrb[60].mxu1 %vm628_vm2, %v9143_v47 }
 0x215   :  { %6701 = vmatprep.mubr.msk.bf16.mxu1 %vm628_vm2, %v12263_v23 }
 0x217   :  { %6950 = vmatmul.mubr.msk.bf16.gmra.mrb[24].mxu0 %vm628_vm2, %v8753_v17 }
 0x218   :  { %6953 = vmatprep.mubr.msk.bf16.mxu0 %vm628_vm2, %v12281_v16 }
 0x21c   :  { %6702 = vmatmul.mubr.msk.bf16.vlgmr.msra.gmra.mrb[40].mxu1 %vm628_vm2, %v12264_v63 }
 0x21d   :  { %6705 = vmatprep.mubr.msk.bf16.mxu1 %vm628_vm2, %v12265_v22 }
 0x21f   :  { %6954 = vmatmul.mubr.msk.bf16.gmra.mrb[28].mxu0 %vm628_vm2, %v4015_v36 }
 0x220   :  { %6957 = vmatprep.mubr.msk.bf16.mxu0 %vm628_vm2, %v8796_v31 }
 0x224   :  { %6706 = vmatmul.mubr.msk.bf16.gmra.mrb[44].mxu1 %vm628_vm2, %v12266_v26 }
 0x225   :  { %6709 = vmatprep.mubr.msk.bf16.mxu1 %vm628_vm2, %v12267_v46 }
 0x227   :  { %6958 = vmatmul.mubr.msk.bf16.gmra.mrb[32].mxu0 %vm628_vm2, %v8824_v43 }
 0x228   :  { %6961 = vmatprep.mubr.msk.bf16.mxu0 %vm628_vm2, %v8834_v9 }
 0x22c   :  { %6710 = vmatmul.mubr.msk.bf16.gmra.mrb[48].mxu1 %vm628_vm2, %v12268_v30 }
 0x22d   :  { %6713 = vmatprep.mubr.msk.bf16.mxu1 %vm628_vm2, %v12269_v18 }
 0x22f   :  { %6962 = vmatmul.mubr.msk.bf16.gmra.mrb[36].mxu0 %vm628_vm2, %v8847_v45 }
 0x230   :  { %6965 = vmatprep.mubr.msk.bf16.mxu0 %vm628_vm2, %v8858_v7 }
 0x234   :  { %6714 = vmatmul.mubr.msk.bf16.gmra.mrb[52].mxu1 %vm628_vm2, %v12270_v58 }
 0x235   :  { %6717 = vmatprep.mubr.msk.bf16.mxu1 %vm628_vm2, %v12275_v2 }
 0x237   :  { %6966 = vmatmul.mubr.msk.bf16.gmra.mrb[40].mxu0 %vm628_vm2, %v8876_v59 }
 0x238   :  { %6969 = vmatprep.mubr.msk.bf16.mxu0 %vm628_vm2, %v8892_v29 }
 0x23c   :  { %6718 = vmatmul.mubr.msk.bf16.gmra.mrb[56].mxu1 %vm628_vm2, %v12276_v33  ;;  %v11929_v33 = vmov 0.0|0.0  }
 0x23d   :  { %6721 = vmatprep.mubr.msk.bf16.mxu1 %vm628_vm2, %v12277_v20  ;;  %7027 = vmatprep.subr.bf16.mxu1 %v11929_v33  ;;  %v4657_v20 = vld [vmem:[%s11752_s5 + $0x10] sm:$0xff] }
 0x23e   :  { %7029 = vmatpush3.bf16.msra.mxu1 %v9690_v21  ;;  %v9710_v5 = vpack.c.bf16 %v4658_v3, %v4657_v20 }
 0x23f   :  { %6970 = vmatmul.mubr.msk.bf16.gmra.mrb[44].mxu0 %vm628_vm2, %v12282_v52  ;;  %7030 = vmatprep.subr.bf16.mxu1 %v11929_v33 }
 0x240   :  { %6973 = vmatprep.mubr.msk.bf16.mxu0 %vm628_vm2, %v12283_v48 }
 0x242   :  { %7032 = vmatpush3.bf16.msra.mxu1 %v9710_v5 }
 0x243   :  { %7033 = vmatprep.subr.bf16.mxu1 %v11929_v33 }
 0x244   :  { %6722 = vmatmul.mubr.msk.bf16.gmra.mrb[60].mxu1 %vm628_vm2, %v2504_v4 }
 0x247   :  { %6974 = vmatmul.mubr.msk.bf16.gmra.mrb[48].mxu0 %vm628_vm2, %v12284_v49 }
 0x248   :  { %6977 = vmatprep.mubr.msk.bf16.mxu0 %vm628_vm2, %v12285_v28 }
 0x24f   :  { %6978 = vmatmul.mubr.msk.bf16.gmra.mrb[52].mxu0 %vm628_vm2, %v12286_v1 }
 0x250   :  { %6981 = vmatprep.mubr.msk.bf16.mxu0 %vm628_vm2, %v12287_v34 }
 0x257   :  { %6982 = vmatmul.mubr.msk.bf16.gmra.mrb[56].mxu0 %vm628_vm2, %v12288_v15 }
 0x258   :  { %6985 = vmatprep.mubr.msk.bf16.mxu0 %vm628_vm2, %v12289_v14 }
 0x25f   :  { %6986 = vmatmul.mubr.msk.bf16.gmra.mrb[60].mxu0 %vm628_vm2, %v4016_v54 }
 0x26f   :  { %v6597_v31 = vpop.f32.mrb[0].mxu1 }
 0x270   :  { %v2164_v32 = vpop.f32.mrb[1].mxu1 }
 0x271   :  { %v6598_v61 = vpop.f32.mrb[2].mxu1 }
 0x272   :  { %v2167_v12 = vpop.f32.mrb[3].mxu1 }
 0x277   :  { %v9621_v17 = vpop.f32.mrb[4].mxu1 }
 0x278   :  { %v9623_v11 = vpop.f32.mrb[5].mxu1 }
 0x279   :  { %v9625_v0 = vpop.f32.mrb[6].mxu1 }
 0x27a   :  { %v9627_v57 = vpop.f32.mrb[7].mxu1 }
 0x27f   :  { %v9629_v43 = vpop.f32.mrb[8].mxu1 }
 0x280   :  { %v9631_v9 = vpop.f32.mrb[9].mxu1 }
 0x281   :  { %v9633_v41 = vpop.f32.mrb[10].mxu1 }
 0x282   :  { %v9635_v45 = vpop.f32.mrb[11].mxu1 }
 0x287   :  { %v9637_v7 = vpop.f32.mrb[12].mxu1 }
 0x288   :  { %v9639_v59 = vpop.f32.mrb[13].mxu1 }
 0x289   :  { %v9641_v60 = vpop.f32.mrb[14].mxu1 }
 0x28a   :  { %v9643_v29 = vpop.f32.mrb[15].mxu1 }
 0x28f   :  { %v9645_v47 = vpop.f32.mrb[16].mxu1 }
 0x290   :  { %v9647_v44 = vpop.f32.mrb[17].mxu1 }
 0x291   :  { %v9649_v19 = vpop.f32.mrb[18].mxu1 }
 0x292   :  { %v9651_v53 = vpop.f32.mrb[19].mxu1 }
 0x297   :  { %v9653_v62 = vpop.f32.mrb[20].mxu1 }
 0x298   :  { %v9655_v10 = vpop.f32.mrb[21].mxu1 }
 0x299   :  { %v9657_v36 = vpop.f32.mrb[22].mxu1 }
 0x29a   :  { %v9659_v23 = vpop.f32.mrb[23].mxu1 }
 0x29f   :  { %v9661_v63 = vpop.f32.mrb[24].mxu1 }
 0x2a0   :  { %v9663_v22 = vpop.f32.mrb[25].mxu1 }
 0x2a1   :  { %v9665_v26 = vpop.f32.mrb[26].mxu1 }
 0x2a2   :  { %v9667_v46 = vpop.f32.mrb[27].mxu1 }
 0x2a7   :  { %v9669_v30 = vpop.f32.mrb[28].mxu1 }
 0x2a8   :  { %v9671_v18 = vpop.f32.mrb[29].mxu1 }
 0x2a9   :  { %v9673_v58 = vpop.f32.mrb[30].mxu1 }
 0x2aa   :  { %v9675_v37 = vpop.f32.mrb[31].mxu1 }
 0x2af   :  { %v9677_v24 = vpop.f32.mrb[32].mxu1 }
 0x2b0   :  { %v9679_v2 = vpop.f32.mrb[33].mxu1 }
 0x2b1   :  { %v9688_v55 = vpop.f32.mrb[34].mxu1 }
 0x2b2   :  { %v9692_v51 = vpop.f32.mrb[35].mxu1 }
 0x2b7   :  { %v9696_v6 = vpop.f32.mrb[36].mxu1 }
 0x2b8   :  { %v9698_v25 = vpop.f32.mrb[37].mxu1 }
 0x2b9   :  { %v9700_v4 = vpop.f32.mrb[38].mxu1 }
 0x2ba   :  { %v9702_v40 = vpop.f32.mrb[39].mxu1  ;;  %v6927_v13 = vpop.f32.mrb[0].mxu0 }
 0x2bb   :  { %v7053_v27 = vadd.f32 %v6927_v13, %v6597_v31  ;;  %v4062_v56 = vpop.f32.mrb[1].mxu0 }
 0x2bc   :  { %v7054_v54 = vadd.f32 %v4062_v56, %v2164_v32  ;;  %v6928_v50 = vpop.f32.mrb[2].mxu0 }
 0x2bd   :  { %v7055_v8 = vadd.f32 %v6928_v50, %v6598_v61  ;;  %v4065_v42 = vpop.f32.mrb[3].mxu0  ;;  %v9720_v16 = vadd.f32 %v7053_v27, %v9717_v38 }
 0x2be   :  { %v9723_v52 = vadd.f32 %v7054_v54, %v9717_v38  ;;  %v7056_v48 = vadd.f32 %v4065_v42, %v2167_v12 }
 0x2bf   :  { %v9727_v28 = vadd.f32 %v7055_v8, %v9717_v38  ;;  %v11918_v34 = vmax.f32 %v9720_v16, 0.0  ;;  %v4660_v8 = vld [vmem:[%s11752_s5 + $0x28] sm:$0xff] }
 0x2c0   :  { %v11927_v49 = vmax.f32 %v9723_v52, 0.0  ;;  %v9730_v1 = vadd.f32 %v7056_v48, %v9717_v38 }
 0x2c1   :  { %v11915_v12 = vmax.f32 %v9727_v28, 0.0  ;;  %v4520_v56 = vsel %vm4516_vm4, %v11918_v34, 0.0 }
 0x2c2   :  { %v11926_v15 = vmax.f32 %v9730_v1, 0.0  ;;  %v6931_v14 = vpop.f32.mrb[4].mxu0  ;;  %v4517_v61 = vsel %vm4516_vm4, %v11927_v49, 0.0 }
 0x2c3   :  { %v7057_v31 = vadd.f32 %v6931_v14, %v9621_v17  ;;  %v4078_v32 = vpop.f32.mrb[5].mxu0  ;;  %v4522_v48 = vsel %vm4516_vm4, %v11915_v12, 0.0 }
 0x2c4   :  { %v4518_v39 = vsel %vm4516_vm4, %v11926_v15, 0.0  ;;  %v7058_v35 = vadd.f32 %v4078_v32, %v9623_v11  ;;  %v6932_v20 = vpop.f32.mrb[6].mxu0  ;;  %v4659_v11 = vld [vmem:[%s11752_s5 + $0x20] sm:$0xff] }
 0x2c5   :  { %v4519_v3 = vadd.f32 %v4518_v39, %v4517_v61  ;;  %v9744_v13 = vadd.f32 %v7057_v31, %v9717_v38  ;;  %v7059_v17 = vadd.f32 %v6932_v20, %v9625_v0  ;;  %v4081_v27 = vpop.f32.mrb[7].mxu0  ;;  %v9760_v0 = vpack.c.bf16 %v4660_v8, %v4659_v11  ;;  %v4661_v39 = vld [vmem:[%s11752_s5 + $0x30] sm:$0xff] }
 0x2c6   :  { %v9751_v54 = vadd.f32 %v7058_v35, %v9717_v38  ;;  %v7060_v50 = vadd.f32 %v4081_v27, %v9627_v57  ;;  %v4662_v35 = vld [vmem:[%s11752_s5 + $0x38] sm:$0xff]  ;;  %v11931_v8 = vmov 0.0  }
 0x2c7   :  { %v4521_v42 = vadd.f32 %v4520_v56, %v4519_v3  ;;  %v11916_v57 = vmax.f32 %v9744_v13, 0.0  ;;  %v9771_v61 = vadd.f32 %v7059_v17, %v9717_v38  ;;  %7035 = vmatpush3.bf16.msra.mxu1 %v9760_v0  ;;  %v9785_v17 = vpack.c.bf16 %v4662_v35, %v4661_v39  ;;  %7005 = vmatprep.mubr.msk.f32.mxu1 %vm7672_vm5, %v11931_v8 }
 0x2c8   :  { %v11914_v14 = vmax.f32 %v9751_v54, 0.0  ;;  %v9767_v31 = vadd.f32 %v7060_v50, %v9717_v38  ;;  %7036 = vmatprep.subr.bf16.mxu1 %v11929_v33 }
 0x2c9   :  { %v4523_v32 = vadd.f32 %v4522_v48, %v4521_v42  ;;  %12290 = vst [vmem:[#allocation2_spill] sm:$0xff] %v9771_v61 }
 0x2ca   :  { %v4524_v20 = vsel %vm4516_vm4, %v11914_v14, 0.0  ;;  %v11917_v3 = vmax.f32 %v9767_v31, 0.0  ;;  %v6935_v27 = vpop.f32.mrb[8].mxu0 }
 0x2cb   :  { %v4525_v56 = vadd.f32 %v4524_v20, %v4523_v32  ;;  %v7061_v50 = vadd.f32 %v6935_v27, %v9629_v43  ;;  %v4094_v11 = vpop.f32.mrb[9].mxu0  ;;  %7038 = vmatpush3.bf16.msra.mxu1 %v9785_v17  ;;  %v4528_v43 = vsel %vm4516_vm4, %v11916_v57, 0.0  ;;  %v11925_v32 = vmax.f32 %v9771_v61, 0.0 }
 0x2cc   :  { %v4526_v42 = vsel %vm4516_vm4, %v11917_v3, 0.0  ;;  %v7062_v48 = vadd.f32 %v4094_v11, %v9631_v9  ;;  %v6936_v14 = vpop.f32.mrb[10].mxu0  ;;  %7039 = vmatprep.subr.bf16.mxu1 %v11929_v33 }
 0x2cd   :  { %v4527_v12 = vadd.f32 %v4526_v42, %v4525_v56  ;;  %v7063_v39 = vadd.f32 %v6936_v14, %v9633_v41  ;;  %v4097_v35 = vpop.f32.mrb[11].mxu0  ;;  %v4530_v14 = vsel %vm4516_vm4, %v11925_v32, 0.0  ;;  %v9820_v34 = vadd.f32 %v7061_v50, %v9717_v38 }
 0x2ce   :  { %v9801_v20 = vadd.f32 %v7062_v48, %v9717_v38  ;;  %v7064_v27 = vadd.f32 %v4097_v35, %v9635_v45 }
 0x2cf   :  { %v4529_v9 = vadd.f32 %v4528_v43, %v4527_v12  ;;  %12293 = vst [vmem:[#allocation18_spill] sm:$0xff] %v9820_v34 }
 0x2d0   :  { %12291 = vst [vmem:[#allocation4_spill] sm:$0xff] %v9801_v20  ;;  %v11919_v56 = vmax.f32 %v9801_v20, 0.0  ;;  %v9807_v41 = vadd.f32 %v7064_v27, %v9717_v38 }
 0x2d1   :  { %v4531_v42 = vadd.f32 %v4530_v14, %v4529_v9 }
 0x2d2   :  { %12292 = vst [vmem:[#allocation15_spill] sm:$0xff] %v9807_v41  ;;  %v6939_v11 = vpop.f32.mrb[12].mxu0  ;;  %v4532_v45 = vsel %vm4516_vm4, %v11919_v56, 0.0  ;;  %v11920_v12 = vmax.f32 %v9807_v41, 0.0  ;;  %v9828_v56 = vadd.f32 %v7063_v39, %v9717_v38 }
 0x2d3   :  { %v7065_v57 = vadd.f32 %v6939_v11, %v9637_v7  ;;  %v4110_v48 = vpop.f32.mrb[13].mxu0  ;;  %v4533_v14 = vadd.f32 %v4532_v45, %v4531_v42  ;;  %v11921_v11 = vmax.f32 %v9820_v34, 0.0 }
 0x2d4   :  { %v7066_v35 = vadd.f32 %v4110_v48, %v9639_v59  ;;  %v6940_v43 = vpop.f32.mrb[14].mxu0  ;;  %v4534_v7 = vsel %vm4516_vm4, %v11920_v12, 0.0  ;;  %12294 = vst [vmem:[#allocation29_spill] sm:$0xff] %v9828_v56  ;;  %v11922_v12 = vmax.f32 %v9828_v56, 0.0 }
 0x2d5   :  { %v7067_v27 = vadd.f32 %v6940_v43, %v9641_v60  ;;  %v4113_v3 = vpop.f32.mrb[15].mxu0  ;;  %v4535_v48 = vadd.f32 %v4534_v7, %v4533_v14  ;;  %v4536_v39 = vsel %vm4516_vm4, %v11921_v11, 0.0 }
 0x2d6   :  { %v7068_v9 = vadd.f32 %v4113_v3, %v9643_v29  ;;  %v9832_v50 = vadd.f32 %v7066_v35, %v9717_v38 }
 0x2d8   :  { %12295 = vst [vmem:[#allocation38_spill] sm:$0xff] %v9832_v50  ;;  %v11923_v7 = vmax.f32 %v9832_v50, 0.0  ;;  %v9845_v35 = vadd.f32 %v7068_v9, %v9717_v38 }
 0x2da   :  { %v6943_v59 = vpop.f32.mrb[16].mxu0  ;;  %12296 = vst [vmem:[#allocation45_spill] sm:$0xff] %v9845_v35 }
 0x2db   :  { %v7069_v60 = vadd.f32 %v6943_v59, %v9645_v47  ;;  %v4126_v43 = vpop.f32.mrb[17].mxu0  ;;  %v4537_v47 = vadd.f32 %v4536_v39, %v4535_v48  ;;  %v11924_v48 = vmax.f32 %v9845_v35, 0.0 }
 0x2dc   :  { %v7070_v29 = vadd.f32 %v4126_v43, %v9647_v44  ;;  %v6944_v3 = vpop.f32.mrb[18].mxu0  ;;  %v4538_v44 = vsel %vm4516_vm4, %v11922_v12, 0.0  ;;  %v9862_v12 = vadd.f32 %v7065_v57, %v9717_v38 }
 0x2dd   :  { %v9836_v42 = vadd.f32 %v6944_v3, %v9649_v19  ;;  %v4129_v45 = vpop.f32.mrb[19].mxu0  ;;  %v4539_v59 = vadd.f32 %v4538_v44, %v4537_v47 }
 0x2de   :  { %v7072_v14 = vadd.f32 %v4129_v45, %v9651_v53  ;;  %v4540_v53 = vsel %vm4516_vm4, %v11923_v7, 0.0  ;;  %12297 = vst [vmem:[#allocation46_spill] sm:$0xff] %v9862_v12 }
 0x2df   :  { %v4541_v47 = vadd.f32 %v4540_v53, %v4539_v59  ;;  %v9886_v53 = vadd.f32 %v7070_v29, %v9717_v38 }
 0x2e1   :  { %12299 = vst [vmem:[#allocation5_spill] sm:$0xff] %v9886_v53 }
 0x2e2   :  { %v6947_v19 = vpop.f32.mrb[20].mxu0 }
 0x2e3   :  { %v9851_v43 = vadd.f32 %v6947_v19, %v9653_v62  ;;  %v4142_v3 = vpop.f32.mrb[21].mxu0  ;;  %v4542_v19 = vsel %vm4516_vm4, %v11924_v48, 0.0 }
 0x2e4   :  { %v7074_v45 = vadd.f32 %v4142_v3, %v9655_v10  ;;  %v6948_v9 = vpop.f32.mrb[22].mxu0  ;;  %v9878_v3 = vadd.f32 %v7067_v27, %v9717_v38 }
 0x2e5   :  { %v9859_v39 = vadd.f32 %v6948_v9, %v9657_v36  ;;  %v4145_v11 = vpop.f32.mrb[23].mxu0  ;;  %v11928_v36 = vmax.f32 %v9862_v12, 0.0 }
 0x2e6   :  { %v9865_v62 = vadd.f32 %v4145_v11, %v9659_v23  ;;  %12298 = vst [vmem:[#allocation19_spill] sm:$0xff] %v9878_v3  ;;  %v4543_v23 = vadd.f32 %v4542_v19, %v4541_v47  ;;  %v11933_v47 = vmax.f32 %v9878_v3, 0.0 }
 0x2e7   :  { %v4544_v49 = vsel %vm4516_vm4, %v11928_v36, 0.0 }
 0x2e8   :  { %v4545_v19 = vadd.f32 %v4544_v49, %v4543_v23 }
 0x2ea   :  { %v6951_v57 = vpop.f32.mrb[24].mxu0 }
 0x2eb   :  { %v9883_v11 = vadd.f32 %v6951_v57, %v9661_v63  ;;  %v4158_v59 = vpop.f32.mrb[25].mxu0  ;;  %v9905_v57 = vadd.f32 %v7072_v14, %v9717_v38 }
 0x2ec   :  { %v9889_v48 = vadd.f32 %v4158_v59, %v9663_v22  ;;  %v6952_v32 = vpop.f32.mrb[26].mxu0  ;;  %v11935_v22 = vmax.f32 %v9886_v53, 0.0  ;;  %v4546_v59 = vsel %vm4516_vm4, %v11933_v47, 0.0  ;;  %v9927_v47 = vadd.f32 %v7069_v60, %v9717_v38 }
 0x2ed   :  { %v9892_v15 = vadd.f32 %v6952_v32, %v9665_v26  ;;  %v4161_v27 = vpop.f32.mrb[27].mxu0  ;;  %12300 = vst [vmem:[#allocation6_spill] sm:$0xff] %v9905_v57 }
 0x2ee   :  { %v9899_v63 = vadd.f32 %v4161_v27, %v9667_v46  ;;  %v4547_v46 = vadd.f32 %v4546_v59, %v4545_v19  ;;  %v4548_v14 = vsel %vm4516_vm4, %v11935_v22, 0.0  ;;  %v11936_v27 = vmax.f32 %v9905_v57, 0.0  ;;  %12301 = vst [vmem:[#allocation7_spill] sm:$0xff] %v9927_v47 }
 0x2ef   :  { %v9867_v44 = vpop.f32.mrb[40].mxu1 }
 0x2f0   :  { %v9872_v7 = vpop.f32.mrb[41].mxu1  ;;  %v4550_v22 = vsel %vm4516_vm4, %v11936_v27, 0.0 }
 0x2f1   :  { %v9874_v10 = vpop.f32.mrb[42].mxu1 }
 0x2f2   :  { %v9880_v9 = vpop.f32.mrb[43].mxu1  ;;  %v6955_v36 = vpop.f32.mrb[28].mxu0 }
 0x2f3   :  { %v9917_v49 = vadd.f32 %v6955_v36, %v9669_v30  ;;  %v4174_v23 = vpop.f32.mrb[29].mxu0  ;;  %v4549_v36 = vadd.f32 %v4548_v14, %v4547_v46  ;;  %v9952_v14 = vadd.f32 %v7074_v45, %v9717_v38 }
 0x2f4   :  { %v9924_v8 = vadd.f32 %v4174_v23, %v9671_v18  ;;  %v6956_v3 = vpop.f32.mrb[30].mxu0  ;;  %v11942_v23 = vmax.f32 %v9927_v47, 0.0 }
 0x2f5   :  { %v9930_v12 = vadd.f32 %v6956_v3, %v9673_v58  ;;  %v4177_v19 = vpop.f32.mrb[31].mxu0  ;;  %v9947_v58 = vadd.f32 %v9836_v42, %v9717_v38  ;;  %v4551_v46 = vadd.f32 %v4550_v22, %v4549_v36  ;;  %12303 = vst [vmem:[#allocation9_spill] sm:$0xff] %v9952_v14 }
 0x2f6   :  { %v9933_v30 = vadd.f32 %v4177_v19, %v9675_v37  ;;  %v4552_v35 = vsel %vm4516_vm4, %v11942_v23, 0.0 }
 0x2f7   :  { %v9901_v29 = vpop.f32.mrb[44].mxu1  ;;  %12302 = vst [vmem:[#allocation8_spill] sm:$0xff] %v9947_v58  ;;  %v11946_v56 = vmax.f32 %v9947_v58, 0.0  ;;  %v4553_v36 = vadd.f32 %v4552_v35, %v4551_v46 }
 0x2f8   :  { %v9907_v26 = vpop.f32.mrb[45].mxu1 }
 0x2f9   :  { %v9909_v32 = vpop.f32.mrb[46].mxu1 }
 0x2fa   :  { %v9914_v33 = vpop.f32.mrb[47].mxu1  ;;  %v6959_v3 = vpop.f32.mrb[32].mxu0 }
 0x2fb   :  { %v7085_v19 = vadd.f32 %v6959_v3, %v9677_v24  ;;  %v4190_v27 = vpop.f32.mrb[33].mxu0 }
 0x2fc   :  { %v7086_v57 = vadd.f32 %v4190_v27, %v9679_v2  ;;  %v6960_v53 = vpop.f32.mrb[34].mxu0  ;;  %v11948_v2 = vmax.f32 %v9952_v14, 0.0  ;;  %v9971_v27 = vadd.f32 %v9865_v62, %v9717_v38 }
 0x2fd   :  { %v7087_v42 = vadd.f32 %v6960_v53, %v9688_v55  ;;  %v4193_v50 = vpop.f32.mrb[35].mxu0  ;;  %v9962_v22 = vadd.f32 %v7085_v19, %v9717_v38 }
 0x2fe   :  { %v9965_v45 = vadd.f32 %v7086_v57, %v9717_v38  ;;  %v7088_v24 = vadd.f32 %v4193_v50, %v9692_v51  ;;  %12304 = vst [vmem:[#allocation10_spill] sm:$0xff] %v9971_v27  ;;  %v4554_v50 = vsel %vm4516_vm4, %v11946_v56, 0.0 }
 0x2ff   :  { %v9935_v59 = vpop.f32.mrb[48].mxu1  ;;  %v9977_v53 = vadd.f32 %v7087_v42, %v9717_v38  ;;  %v4555_v42 = vadd.f32 %v4554_v50, %v4553_v36  ;;  %v12308_v14 = vmax.f32 %v9962_v22, 0.0 }
 0x300   :  { %v9940_v18 = vpop.f32.mrb[49].mxu1  ;;  %v9980_v19 = vadd.f32 %v7088_v24, %v9717_v38  ;;  %v4556_v24 = vsel %vm4516_vm4, %v11948_v2, 0.0  ;;  %v12306_v58 = vmax.f32 %v9965_v45, 0.0  ;;  %v10008_v2 = vadd.f32 %v9851_v43, %v9717_v38 }
 0x301   :  { %v9943_v60 = vpop.f32.mrb[50].mxu1  ;;  %12305 = vst [vmem:[#allocation11_spill] sm:$0xff] %v9977_v53  ;;  %v12311_v43 = vmax.f32 %v9971_v27, 0.0 }
 0x302   :  { %v9949_v37 = vpop.f32.mrb[51].mxu1  ;;  %v11950_v62 = vmax.f32 %v9980_v19, 0.0  ;;  %v6963_v46 = vpop.f32.mrb[36].mxu0  ;;  %v4586_v56 = vsel %vm4516_vm4, %v12306_v58, 0.0  ;;  %12307 = vst [vmem:[#allocation12_spill] sm:$0xff] %v10008_v2  ;;  %v4589_v58 = vsel %vm4516_vm4, %v12308_v14, 0.0 }
 0x303   :  { %v7089_v47 = vadd.f32 %v6963_v46, %v9696_v6  ;;  %v4206_v34 = vpop.f32.mrb[37].mxu0  ;;  %v12315_v61 = vmax.f32 %v10008_v2, 0.0 }
 0x304   :  { %v4587_v41 = vsel %vm4516_vm4, %v11950_v62, 0.0  ;;  %v7090_v36 = vadd.f32 %v4206_v34, %v9698_v25  ;;  %v6964_v50 = vpop.f32.mrb[38].mxu0  ;;  %v4557_v34 = vadd.f32 %v4556_v24, %v4555_v42  ;;  %v10054_v42 = vadd.f32 %v9889_v48, %v9717_v38 }
 0x305   :  { %v4588_v55 = vadd.f32 %v4587_v41, %v4586_v56  ;;  %v7091_v6 = vadd.f32 %v6964_v50, %v9700_v4  ;;  %v4209_v46 = vpop.f32.mrb[39].mxu0  ;;  %v10015_v35 = vadd.f32 %v7089_v47, %v9717_v38  ;;  %v4558_v56 = vsel %vm4516_vm4, %v12311_v43, 0.0 }
 0x306   :  { %v10018_v62 = vadd.f32 %v7090_v36, %v9717_v38  ;;  %v7092_v25 = vadd.f32 %v4209_v46, %v9702_v40  ;;  %v12312_v50 = vmax.f32 %v9977_v53, 0.0  ;;  %v4559_v27 = vadd.f32 %v4558_v56, %v4557_v34 }
 0x307   :  { %v9973_v3 = vpop.f32.mrb[52].mxu1  ;;  %12309 = vst [vmem:[#allocation16_spill] sm:$0xff] %v10015_v35  ;;  %v4590_v41 = vadd.f32 %v4589_v58, %v4588_v55  ;;  %v10031_v20 = vadd.f32 %v7091_v6, %v9717_v38  ;;  %v10041_v55 = vadd.f32 %v9859_v39, %v9717_v38  ;;  %v4560_v34 = vsel %vm4516_vm4, %v12315_v61, 0.0 }
 0x308   :  { %v9982_v57 = vpop.f32.mrb[53].mxu1  ;;  %12310 = vst [vmem:[#allocation20_spill] sm:$0xff] %v10018_v62  ;;  %v4591_v14 = vsel %vm4516_vm4, %v12312_v50, 0.0  ;;  %v11953_v47 = vmax.f32 %v10018_v62, 0.0  ;;  %v10034_v36 = vadd.f32 %v7092_v25, %v9717_v38 }
 0x309   :  { %v9984_v51 = vpop.f32.mrb[54].mxu1  ;;  %12313 = vst [vmem:[#allocation23_spill] sm:$0xff] %v10031_v20  ;;  %12314 = vst [vmem:[#allocation37_spill] sm:$0xff] %v10041_v55  ;;  %v4592_v24 = vadd.f32 %v4591_v14, %v4590_v41  ;;  %v11960_v48 = vmax.f32 %v10041_v55, 0.0 }
 0x30a   :  { %v9991_v23 = vpop.f32.mrb[55].mxu1  ;;  %v4593_v6 = vsel %vm4516_vm4, %v11953_v47, 0.0  ;;  %v11957_v25 = vmax.f32 %v10034_v36, 0.0  ;;  %v6967_v43 = vpop.f32.mrb[40].mxu0 }
 0x30b   :  { %v4594_v39 = vadd.f32 %v4593_v6, %v4592_v24  ;;  %v7093_v41 = vadd.f32 %v6967_v43, %v9867_v44  ;;  %v4222_v14 = vpop.f32.mrb[41].mxu0  ;;  %v12316_v6 = vmax.f32 %v10015_v35, 0.0 }
 0x30c   :  { %v4595_v47 = vsel %vm4516_vm4, %v11957_v25, 0.0  ;;  %v7094_v62 = vadd.f32 %v4222_v14, %v9872_v7  ;;  %v6968_v53 = vpop.f32.mrb[42].mxu0  ;;  %v4561_v25 = vadd.f32 %v4560_v34, %v4559_v27 }
 0x30d   :  { %v4596_v56 = vadd.f32 %v4595_v47, %v4594_v39  ;;  %v7095_v24 = vadd.f32 %v6968_v53, %v9874_v10  ;;  %v4225_v44 = vpop.f32.mrb[43].mxu0  ;;  %v4597_v43 = vsel %vm4516_vm4, %v12316_v6, 0.0  ;;  %v10071_v58 = vadd.f32 %v7093_v41, %v9717_v38 }
 0x30e   :  { %v10074_v7 = vadd.f32 %v7094_v62, %v9717_v38  ;;  %v7096_v14 = vadd.f32 %v4225_v44, %v9880_v9  ;;  %v10080_v47 = vadd.f32 %v9899_v63, %v9717_v38  ;;  %v12318_v39 = vmax.f32 %v10031_v20, 0.0 }
 0x30f   :  { %v10024_v4 = vpop.f32.mrb[56].mxu1  ;;  %v4598_v10 = vadd.f32 %v4597_v43, %v4596_v56  ;;  %v10089_v62 = vadd.f32 %v7095_v24, %v9717_v38  ;;  %v4562_v56 = vsel %vm4516_vm4, %v11960_v48, 0.0  ;;  %v12319_v48 = vmax.f32 %v10054_v42, 0.0 }
 0x310   :  { %v10036_v40 = vpop.f32.mrb[57].mxu1  ;;  %12317 = vst [vmem:[#allocation24_spill] sm:$0xff] %v10074_v7  ;;  %v4599_v41 = vsel %vm4516_vm4, %v12318_v39, 0.0  ;;  %v11962_v6 = vmax.f32 %v10074_v7, 0.0  ;;  %v10092_v9 = vadd.f32 %v7096_v14, %v9717_v38  ;;  %v4563_v61 = vadd.f32 %v4562_v56, %v4561_v25 }
 0x311   :  { %v10043_v46 = vpop.f32.mrb[58].mxu1  ;;  %v4600_v34 = vadd.f32 %v4599_v41, %v4598_v10  ;;  %v11966_v10 = vmax.f32 %v10080_v47, 0.0  ;;  %v4564_v44 = vsel %vm4516_vm4, %v12319_v48, 0.0  ;;  %v11968_v7 = vmax.f32 %v10089_v62, 0.0 }
 0x312   :  { %v10050_v50 = vpop.f32.mrb[59].mxu1  ;;  %v4601_v43 = vsel %vm4516_vm4, %v11962_v6, 0.0  ;;  %v11965_v24 = vmax.f32 %v10092_v9, 0.0  ;;  %v6971_v39 = vpop.f32.mrb[44].mxu0  ;;  %v10120_v25 = vadd.f32 %v9883_v11, %v9717_v38 }
 0x313   :  { %v4602_v41 = vadd.f32 %v4601_v43, %v4600_v34  ;;  %v7097_v2 = vadd.f32 %v6971_v39, %v9901_v29  ;;  %v4238_v55 = vpop.f32.mrb[45].mxu0  ;;  %v12320_v43 = vmax.f32 %v10071_v58, 0.0  ;;  %v4566_v11 = vsel %vm4516_vm4, %v11966_v10, 0.0 }
 0x314   :  { %v4603_v6 = vsel %vm4516_vm4, %v11965_v24, 0.0  ;;  %v7098_v20 = vadd.f32 %v4238_v55, %v9907_v26  ;;  %v6972_v35 = vpop.f32.mrb[46].mxu0  ;;  %v4565_v55 = vadd.f32 %v4564_v44, %v4563_v61 }
 0x315   :  { %v4604_v34 = vadd.f32 %v4603_v6, %v4602_v41  ;;  %v7099_v29 = vadd.f32 %v6972_v35, %v9909_v32  ;;  %v4241_v56 = vpop.f32.mrb[47].mxu0  ;;  %v4605_v48 = vsel %vm4516_vm4, %v12320_v43, 0.0  ;;  %v10127_v39 = vadd.f32 %v7097_v2, %v9717_v38 }
 0x316   :  { %v10130_v24 = vadd.f32 %v7098_v20, %v9717_v38  ;;  %v7100_v26 = vadd.f32 %v4241_v56, %v9914_v33  ;;  %v4607_v32 = vsel %vm4516_vm4, %v11968_v7, 0.0  ;;  %v11969_v33 = vmax.f32 %v10120_v25, 0.0 }
 0x317   :  { %v10082_v53 = vpop.f32.mrb[60].mxu1  ;;  %v4606_v6 = vadd.f32 %v4605_v48, %v4604_v34  ;;  %v10141_v2 = vadd.f32 %v7099_v29, %v9717_v38  ;;  %v10154_v43 = vadd.f32 %v9892_v15, %v9717_v38  ;;  %v4567_v29 = vadd.f32 %v4566_v11, %v4565_v55 }
 0x318   :  { %v10094_v27 = vpop.f32.mrb[61].mxu1  ;;  %v11967_v35 = vmax.f32 %v10130_v24, 0.0  ;;  %v10144_v20 = vadd.f32 %v7100_v26, %v9717_v38  ;;  %v4568_v44 = vsel %vm4516_vm4, %v11969_v33, 0.0  ;;  %v10167_v15 = vadd.f32 %v9924_v8, %v9717_v38 }
 0x319   :  { %v10096_v63 = vpop.f32.mrb[62].mxu1  ;;  %v4608_v61 = vadd.f32 %v4607_v32, %v4606_v6  ;;  %v11972_v6 = vmax.f32 %v10141_v2, 0.0  ;;  %v11973_v33 = vmax.f32 %v10154_v43, 0.0  ;;  %v4569_v8 = vadd.f32 %v4568_v44, %v4567_v29 }
 0x31a   :  { %v10106_v14 = vpop.f32.mrb[63].mxu1  ;;  %v4609_v41 = vsel %vm4516_vm4, %v11967_v35, 0.0  ;;  %v11970_v34 = vmax.f32 %v10144_v20, 0.0  ;;  %v6975_v56 = vpop.f32.mrb[48].mxu0 }
 0x31b   :  { %v4610_v48 = vadd.f32 %v4609_v41, %v4608_v61  ;;  %v7101_v26 = vadd.f32 %v6975_v56, %v9935_v59  ;;  %v4254_v10 = vpop.f32.mrb[49].mxu0  ;;  %v12321_v61 = vmax.f32 %v10127_v39, 0.0 }
 0x31c   :  { %v4611_v32 = vsel %vm4516_vm4, %v11970_v34, 0.0  ;;  %v7102_v35 = vadd.f32 %v4254_v10, %v9940_v18  ;;  %v6976_v7 = vpop.f32.mrb[50].mxu0 }
 0x31d   :  { %v4612_v55 = vadd.f32 %v4611_v32, %v4610_v48  ;;  %v7103_v59 = vadd.f32 %v6976_v7, %v9943_v60  ;;  %v4257_v11 = vpop.f32.mrb[51].mxu0  ;;  %v4613_v41 = vsel %vm4516_vm4, %v12321_v61, 0.0  ;;  %v10174_v56 = vadd.f32 %v7101_v26, %v9717_v38 }
 0x31e   :  { %v10177_v18 = vadd.f32 %v7102_v35, %v9717_v38  ;;  %v7104_v10 = vadd.f32 %v4257_v11, %v9949_v37  ;;  %v4615_v60 = vsel %vm4516_vm4, %v11972_v6, 0.0  ;;  %v11974_v35 = vmax.f32 %v10167_v15, 0.0 }
 0x31f   :  { %v4614_v34 = vadd.f32 %v4613_v41, %v4612_v55  ;;  %v10186_v48 = vadd.f32 %v7103_v59, %v9717_v38  ;;  %v10194_v37 = vadd.f32 %v9933_v30, %v9717_v38  ;;  %v4570_v11 = vsel %vm4516_vm4, %v11973_v33, 0.0 }
 0x320   :  { %v11971_v7 = vmax.f32 %v10177_v18, 0.0  ;;  %v10189_v26 = vadd.f32 %v7104_v10, %v9717_v38  ;;  %v4571_v30 = vadd.f32 %v4570_v11, %v4569_v8  ;;  %v4572_v29 = vsel %vm4516_vm4, %v11974_v35, 0.0 }
 0x321   :  { %12322 = vst [vmem:[#allocation25_spill] sm:$0xff] %v10194_v37  ;;  %v4616_v44 = vadd.f32 %v4615_v60, %v4614_v34  ;;  %v11977_v34 = vmax.f32 %v10186_v48, 0.0  ;;  %v11975_v33 = vmax.f32 %v10194_v37, 0.0  ;;  %v12323_v8 = vmax.f32 %v10174_v56, 0.0 }
 0x322   :  { %v4617_v32 = vsel %vm4516_vm4, %v11971_v7, 0.0  ;;  %v11978_v55 = vmax.f32 %v10189_v26, 0.0  ;;  %v6979_v59 = vpop.f32.mrb[52].mxu0  ;;  %v10227_v35 = vadd.f32 %v9917_v49, %v9717_v38 }
 0x323   :  { %v4618_v61 = vadd.f32 %v4617_v32, %v4616_v44  ;;  %v7105_v41 = vadd.f32 %v6979_v59, %v9973_v3  ;;  %v4270_v10 = vpop.f32.mrb[53].mxu0  ;;  %v4621_v59 = vsel %vm4516_vm4, %v12323_v8, 0.0  ;;  %v4574_v49 = vsel %vm4516_vm4, %v11975_v33, 0.0 }
 0x324   :  { %v4619_v60 = vsel %vm4516_vm4, %v11978_v55, 0.0  ;;  %v7106_v7 = vadd.f32 %v4270_v10, %v9982_v57  ;;  %v6980_v6 = vpop.f32.mrb[54].mxu0 }
 0x325   :  { %v4620_v44 = vadd.f32 %v4619_v60, %v4618_v61  ;;  %v7107_v3 = vadd.f32 %v6980_v6, %v9984_v51  ;;  %v4273_v32 = vpop.f32.mrb[55].mxu0  ;;  %v10219_v11 = vadd.f32 %v7105_v41, %v9717_v38  ;;  %v4623_v51 = vsel %vm4516_vm4, %v11977_v34, 0.0 }
 0x326   :  { %v10222_v57 = vadd.f32 %v7106_v7, %v9717_v38  ;;  %v7108_v10 = vadd.f32 %v4273_v32, %v9991_v23  ;;  %v4573_v7 = vadd.f32 %v4572_v29, %v4571_v30 }
 0x327   :  { %v4622_v61 = vadd.f32 %v4621_v59, %v4620_v44  ;;  %v10234_v60 = vadd.f32 %v7107_v3, %v9717_v38 }
 0x328   :  { %v11976_v6 = vmax.f32 %v10222_v57, 0.0  ;;  %v10237_v41 = vadd.f32 %v7108_v10, %v9717_v38  ;;  %v10250_v10 = vadd.f32 %v9930_v12, %v9717_v38  ;;  %v4575_v55 = vadd.f32 %v4574_v49, %v4573_v7 }
 0x329   :  { %v4624_v8 = vadd.f32 %v4623_v51, %v4622_v61  ;;  %v11980_v51 = vmax.f32 %v10234_v60, 0.0  ;;  %v12324_v12 = vmax.f32 %v10219_v11, 0.0 }
 0x32a   :  { %v4625_v44 = vsel %vm4516_vm4, %v11976_v6, 0.0  ;;  %v11984_v32 = vmax.f32 %v10237_v41, 0.0  ;;  %v6983_v59 = vpop.f32.mrb[56].mxu0 }
 0x32b   :  { %v4626_v29 = vadd.f32 %v4625_v44, %v4624_v8  ;;  %v7109_v30 = vadd.f32 %v6983_v59, %v10024_v4  ;;  %v4286_v61 = vpop.f32.mrb[57].mxu0  ;;  %v4629_v8 = vsel %vm4516_vm4, %v12324_v12, 0.0 }
 0x32c   :  { %v4627_v33 = vsel %vm4516_vm4, %v11984_v32, 0.0  ;;  %v7110_v6 = vadd.f32 %v4286_v61, %v10036_v40  ;;  %v6984_v34 = vpop.f32.mrb[58].mxu0  ;;  %v12325_v40 = vmax.f32 %v10227_v35, 0.0 }
 0x32d   :  { %v4628_v23 = vadd.f32 %v4627_v33, %v4626_v29  ;;  %v7111_v3 = vadd.f32 %v6984_v34, %v10043_v46  ;;  %v4289_v37 = vpop.f32.mrb[59].mxu0  ;;  %v10263_v4 = vadd.f32 %v7109_v30, %v9717_v38  ;;  %v11982_v33 = vmax.f32 %v10250_v10, 0.0 }
 0x32e   :  { %v10266_v44 = vadd.f32 %v7110_v6, %v9717_v38  ;;  %v7112_v59 = vadd.f32 %v4289_v37, %v10050_v50  ;;  %v4576_v7 = vsel %vm4516_vm4, %v12325_v40, 0.0  ;;  %v4631_v34 = vsel %vm4516_vm4, %v11980_v51, 0.0 }
 0x32f   :  { %v4630_v46 = vadd.f32 %v4629_v8, %v4628_v23  ;;  %v10278_v29 = vadd.f32 %v7111_v3, %v9717_v38  ;;  %v4577_v50 = vadd.f32 %v4576_v7, %v4575_v55  ;;  %v11987_v30 = vmax.f32 %v10263_v4, 0.0 }
 0x330   :  { %v11981_v49 = vmax.f32 %v10266_v44, 0.0  ;;  %v10281_v6 = vadd.f32 %v7112_v59, %v9717_v38  ;;  %v4578_v3 = vsel %vm4516_vm4, %v11982_v33, 0.0 }
 0x331   :  { %v4632_v37 = vadd.f32 %v4631_v34, %v4630_v46  ;;  %v11986_v55 = vmax.f32 %v10278_v29, 0.0  ;;  %v4579_v34 = vadd.f32 %v4578_v3, %v4577_v50 }
 0x332   :  { %v4633_v23 = vsel %vm4516_vm4, %v11981_v49, 0.0  ;;  %v11983_v61 = vmax.f32 %v10281_v6, 0.0  ;;  %v6987_v12 = vpop.f32.mrb[60].mxu0 }
 0x333   :  { %v4634_v8 = vadd.f32 %v4633_v23, %v4632_v37  ;;  %v7113_v40 = vadd.f32 %v6987_v12, %v10082_v53  ;;  %v4302_v51 = vpop.f32.mrb[61].mxu0  ;;  %v4637_v53 = vsel %vm4516_vm4, %v11987_v30, 0.0 }
 0x334   :  { %v4635_v59 = vsel %vm4516_vm4, %v11983_v61, 0.0  ;;  %v7114_v7 = vadd.f32 %v4302_v51, %v10094_v27  ;;  %v6988_v46 = vpop.f32.mrb[62].mxu0  ;;  %v4639_v27 = vsel %vm4516_vm4, %v11986_v55, 0.0 }
 0x335   :  { %v4636_v49 = vadd.f32 %v4635_v59, %v4634_v8  ;;  %v7115_v37 = vadd.f32 %v6988_v46, %v10096_v63  ;;  %v4305_v23 = vpop.f32.mrb[63].mxu0  ;;  %v10302_v12 = vadd.f32 %v7113_v40, %v9717_v38  ;;  %v4580_v8 = vrot.slane %v4579_v34, 4 }
 0x336   :  { %v10305_v33 = vadd.f32 %v7114_v7, %v9717_v38  ;;  %v7116_v61 = vadd.f32 %v4305_v23, %v10106_v14 }
 0x337   :  { %v4638_v32 = vadd.f32 %v4637_v53, %v4636_v49  ;;  %v10313_v51 = vadd.f32 %v7115_v37, %v9717_v38  ;;  %v11991_v3 = vmax.f32 %v10302_v12, 0.0  ;;  %v4581_v37 = vadd.f32 %v4580_v8, %v4579_v34 }
 0x338   :  { %v11985_v63 = vmax.f32 %v10305_v33, 0.0  ;;  %v10316_v50 = vadd.f32 %v7116_v61, %v9717_v38 }
 0x339   :  { %v4640_v40 = vadd.f32 %v4639_v27, %v4638_v32  ;;  %v11990_v7 = vmax.f32 %v10313_v51, 0.0  ;;  %v4645_v32 = vsel %vm4516_vm4, %v11991_v3, 0.0  ;;  %v4582_v53 = vrot.slane %v4581_v37, 2 }
 0x33a   :  { %12326 = vst [vmem:[#allocation3_spill] sm:$0xff] %v10316_v50  ;;  %v4641_v14 = vsel %vm4516_vm4, %v11985_v63, 0.0  ;;  %v11989_v49 = vmax.f32 %v10316_v50, 0.0 }
 0x33b   :  { %v4642_v59 = vadd.f32 %v4641_v14, %v4640_v40  ;;  %v4647_v23 = vsel %vm4516_vm4, %v11990_v7, 0.0  ;;  %v4583_v14 = vadd.f32 %v4582_v53, %v4581_v37 }
 0x33c   :  { %v4643_v46 = vsel %vm4516_vm4, %v11989_v49, 0.0 }
 0x33d   :  { %v4644_v38 = vadd.f32 %v4643_v46, %v4642_v59  ;;  %v4584_v50 = vrot.slane %v4583_v14, 1  ;;  %v12327_v46 = vmov 0.0  }
 0x33f   :  { %v4646_v61 = vadd.f32 %v4645_v32, %v4644_v38  ;;  %v4585_v34 = vadd.f32 %v4584_v50, %v4583_v14  ;;  %v12328_v38 = vmov 0.0|0.0  }
 0x341   :  { %v4648_v27 = vadd.f32 %v4647_v23, %v4646_v61 }
 0x343   :  { %v4649_v40 = vrot.slane %v4648_v27, 4 }
 0x345   :  { %v4650_v63 = vadd.f32 %v4649_v40, %v4648_v27  ;;  %v12330_v40 = vmax.f32 %v9730_v1, 0.0 }
 0x347   :  { %v4651_v55 = vrot.slane %v4650_v63, 2 }
 0x349   :  { %v4652_v30 = vadd.f32 %v4651_v55, %v4650_v63  ;;  %v7674_v63 = vmov 1966171168  }
 0x34a   :  { %v4741_v50 = vunpack.c.l.s4 %v7674_v63 }
 0x34b   :  { %v4653_v49 = vrot.slane %v4652_v30, 1 }
 0x34d   :  { %v4654_v8 = vadd.f32 %v4653_v49, %v4652_v30  ;;  %v4742_v49 = vunpack.c.0.s8 %v4741_v50 }
 0x34f   :  { %v4666_v59 = vsel %vm4665_vm6, %v4654_v8, %v4585_v34  ;;  %v12331_v8 = vmax.f32 %v9720_v16, 0.0 }
 0x350   :  { %7006 = vmatmul.mubr.msk.f32.vlgmr.msra.gmra.mrb[64].mxu1 %vm4516_vm4, %v4666_v59 }
 0x351   :  { %7041 = vmatpush3.bf16.msra.mxu1 %v9690_v21  ;;  %7024 = vmatprep.mubr.msk.f32.mxu1 %vm7672_vm5, %v12327_v46  ;;  %v4743_v21 = vlaneseq  ;;  %v12332_v46 = vmax.f32 %v9727_v28, 0.0  ;;  %v12334_v28 = vmax.f32 %v9767_v31, 0.0 }
 0x352   :  { %7042 = vmatprep.subr.bf16.mxu1 %v12328_v38 }
 0x353   :  { %v4744_v37 = vshrl.u32 %v4743_v21, 7 }
 0x355   :  { %7044 = vmatpush3.bf16.msra.mxu1 %v9710_v5  ;;  %v10344_v32 = vsub.s32 %v4742_v49, %v4744_v37  ;;  %v10348_v23 = vsub.s32 0, %v4744_v37 }
 0x356   :  { %7045 = vmatprep.subr.bf16.mxu1 %v12328_v38 }
 0x359   :  { %7047 = vmatpush3.bf16.msra.mxu1 %v9760_v0 }
 0x35a   :  { %7048 = vmatprep.subr.bf16.mxu1 %v12328_v38 }
 0x35d   :  { %7050 = vmatpush3.bf16.msra.mxu1 %v9785_v17  ;;  %v12329_v17 = vmax.f32 %v9723_v52, 0.0 }
 0x423   :  { %v4735_v30 = vpop.f32.mrb[64].mxu1 }
 0x424   :  { %v7007_v55 = vpop.f32.mrb[65].mxu1  ;;  %v4746_v61 = vrot.slane %v4735_v30, %v10344_v32 }
 0x425   :  { %v12333_v55 = vmax.f32 %v9751_v54, 0.0  ;;  %v12335_v54 = vmax.f32 %v9965_v45, 0.0  ;;  %v12340_v45 = vmax.f32 %v9962_v22, 0.0 }
 0x426   :  { %v4754_v5 = vrot.slane %v4746_v61, %v10344_v32  ;;  %v4747_v53 = vcombine.high %v4746_v61, %v4746_v61 }
 0x428   :  { %v10351_v0 = vrot.slane %v4754_v5, %v10348_v23  ;;  %v4761_v34 = vrot.slane %v4747_v53, %v10344_v32  ;;  %v12337_v5 = vmax.f32 %v9980_v19, 0.0  ;;  %v12342_v19 = vld [vmem:[#allocation2_spill] sm:$0xff] }
 0x42a   :  { %v10356_v27 = vsub.f32 %v12329_v17, %v10351_v0  ;;  %v10361_v14 = vsub.f32 %v12330_v40, %v10351_v0  ;;  %v10367_v59 = vsub.f32 %v12331_v8, %v10351_v0  ;;  %v10372_v38 = vsub.f32 %v12332_v46, %v10351_v0 }
 0x42b   :  { %v10379_v30 = vrot.slane %v4761_v34, %v10348_v23  ;;  %v10384_v16 = vsub.f32 %v12333_v55, %v10351_v0  ;;  %v10391_v50 = vsub.f32 %v12334_v28, %v10351_v0  ;;  %v12339_v17 = vmax.f32 %v9744_v13, 0.0 }
 0x42c   :  { %v4836_v52 = vmul.f32 %v10356_v27, %v10356_v27  ;;  %v4837_v1 = vmul.f32 %v10361_v14, %v10361_v14  ;;  %v4838_v63 = vmul.f32 %v10367_v59, %v10367_v59  ;;  %v4839_v21 = vmul.f32 %v10372_v38, %v10372_v38 }
 0x42d   :  { %v10400_v61 = vsub.f32 %v12335_v54, %v10379_v30  ;;  %v10405_v53 = vsub.f32 %v12337_v5, %v10379_v30  ;;  %v10410_v40 = vsub.f32 %v12339_v17, %v10351_v0  ;;  %v4840_v34 = vmul.f32 %v10384_v16, %v10384_v16 }
 0x42e   :  { %v4900_v49 = vsel %vm4516_vm4, %v4836_v52, 0.0  ;;  %v4901_v37 = vsel %vm4516_vm4, %v4837_v1, 0.0  ;;  %v4903_v8 = vsel %vm4516_vm4, %v4838_v63, 0.0  ;;  %v10418_v46 = vsub.f32 %v12340_v45, %v10379_v30 }
 0x42f   :  { %12336 = vst [vmem:[#allocation30_spill] sm:$0xff] %v10400_v61  ;;  %12338 = vst [vmem:[#allocation31_spill] sm:$0xff] %v10405_v53  ;;  %v4902_v31 = vadd.f32 %v4901_v37, %v4900_v49  ;;  %v12343_v1 = vmax.f32 %v12342_v19, 0.0  ;;  %v4841_v13 = vmul.f32 %v10391_v50, %v10391_v50  ;;  %v4905_v28 = vsel %vm4516_vm4, %v4839_v21, 0.0  ;;  %v12345_v49 = vld [vmem:[#allocation11_spill] sm:$0xff]  ;;  %v12351_v19 = vld [vmem:[#allocation20_spill] sm:$0xff] }
 0x430   :  { %12341 = vst [vmem:[#allocation36_spill] sm:$0xff] %v10418_v46  ;;  %v12346_v37 = vmax.f32 %v12345_v49, 0.0  ;;  %v4868_v22 = vmul.f32 %v10400_v61, %v10400_v61  ;;  %v4869_v54 = vmul.f32 %v10405_v53, %v10405_v53  ;;  %v4842_v21 = vmul.f32 %v10410_v40, %v10410_v40 }
 0x431   :  { %v4904_v52 = vadd.f32 %v4903_v8, %v4902_v31  ;;  %v10423_v55 = vsub.f32 %v12343_v1, %v10351_v0  ;;  %v12348_v31 = vld [vmem:[#allocation4_spill] sm:$0xff]  ;;  %v4907_v45 = vsel %vm4516_vm4, %v4840_v34, 0.0  ;;  %v12352_v1 = vmax.f32 %v12351_v19, 0.0 }
 0x432   :  { %v10431_v63 = vsub.f32 %v12346_v37, %v10379_v30  ;;  %v12349_v17 = vmax.f32 %v12348_v31, 0.0  ;;  %v4870_v37 = vmul.f32 %v10418_v46, %v10418_v46  ;;  %v4909_v19 = vsel %vm4516_vm4, %v4841_v13, 0.0  ;;  %v12361_v13 = vld [vmem:[#allocation16_spill] sm:$0xff] }
 0x433   :  { %12344 = vst [vmem:[#allocation39_spill] sm:$0xff] %v10423_v55  ;;  %v4906_v5 = vadd.f32 %v4905_v28, %v4904_v52  ;;  %v10448_v49 = vsub.f32 %v12352_v1, %v10379_v30  ;;  %v12354_v52 = vld [vmem:[#allocation15_spill] sm:$0xff]  ;;  %v4843_v34 = vmul.f32 %v10423_v55, %v10423_v55  ;;  %v12362_v55 = vmax.f32 %v12361_v13, 0.0 }
 0x434   :  { %12347 = vst [vmem:[#allocation40_spill] sm:$0xff] %v10431_v63  ;;  %v10440_v8 = vsub.f32 %v12349_v17, %v10351_v0  ;;  %v12355_v28 = vmax.f32 %v12354_v52, 0.0  ;;  %v12357_v17 = vmax.f32 %v10034_v36, 0.0  ;;  %v4871_v1 = vmul.f32 %v10431_v63, %v10431_v63  ;;  %v12359_v52 = vld [vmem:[#allocation18_spill] sm:$0xff] }
 0x435   :  { %12353 = vst [vmem:[#allocation42_spill] sm:$0xff] %v10448_v49  ;;  %v4908_v7 = vadd.f32 %v4907_v45, %v4906_v5  ;;  %v4969_v5 = vsel %vm4516_vm4, %v4868_v22, 0.0  ;;  %v4970_v45 = vsel %vm4516_vm4, %v4869_v54, 0.0  ;;  %v10480_v63 = vsub.f32 %v12362_v55, %v10379_v30  ;;  %v12366_v55 = vld [vmem:[#allocation23_spill] sm:$0xff] }
 0x436   :  { %12350 = vst [vmem:[#allocation41_spill] sm:$0xff] %v10440_v8  ;;  %v10455_v31 = vsub.f32 %v12355_v28, %v10351_v0  ;;  %v10460_v3 = vsub.f32 %v12357_v17, %v10379_v30  ;;  %v12360_v28 = vmax.f32 %v12359_v52, 0.0  ;;  %v4844_v36 = vmul.f32 %v10440_v8, %v10440_v8 }
 0x437   :  { %v4910_v46 = vadd.f32 %v4909_v19, %v4908_v7  ;;  %v4911_v17 = vsel %vm4516_vm4, %v4842_v21, 0.0  ;;  %v4971_v61 = vadd.f32 %v4970_v45, %v4969_v5  ;;  %12363 = vst [vmem:[#allocation49_spill] sm:$0xff] %v10480_v63  ;;  %v4872_v7 = vmul.f32 %v10448_v49, %v10448_v49  ;;  %v12364_v19 = vld [vmem:[#allocation29_spill] sm:$0xff] }
 0x438   :  { %12356 = vst [vmem:[#allocation43_spill] sm:$0xff] %v10455_v31  ;;  %12358 = vst [vmem:[#allocation48_spill] sm:$0xff] %v10460_v3  ;;  %v10472_v53 = vsub.f32 %v12360_v28, %v10351_v0  ;;  %v4972_v54 = vsel %vm4516_vm4, %v4870_v37, 0.0  ;;  %v12365_v52 = vmax.f32 %v12364_v19, 0.0  ;;  %v4845_v21 = vmul.f32 %v10455_v31, %v10455_v31  ;;  %v12369_v19 = vld [vmem:[#allocation38_spill] sm:$0xff] }
 0x439   :  { %v4912_v22 = vadd.f32 %v4911_v17, %v4910_v46  ;;  %v4913_v5 = vsel %vm4516_vm4, %v4843_v34, 0.0  ;;  %v4973_v45 = vadd.f32 %v4972_v54, %v4971_v61  ;;  %v12367_v13 = vmax.f32 %v12366_v55, 0.0  ;;  %v12371_v55 = vld [vmem:[#allocation24_spill] sm:$0xff] }
 0x43a   :  { %v10488_v28 = vsub.f32 %v12365_v52, %v10351_v0  ;;  %v4873_v46 = vmul.f32 %v10460_v3, %v10460_v3  ;;  %v4974_v17 = vsel %vm4516_vm4, %v4871_v1, 0.0  ;;  %v12370_v52 = vmax.f32 %v12369_v19, 0.0  ;;  %v12374_v19 = vld [vmem:[#allocation45_spill] sm:$0xff] }
 0x43b   :  { %v10496_v8 = vsub.f32 %v12367_v13, %v10379_v30  ;;  %v4914_v37 = vadd.f32 %v4913_v5, %v4912_v22  ;;  %v4846_v34 = vmul.f32 %v10472_v53, %v10472_v53  ;;  %v4915_v61 = vsel %vm4516_vm4, %v4844_v36, 0.0 }
 0x43c   :  { %v10504_v49 = vsub.f32 %v12370_v52, %v10351_v0  ;;  %v4975_v54 = vadd.f32 %v4974_v17, %v4973_v45  ;;  %v12372_v13 = vmax.f32 %v12371_v55, 0.0  ;;  %v4874_v22 = vmul.f32 %v10480_v63, %v10480_v63 }
 0x43d   :  { %12368 = vst [vmem:[#allocation50_spill] sm:$0xff] %v10496_v8  ;;  %v4916_v1 = vadd.f32 %v4915_v61, %v4914_v37  ;;  %v4976_v5 = vsel %vm4516_vm4, %v4872_v7, 0.0  ;;  %v12375_v52 = vmax.f32 %v12374_v19, 0.0  ;;  %v4847_v36 = vmul.f32 %v10488_v28, %v10488_v28  ;;  %v12378_v19 = vld [vmem:[#allocation46_spill] sm:$0xff] }
 0x43e   :  { %v10512_v31 = vsub.f32 %v12372_v13, %v10379_v30  ;;  %v4917_v45 = vsel %vm4516_vm4, %v4845_v21, 0.0  ;;  %v4977_v17 = vadd.f32 %v4976_v5, %v4975_v54  ;;  %v12376_v55 = vmax.f32 %v10092_v9, 0.0 }
 0x43f   :  { %v10520_v3 = vsub.f32 %v12375_v52, %v10351_v0  ;;  %v4875_v37 = vmul.f32 %v10496_v8, %v10496_v8  ;;  %v4918_v7 = vadd.f32 %v4917_v45, %v4916_v1  ;;  %v4978_v61 = vsel %vm4516_vm4, %v4873_v46, 0.0 }
 0x440   :  { %12373 = vst [vmem:[#allocation51_spill] sm:$0xff] %v10512_v31  ;;  %v10528_v13 = vsub.f32 %v12376_v55, %v10379_v30  ;;  %v12379_v52 = vmax.f32 %v12378_v19, 0.0  ;;  %v4848_v21 = vmul.f32 %v10504_v49, %v10504_v49  ;;  %v4919_v54 = vsel %vm4516_vm4, %v4846_v34, 0.0  ;;  %v12382_v19 = vld [vmem:[#allocation19_spill] sm:$0xff] }
 0x441   :  { %v4979_v5 = vadd.f32 %v4978_v61, %v4977_v17  ;;  %v12380_v9 = vmax.f32 %v10071_v58, 0.0  ;;  %v4876_v1 = vmul.f32 %v10512_v31, %v10512_v31  ;;  %v4920_v46 = vadd.f32 %v4919_v54, %v4918_v7 }
 0x442   :  { %12377 = vst [vmem:[#allocation53_spill] sm:$0xff] %v10528_v13  ;;  %v10536_v63 = vsub.f32 %v12379_v52, %v10351_v0  ;;  %v4980_v45 = vsel %vm4516_vm4, %v4874_v22, 0.0  ;;  %v12383_v52 = vmax.f32 %v12382_v19, 0.0  ;;  %v4849_v34 = vmul.f32 %v10520_v3, %v10520_v3  ;;  %v12386_v19 = vld [vmem:[#allocation5_spill] sm:$0xff] }
 0x443   :  { %v10544_v55 = vsub.f32 %v12380_v9, %v10379_v30  ;;  %v4921_v17 = vsel %vm4516_vm4, %v4847_v36, 0.0  ;;  %v4981_v61 = vadd.f32 %v4980_v45, %v4979_v5  ;;  %v12384_v58 = vmax.f32 %v10089_v62, 0.0 }
 0x444   :  { %v10552_v8 = vsub.f32 %v12383_v52, %v10351_v0  ;;  %v4877_v7 = vmul.f32 %v10528_v13, %v10528_v13  ;;  %v4922_v22 = vadd.f32 %v4921_v17, %v4920_v46  ;;  %v4982_v54 = vsel %vm4516_vm4, %v4875_v37, 0.0 }
 0x445   :  { %12381 = vst [vmem:[#allocation21_spill] sm:$0xff] %v10544_v55  ;;  %v10560_v9 = vsub.f32 %v12384_v58, %v10379_v30  ;;  %v12387_v52 = vmax.f32 %v12386_v19, 0.0  ;;  %v4850_v36 = vmul.f32 %v10536_v63, %v10536_v63  ;;  %v4923_v5 = vsel %vm4516_vm4, %v4848_v21, 0.0  ;;  %v12390_v19 = vld [vmem:[#allocation6_spill] sm:$0xff] }
 0x446   :  { %v4983_v45 = vadd.f32 %v4982_v54, %v4981_v61  ;;  %v12388_v62 = vmax.f32 %v10130_v24, 0.0  ;;  %v4878_v46 = vmul.f32 %v10544_v55, %v10544_v55  ;;  %v4924_v37 = vadd.f32 %v4923_v5, %v4922_v22 }
 0x447   :  { %12385 = vst [vmem:[#allocation13_spill] sm:$0xff] %v10560_v9  ;;  %v10568_v31 = vsub.f32 %v12387_v52, %v10351_v0  ;;  %v4984_v17 = vsel %vm4516_vm4, %v4876_v1, 0.0  ;;  %v12391_v52 = vmax.f32 %v12390_v19, 0.0  ;;  %v4851_v21 = vmul.f32 %v10552_v8, %v10552_v8  ;;  %v12394_v19 = vld [vmem:[#allocation7_spill] sm:$0xff] }
 0x448   :  { %v10576_v58 = vsub.f32 %v12388_v62, %v10379_v30  ;;  %v4925_v61 = vsel %vm4516_vm4, %v4849_v34, 0.0  ;;  %v4985_v54 = vadd.f32 %v4984_v17, %v4983_v45  ;;  %v12392_v24 = vmax.f32 %v10144_v20, 0.0 }
 0x449   :  { %v10584_v13 = vsub.f32 %v12391_v52, %v10351_v0  ;;  %v4879_v22 = vmul.f32 %v10560_v9, %v10560_v9  ;;  %v4926_v1 = vadd.f32 %v4925_v61, %v4924_v37  ;;  %v4986_v5 = vsel %vm4516_vm4, %v4877_v7, 0.0 }
 0x44a   :  { %12389 = vst [vmem:[#allocation17_spill] sm:$0xff] %v10576_v58  ;;  %v10592_v62 = vsub.f32 %v12392_v24, %v10379_v30  ;;  %v12395_v52 = vmax.f32 %v12394_v19, 0.0  ;;  %v4852_v34 = vmul.f32 %v10568_v31, %v10568_v31  ;;  %v4927_v45 = vsel %vm4516_vm4, %v4850_v36, 0.0  ;;  %v12398_v19 = vld [vmem:[#allocation8_spill] sm:$0xff] }
 0x44b   :  { %v4987_v17 = vadd.f32 %v4986_v5, %v4985_v54  ;;  %v12396_v20 = vmax.f32 %v10127_v39, 0.0  ;;  %v4880_v37 = vmul.f32 %v10576_v58, %v10576_v58  ;;  %v4928_v7 = vadd.f32 %v4927_v45, %v4926_v1 }
 0x44c   :  { %12393 = vst [vmem:[#allocation32_spill] sm:$0xff] %v10592_v62  ;;  %v10600_v55 = vsub.f32 %v12395_v52, %v10351_v0  ;;  %v4988_v61 = vsel %vm4516_vm4, %v4878_v46, 0.0  ;;  %v12399_v52 = vmax.f32 %v12398_v19, 0.0  ;;  %v4853_v36 = vmul.f32 %v10584_v13, %v10584_v13  ;;  %v12402_v19 = vld [vmem:[#allocation9_spill] sm:$0xff] }
 0x44d   :  { %v10608_v24 = vsub.f32 %v12396_v20, %v10379_v30  ;;  %v4929_v54 = vsel %vm4516_vm4, %v4851_v21, 0.0  ;;  %v4989_v5 = vadd.f32 %v4988_v61, %v4987_v17  ;;  %v12400_v39 = vmax.f32 %v10141_v2, 0.0 }
 0x44e   :  { %v10616_v9 = vsub.f32 %v12399_v52, %v10351_v0  ;;  %v4881_v1 = vmul.f32 %v10592_v62, %v10592_v62  ;;  %v4930_v46 = vadd.f32 %v4929_v54, %v4928_v7  ;;  %v4990_v45 = vsel %vm4516_vm4, %v4879_v22, 0.0 }
 0x44f   :  { %12397 = vst [vmem:[#allocation47_spill] sm:$0xff] %v10608_v24  ;;  %v10624_v20 = vsub.f32 %v12400_v39, %v10379_v30  ;;  %v12403_v52 = vmax.f32 %v12402_v19, 0.0  ;;  %v4854_v21 = vmul.f32 %v10600_v55, %v10600_v55  ;;  %v4931_v17 = vsel %vm4516_vm4, %v4852_v34, 0.0  ;;  %v12405_v19 = vld [vmem:[#allocation10_spill] sm:$0xff] }
 0x450   :  { %v4991_v61 = vadd.f32 %v4990_v45, %v4989_v5  ;;  %v12404_v2 = vmax.f32 %v10177_v18, 0.0  ;;  %v4882_v7 = vmul.f32 %v10608_v24, %v10608_v24  ;;  %v4932_v22 = vadd.f32 %v4931_v17, %v4930_v46 }
 0x451   :  { %12401 = vst [vmem:[#allocation52_spill] sm:$0xff] %v10624_v20  ;;  %v10632_v58 = vsub.f32 %v12403_v52, %v10351_v0  ;;  %v4992_v54 = vsel %vm4516_vm4, %v4880_v37, 0.0  ;;  %v12406_v52 = vmax.f32 %v12405_v19, 0.0  ;;  %v4855_v34 = vmul.f32 %v10616_v9, %v10616_v9  ;;  %v12408_v19 = vld [vmem:[#allocation12_spill] sm:$0xff] }
 0x452   :  { %v10640_v39 = vsub.f32 %v12404_v2, %v10379_v30  ;;  %v4933_v5 = vsel %vm4516_vm4, %v4853_v36, 0.0  ;;  %v4993_v45 = vadd.f32 %v4992_v54, %v4991_v61  ;;  %v12407_v18 = vmax.f32 %v10189_v26, 0.0 }
 0x453   :  { %v10648_v62 = vsub.f32 %v12406_v52, %v10351_v0  ;;  %v4883_v46 = vmul.f32 %v10624_v20, %v10624_v20  ;;  %v4934_v37 = vadd.f32 %v4933_v5, %v4932_v22  ;;  %v4994_v17 = vsel %vm4516_vm4, %v4881_v1, 0.0 }
 0x454   :  { %v10656_v2 = vsub.f32 %v12407_v18, %v10379_v30  ;;  %v12409_v52 = vmax.f32 %v12408_v19, 0.0  ;;  %v4856_v36 = vmul.f32 %v10632_v58, %v10632_v58  ;;  %v4935_v61 = vsel %vm4516_vm4, %v4854_v21, 0.0  ;;  %v12411_v19 = vld [vmem:[#allocation37_spill] sm:$0xff] }
 0x455   :  { %v4995_v54 = vadd.f32 %v4994_v17, %v4993_v45  ;;  %v12410_v26 = vmax.f32 %v10174_v56, 0.0  ;;  %v4884_v22 = vmul.f32 %v10640_v39, %v10640_v39  ;;  %v4936_v1 = vadd.f32 %v4935_v61, %v4934_v37 }
 0x456   :  { %v10664_v24 = vsub.f32 %v12409_v52, %v10351_v0  ;;  %v4996_v5 = vsel %vm4516_vm4, %v4882_v7, 0.0  ;;  %v12412_v52 = vmax.f32 %v12411_v19, 0.0  ;;  %v4857_v21 = vmul.f32 %v10648_v62, %v10648_v62 }
 0x457   :  { %v10672_v18 = vsub.f32 %v12410_v26, %v10379_v30  ;;  %v4937_v45 = vsel %vm4516_vm4, %v4855_v34, 0.0  ;;  %v4997_v17 = vadd.f32 %v4996_v5, %v4995_v54  ;;  %v12413_v56 = vmax.f32 %v10186_v48, 0.0 }
 0x458   :  { %v10680_v20 = vsub.f32 %v12412_v52, %v10351_v0  ;;  %v4885_v37 = vmul.f32 %v10656_v2, %v10656_v2  ;;  %v4938_v7 = vadd.f32 %v4937_v45, %v4936_v1  ;;  %v4998_v61 = vsel %vm4516_vm4, %v4883_v46, 0.0 }
 0x459   :  { %v10688_v26 = vsub.f32 %v12413_v56, %v10379_v30  ;;  %v12414_v19 = vmax.f32 %v10054_v42, 0.0  ;;  %v4858_v34 = vmul.f32 %v10664_v24, %v10664_v24  ;;  %v4939_v54 = vsel %vm4516_vm4, %v4856_v36, 0.0 }
 0x45a   :  { %v4999_v5 = vadd.f32 %v4998_v61, %v4997_v17  ;;  %v12415_v48 = vmax.f32 %v10222_v57, 0.0  ;;  %v4886_v1 = vmul.f32 %v10672_v18, %v10672_v18  ;;  %v4940_v46 = vadd.f32 %v4939_v54, %v4938_v7 }
 0x45b   :  { %v10696_v52 = vsub.f32 %v12414_v19, %v10351_v0  ;;  %v5000_v45 = vsel %vm4516_vm4, %v4884_v22, 0.0  ;;  %v12416_v42 = vmax.f32 %v10080_v47, 0.0  ;;  %v4859_v36 = vmul.f32 %v10680_v20, %v10680_v20 }
 0x45c   :  { %v10704_v56 = vsub.f32 %v12415_v48, %v10379_v30  ;;  %v4941_v17 = vsel %vm4516_vm4, %v4857_v21, 0.0  ;;  %v5001_v61 = vadd.f32 %v5000_v45, %v4999_v5  ;;  %v12417_v57 = vmax.f32 %v10237_v41, 0.0 }
 0x45d   :  { %v10712_v19 = vsub.f32 %v12416_v42, %v10351_v0  ;;  %v4887_v7 = vmul.f32 %v10688_v26, %v10688_v26  ;;  %v4942_v22 = vadd.f32 %v4941_v17, %v4940_v46  ;;  %v5002_v54 = vsel %vm4516_vm4, %v4885_v37, 0.0 }
 0x45e   :  { %v10720_v48 = vsub.f32 %v12417_v57, %v10379_v30  ;;  %v12419_v47 = vmax.f32 %v10120_v25, 0.0  ;;  %v4860_v21 = vmul.f32 %v10696_v52, %v10696_v52  ;;  %v4943_v5 = vsel %vm4516_vm4, %v4858_v34, 0.0 }
 0x45f   :  { %v5003_v45 = vadd.f32 %v5002_v54, %v5001_v61  ;;  %v12420_v41 = vmax.f32 %v10219_v11, 0.0  ;;  %v4888_v46 = vmul.f32 %v10704_v56, %v10704_v56  ;;  %v4944_v37 = vadd.f32 %v4943_v5, %v4942_v22 }
 0x460   :  { %12418 = vst [vmem:[#allocation54_spill] sm:$0xff] %v10720_v48  ;;  %v10728_v42 = vsub.f32 %v12419_v47, %v10351_v0  ;;  %v5004_v17 = vsel %vm4516_vm4, %v4886_v1, 0.0  ;;  %v12421_v25 = vmax.f32 %v10154_v43, 0.0  ;;  %v4861_v34 = vmul.f32 %v10712_v19, %v10712_v19 }
 0x461   :  { %v10736_v57 = vsub.f32 %v12420_v41, %v10379_v30  ;;  %v4945_v61 = vsel %vm4516_vm4, %v4859_v36, 0.0  ;;  %v5005_v54 = vadd.f32 %v5004_v17, %v5003_v45  ;;  %v12422_v11 = vmax.f32 %v10234_v60, 0.0 }
 0x462   :  { %v10744_v47 = vsub.f32 %v12421_v25, %v10351_v0  ;;  %v4889_v22 = vmul.f32 %v10720_v48, %v10720_v48  ;;  %v4946_v1 = vadd.f32 %v4945_v61, %v4944_v37  ;;  %v5006_v5 = vsel %vm4516_vm4, %v4887_v7, 0.0 }
 0x463   :  { %v10752_v41 = vsub.f32 %v12422_v11, %v10379_v30  ;;  %v12423_v43 = vmax.f32 %v10167_v15, 0.0  ;;  %v4862_v36 = vmul.f32 %v10728_v42, %v10728_v42  ;;  %v4947_v45 = vsel %vm4516_vm4, %v4860_v21, 0.0  ;;  %v12425_v15 = vld [vmem:[#allocation25_spill] sm:$0xff] }
 0x464   :  { %v5007_v17 = vadd.f32 %v5006_v5, %v5005_v54  ;;  %v12424_v60 = vmax.f32 %v10266_v44, 0.0  ;;  %v4890_v37 = vmul.f32 %v10736_v57, %v10736_v57  ;;  %v4948_v7 = vadd.f32 %v4947_v45, %v4946_v1 }
 0x465   :  { %v10760_v25 = vsub.f32 %v12423_v43, %v10351_v0  ;;  %v5008_v61 = vsel %vm4516_vm4, %v4888_v46, 0.0  ;;  %v12426_v43 = vmax.f32 %v12425_v15, 0.0  ;;  %v4863_v21 = vmul.f32 %v10744_v47, %v10744_v47 }
 0x466   :  { %v10768_v11 = vsub.f32 %v12424_v60, %v10379_v30  ;;  %v4949_v54 = vsel %vm4516_vm4, %v4861_v34, 0.0  ;;  %v5009_v5 = vadd.f32 %v5008_v61, %v5007_v17  ;;  %v12427_v44 = vmax.f32 %v10281_v6, 0.0 }
 0x467   :  { %v10776_v48 = vsub.f32 %v12426_v43, %v10351_v0  ;;  %v4891_v1 = vmul.f32 %v10752_v41, %v10752_v41  ;;  %v4950_v46 = vadd.f32 %v4949_v54, %v4948_v7  ;;  %v5010_v45 = vsel %vm4516_vm4, %v4889_v22, 0.0 }
 0x468   :  { %v10784_v60 = vsub.f32 %v12427_v44, %v10379_v30  ;;  %v12429_v15 = vmax.f32 %v10227_v35, 0.0  ;;  %v4864_v34 = vmul.f32 %v10760_v25, %v10760_v25  ;;  %v4951_v17 = vsel %vm4516_vm4, %v4862_v36, 0.0 }
 0x469   :  { %v5011_v61 = vadd.f32 %v5010_v45, %v5009_v5  ;;  %v12430_v6 = vmax.f32 %v10263_v4, 0.0  ;;  %v4892_v7 = vmul.f32 %v10768_v11, %v10768_v11  ;;  %v4952_v22 = vadd.f32 %v4951_v17, %v4950_v46 }
 0x46a   :  { %12428 = vst [vmem:[#allocation14_spill] sm:$0xff] %v10784_v60  ;;  %v10792_v43 = vsub.f32 %v12429_v15, %v10351_v0  ;;  %v5012_v54 = vsel %vm4516_vm4, %v4890_v37, 0.0  ;;  %v12432_v35 = vmax.f32 %v10250_v10, 0.0  ;;  %v4865_v36 = vmul.f32 %v10776_v48, %v10776_v48 }
 0x46b   :  { %v10800_v44 = vsub.f32 %v12430_v6, %v10379_v30  ;;  %v4953_v5 = vsel %vm4516_vm4, %v4863_v21, 0.0  ;;  %v5013_v45 = vadd.f32 %v5012_v54, %v5011_v61  ;;  %v12433_v4 = vmax.f32 %v10278_v29, 0.0 }
 0x46c   :  { %v10808_v15 = vsub.f32 %v12432_v35, %v10351_v0  ;;  %v4893_v46 = vmul.f32 %v10784_v60, %v10784_v60  ;;  %v4954_v37 = vadd.f32 %v4953_v5, %v4952_v22  ;;  %v5014_v17 = vsel %vm4516_vm4, %v4891_v1, 0.0 }
 0x46d   :  { %12431 = vst [vmem:[#allocation22_spill] sm:$0xff] %v10800_v44  ;;  %v10816_v6 = vsub.f32 %v12433_v4, %v10379_v30  ;;  %v4866_v10 = vmul.f32 %v10792_v43, %v10792_v43  ;;  %v4955_v0 = vsel %vm4516_vm4, %v4864_v34, 0.0  ;;  %v5015_v35 = vadd.f32 %v5014_v17, %v5013_v45  ;;  %v12435_v34 = vld [vmem:[#allocation3_spill] sm:$0xff] }
 0x46e   :  { %v12434_v21 = vmax.f32 %v10305_v33, 0.0  ;;  %v4894_v29 = vmul.f32 %v10800_v44, %v10800_v44  ;;  %v4956_v54 = vadd.f32 %v4955_v0, %v4954_v37  ;;  %v5016_v4 = vsel %vm4516_vm4, %v4892_v7, 0.0 }
 0x46f   :  { %v4867_v1 = vmul.f32 %v10808_v15, %v10808_v15  ;;  %v4957_v22 = vsel %vm4516_vm4, %v4865_v36, 0.0  ;;  %v5017_v5 = vadd.f32 %v5016_v4, %v5015_v35  ;;  %v12436_v45 = vmax.f32 %v12435_v34, 0.0 }
 0x470   :  { %v10827_v61 = vsub.f32 %v12434_v21, %v10379_v30  ;;  %v4895_v33 = vmul.f32 %v10816_v6, %v10816_v6  ;;  %v4958_v21 = vadd.f32 %v4957_v22, %v4956_v54  ;;  %v5018_v44 = vsel %vm4516_vm4, %v4893_v46, 0.0 }
 0x471   :  { %v10838_v17 = vsub.f32 %v12436_v45, %v10379_v30  ;;  %v4959_v37 = vsel %vm4516_vm4, %v4866_v10, 0.0  ;;  %v5019_v7 = vadd.f32 %v5018_v44, %v5017_v5  ;;  %v12438_v0 = vmax.f32 %v10302_v12, 0.0 }
 0x472   :  { %v4896_v36 = vmul.f32 %v10827_v61, %v10827_v61  ;;  %v4960_v35 = vadd.f32 %v4959_v37, %v4958_v21  ;;  %v5020_v4 = vsel %vm4516_vm4, %v4894_v29, 0.0  ;;  %v4961_v34 = vsel %vm4516_vm4, %v4867_v1, 0.0 }
 0x473   :  { %12437 = vst [vmem:[#allocation26_spill] sm:$0xff] %v10838_v17  ;;  %v10847_v60 = vsub.f32 %v12438_v0, %v10379_v30  ;;  %v5021_v45 = vadd.f32 %v5020_v4, %v5019_v7  ;;  %v12440_v46 = vmax.f32 %v10313_v51, 0.0  ;;  %v4897_v44 = vmul.f32 %v10838_v17, %v10838_v17 }
 0x474   :  { %v4962_v12 = vadd.f32 %v4961_v34, %v4960_v35  ;;  %v5022_v10 = vsel %vm4516_vm4, %v4895_v33, 0.0  ;;  %v5024_v29 = vsel %vm4516_vm4, %v4896_v36, 0.0 }
 0x475   :  { %12439 = vst [vmem:[#allocation27_spill] sm:$0xff] %v10847_v60  ;;  %v10856_v54 = vsub.f32 %v12440_v46, %v10379_v30  ;;  %v5023_v22 = vadd.f32 %v5022_v10, %v5021_v45  ;;  %v4898_v5 = vmul.f32 %v10847_v60, %v10847_v60  ;;  %v5026_v51 = vsel %vm4516_vm4, %v4897_v44, 0.0 }
 0x476   :  { %v4963_v21 = vrot.slane %v4962_v12, 4 }
 0x477   :  { %12441 = vst [vmem:[#allocation28_spill] sm:$0xff] %v10856_v54  ;;  %v5025_v1 = vadd.f32 %v5024_v29, %v5023_v22  ;;  %v4899_v37 = vmul.f32 %v10856_v54, %v10856_v54  ;;  %v5028_v0 = vsel %vm4516_vm4, %v4898_v5, 0.0 }
 0x478   :  { %v4964_v7 = vadd.f32 %v4963_v21, %v4962_v12 }
 0x479   :  { %v5027_v30 = vadd.f32 %v5026_v51, %v5025_v1  ;;  %v5030_v33 = vsel %vm4516_vm4, %v4899_v37, 0.0  ;;  %v5950_v1 = vld [vmem:[%s11754_s3] ss:$0 sm:$0xff] }
 0x47a   :  { %v4965_v34 = vrot.slane %v4964_v7, 2 }
 0x47b   :  { %v5029_v35 = vadd.f32 %v5028_v0, %v5027_v30 }
 0x47c   :  { %v4966_v46 = vadd.f32 %v4965_v34, %v4964_v7 }
 0x47d   :  { %v5031_v4 = vadd.f32 %v5030_v33, %v5029_v35 }
 0x47e   :  { %v4967_v36 = vrot.slane %v4966_v46, 1 }
 0x47f   :  { %v5032_v45 = vrot.slane %v5031_v4, 4 }
 0x480   :  { %v4968_v17 = vadd.f32 %v4967_v36, %v4966_v46 }
 0x481   :  { %v5033_v10 = vadd.f32 %v5032_v45, %v5031_v4 }
 0x483   :  { %v5034_v60 = vrot.slane %v5033_v10, 2 }
 0x485   :  { %v5035_v22 = vadd.f32 %v5034_v60, %v5033_v10 }
 0x487   :  { %v5036_v29 = vrot.slane %v5035_v22, 1 }
 0x489   :  { %v5037_v54 = vadd.f32 %v5036_v29, %v5035_v22 }
 0x48b   :  { %v5040_v44 = vsel %vm4665_vm6, %v5037_v54, %v4968_v17 }
 0x48c   :  { %7025 = vmatmul.mubr.msk.f32.vlgmr.msra.gmra.mrb[66].mxu1 %vm4516_vm4, %v5040_v44 }
 0x55f   :  { %v5109_v12 = vpop.f32.mrb[66].mxu1 }
 0x560   :  { %v5110_v5 = vadd.f32 1e-05, %v5109_v12  ;;  %v7026_v21 = vpop.f32.mrb[67].mxu1 }
 0x562   :  { %7651 = vrsqrt.f32 %v5110_v5  ;;  %v12447_v5 = vld [vmem:[#allocation36_spill] sm:$0xff] }
 0x56c   :  { %v7652_v37 = vpop.eup %7651 }
 0x56d   :  { %v5121_v51 = vmul.f32 %v7652_v37, %v5950_v1  ;;  %v12450_v1 = vld [vmem:[#allocation48_spill] sm:$0xff] }
 0x56f   :  { %v5129_v30 = vrot.slane %v5121_v51, %v10344_v32  ;;  %v12451_v51 = vld [vmem:[#allocation49_spill] sm:$0xff] }
 0x571   :  { %v5130_v60 = vcombine.high %v5129_v30, %v5129_v30  ;;  %v5137_v7 = vrot.slane %v5129_v30, %v10344_v32 }
 0x573   :  { %v5144_v0 = vrot.slane %v5130_v60, %v10344_v32  ;;  %v5148_v17 = vrot.slane %v5137_v7, %v10348_v23  ;;  %v12452_v60 = vld [vmem:[#allocation50_spill] sm:$0xff] }
 0x575   :  { %v10879_v54 = vrot.slane %v5144_v0, %v10348_v23  ;;  %v10882_v35 = vmul.f32 %v5148_v17, %v10356_v27  ;;  %v10885_v33 = vmul.f32 %v5148_v17, %v10361_v14  ;;  %v10888_v4 = vmul.f32 %v5148_v17, %v10367_v59  ;;  %v12442_v27 = vld [vmem:[#allocation39_spill] sm:$0xff]  ;;  %v12443_v14 = vld [vmem:[#allocation41_spill] sm:$0xff] }
 0x576   :  { %v10891_v34 = vmul.f32 %v5148_v17, %v10372_v38  ;;  %v10894_v45 = vmul.f32 %v5148_v17, %v10384_v16  ;;  %v10897_v32 = vmul.f32 %v5148_v17, %v10391_v50  ;;  %v10900_v23 = vmul.f32 %v5148_v17, %v10410_v40  ;;  %v12444_v59 = vld [vmem:[#allocation43_spill] sm:$0xff] }
 0x577   :  { %v10903_v46 = vmul.f32 %v5148_v17, %v12442_v27  ;;  %v10906_v10 = vmul.f32 %v5148_v17, %v12443_v14  ;;  %v10909_v36 = vmul.f32 %v5148_v17, %v12444_v59  ;;  %v10912_v38 = vmul.f32 %v5148_v17, %v10472_v53  ;;  %v12453_v0 = vld [vmem:[#allocation51_spill] sm:$0xff]  ;;  %v12454_v27 = vld [vmem:[#allocation53_spill] sm:$0xff] }
 0x578   :  { %v10915_v16 = vmul.f32 %v5148_v17, %v10488_v28  ;;  %v10918_v50 = vmul.f32 %v5148_v17, %v10504_v49  ;;  %v10921_v40 = vmul.f32 %v5148_v17, %v10520_v3  ;;  %v10924_v22 = vmul.f32 %v5148_v17, %v10536_v63  ;;  %v12455_v59 = vld [vmem:[#allocation21_spill] sm:$0xff] }
 0x579   :  { %v10927_v29 = vmul.f32 %v5148_v17, %v10552_v8  ;;  %v10930_v44 = vmul.f32 %v5148_v17, %v10568_v31  ;;  %v10933_v53 = vmul.f32 %v5148_v17, %v10584_v13  ;;  %v10936_v28 = vmul.f32 %v5148_v17, %v10600_v55 }
 0x57a   :  { %v10939_v49 = vmul.f32 %v5148_v17, %v10616_v9  ;;  %v10942_v3 = vmul.f32 %v5148_v17, %v10632_v58  ;;  %v10945_v63 = vmul.f32 %v5148_v17, %v10648_v62  ;;  %v10948_v8 = vmul.f32 %v5148_v17, %v10664_v24 }
 0x57b   :  { %v10951_v31 = vmul.f32 %v5148_v17, %v10680_v20  ;;  %v10954_v13 = vmul.f32 %v5148_v17, %v10696_v52  ;;  %v10957_v55 = vmul.f32 %v5148_v17, %v10712_v19  ;;  %v10960_v9 = vmul.f32 %v5148_v17, %v10728_v42  ;;  %v12445_v19 = vld [vmem:[#allocation30_spill] sm:$0xff]  ;;  %v12446_v42 = vld [vmem:[#allocation31_spill] sm:$0xff] }
 0x57c   :  { %v10963_v58 = vmul.f32 %v5148_v17, %v10744_v47  ;;  %v10966_v62 = vmul.f32 %v5148_v17, %v10760_v25  ;;  %v10969_v24 = vmul.f32 %v5148_v17, %v10776_v48  ;;  %v10972_v20 = vmul.f32 %v5148_v17, %v10792_v43  ;;  %v12448_v48 = vld [vmem:[#allocation40_spill] sm:$0xff]  ;;  %v12449_v43 = vld [vmem:[#allocation42_spill] sm:$0xff] }
 0x57d   :  { %v10975_v52 = vmul.f32 %v5148_v17, %v10808_v15  ;;  %v10979_v12 = vmul.f32 %v10879_v54, %v12445_v19  ;;  %v10983_v47 = vmul.f32 %v10879_v54, %v12446_v42  ;;  %v10987_v25 = vmul.f32 %v10879_v54, %v12447_v5  ;;  %v12456_v42 = vld [vmem:[#allocation13_spill] sm:$0xff] }
 0x57e   :  { %v10991_v21 = vmul.f32 %v10879_v54, %v12448_v48  ;;  %v10995_v15 = vmul.f32 %v10879_v54, %v12449_v43  ;;  %v10999_v37 = vmul.f32 %v10879_v54, %v12450_v1  ;;  %v11003_v30 = vmul.f32 %v10879_v54, %v12451_v51  ;;  %v12457_v48 = vld [vmem:[#allocation17_spill] sm:$0xff]  ;;  %v12458_v1 = vld [vmem:[#allocation32_spill] sm:$0xff] }
 0x57f   :  { %v11007_v7 = vmul.f32 %v10879_v54, %v12452_v60  ;;  %v11011_v17 = vmul.f32 %v10879_v54, %v12453_v0  ;;  %v11015_v14 = vmul.f32 %v10879_v54, %v12454_v27  ;;  %v11019_v19 = vmul.f32 %v10879_v54, %v12455_v59  ;;  %v12459_v60 = vld [vmem:[#allocation47_spill] sm:$0xff]  ;;  %v12460_v27 = vld [vmem:[#allocation52_spill] sm:$0xff] }
 0x580   :  { %v11023_v5 = vmul.f32 %v10879_v54, %v12456_v42  ;;  %v11027_v43 = vmul.f32 %v10879_v54, %v12457_v48  ;;  %v11031_v51 = vmul.f32 %v10879_v54, %v12458_v1  ;;  %v11035_v0 = vmul.f32 %v10879_v54, %v12459_v60 }
 0x581   :  { %v11039_v59 = vmul.f32 %v10879_v54, %v12460_v27  ;;  %v11043_v42 = vmul.f32 %v10879_v54, %v10640_v39  ;;  %v11047_v48 = vmul.f32 %v10879_v54, %v10656_v2  ;;  %v11051_v1 = vmul.f32 %v10879_v54, %v10672_v18  ;;  %v11072_v18 = vld [vmem:[%s11755_s4] ss:$0 sm:$0xff] }
 0x582   :  { %v11055_v60 = vmul.f32 %v10879_v54, %v10688_v26  ;;  %v11059_v27 = vmul.f32 %v10879_v54, %v10704_v56  ;;  %v11067_v2 = vmul.f32 %v10879_v54, %v10736_v57  ;;  %v11076_v26 = vmul.f32 %v10879_v54, %v10752_v41 }
 0x583   :  { %12461 = vst [vmem:[#allocation33_spill] sm:$0xff] %v11039_v59  ;;  %v12463_v59 = vld [vmem:[#allocation54_spill] sm:$0xff]  ;;  %v11080_v56 = vmul.f32 %v10879_v54, %v10768_v11  ;;  %v11096_v41 = vmul.f32 %v10879_v54, %v10827_v61  ;;  %v11116_v61 = vadd.f32 %v11072_v18, %v10885_v33  ;;  %v11136_v33 = vadd.f32 %v11072_v18, %v10900_v23 }
 0x584   :  { %12462 = vst [vmem:[#allocation34_spill] sm:$0xff] %v11059_v27  ;;  %v11063_v39 = vmul.f32 %v10879_v54, %v12463_v59  ;;  %12465 = vst [vmem:[#allocation44_spill] sm:$0xff] %v11067_v2  ;;  %v12468_v27 = vld [vmem:[#allocation14_spill] sm:$0xff]  ;;  %v11092_v2 = vmul.f32 %v10879_v54, %v10816_v6  ;;  %v11112_v6 = vadd.f32 %v11072_v18, %v10882_v35 }
 0x585   :  { %12466 = vst [vmem:[#allocation2_spill] sm:$0xff] %v11076_v26  ;;  %12467 = vst [vmem:[#allocation11_spill] sm:$0xff] %v11080_v56  ;;  %v11084_v59 = vmul.f32 %v10879_v54, %v12468_v27  ;;  %v12471_v26 = vld [vmem:[#allocation26_spill] sm:$0xff]  ;;  %v12472_v56 = vld [vmem:[#allocation27_spill] sm:$0xff]  ;;  %v11132_v35 = vadd.f32 %v11072_v18, %v10897_v32  ;;  %v11152_v32 = vadd.f32 %v11072_v18, %v10912_v38 }
 0x586   :  { %12464 = vst [vmem:[#allocation35_spill] sm:$0xff] %v11063_v39  ;;  %v12470_v39 = vld [vmem:[#allocation22_spill] sm:$0xff]  ;;  %v11100_v11 = vmul.f32 %v10879_v54, %v12471_v26  ;;  %v11104_v27 = vmul.f32 %v10879_v54, %v12472_v56  ;;  %v11120_v26 = vadd.f32 %v11072_v18, %v10888_v4  ;;  %v11124_v56 = vadd.f32 %v11072_v18, %v10891_v34 }
 0x587   :  { %12469 = vst [vmem:[#allocation4_spill] sm:$0xff] %v11084_v59  ;;  %v11088_v57 = vmul.f32 %v10879_v54, %v12470_v39  ;;  %v12473_v59 = vld [vmem:[#allocation28_spill] sm:$0xff]  ;;  %v11140_v4 = vadd.f32 %v11072_v18, %v10903_v46  ;;  %v11144_v34 = vadd.f32 %v11072_v18, %v10906_v10  ;;  %v11156_v23 = vadd.f32 %v11072_v18, %v10915_v16 }
 0x588   :  { %v11108_v39 = vmul.f32 %v10879_v54, %v12473_v59  ;;  %v11128_v54 = vadd.f32 %v11072_v18, %v10894_v45  ;;  %v11148_v45 = vadd.f32 %v11072_v18, %v10909_v36  ;;  %v11160_v46 = vadd.f32 %v11072_v18, %v10918_v50 }
 0x589   :  { %v11164_v10 = vadd.f32 %v11072_v18, %v10921_v40  ;;  %v11168_v36 = vadd.f32 %v11072_v18, %v10924_v22  ;;  %v11172_v38 = vadd.f32 %v11072_v18, %v10927_v29  ;;  %v11176_v16 = vadd.f32 %v11072_v18, %v10930_v44 }
 0x58a   :  { %v11180_v50 = vadd.f32 %v11072_v18, %v10933_v53  ;;  %v11184_v40 = vadd.f32 %v11072_v18, %v10936_v28  ;;  %v11188_v22 = vadd.f32 %v11072_v18, %v10939_v49  ;;  %v11192_v29 = vadd.f32 %v11072_v18, %v10942_v3  ;;  %v12475_v59 = vld [vmem:[#allocation33_spill] sm:$0xff] }
 0x58b   :  { %v11196_v44 = vadd.f32 %v11072_v18, %v10945_v63  ;;  %v11200_v53 = vadd.f32 %v11072_v18, %v10948_v8  ;;  %v11204_v28 = vadd.f32 %v11072_v18, %v10951_v31  ;;  %v11208_v49 = vadd.f32 %v11072_v18, %v10954_v13 }
 0x58c   :  { %v11212_v3 = vadd.f32 %v11072_v18, %v10957_v55  ;;  %v11216_v63 = vadd.f32 %v11072_v18, %v10960_v9  ;;  %v11220_v8 = vadd.f32 %v11072_v18, %v10963_v58  ;;  %v11224_v31 = vadd.f32 %v11072_v18, %v10966_v62 }
 0x58d   :  { %v11228_v13 = vadd.f32 %v11072_v18, %v10969_v24  ;;  %v11232_v55 = vadd.f32 %v11072_v18, %v10972_v20  ;;  %v11236_v9 = vadd.f32 %v11072_v18, %v10975_v52  ;;  %v11240_v58 = vadd.f32 %v11072_v18, %v10979_v12 }
 0x58e   :  { %v11244_v62 = vadd.f32 %v11072_v18, %v10983_v47  ;;  %v11248_v24 = vadd.f32 %v11072_v18, %v10987_v25  ;;  %v11252_v20 = vadd.f32 %v11072_v18, %v10991_v21  ;;  %v11256_v52 = vadd.f32 %v11072_v18, %v10995_v15 }
 0x58f   :  { %v11260_v12 = vadd.f32 %v11072_v18, %v10999_v37  ;;  %v11264_v47 = vadd.f32 %v11072_v18, %v11003_v30  ;;  %v11268_v25 = vadd.f32 %v11072_v18, %v11007_v7  ;;  %v11272_v21 = vadd.f32 %v11072_v18, %v11011_v17 }
 0x590   :  { %v11276_v15 = vadd.f32 %v11072_v18, %v11015_v14  ;;  %v11280_v37 = vadd.f32 %v11072_v18, %v11019_v19  ;;  %v11284_v30 = vadd.f32 %v11072_v18, %v11023_v5  ;;  %v11288_v7 = vadd.f32 %v11072_v18, %v11027_v43 }
 0x591   :  { %v11292_v17 = vadd.f32 %v11072_v18, %v11031_v51  ;;  %v11296_v14 = vadd.f32 %v11072_v18, %v11035_v0  ;;  %v11300_v19 = vadd.f32 %v11072_v18, %v12475_v59  ;;  %v11304_v5 = vadd.f32 %v11072_v18, %v11043_v42 }
 0x592   :  { %v11308_v43 = vadd.f32 %v11072_v18, %v11047_v48  ;;  %v11312_v51 = vadd.f32 %v11072_v18, %v11051_v1  ;;  %v11316_v0 = vadd.f32 %v11072_v18, %v11055_v60 }
 0x593   :  { %12474 = vst [vmem:[#allocation20_spill] sm:$0xff] %v11296_v14  ;;  %12476 = vst [vmem:[#allocation15_spill] sm:$0xff] %v11300_v19  ;;  %v12481_v14 = vld [vmem:[#allocation34_spill] sm:$0xff]  ;;  %v12482_v19 = vld [vmem:[#allocation35_spill] sm:$0xff] }
 0x594   :  { %12477 = vst [vmem:[#allocation18_spill] sm:$0xff] %v11304_v5  ;;  %12478 = vst [vmem:[#allocation16_spill] sm:$0xff] %v11308_v43  ;;  %v11320_v59 = vadd.f32 %v11072_v18, %v12481_v14  ;;  %v11324_v42 = vadd.f32 %v11072_v18, %v12482_v19  ;;  %v12483_v5 = vld [vmem:[#allocation44_spill] sm:$0xff]  ;;  %v12484_v43 = vld [vmem:[#allocation2_spill] sm:$0xff]  ;;  %v11344_v19 = vadd.f32 %v11072_v18, %v11088_v57 }
 0x595   :  { %12479 = vst [vmem:[#allocation29_spill] sm:$0xff] %v11312_v51  ;;  %12480 = vst [vmem:[#allocation23_spill] sm:$0xff] %v11316_v0  ;;  %v11328_v48 = vadd.f32 %v11072_v18, %v12483_v5  ;;  %v11332_v1 = vadd.f32 %v11072_v18, %v12484_v43  ;;  %v12485_v51 = vld [vmem:[#allocation11_spill] sm:$0xff]  ;;  %v12486_v0 = vld [vmem:[#allocation4_spill] sm:$0xff]  ;;  %v11348_v5 = vadd.f32 %v11072_v18, %v11092_v2 }
 0x596   :  { %v11336_v60 = vadd.f32 %v11072_v18, %v12485_v51  ;;  %v11340_v14 = vadd.f32 %v11072_v18, %v12486_v0  ;;  %v11352_v43 = vadd.f32 %v11072_v18, %v11096_v41  ;;  %v11356_v51 = vadd.f32 %v11072_v18, %v11100_v11 }
 0x597   :  { %12487 = vst [vmem:[#allocation38_spill] sm:$0xff] %v11348_v5  ;;  %v11360_v0 = vadd.f32 %v11072_v18, %v11104_v27  ;;  %v11364_v57 = vadd.f32 %v11072_v18, %v11108_v39  ;;  %v6016_v2 = vpack.c.bf16 %v11112_v6, %v11112_v6  ;;  %v6017_v5 = vpack.c.bf16 %v11116_v61, %v11116_v61 }
 0x598   :  { %v6018_v41 = vpack.c.bf16 %v11120_v26, %v11120_v26  ;;  %v6019_v11 = vpack.c.bf16 %v11124_v56, %v11124_v56  ;;  %v6020_v27 = vpack.c.bf16 %v11128_v54, %v11128_v54  ;;  %v6022_v18 = vpack.c.bf16 %v11136_v33, %v11136_v33 }
 0x599   :  { %12488 = vst [vmem:[#allocation24_spill] sm:$0xff] %v11360_v0  ;;  %v6021_v0 = vpack.c.bf16 %v11132_v35, %v11132_v35  ;;  %v6023_v39 = vpack.c.bf16 %v11140_v4, %v11140_v4  ;;  %v6024_v6 = vpack.c.bf16 %v11144_v34, %v11144_v34  ;;  %v6025_v61 = vpack.c.bf16 %v11148_v45, %v11148_v45 }
 0x59a   :  { %v6026_v26 = vpack.c.bf16 %v11152_v32, %v11152_v32  ;;  %5547 = vst.msk [vmem:[%s11756_s6] sm:$0xf] %vm5546_vm7, %v6016_v2  ;;  %5548 = vst.msk [vmem:[%s11756_s6 + $0x4] sm:$0xf] %vm5546_vm7, %v6017_v5  ;;  %v6027_v56 = vpack.c.bf16 %v11156_v23, %v11156_v23  ;;  %v6028_v54 = vpack.c.bf16 %v11160_v46, %v11160_v46 }
 0x59b   :  { %5549 = vst.msk [vmem:[%s11756_s6 + $0x8] sm:$0xf] %vm5546_vm7, %v6018_v41  ;;  %v6029_v35 = vpack.c.bf16 %v11164_v10, %v11164_v10  ;;  %v6030_v33 = vpack.c.bf16 %v11168_v36, %v11168_v36  ;;  %5550 = vst.msk [vmem:[%s11756_s6 + $0xc] sm:$0xf] %vm5546_vm7, %v6019_v11  ;;  %v6031_v4 = vpack.c.bf16 %v11172_v38, %v11172_v38 }
 0x59c   :  { %5551 = vst.msk [vmem:[%s11756_s6 + $0x10] sm:$0xf] %vm5546_vm7, %v6020_v27  ;;  %5552 = vst.msk [vmem:[%s11756_s6 + $0x14] sm:$0xf] %vm5546_vm7, %v6021_v0  ;;  %v6032_v34 = vpack.c.bf16 %v11176_v16, %v11176_v16  ;;  %v6033_v45 = vpack.c.bf16 %v11180_v50, %v11180_v50  ;;  %v6034_v32 = vpack.c.bf16 %v11184_v40, %v11184_v40  ;;  %v12493_v5 = vld [vmem:[#allocation29_spill] sm:$0xff]  ;;  %v12494_v2 = vld [vmem:[#allocation23_spill] sm:$0xff] }
 0x59d   :  { %5553 = vst.msk [vmem:[%s11756_s6 + $0x18] sm:$0xf] %vm5546_vm7, %v6022_v18  ;;  %5554 = vst.msk [vmem:[%s11756_s6 + $0x1c] sm:$0xf] %vm5546_vm7, %v6023_v39  ;;  %v6035_v23 = vpack.c.bf16 %v11188_v22, %v11188_v22  ;;  %v6036_v46 = vpack.c.bf16 %v11192_v29, %v11192_v29  ;;  %v6037_v10 = vpack.c.bf16 %v11196_v44, %v11196_v44 }
 0x59e   :  { %5555 = vst.msk [vmem:[%s11756_s6 + $0x20] sm:$0xf] %vm5546_vm7, %v6024_v6  ;;  %5556 = vst.msk [vmem:[%s11756_s6 + $0x24] sm:$0xf] %vm5546_vm7, %v6025_v61  ;;  %v6038_v36 = vpack.c.bf16 %v11200_v53, %v11200_v53  ;;  %v6039_v38 = vpack.c.bf16 %v11204_v28, %v11204_v28  ;;  %v6040_v16 = vpack.c.bf16 %v11208_v49, %v11208_v49 }
 0x59f   :  { %5557 = vst.msk [vmem:[%s11756_s6 + $0x28] sm:$0xf] %vm5546_vm7, %v6026_v26  ;;  %5558 = vst.msk [vmem:[%s11756_s6 + $0x2c] sm:$0xf] %vm5546_vm7, %v6027_v56  ;;  %v6041_v50 = vpack.c.bf16 %v11212_v3, %v11212_v3  ;;  %v6042_v40 = vpack.c.bf16 %v11216_v63, %v11216_v63  ;;  %v6043_v22 = vpack.c.bf16 %v11220_v8, %v11220_v8 }
 0x5a0   :  { %5559 = vst.msk [vmem:[%s11756_s6 + $0x30] sm:$0xf] %vm5546_vm7, %v6028_v54  ;;  %5560 = vst.msk [vmem:[%s11756_s6 + $0x34] sm:$0xf] %vm5546_vm7, %v6029_v35  ;;  %v6044_v29 = vpack.c.bf16 %v11224_v31, %v11224_v31  ;;  %v6045_v44 = vpack.c.bf16 %v11228_v13, %v11228_v13  ;;  %v6046_v53 = vpack.c.bf16 %v11232_v55, %v11232_v55  ;;  %v12496_v6 = vld [vmem:[#allocation24_spill] sm:$0xff] }
 0x5a1   :  { %5561 = vst.msk [vmem:[%s11756_s6 + $0x38] sm:$0xf] %vm5546_vm7, %v6030_v33  ;;  %5562 = vst.msk [vmem:[%s11756_s6 + $0x3c] sm:$0xf] %vm5546_vm7, %v6031_v4  ;;  %v6047_v28 = vpack.c.bf16 %v11236_v9, %v11236_v9  ;;  %v6048_v49 = vpack.c.bf16 %v11240_v58, %v11240_v58  ;;  %v6049_v3 = vpack.c.bf16 %v11244_v62, %v11244_v62 }
 0x5a2   :  { %5563 = vst.msk [vmem:[%s11756_s6 + $0x40] sm:$0xf] %vm5546_vm7, %v6032_v34  ;;  %5564 = vst.msk [vmem:[%s11756_s6 + $0x44] sm:$0xf] %vm5546_vm7, %v6033_v45  ;;  %v6050_v63 = vpack.c.bf16 %v11248_v24, %v11248_v24  ;;  %v6051_v8 = vpack.c.bf16 %v11252_v20, %v11252_v20  ;;  %v6052_v31 = vpack.c.bf16 %v11256_v52, %v11256_v52 }
 0x5a3   :  { %5565 = vst.msk [vmem:[%s11756_s6 + $0x48] sm:$0xf] %vm5546_vm7, %v6034_v32  ;;  %5566 = vst.msk [vmem:[%s11756_s6 + $0x4c] sm:$0xf] %vm5546_vm7, %v6035_v23  ;;  %v6053_v13 = vpack.c.bf16 %v11260_v12, %v11260_v12  ;;  %v6054_v55 = vpack.c.bf16 %v11264_v47, %v11264_v47  ;;  %v6055_v9 = vpack.c.bf16 %v11268_v25, %v11268_v25  ;;  %v12489_v47 = vld [vmem:[#allocation20_spill] sm:$0xff] }
 0x5a4   :  { %5567 = vst.msk [vmem:[%s11756_s6 + $0x50] sm:$0xf] %vm5546_vm7, %v6036_v46  ;;  %5568 = vst.msk [vmem:[%s11756_s6 + $0x54] sm:$0xf] %vm5546_vm7, %v6037_v10  ;;  %v6056_v58 = vpack.c.bf16 %v11272_v21, %v11272_v21  ;;  %v6057_v62 = vpack.c.bf16 %v11276_v15, %v11276_v15  ;;  %v6058_v24 = vpack.c.bf16 %v11280_v37, %v11280_v37  ;;  %v12490_v21 = vld [vmem:[#allocation15_spill] sm:$0xff]  ;;  %v12491_v37 = vld [vmem:[#allocation18_spill] sm:$0xff] }
 0x5a5   :  { %5569 = vst.msk [vmem:[%s11756_s6 + $0x58] sm:$0xf] %vm5546_vm7, %v6038_v36  ;;  %5570 = vst.msk [vmem:[%s11756_s6 + $0x5c] sm:$0xf] %vm5546_vm7, %v6039_v38  ;;  %v6059_v20 = vpack.c.bf16 %v11284_v30, %v11284_v30  ;;  %v6060_v52 = vpack.c.bf16 %v11288_v7, %v11288_v7  ;;  %v6061_v12 = vpack.c.bf16 %v11292_v17, %v11292_v17  ;;  %v12492_v7 = vld [vmem:[#allocation16_spill] sm:$0xff] }
 0x5a6   :  { %5571 = vst.msk [vmem:[%s11756_s6 + $0x60] sm:$0xf] %vm5546_vm7, %v6040_v16  ;;  %5572 = vst.msk [vmem:[%s11756_s6 + $0x64] sm:$0xf] %vm5546_vm7, %v6041_v50  ;;  %v6062_v25 = vpack.c.bf16 %v12489_v47, %v12489_v47  ;;  %v6063_v15 = vpack.c.bf16 %v12490_v21, %v12490_v21  ;;  %v6064_v30 = vpack.c.bf16 %v12491_v37, %v12491_v37 }
 0x5a7   :  { %5573 = vst.msk [vmem:[%s11756_s6 + $0x68] sm:$0xf] %vm5546_vm7, %v6042_v40  ;;  %5574 = vst.msk [vmem:[%s11756_s6 + $0x6c] sm:$0xf] %vm5546_vm7, %v6043_v22  ;;  %v6065_v17 = vpack.c.bf16 %v12492_v7, %v12492_v7  ;;  %v6066_v0 = vpack.c.bf16 %v12493_v5, %v12493_v5  ;;  %v6067_v41 = vpack.c.bf16 %v12494_v2, %v12494_v2 }
 0x5a8   :  { %5575 = vst.msk [vmem:[%s11756_s6 + $0x70] sm:$0xf] %vm5546_vm7, %v6044_v29  ;;  %5576 = vst.msk [vmem:[%s11756_s6 + $0x74] sm:$0xf] %vm5546_vm7, %v6045_v44  ;;  %v6068_v11 = vpack.c.bf16 %v11320_v59, %v11320_v59  ;;  %v6069_v27 = vpack.c.bf16 %v11324_v42, %v11324_v42  ;;  %v6070_v18 = vpack.c.bf16 %v11328_v48, %v11328_v48 }
 0x5a9   :  { %5577 = vst.msk [vmem:[%s11756_s6 + $0x78] sm:$0xf] %vm5546_vm7, %v6046_v53  ;;  %5578 = vst.msk [vmem:[%s11756_s6 + $0x7c] sm:$0xf] %vm5546_vm7, %v6047_v28  ;;  %v6071_v59 = vpack.c.bf16 %v11332_v1, %v11332_v1  ;;  %v6072_v42 = vpack.c.bf16 %v11336_v60, %v11336_v60  ;;  %v6073_v48 = vpack.c.bf16 %v11340_v14, %v11340_v14  ;;  %v12495_v1 = vld [vmem:[#allocation38_spill] sm:$0xff] }
 0x5aa   :  { %5579 = vst.msk [vmem:[%s11756_s6 + $0x80] sm:$0xf] %vm5546_vm7, %v6048_v49  ;;  %5580 = vst.msk [vmem:[%s11756_s6 + $0x84] sm:$0xf] %vm5546_vm7, %v6049_v3  ;;  %v6074_v39 = vpack.c.bf16 %v11344_v19, %v11344_v19  ;;  %v6075_v60 = vpack.c.bf16 %v12495_v1, %v12495_v1  ;;  %v6076_v14 = vpack.c.bf16 %v11352_v43, %v11352_v43 }
 0x5ab   :  { %5581 = vst.msk [vmem:[%s11756_s6 + $0x88] sm:$0xf] %vm5546_vm7, %v6050_v63  ;;  %5582 = vst.msk [vmem:[%s11756_s6 + $0x8c] sm:$0xf] %vm5546_vm7, %v6051_v8  ;;  %v6077_v19 = vpack.c.bf16 %v11356_v51, %v11356_v51  ;;  %v6078_v61 = vpack.c.bf16 %v12496_v6, %v12496_v6  ;;  %v6079_v43 = vpack.c.bf16 %v11364_v57, %v11364_v57 }
 0x5ac   :  { %5583 = vst.msk [vmem:[%s11756_s6 + $0x90] sm:$0xf] %vm5546_vm7, %v6052_v31  ;;  %5584 = vst.msk [vmem:[%s11756_s6 + $0x94] sm:$0xf] %vm5546_vm7, %v6053_v13 }
 0x5ad   :  { %5585 = vst.msk [vmem:[%s11756_s6 + $0x98] sm:$0xf] %vm5546_vm7, %v6054_v55  ;;  %5586 = vst.msk [vmem:[%s11756_s6 + $0x9c] sm:$0xf] %vm5546_vm7, %v6055_v9 }
 0x5ae   :  { %5587 = vst.msk [vmem:[%s11756_s6 + $0xa0] sm:$0xf] %vm5546_vm7, %v6056_v58  ;;  %5588 = vst.msk [vmem:[%s11756_s6 + $0xa4] sm:$0xf] %vm5546_vm7, %v6057_v62 }
 0x5af   :  { %5589 = vst.msk [vmem:[%s11756_s6 + $0xa8] sm:$0xf] %vm5546_vm7, %v6058_v24  ;;  %5590 = vst.msk [vmem:[%s11756_s6 + $0xac] sm:$0xf] %vm5546_vm7, %v6059_v20 }
 0x5b0   :  { %5591 = vst.msk [vmem:[%s11756_s6 + $0xb0] sm:$0xf] %vm5546_vm7, %v6060_v52  ;;  %5592 = vst.msk [vmem:[%s11756_s6 + $0xb4] sm:$0xf] %vm5546_vm7, %v6061_v12 }
 0x5b1   :  { %5593 = vst.msk [vmem:[%s11756_s6 + $0xb8] sm:$0xf] %vm5546_vm7, %v6062_v25  ;;  %5594 = vst.msk [vmem:[%s11756_s6 + $0xbc] sm:$0xf] %vm5546_vm7, %v6063_v15 }
 0x5b2   :  { %5595 = vst.msk [vmem:[%s11756_s6 + $0xc0] sm:$0xf] %vm5546_vm7, %v6064_v30  ;;  %5596 = vst.msk [vmem:[%s11756_s6 + $0xc4] sm:$0xf] %vm5546_vm7, %v6065_v17 }
 0x5b3   :  { %5597 = vst.msk [vmem:[%s11756_s6 + $0xc8] sm:$0xf] %vm5546_vm7, %v6066_v0  ;;  %5598 = vst.msk [vmem:[%s11756_s6 + $0xcc] sm:$0xf] %vm5546_vm7, %v6067_v41 }
 0x5b4   :  { %5599 = vst.msk [vmem:[%s11756_s6 + $0xd0] sm:$0xf] %vm5546_vm7, %v6068_v11  ;;  %5600 = vst.msk [vmem:[%s11756_s6 + $0xd4] sm:$0xf] %vm5546_vm7, %v6069_v27 }
 0x5b5   :  { %5601 = vst.msk [vmem:[%s11756_s6 + $0xd8] sm:$0xf] %vm5546_vm7, %v6070_v18  ;;  %5602 = vst.msk [vmem:[%s11756_s6 + $0xdc] sm:$0xf] %vm5546_vm7, %v6071_v59 }
 0x5b6   :  { %5603 = vst.msk [vmem:[%s11756_s6 + $0xe0] sm:$0xf] %vm5546_vm7, %v6072_v42  ;;  %5604 = vst.msk [vmem:[%s11756_s6 + $0xe4] sm:$0xf] %vm5546_vm7, %v6073_v48 }
 0x5b7   :  { %5605 = vst.msk [vmem:[%s11756_s6 + $0xe8] sm:$0xf] %vm5546_vm7, %v6074_v39  ;;  %5606 = vst.msk [vmem:[%s11756_s6 + $0xec] sm:$0xf] %vm5546_vm7, %v6075_v60 }
 0x5b8   :  { %5607 = vst.msk [vmem:[%s11756_s6 + $0xf0] sm:$0xf] %vm5546_vm7, %v6076_v14  ;;  %5608 = vst.msk [vmem:[%s11756_s6 + $0xf4] sm:$0xf] %vm5546_vm7, %v6077_v19 }
 0x5b9   :  { %5609 = vst.msk [vmem:[%s11756_s6 + $0xf8] sm:$0xf] %vm5546_vm7, %v6078_v61  ;;  %5610 = vst.msk [vmem:[%s11756_s6 + $0xfc] sm:$0xf] %vm5546_vm7, %v6079_v43 }

</bundles_post_ra>
